<compile_context>
chip_gen: v7x
topology: tpu7x:2x2x1
jax: 0.10.0
libtpu: 0.0.40
codegen_flags: <defaults>
</compile_context>

<pallas_src>
import functools

import jax
import jax.numpy as jnp
from jax.experimental import pallas as pl
from jax.experimental.pallas import tpu as pltpu

NC = 3
NDF = 64
BN_EPS = 1e-5
LEAKY_SLOPE = 0.2

# Conservative scoped-VMEM limit: leaves headroom on v7x (64 MiB/TC) and is at
# or below the defaults on v5e/v6e.  Actual per-call usage is ~10 MiB.
_VMEM_LIMIT = 32 * 1024 * 1024


def _round_up(x, m):
    return (x + m - 1) // m * m


def _pick_tm(m):
    """M-tile: 512 rows when there is enough work, else one 8-aligned tile."""
    return 512 if m >= 512 else _round_up(max(m, 8), 8)


def _pick_tk(k):
    """K-tile: full K up to 2048, else 2048-wide reduction steps."""
    return k if k <= 2048 else 2048


def _pad2d(a, rows, cols):
    r, c = a.shape
    if r == rows and c == cols:
        return a
    return jnp.pad(a, ((0, rows - r), (0, cols - c)))


# ---------------------------------------------------------------------------
# Pallas kernels
# ---------------------------------------------------------------------------
def _mm_act_kernel(a_ref, b_ref, o_ref, acc_ref, *, act):
    """Tiled matmul with f32 accumulator; optional LeakyReLU fused at last K step."""
    k = pl.program_id(1)

    @pl.when(k == 0)
    def _():
        acc_ref[...] = jnp.zeros_like(acc_ref)

    acc_ref[...] += jnp.dot(a_ref[...], b_ref[...],
                            preferred_element_type=jnp.float32)

    @pl.when(k == pl.num_programs(1) - 1)
    def _():
        acc = acc_ref[...]
        if act == "leaky":
            acc = jnp.maximum(acc, LEAKY_SLOPE * acc)
        o_ref[...] = acc.astype(o_ref.dtype)


def matmul_act(a, b, *, act="none", out_dtype=jnp.bfloat16):
    """y = act(a @ b). bf16 operands, f32 accumulation, tiled over (M, K)."""
    m, k = a.shape
    k2, n = b.shape
    assert k == k2
    tm, tk = _pick_tm(m), _pick_tk(k)
    m_pad, k_pad = _round_up(m, tm), _round_up(k, tk)
    a = _pad2d(a.astype(jnp.bfloat16), m_pad, k_pad)
    b = _pad2d(b.astype(jnp.bfloat16), k_pad, n)
    out = pl.pallas_call(
        functools.partial(_mm_act_kernel, act=act),
        out_shape=jax.ShapeDtypeStruct((m_pad, n), out_dtype),
        grid=(m_pad // tm, k_pad // tk),
        in_specs=[
            pl.BlockSpec((tm, tk), lambda i, kk: (i, kk)),
            pl.BlockSpec((tk, n), lambda i, kk: (kk, 0)),
        ],
        out_specs=pl.BlockSpec((tm, n), lambda i, kk: (i, 0)),
        scratch_shapes=[pltpu.VMEM((tm, n), jnp.float32)],
        compiler_params=pltpu.CompilerParams(
            dimension_semantics=("parallel", "arbitrary"),
            vmem_limit_bytes=_VMEM_LIMIT),
    )(a, b)
    return out[:m]


def _mm_bn_stats_kernel(a_ref, b_ref, y_ref, stats_ref, acc_ref):
    """Tiled matmul; at the last K step also emits per-channel sum / sum-of-squares."""
    k = pl.program_id(1)

    @pl.when(k == 0)
    def _():
        acc_ref[...] = jnp.zeros_like(acc_ref)

    acc_ref[...] += jnp.dot(a_ref[...], b_ref[...],
                            preferred_element_type=jnp.float32)

    @pl.when(k == pl.num_programs(1) - 1)
    def _():
        acc = acc_ref[...]
        y_ref[...] = acc.astype(y_ref.dtype)
        col_sum = jnp.sum(acc, axis=0, keepdims=True)        # (1, N)
        col_sq = jnp.sum(acc * acc, axis=0, keepdims=True)   # (1, N)
        stats_ref[...] = jnp.concatenate([col_sum, col_sq], axis=0)[None]


def matmul_bn_stats(a, b):
    """Returns (y = a @ b in f32, per-M-tile BN partial stats (m_tiles, 2, N))."""
    m, k = a.shape
    k2, n = b.shape
    assert k == k2
    tm, tk = _pick_tm(m), _pick_tk(k)
    m_pad, k_pad = _round_up(m, tm), _round_up(k, tk)
    a = _pad2d(a.astype(jnp.bfloat16), m_pad, k_pad)
    b = _pad2d(b.astype(jnp.bfloat16), k_pad, n)
    m_tiles = m_pad // tm
    y, stats = pl.pallas_call(
        _mm_bn_stats_kernel,
        out_shape=(jax.ShapeDtypeStruct((m_pad, n), jnp.float32),
                   jax.ShapeDtypeStruct((m_tiles, 2, n), jnp.float32)),
        grid=(m_tiles, k_pad // tk),
        in_specs=[
            pl.BlockSpec((tm, tk), lambda i, kk: (i, kk)),
            pl.BlockSpec((tk, n), lambda i, kk: (kk, 0)),
        ],
        out_specs=(pl.BlockSpec((tm, n), lambda i, kk: (i, 0)),
                   pl.BlockSpec((1, 2, n), lambda i, kk: (i, 0, 0))),
        scratch_shapes=[pltpu.VMEM((tm, n), jnp.float32)],
        compiler_params=pltpu.CompilerParams(
            dimension_semantics=("parallel", "arbitrary"),
            vmem_limit_bytes=_VMEM_LIMIT),
    )(a, b)
    return y[:m], stats


def _bn_leaky_kernel(x_ref, scale_ref, shift_ref, o_ref):
    """o = leaky_relu(x * scale + shift), per-channel scale/shift broadcast over rows."""
    y = x_ref[...] * scale_ref[...] + shift_ref[...]
    o_ref[...] = jnp.maximum(y, LEAKY_SLOPE * y).astype(o_ref.dtype)


def bn_leaky(x, scale, shift, out_dtype=jnp.bfloat16):
    m, c = x.shape
    tm = _pick_tm(m)
    m_pad = _round_up(m, tm)
    x = _pad2d(x, m_pad, c)
    out = pl.pallas_call(
        _bn_leaky_kernel,
        out_shape=jax.ShapeDtypeStruct((m_pad, c), out_dtype),
        grid=(m_pad // tm,),
        in_specs=[
            pl.BlockSpec((tm, c), lambda i: (i, 0)),
            pl.BlockSpec((1, c), lambda i: (0, 0)),
            pl.BlockSpec((1, c), lambda i: (0, 0)),
        ],
        out_specs=pl.BlockSpec((tm, c), lambda i: (i, 0)),
        compiler_params=pltpu.CompilerParams(
            dimension_semantics=("parallel",),
            vmem_limit_bytes=_VMEM_LIMIT),
    )(x, scale, shift)
    return out[:m]


def _rowdot_sigmoid_kernel(x_ref, w_ref, o_ref):
    """o = sigmoid(sum(x * w, axis=-1)); VPU multiply + lane reduction, EUP sigmoid."""
    x = x_ref[...].astype(jnp.float32)
    w = w_ref[...].astype(jnp.float32)
    s = jnp.sum(x * w, axis=-1, keepdims=True)
    o_ref[...] = jax.nn.sigmoid(s)


def rowdot_sigmoid(x, w):
    """Final Cout=1 conv: stays off the MXU (1-wide output would waste 255/256 columns)."""
    m, k = x.shape
    assert w.shape == (1, k)
    tm = _pick_tm(m)
    m_pad = _round_up(m, tm)
    x = _pad2d(x.astype(jnp.bfloat16), m_pad, k)
    out = pl.pallas_call(
        _rowdot_sigmoid_kernel,
        out_shape=jax.ShapeDtypeStruct((m_pad, 1), jnp.float32),
        grid=(m_pad // tm,),
        in_specs=[
            pl.BlockSpec((tm, k), lambda i: (i, 0)),
            pl.BlockSpec((1, k), lambda i: (0, 0)),
        ],
        out_specs=pl.BlockSpec((tm, 1), lambda i: (i, 0)),
        compiler_params=pltpu.CompilerParams(
            dimension_semantics=("parallel",),
            vmem_limit_bytes=_VMEM_LIMIT),
    )(x, w.astype(jnp.bfloat16))
    return out[:m]


# ---------------------------------------------------------------------------
# Glue: im2col, weight layout, parameter init
# ---------------------------------------------------------------------------
def im2col(x_nhwc, kh, kw, stride, pad):
    """x: (N,H,W,C) -> cols (N*OH*OW, KH*KW*C), plus (OH, OW). Kept in bf16."""
    x = jnp.pad(x_nhwc, ((0, 0), (pad, pad), (pad, pad), (0, 0)))
    n, h, w, c = x.shape
    oh = (h - kh) // stride + 1
    ow = (w - kw) // stride + 1
    patches = []
    for i in range(kh):
        for j in range(kw):
            patches.append(x[:, i:i + stride * oh:stride, j:j + stride * ow:stride, :])
    cols = jnp.stack(patches, axis=3)                # (N, OH, OW, KH*KW, C)
    return cols.reshape(n * oh * ow, kh * kw * c), oh, ow


def conv_w_to_matmul(w_oihw):
    """PyTorch (Cout, Cin, KH, KW) -> (KH*KW*Cin, Cout), matching im2col order."""
    cout = w_oihw.shape[0]
    return jnp.transpose(w_oihw, (2, 3, 1, 0)).reshape(-1, cout)


def init_params(key):
    """Deterministic DCGAN-style init: conv ~ N(0, 0.02); BN gamma=1, beta=0."""
    ks = jax.random.split(key, 5)

    def conv_w(k, cout, cin):
        return 0.02 * jax.random.normal(k, (cout, cin, 4, 4), dtype=jnp.float32)

    params = {
        "w1": conv_w_to_matmul(conv_w(ks[0], NDF, NC)).astype(jnp.bfloat16),
        "w2": conv_w_to_matmul(conv_w(ks[1], NDF * 2, NDF)).astype(jnp.bfloat16),
        "w3": conv_w_to_matmul(conv_w(ks[2], NDF * 4, NDF * 2)).astype(jnp.bfloat16),
        "w4": conv_w_to_matmul(conv_w(ks[3], NDF * 8, NDF * 4)).astype(jnp.bfloat16),
        # final Conv(512->1, k4 s1 p0) kept as a (1, 8192) row vector for the VPU kernel
        "w5": conv_w_to_matmul(conv_w(ks[4], 1, NDF * 8)).T.astype(jnp.bfloat16),
        "g2": jnp.ones((NDF * 2,), jnp.float32), "b2": jnp.zeros((NDF * 2,), jnp.float32),
        "g3": jnp.ones((NDF * 4,), jnp.float32), "b3": jnp.zeros((NDF * 4,), jnp.float32),
        "g4": jnp.ones((NDF * 8,), jnp.float32), "b4": jnp.zeros((NDF * 8,), jnp.float32),
    }
    return params


# ---------------------------------------------------------------------------
# Forward pass of D
# ---------------------------------------------------------------------------
@jax.jit
def discriminator_forward(x_nchw, params):
    x = jnp.transpose(x_nchw, (0, 2, 3, 1)).astype(jnp.bfloat16)  # NCHW -> NHWC
    n = x.shape[0]

    # layer 1: Conv(3 -> 64, k4 s2 p1) + LeakyReLU(0.2) fused in the matmul epilogue
    cols, oh, ow = im2col(x, 4, 4, 2, 1)
    y = matmul_act(cols, params["w1"], act="leaky", out_dtype=jnp.bfloat16)
    x = y.reshape(n, oh, ow, NDF)

    # layers 2-4: Conv + BatchNorm (training-mode batch stats) + LeakyReLU(0.2)
    for wname, gname, bname, cout in (
        ("w2", "g2", "b2", NDF * 2),
        ("w3", "g3", "b3", NDF * 4),
        ("w4", "g4", "b4", NDF * 8),
    ):
        cols, oh, ow = im2col(x, 4, 4, 2, 1)
        # Conv matmul with fused per-channel sum / sum-of-squares partials
        y, stats = matmul_bn_stats(cols, params[wname])          # y: (M, Cout) f32
        m_true = n * oh * ow
        col_sum = jnp.sum(stats[:, 0, :], axis=0)
        col_sq = jnp.sum(stats[:, 1, :], axis=0)
        mean = col_sum / m_true
        var = jnp.maximum(col_sq / m_true - mean * mean, 0.0)    # biased var (PyTorch norm)
        scale = params[gname] / jnp.sqrt(var + BN_EPS)
        shift = params[bname] - mean * scale
        y = bn_leaky(y, scale.reshape(1, -1), shift.reshape(1, -1))   # bf16 out
        x = y.reshape(n, oh, ow, cout)

    # layer 5: Conv(512 -> 1, k4 s1 p0) + Sigmoid == per-image dot with a (1, 8192) vector
    cols5 = x.reshape(n, -1)             # (kh, kw, cin) order matches conv_w_to_matmul
    y = rowdot_sigmoid(cols5, params["w5"])                       # (N, 1)
    return y.reshape(-1)                                          # (N,)


# ---------------------------------------------------------------------------
if __name__ == "__main__":
    key = jax.random.PRNGKey(0)
    k_param, k_input = jax.random.split(key)

    params = init_params(k_param)
    # DCGAN discriminator expects 64x64 RGB images; batch=2 keeps it small.
    x = jax.random.normal(k_input, (2, NC, 64, 64), dtype=jnp.float32)

    out = discriminator_forward(x, params)
    out = jax.block_until_ready(out)

    assert out.shape == (2,), out.shape
    assert bool(jnp.all(jnp.isfinite(out)))
    assert bool(jnp.all((out >= 0.0) & (out <= 1.0)))
    print("KERNEL_OK")
</pallas_src>

<mosaic_0001>
module attributes {stable_mosaic.version = 11 : i64} {
  func.func @_mm_act_kernel(%arg0: i32, %arg1: i32, %arg2: memref<512x48xbf16, #tpu.memory_space<vmem>>, %arg3: memref<48x64xbf16, #tpu.memory_space<vmem>>, %arg4: memref<512x64xbf16, #tpu.memory_space<vmem>>, %arg5: memref<512x64xf32, #tpu.memory_space<vmem>>) attributes {dimension_semantics = [#tpu.dimension_semantics<parallel>, #tpu.dimension_semantics<arbitrary>], iteration_bounds = array<i64: 4, 1>, scalar_prefetch = 0 : i64, scratch_operands = 1 : i64, tpu.core_type = #tpu.core_type<tc>, window_params = [{transform_indices = @transform_0, window_bounds = array<i64: 512, 48>}, {transform_indices = @transform_1, window_bounds = array<i64: 48, 64>}, {transform_indices = @transform_2, window_bounds = array<i64: 512, 64>}]} {
    %c0_i32 = arith.constant 0 : i32
    %0 = arith.cmpi eq, %arg1, %c0_i32 : i32
    %1 = arith.extui %0 : i1 to i32
    %c0_i32_0 = arith.constant 0 : i32
    %2 = arith.cmpi ne, %1, %c0_i32_0 : i32
    scf.if %2 {
      %cst_10 = arith.constant 0.000000e+00 : f32
      %12 = vector.broadcast %cst_10 : f32 to vector<512x64xf32>
      %c0_11 = arith.constant 0 : index
      %c0_12 = arith.constant 0 : index
      %13 = vector.load %arg5[%c0_11, %c0_12] : memref<512x64xf32, #tpu.memory_space<vmem>>, vector<512x64xf32>
      tpu.vector_store %arg5[%c0_11, %c0_12], %12 {strides = array<i32>} : memref<512x64xf32, #tpu.memory_space<vmem>>, vector<512x64xf32>,
    } else {
    }
    %c0 = arith.constant 0 : index
    %c0_1 = arith.constant 0 : index
    %3 = vector.load %arg5[%c0, %c0_1] : memref<512x64xf32, #tpu.memory_space<vmem>>, vector<512x64xf32>
    %c0_2 = arith.constant 0 : index
    %c0_3 = arith.constant 0 : index
    %4 = vector.load %arg2[%c0_2, %c0_3] : memref<512x48xbf16, #tpu.memory_space<vmem>>, vector<512x48xbf16>
    %c0_4 = arith.constant 0 : index
    %c0_5 = arith.constant 0 : index
    %5 = vector.load %arg3[%c0_4, %c0_5] : memref<48x64xbf16, #tpu.memory_space<vmem>>, vector<48x64xbf16>
    %cst = arith.constant dense<0.000000e+00> : vector<512x64xf32>
    %6 = tpu.matmul %4, %5, %cst {dimension_numbers = #tpu.dot_dimension_numbers<[1], [0], [0], [1], [0, 0, 1, 1], [], []>} : vector<512x48xbf16>, vector<48x64xbf16>, vector<512x64xf32> -> vector<512x64xf32>
    %7 = arith.addf %3, %6 : vector<512x64xf32>
    %c0_6 = arith.constant 0 : index
    %c0_7 = arith.constant 0 : index
    %8 = vector.load %arg5[%c0_6, %c0_7] : memref<512x64xf32, #tpu.memory_space<vmem>>, vector<512x64xf32>
    tpu.vector_store %arg5[%c0_6, %c0_7], %7 {strides = array<i32>} : memref<512x64xf32, #tpu.memory_space<vmem>>, vector<512x64xf32>,
    %c0_i32_8 = arith.constant 0 : i32
    %9 = arith.cmpi eq, %arg1, %c0_i32_8 : i32
    %10 = arith.extui %9 : i1 to i32
    %c0_i32_9 = arith.constant 0 : i32
    %11 = arith.cmpi ne, %10, %c0_i32_9 : i32
    scf.if %11 {
      %c0_10 = arith.constant 0 : index
      %c0_11 = arith.constant 0 : index
      %12 = vector.load %arg5[%c0_10, %c0_11] : memref<512x64xf32, #tpu.memory_space<vmem>>, vector<512x64xf32>
      %cst_12 = arith.constant 2.000000e-01 : f32
      %13 = vector.broadcast %cst_12 : f32 to vector<512x64xf32>
      %14 = arith.mulf %13, %12 : vector<512x64xf32>
      %15 = arith.maximumf %12, %14 : vector<512x64xf32>
      %16 = arith.truncf %15 : vector<512x64xf32> to vector<512x64xbf16>
      %c0_13 = arith.constant 0 : index
      %c0_14 = arith.constant 0 : index
      %17 = vector.load %arg4[%c0_13, %c0_14] : memref<512x64xbf16, #tpu.memory_space<vmem>>, vector<512x64xbf16>
      tpu.vector_store %arg4[%c0_13, %c0_14], %16 {strides = array<i32>} : memref<512x64xbf16, #tpu.memory_space<vmem>>, vector<512x64xbf16>,
    } else {
    }
    return
  }
  func.func @transform_0(%arg0: i32, %arg1: i32) -> (i32, i32) {
    %c0_i32 = arith.constant 0 : i32
    return %arg0, %arg1 : i32, i32
  }
  func.func @transform_1(%arg0: i32, %arg1: i32) -> (i32, i32) {
    %c0_i32 = arith.constant 0 : i32
    %c0_i32_0 = arith.constant 0 : i32
    return %arg1, %c0_i32 : i32, i32
  }
  func.func @transform_2(%arg0: i32, %arg1: i32) -> (i32, i32) {
    %c0_i32 = arith.constant 0 : i32
    %c0_i32_0 = arith.constant 0 : i32
    return %arg0, %c0_i32 : i32, i32
  }
}

module attributes {stable_mosaic.version = 11 : i64} {
  func.func @_mm_bn_stats_kernel(%arg0: i32, %arg1: i32, %arg2: memref<512x1024xbf16, #tpu.memory_space<vmem>>, %arg3: memref<1024x128xbf16, #tpu.memory_space<vmem>>, %arg4: memref<512x128xf32, #tpu.memory_space<vmem>>, %arg5: memref<1x2x128xf32, #tpu.memory_space<vmem>>, %arg6: memref<512x128xf32, #tpu.memory_space<vmem>>) attributes {dimension_semantics = [#tpu.dimension_semantics<parallel>, #tpu.dimension_semantics<arbitrary>], iteration_bounds = array<i64: 1, 1>, scalar_prefetch = 0 : i64, scratch_operands = 1 : i64, tpu.core_type = #tpu.core_type<tc>, window_params = [{transform_indices = @transform_0, window_bounds = array<i64: 512, 1024>}, {transform_indices = @transform_1, window_bounds = array<i64: 1024, 128>}, {transform_indices = @transform_2, window_bounds = array<i64: 512, 128>}, {transform_indices = @transform_3, window_bounds = array<i64: 1, 2, 128>}]} {
    %c0_i32 = arith.constant 0 : i32
    %0 = arith.cmpi eq, %arg1, %c0_i32 : i32
    %1 = arith.extui %0 : i1 to i32
    %c0_i32_0 = arith.constant 0 : i32
    %2 = arith.cmpi ne, %1, %c0_i32_0 : i32
    scf.if %2 {
      %cst_10 = arith.constant 0.000000e+00 : f32
      %12 = vector.broadcast %cst_10 : f32 to vector<512x128xf32>
      %c0_11 = arith.constant 0 : index
      %c0_12 = arith.constant 0 : index
      %13 = vector.load %arg6[%c0_11, %c0_12] : memref<512x128xf32, #tpu.memory_space<vmem>>, vector<512x128xf32>
      tpu.vector_store %arg6[%c0_11, %c0_12], %12 {strides = array<i32>} : memref<512x128xf32, #tpu.memory_space<vmem>>, vector<512x128xf32>,
    } else {
    }
    %c0 = arith.constant 0 : index
    %c0_1 = arith.constant 0 : index
    %3 = vector.load %arg6[%c0, %c0_1] : memref<512x128xf32, #tpu.memory_space<vmem>>, vector<512x128xf32>
    %c0_2 = arith.constant 0 : index
    %c0_3 = arith.constant 0 : index
    %4 = vector.load %arg2[%c0_2, %c0_3] : memref<512x1024xbf16, #tpu.memory_space<vmem>>, vector<512x1024xbf16>
    %c0_4 = arith.constant 0 : index
    %c0_5 = arith.constant 0 : index
    %5 = vector.load %arg3[%c0_4, %c0_5] : memref<1024x128xbf16, #tpu.memory_space<vmem>>, vector<1024x128xbf16>
    %cst = arith.constant dense<0.000000e+00> : vector<512x128xf32>
    %6 = tpu.matmul %4, %5, %cst {dimension_numbers = #tpu.dot_dimension_numbers<[1], [0], [0], [1], [0, 0, 1, 1], [], []>} : vector<512x1024xbf16>, vector<1024x128xbf16>, vector<512x128xf32> -> vector<512x128xf32>
    %7 = arith.addf %3, %6 : vector<512x128xf32>
    %c0_6 = arith.constant 0 : index
    %c0_7 = arith.constant 0 : index
    %8 = vector.load %arg6[%c0_6, %c0_7] : memref<512x128xf32, #tpu.memory_space<vmem>>, vector<512x128xf32>
    tpu.vector_store %arg6[%c0_6, %c0_7], %7 {strides = array<i32>} : memref<512x128xf32, #tpu.memory_space<vmem>>, vector<512x128xf32>,
    %c0_i32_8 = arith.constant 0 : i32
    %9 = arith.cmpi eq, %arg1, %c0_i32_8 : i32
    %10 = arith.extui %9 : i1 to i32
    %c0_i32_9 = arith.constant 0 : i32
    %11 = arith.cmpi ne, %10, %c0_i32_9 : i32
    scf.if %11 {
      %c0_10 = arith.constant 0 : index
      %c0_11 = arith.constant 0 : index
      %12 = vector.load %arg6[%c0_10, %c0_11] : memref<512x128xf32, #tpu.memory_space<vmem>>, vector<512x128xf32>
      %c0_12 = arith.constant 0 : index
      %c0_13 = arith.constant 0 : index
      %13 = vector.load %arg4[%c0_12, %c0_13] : memref<512x128xf32, #tpu.memory_space<vmem>>, vector<512x128xf32>
      tpu.vector_store %arg4[%c0_12, %c0_13], %12 {strides = array<i32>} : memref<512x128xf32, #tpu.memory_space<vmem>>, vector<512x128xf32>,
      %cst_14 = arith.constant dense<0.000000e+00> : vector<128xf32>
      %14 = vector.multi_reduction <add>, %12, %cst_14 [0] : vector<512x128xf32> to vector<128xf32>
      %15 = vector.shape_cast %14 : vector<128xf32> to vector<1x128xf32>
      %16 = arith.mulf %12, %12 : vector<512x128xf32>
      %cst_15 = arith.constant dense<0.000000e+00> : vector<128xf32>
      %17 = vector.multi_reduction <add>, %16, %cst_15 [0] : vector<512x128xf32> to vector<128xf32>
      %18 = vector.shape_cast %17 : vector<128xf32> to vector<1x128xf32>
      %19 = tpu.concatenate %15, %18 in 0 : vector<1x128xf32>, vector<1x128xf32> -> vector<2x128xf32>
      %20 = vector.shape_cast %19 : vector<2x128xf32> to vector<1x2x128xf32>
      %c0_16 = arith.constant 0 : index
      %c0_17 = arith.constant 0 : index
      %c0_18 = arith.constant 0 : index
      %21 = vector.load %arg5[%c0_16, %c0_17, %c0_18] : memref<1x2x128xf32, #tpu.memory_space<vmem>>, vector<1x2x128xf32>
      tpu.vector_store %arg5[%c0_16, %c0_17, %c0_18], %20 {strides = array<i32>} : memref<1x2x128xf32, #tpu.memory_space<vmem>>, vector<1x2x128xf32>,
    } else {
    }
    return
  }
  func.func @transform_0(%arg0: i32, %arg1: i32) -> (i32, i32) {
    %c0_i32 = arith.constant 0 : i32
    return %arg0, %arg1 : i32, i32
  }
  func.func @transform_1(%arg0: i32, %arg1: i32) -> (i32, i32) {
    %c0_i32 = arith.constant 0 : i32
    %c0_i32_0 = arith.constant 0 : i32
    return %arg1, %c0_i32 : i32, i32
  }
  func.func @transform_2(%arg0: i32, %arg1: i32) -> (i32, i32) {
    %c0_i32 = arith.constant 0 : i32
    %c0_i32_0 = arith.constant 0 : i32
    return %arg0, %c0_i32 : i32, i32
  }
  func.func @transform_3(%arg0: i32, %arg1: i32) -> (i32, i32, i32) {
    %c0_i32 = arith.constant 0 : i32
    %c0_i32_0 = arith.constant 0 : i32
    %c0_i32_1 = arith.constant 0 : i32
    return %arg0, %c0_i32, %c0_i32_0 : i32, i32, i32
  }
}

module attributes {stable_mosaic.version = 11 : i64} {
  func.func @_bn_leaky_kernel(%arg0: i32, %arg1: memref<512x128xf32, #tpu.memory_space<vmem>>, %arg2: memref<1x128xf32, #tpu.memory_space<vmem>>, %arg3: memref<1x128xf32, #tpu.memory_space<vmem>>, %arg4: memref<512x128xbf16, #tpu.memory_space<vmem>>) attributes {dimension_semantics = [#tpu.dimension_semantics<parallel>], iteration_bounds = array<i64: 1>, scalar_prefetch = 0 : i64, scratch_operands = 0 : i64, tpu.core_type = #tpu.core_type<tc>, window_params = [{transform_indices = @transform_0, window_bounds = array<i64: 512, 128>}, {pipeline_mode = #tpu.pipeline_mode<synchronous>, transform_indices = @transform_1, window_bounds = array<i64: 1, 128>}, {pipeline_mode = #tpu.pipeline_mode<synchronous>, transform_indices = @transform_2, window_bounds = array<i64: 1, 128>}, {transform_indices = @transform_3, window_bounds = array<i64: 512, 128>}]} {
    %c0 = arith.constant 0 : index
    %c0_0 = arith.constant 0 : index
    %0 = vector.load %arg1[%c0, %c0_0] : memref<512x128xf32, #tpu.memory_space<vmem>>, vector<512x128xf32>
    %c0_1 = arith.constant 0 : index
    %c0_2 = arith.constant 0 : index
    %1 = vector.load %arg2[%c0_1, %c0_2] : memref<1x128xf32, #tpu.memory_space<vmem>>, vector<1x128xf32>
    %2 = vector.broadcast %1 : vector<1x128xf32> to vector<512x128xf32>
    %3 = arith.mulf %0, %2 : vector<512x128xf32>
    %c0_3 = arith.constant 0 : index
    %c0_4 = arith.constant 0 : index
    %4 = vector.load %arg3[%c0_3, %c0_4] : memref<1x128xf32, #tpu.memory_space<vmem>>, vector<1x128xf32>
    %5 = vector.broadcast %4 : vector<1x128xf32> to vector<512x128xf32>
    %6 = arith.addf %3, %5 : vector<512x128xf32>
    %cst = arith.constant 2.000000e-01 : f32
    %7 = vector.broadcast %cst : f32 to vector<512x128xf32>
    %8 = arith.mulf %7, %6 : vector<512x128xf32>
    %9 = arith.maximumf %6, %8 : vector<512x128xf32>
    %10 = arith.truncf %9 : vector<512x128xf32> to vector<512x128xbf16>
    %c0_5 = arith.constant 0 : index
    %c0_6 = arith.constant 0 : index
    %11 = vector.load %arg4[%c0_5, %c0_6] : memref<512x128xbf16, #tpu.memory_space<vmem>>, vector<512x128xbf16>
    tpu.vector_store %arg4[%c0_5, %c0_6], %10 {strides = array<i32>} : memref<512x128xbf16, #tpu.memory_space<vmem>>, vector<512x128xbf16>,
    return
  }
  func.func @transform_0(%arg0: i32) -> (i32, i32) {
    %c0_i32 = arith.constant 0 : i32
    %c0_i32_0 = arith.constant 0 : i32
    return %arg0, %c0_i32 : i32, i32
  }
  func.func @transform_1(%arg0: i32) -> (i32, i32) {
    %c0_i32 = arith.constant 0 : i32
    %c0_i32_0 = arith.constant 0 : i32
    %c0_i32_1 = arith.constant 0 : i32
    return %c0_i32, %c0_i32_0 : i32, i32
  }
  func.func @transform_2(%arg0: i32) -> (i32, i32) {
    %c0_i32 = arith.constant 0 : i32
    %c0_i32_0 = arith.constant 0 : i32
    %c0_i32_1 = arith.constant 0 : i32
    return %c0_i32, %c0_i32_0 : i32, i32
  }
  func.func @transform_3(%arg0: i32) -> (i32, i32) {
    %c0_i32 = arith.constant 0 : i32
    %c0_i32_0 = arith.constant 0 : i32
    return %arg0, %c0_i32 : i32, i32
  }
}

module attributes {stable_mosaic.version = 11 : i64} {
  func.func @_mm_bn_stats_kernel(%arg0: i32, %arg1: i32, %arg2: memref<128x2048xbf16, #tpu.memory_space<vmem>>, %arg3: memref<2048x256xbf16, #tpu.memory_space<vmem>>, %arg4: memref<128x256xf32, #tpu.memory_space<vmem>>, %arg5: memref<1x2x256xf32, #tpu.memory_space<vmem>>, %arg6: memref<128x256xf32, #tpu.memory_space<vmem>>) attributes {dimension_semantics = [#tpu.dimension_semantics<parallel>, #tpu.dimension_semantics<arbitrary>], iteration_bounds = array<i64: 1, 1>, scalar_prefetch = 0 : i64, scratch_operands = 1 : i64, tpu.core_type = #tpu.core_type<tc>, window_params = [{transform_indices = @transform_0, window_bounds = array<i64: 128, 2048>}, {transform_indices = @transform_1, window_bounds = array<i64: 2048, 256>}, {transform_indices = @transform_2, window_bounds = array<i64: 128, 256>}, {transform_indices = @transform_3, window_bounds = array<i64: 1, 2, 256>}]} {
    %c0_i32 = arith.constant 0 : i32
    %0 = arith.cmpi eq, %arg1, %c0_i32 : i32
    %1 = arith.extui %0 : i1 to i32
    %c0_i32_0 = arith.constant 0 : i32
    %2 = arith.cmpi ne, %1, %c0_i32_0 : i32
    scf.if %2 {
      %cst_10 = arith.constant 0.000000e+00 : f32
      %12 = vector.broadcast %cst_10 : f32 to vector<128x256xf32>
      %c0_11 = arith.constant 0 : index
      %c0_12 = arith.constant 0 : index
      %13 = vector.load %arg6[%c0_11, %c0_12] : memref<128x256xf32, #tpu.memory_space<vmem>>, vector<128x256xf32>
      tpu.vector_store %arg6[%c0_11, %c0_12], %12 {strides = array<i32>} : memref<128x256xf32, #tpu.memory_space<vmem>>, vector<128x256xf32>,
    } else {
    }
    %c0 = arith.constant 0 : index
    %c0_1 = arith.constant 0 : index
    %3 = vector.load %arg6[%c0, %c0_1] : memref<128x256xf32, #tpu.memory_space<vmem>>, vector<128x256xf32>
    %c0_2 = arith.constant 0 : index
    %c0_3 = arith.constant 0 : index
    %4 = vector.load %arg2[%c0_2, %c0_3] : memref<128x2048xbf16, #tpu.memory_space<vmem>>, vector<128x2048xbf16>
    %c0_4 = arith.constant 0 : index
    %c0_5 = arith.constant 0 : index
    %5 = vector.load %arg3[%c0_4, %c0_5] : memref<2048x256xbf16, #tpu.memory_space<vmem>>, vector<2048x256xbf16>
    %cst = arith.constant dense<0.000000e+00> : vector<128x256xf32>
    %6 = tpu.matmul %4, %5, %cst {dimension_numbers = #tpu.dot_dimension_numbers<[1], [0], [0], [1], [0, 0, 1, 1], [], []>} : vector<128x2048xbf16>, vector<2048x256xbf16>, vector<128x256xf32> -> vector<128x256xf32>
    %7 = arith.addf %3, %6 : vector<128x256xf32>
    %c0_6 = arith.constant 0 : index
    %c0_7 = arith.constant 0 : index
    %8 = vector.load %arg6[%c0_6, %c0_7] : memref<128x256xf32, #tpu.memory_space<vmem>>, vector<128x256xf32>
    tpu.vector_store %arg6[%c0_6, %c0_7], %7 {strides = array<i32>} : memref<128x256xf32, #tpu.memory_space<vmem>>, vector<128x256xf32>,
    %c0_i32_8 = arith.constant 0 : i32
    %9 = arith.cmpi eq, %arg1, %c0_i32_8 : i32
    %10 = arith.extui %9 : i1 to i32
    %c0_i32_9 = arith.constant 0 : i32
    %11 = arith.cmpi ne, %10, %c0_i32_9 : i32
    scf.if %11 {
      %c0_10 = arith.constant 0 : index
      %c0_11 = arith.constant 0 : index
      %12 = vector.load %arg6[%c0_10, %c0_11] : memref<128x256xf32, #tpu.memory_space<vmem>>, vector<128x256xf32>
      %c0_12 = arith.constant 0 : index
      %c0_13 = arith.constant 0 : index
      %13 = vector.load %arg4[%c0_12, %c0_13] : memref<128x256xf32, #tpu.memory_space<vmem>>, vector<128x256xf32>
      tpu.vector_store %arg4[%c0_12, %c0_13], %12 {strides = array<i32>} : memref<128x256xf32, #tpu.memory_space<vmem>>, vector<128x256xf32>,
      %cst_14 = arith.constant dense<0.000000e+00> : vector<256xf32>
      %14 = vector.multi_reduction <add>, %12, %cst_14 [0] : vector<128x256xf32> to vector<256xf32>
      %15 = vector.shape_cast %14 : vector<256xf32> to vector<1x256xf32>
      %16 = arith.mulf %12, %12 : vector<128x256xf32>
      %cst_15 = arith.constant dense<0.000000e+00> : vector<256xf32>
      %17 = vector.multi_reduction <add>, %16, %cst_15 [0] : vector<128x256xf32> to vector<256xf32>
      %18 = vector.shape_cast %17 : vector<256xf32> to vector<1x256xf32>
      %19 = tpu.concatenate %15, %18 in 0 : vector<1x256xf32>, vector<1x256xf32> -> vector<2x256xf32>
      %20 = vector.shape_cast %19 : vector<2x256xf32> to vector<1x2x256xf32>
      %c0_16 = arith.constant 0 : index
      %c0_17 = arith.constant 0 : index
      %c0_18 = arith.constant 0 : index
      %21 = vector.load %arg5[%c0_16, %c0_17, %c0_18] : memref<1x2x256xf32, #tpu.memory_space<vmem>>, vector<1x2x256xf32>
      tpu.vector_store %arg5[%c0_16, %c0_17, %c0_18], %20 {strides = array<i32>} : memref<1x2x256xf32, #tpu.memory_space<vmem>>, vector<1x2x256xf32>,
    } else {
    }
    return
  }
  func.func @transform_0(%arg0: i32, %arg1: i32) -> (i32, i32) {
    %c0_i32 = arith.constant 0 : i32
    return %arg0, %arg1 : i32, i32
  }
  func.func @transform_1(%arg0: i32, %arg1: i32) -> (i32, i32) {
    %c0_i32 = arith.constant 0 : i32
    %c0_i32_0 = arith.constant 0 : i32
    return %arg1, %c0_i32 : i32, i32
  }
  func.func @transform_2(%arg0: i32, %arg1: i32) -> (i32, i32) {
    %c0_i32 = arith.constant 0 : i32
    %c0_i32_0 = arith.constant 0 : i32
    return %arg0, %c0_i32 : i32, i32
  }
  func.func @transform_3(%arg0: i32, %arg1: i32) -> (i32, i32, i32) {
    %c0_i32 = arith.constant 0 : i32
    %c0_i32_0 = arith.constant 0 : i32
    %c0_i32_1 = arith.constant 0 : i32
    return %arg0, %c0_i32, %c0_i32_0 : i32, i32, i32
  }
}

module attributes {stable_mosaic.version = 11 : i64} {
  func.func @_bn_leaky_kernel(%arg0: i32, %arg1: memref<128x256xf32, #tpu.memory_space<vmem>>, %arg2: memref<1x256xf32, #tpu.memory_space<vmem>>, %arg3: memref<1x256xf32, #tpu.memory_space<vmem>>, %arg4: memref<128x256xbf16, #tpu.memory_space<vmem>>) attributes {dimension_semantics = [#tpu.dimension_semantics<parallel>], iteration_bounds = array<i64: 1>, scalar_prefetch = 0 : i64, scratch_operands = 0 : i64, tpu.core_type = #tpu.core_type<tc>, window_params = [{transform_indices = @transform_0, window_bounds = array<i64: 128, 256>}, {pipeline_mode = #tpu.pipeline_mode<synchronous>, transform_indices = @transform_1, window_bounds = array<i64: 1, 256>}, {pipeline_mode = #tpu.pipeline_mode<synchronous>, transform_indices = @transform_2, window_bounds = array<i64: 1, 256>}, {transform_indices = @transform_3, window_bounds = array<i64: 128, 256>}]} {
    %c0 = arith.constant 0 : index
    %c0_0 = arith.constant 0 : index
    %0 = vector.load %arg1[%c0, %c0_0] : memref<128x256xf32, #tpu.memory_space<vmem>>, vector<128x256xf32>
    %c0_1 = arith.constant 0 : index
    %c0_2 = arith.constant 0 : index
    %1 = vector.load %arg2[%c0_1, %c0_2] : memref<1x256xf32, #tpu.memory_space<vmem>>, vector<1x256xf32>
    %2 = vector.broadcast %1 : vector<1x256xf32> to vector<128x256xf32>
    %3 = arith.mulf %0, %2 : vector<128x256xf32>
    %c0_3 = arith.constant 0 : index
    %c0_4 = arith.constant 0 : index
    %4 = vector.load %arg3[%c0_3, %c0_4] : memref<1x256xf32, #tpu.memory_space<vmem>>, vector<1x256xf32>
    %5 = vector.broadcast %4 : vector<1x256xf32> to vector<128x256xf32>
    %6 = arith.addf %3, %5 : vector<128x256xf32>
    %cst = arith.constant 2.000000e-01 : f32
    %7 = vector.broadcast %cst : f32 to vector<128x256xf32>
    %8 = arith.mulf %7, %6 : vector<128x256xf32>
    %9 = arith.maximumf %6, %8 : vector<128x256xf32>
    %10 = arith.truncf %9 : vector<128x256xf32> to vector<128x256xbf16>
    %c0_5 = arith.constant 0 : index
    %c0_6 = arith.constant 0 : index
    %11 = vector.load %arg4[%c0_5, %c0_6] : memref<128x256xbf16, #tpu.memory_space<vmem>>, vector<128x256xbf16>
    tpu.vector_store %arg4[%c0_5, %c0_6], %10 {strides = array<i32>} : memref<128x256xbf16, #tpu.memory_space<vmem>>, vector<128x256xbf16>,
    return
  }
  func.func @transform_0(%arg0: i32) -> (i32, i32) {
    %c0_i32 = arith.constant 0 : i32
    %c0_i32_0 = arith.constant 0 : i32
    return %arg0, %c0_i32 : i32, i32
  }
  func.func @transform_1(%arg0: i32) -> (i32, i32) {
    %c0_i32 = arith.constant 0 : i32
    %c0_i32_0 = arith.constant 0 : i32
    %c0_i32_1 = arith.constant 0 : i32
    return %c0_i32, %c0_i32_0 : i32, i32
  }
  func.func @transform_2(%arg0: i32) -> (i32, i32) {
    %c0_i32 = arith.constant 0 : i32
    %c0_i32_0 = arith.constant 0 : i32
    %c0_i32_1 = arith.constant 0 : i32
    return %c0_i32, %c0_i32_0 : i32, i32
  }
  func.func @transform_3(%arg0: i32) -> (i32, i32) {
    %c0_i32 = arith.constant 0 : i32
    %c0_i32_0 = arith.constant 0 : i32
    return %arg0, %c0_i32 : i32, i32
  }
}

module attributes {stable_mosaic.version = 11 : i64} {
  func.func @_mm_bn_stats_kernel(%arg0: i32, %arg1: i32, %arg2: memref<32x2048xbf16, #tpu.memory_space<vmem>>, %arg3: memref<2048x512xbf16, #tpu.memory_space<vmem>>, %arg4: memref<32x512xf32, #tpu.memory_space<vmem>>, %arg5: memref<1x2x512xf32, #tpu.memory_space<vmem>>, %arg6: memref<32x512xf32, #tpu.memory_space<vmem>>) attributes {dimension_semantics = [#tpu.dimension_semantics<parallel>, #tpu.dimension_semantics<arbitrary>], iteration_bounds = array<i64: 1, 2>, scalar_prefetch = 0 : i64, scratch_operands = 1 : i64, tpu.core_type = #tpu.core_type<tc>, window_params = [{transform_indices = @transform_0, window_bounds = array<i64: 32, 2048>}, {transform_indices = @transform_1, window_bounds = array<i64: 2048, 512>}, {transform_indices = @transform_2, window_bounds = array<i64: 32, 512>}, {transform_indices = @transform_3, window_bounds = array<i64: 1, 2, 512>}]} {
    %c0_i32 = arith.constant 0 : i32
    %0 = arith.cmpi eq, %arg1, %c0_i32 : i32
    %1 = arith.extui %0 : i1 to i32
    %c0_i32_0 = arith.constant 0 : i32
    %2 = arith.cmpi ne, %1, %c0_i32_0 : i32
    scf.if %2 {
      %cst_9 = arith.constant 0.000000e+00 : f32
      %12 = vector.broadcast %cst_9 : f32 to vector<32x512xf32>
      %c0_10 = arith.constant 0 : index
      %c0_11 = arith.constant 0 : index
      %13 = vector.load %arg6[%c0_10, %c0_11] : memref<32x512xf32, #tpu.memory_space<vmem>>, vector<32x512xf32>
      tpu.vector_store %arg6[%c0_10, %c0_11], %12 {strides = array<i32>} : memref<32x512xf32, #tpu.memory_space<vmem>>, vector<32x512xf32>,
    } else {
    }
    %c0 = arith.constant 0 : index
    %c0_1 = arith.constant 0 : index
    %3 = vector.load %arg6[%c0, %c0_1] : memref<32x512xf32, #tpu.memory_space<vmem>>, vector<32x512xf32>
    %c0_2 = arith.constant 0 : index
    %c0_3 = arith.constant 0 : index
    %4 = vector.load %arg2[%c0_2, %c0_3] : memref<32x2048xbf16, #tpu.memory_space<vmem>>, vector<32x2048xbf16>
    %c0_4 = arith.constant 0 : index
    %c0_5 = arith.constant 0 : index
    %5 = vector.load %arg3[%c0_4, %c0_5] : memref<2048x512xbf16, #tpu.memory_space<vmem>>, vector<2048x512xbf16>
    %cst = arith.constant dense<0.000000e+00> : vector<32x512xf32>
    %6 = tpu.matmul %4, %5, %cst {dimension_numbers = #tpu.dot_dimension_numbers<[1], [0], [0], [1], [0, 0, 1, 1], [], []>} : vector<32x2048xbf16>, vector<2048x512xbf16>, vector<32x512xf32> -> vector<32x512xf32>
    %7 = arith.addf %3, %6 : vector<32x512xf32>
    %c0_6 = arith.constant 0 : index
    %c0_7 = arith.constant 0 : index
    %8 = vector.load %arg6[%c0_6, %c0_7] : memref<32x512xf32, #tpu.memory_space<vmem>>, vector<32x512xf32>
    tpu.vector_store %arg6[%c0_6, %c0_7], %7 {strides = array<i32>} : memref<32x512xf32, #tpu.memory_space<vmem>>, vector<32x512xf32>,
    %c1_i32 = arith.constant 1 : i32
    %9 = arith.cmpi eq, %arg1, %c1_i32 : i32
    %10 = arith.extui %9 : i1 to i32
    %c0_i32_8 = arith.constant 0 : i32
    %11 = arith.cmpi ne, %10, %c0_i32_8 : i32
    scf.if %11 {
      %c0_9 = arith.constant 0 : index
      %c0_10 = arith.constant 0 : index
      %12 = vector.load %arg6[%c0_9, %c0_10] : memref<32x512xf32, #tpu.memory_space<vmem>>, vector<32x512xf32>
      %c0_11 = arith.constant 0 : index
      %c0_12 = arith.constant 0 : index
      %13 = vector.load %arg4[%c0_11, %c0_12] : memref<32x512xf32, #tpu.memory_space<vmem>>, vector<32x512xf32>
      tpu.vector_store %arg4[%c0_11, %c0_12], %12 {strides = array<i32>} : memref<32x512xf32, #tpu.memory_space<vmem>>, vector<32x512xf32>,
      %cst_13 = arith.constant dense<0.000000e+00> : vector<512xf32>
      %14 = vector.multi_reduction <add>, %12, %cst_13 [0] : vector<32x512xf32> to vector<512xf32>
      %15 = vector.shape_cast %14 : vector<512xf32> to vector<1x512xf32>
      %16 = arith.mulf %12, %12 : vector<32x512xf32>
      %cst_14 = arith.constant dense<0.000000e+00> : vector<512xf32>
      %17 = vector.multi_reduction <add>, %16, %cst_14 [0] : vector<32x512xf32> to vector<512xf32>
      %18 = vector.shape_cast %17 : vector<512xf32> to vector<1x512xf32>
      %19 = tpu.concatenate %15, %18 in 0 : vector<1x512xf32>, vector<1x512xf32> -> vector<2x512xf32>
      %20 = vector.shape_cast %19 : vector<2x512xf32> to vector<1x2x512xf32>
      %c0_15 = arith.constant 0 : index
      %c0_16 = arith.constant 0 : index
      %c0_17 = arith.constant 0 : index
      %21 = vector.load %arg5[%c0_15, %c0_16, %c0_17] : memref<1x2x512xf32, #tpu.memory_space<vmem>>, vector<1x2x512xf32>
      tpu.vector_store %arg5[%c0_15, %c0_16, %c0_17], %20 {strides = array<i32>} : memref<1x2x512xf32, #tpu.memory_space<vmem>>, vector<1x2x512xf32>,
    } else {
    }
    return
  }
  func.func @transform_0(%arg0: i32, %arg1: i32) -> (i32, i32) {
    %c0_i32 = arith.constant 0 : i32
    return %arg0, %arg1 : i32, i32
  }
  func.func @transform_1(%arg0: i32, %arg1: i32) -> (i32, i32) {
    %c0_i32 = arith.constant 0 : i32
    %c0_i32_0 = arith.constant 0 : i32
    return %arg1, %c0_i32 : i32, i32
  }
  func.func @transform_2(%arg0: i32, %arg1: i32) -> (i32, i32) {
    %c0_i32 = arith.constant 0 : i32
    %c0_i32_0 = arith.constant 0 : i32
    return %arg0, %c0_i32 : i32, i32
  }
  func.func @transform_3(%arg0: i32, %arg1: i32) -> (i32, i32, i32) {
    %c0_i32 = arith.constant 0 : i32
    %c0_i32_0 = arith.constant 0 : i32
    %c0_i32_1 = arith.constant 0 : i32
    return %arg0, %c0_i32, %c0_i32_0 : i32, i32, i32
  }
}

module attributes {stable_mosaic.version = 11 : i64} {
  func.func @_bn_leaky_kernel(%arg0: i32, %arg1: memref<32x512xf32, #tpu.memory_space<vmem>>, %arg2: memref<1x512xf32, #tpu.memory_space<vmem>>, %arg3: memref<1x512xf32, #tpu.memory_space<vmem>>, %arg4: memref<32x512xbf16, #tpu.memory_space<vmem>>) attributes {dimension_semantics = [#tpu.dimension_semantics<parallel>], iteration_bounds = array<i64: 1>, scalar_prefetch = 0 : i64, scratch_operands = 0 : i64, tpu.core_type = #tpu.core_type<tc>, window_params = [{transform_indices = @transform_0, window_bounds = array<i64: 32, 512>}, {pipeline_mode = #tpu.pipeline_mode<synchronous>, transform_indices = @transform_1, window_bounds = array<i64: 1, 512>}, {pipeline_mode = #tpu.pipeline_mode<synchronous>, transform_indices = @transform_2, window_bounds = array<i64: 1, 512>}, {transform_indices = @transform_3, window_bounds = array<i64: 32, 512>}]} {
    %c0 = arith.constant 0 : index
    %c0_0 = arith.constant 0 : index
    %0 = vector.load %arg1[%c0, %c0_0] : memref<32x512xf32, #tpu.memory_space<vmem>>, vector<32x512xf32>
    %c0_1 = arith.constant 0 : index
    %c0_2 = arith.constant 0 : index
    %1 = vector.load %arg2[%c0_1, %c0_2] : memref<1x512xf32, #tpu.memory_space<vmem>>, vector<1x512xf32>
    %2 = vector.broadcast %1 : vector<1x512xf32> to vector<32x512xf32>
    %3 = arith.mulf %0, %2 : vector<32x512xf32>
    %c0_3 = arith.constant 0 : index
    %c0_4 = arith.constant 0 : index
    %4 = vector.load %arg3[%c0_3, %c0_4] : memref<1x512xf32, #tpu.memory_space<vmem>>, vector<1x512xf32>
    %5 = vector.broadcast %4 : vector<1x512xf32> to vector<32x512xf32>
    %6 = arith.addf %3, %5 : vector<32x512xf32>
    %cst = arith.constant 2.000000e-01 : f32
    %7 = vector.broadcast %cst : f32 to vector<32x512xf32>
    %8 = arith.mulf %7, %6 : vector<32x512xf32>
    %9 = arith.maximumf %6, %8 : vector<32x512xf32>
    %10 = arith.truncf %9 : vector<32x512xf32> to vector<32x512xbf16>
    %c0_5 = arith.constant 0 : index
    %c0_6 = arith.constant 0 : index
    %11 = vector.load %arg4[%c0_5, %c0_6] : memref<32x512xbf16, #tpu.memory_space<vmem>>, vector<32x512xbf16>
    tpu.vector_store %arg4[%c0_5, %c0_6], %10 {strides = array<i32>} : memref<32x512xbf16, #tpu.memory_space<vmem>>, vector<32x512xbf16>,
    return
  }
  func.func @transform_0(%arg0: i32) -> (i32, i32) {
    %c0_i32 = arith.constant 0 : i32
    %c0_i32_0 = arith.constant 0 : i32
    return %arg0, %c0_i32 : i32, i32
  }
  func.func @transform_1(%arg0: i32) -> (i32, i32) {
    %c0_i32 = arith.constant 0 : i32
    %c0_i32_0 = arith.constant 0 : i32
    %c0_i32_1 = arith.constant 0 : i32
    return %c0_i32, %c0_i32_0 : i32, i32
  }
  func.func @transform_2(%arg0: i32) -> (i32, i32) {
    %c0_i32 = arith.constant 0 : i32
    %c0_i32_0 = arith.constant 0 : i32
    %c0_i32_1 = arith.constant 0 : i32
    return %c0_i32, %c0_i32_0 : i32, i32
  }
  func.func @transform_3(%arg0: i32) -> (i32, i32) {
    %c0_i32 = arith.constant 0 : i32
    %c0_i32_0 = arith.constant 0 : i32
    return %arg0, %c0_i32 : i32, i32
  }
}

module attributes {stable_mosaic.version = 11 : i64} {
  func.func @_rowdot_sigmoid_kernel(%arg0: i32, %arg1: memref<8x8192xbf16, #tpu.memory_space<vmem>>, %arg2: memref<1x8192xbf16, #tpu.memory_space<vmem>>, %arg3: memref<8x1xf32, #tpu.memory_space<vmem>>) attributes {dimension_semantics = [#tpu.dimension_semantics<parallel>], iteration_bounds = array<i64: 1>, scalar_prefetch = 0 : i64, scratch_operands = 0 : i64, tpu.core_type = #tpu.core_type<tc>, window_params = [{transform_indices = @transform_0, window_bounds = array<i64: 8, 8192>}, {pipeline_mode = #tpu.pipeline_mode<synchronous>, transform_indices = @transform_1, window_bounds = array<i64: 1, 8192>}, {transform_indices = @transform_2, window_bounds = array<i64: 8, 1>}]} {
    %c0 = arith.constant 0 : index
    %c0_0 = arith.constant 0 : index
    %0 = vector.load %arg1[%c0, %c0_0] : memref<8x8192xbf16, #tpu.memory_space<vmem>>, vector<8x8192xbf16>
    %1 = arith.extf %0 : vector<8x8192xbf16> to vector<8x8192xf32>
    %c0_1 = arith.constant 0 : index
    %c0_2 = arith.constant 0 : index
    %2 = vector.load %arg2[%c0_1, %c0_2] : memref<1x8192xbf16, #tpu.memory_space<vmem>>, vector<1x8192xbf16>
    %3 = arith.extf %2 : vector<1x8192xbf16> to vector<1x8192xf32>
    %4 = vector.broadcast %3 : vector<1x8192xf32> to vector<8x8192xf32>
    %5 = arith.mulf %1, %4 : vector<8x8192xf32>
    %cst = arith.constant dense<0.000000e+00> : vector<8xf32>
    %6 = vector.multi_reduction <add>, %5, %cst [1] : vector<8x8192xf32> to vector<8xf32>
    %7 = vector.shape_cast %6 : vector<8xf32> to vector<8x1xf32>
    %8 = arith.negf %7 : vector<8x1xf32>
    %9 = math.exp %8 : vector<8x1xf32>
    %cst_3 = arith.constant 1.000000e+00 : f32
    %10 = vector.broadcast %cst_3 : f32 to vector<8x1xf32>
    %11 = arith.addf %10, %9 : vector<8x1xf32>
    %12 = arith.divf %10, %11 : vector<8x1xf32>
    %c0_4 = arith.constant 0 : index
    %c0_5 = arith.constant 0 : index
    %13 = vector.load %arg3[%c0_4, %c0_5] : memref<8x1xf32, #tpu.memory_space<vmem>>, vector<8x1xf32>
    tpu.vector_store %arg3[%c0_4, %c0_5], %12 {strides = array<i32>} : memref<8x1xf32, #tpu.memory_space<vmem>>, vector<8x1xf32>,
    return
  }
  func.func @transform_0(%arg0: i32) -> (i32, i32) {
    %c0_i32 = arith.constant 0 : i32
    %c0_i32_0 = arith.constant 0 : i32
    return %arg0, %c0_i32 : i32, i32
  }
  func.func @transform_1(%arg0: i32) -> (i32, i32) {
    %c0_i32 = arith.constant 0 : i32
    %c0_i32_0 = arith.constant 0 : i32
    %c0_i32_1 = arith.constant 0 : i32
    return %c0_i32, %c0_i32_0 : i32, i32
  }
  func.func @transform_2(%arg0: i32) -> (i32, i32) {
    %c0_i32 = arith.constant 0 : i32
    %c0_i32_0 = arith.constant 0 : i32
    return %arg0, %c0_i32 : i32, i32
  }
}

</mosaic_0001>

<bundles_post_ra>
// kernel: discriminator_forward.8
= control target key start
LH: loop header
LB: loop body
LE: loop exit
PB: predicated region body
PF: predicated region fallthrough
CT: control target
= control target key end

     0   :  { %s2106_s9 = smov 0   ;;  %s2108_s10 = smov 0   ;;  %s2576_s0 = inlined_call_operand.vmem [shape: bf16[2048,48], index: 0, kind: input, shape index: {}]   ;;  %s2577_s1 = inlined_call_operand.vmem [shape: bf16[48,64], index: 1, kind: input, shape index: {}]   ;;  %s2578_s2 = inlined_call_operand.vmem [shape: bf16[2048,64], index: 2, kind: output, shape index: {}]  }
   0x1   :  { %s2110_s11 = smov 0  }
   0x2 LB: > { %s24_s12 = sadd.s32 1, %s2084_s10  ;;  %p1693_p0 = scmp.ge.s32.totalorder %s2088_s11, 1  ;;  %s2088_s11 = sphi %s2110_s11, %s12_s11   ;;  %s2084_s10 = sphi %s2108_s10, %s2580_s10   ;;  %s2080_s9 = sphi %s2106_s9, %s2579_s9  }
   0x3   : > { %p26_p1 = scmp.ge.s32.totalorder %s24_s12, 4  ;;  %p141_p2 = scmp.lt.s32.totalorder %s2088_s11, 5 }
   0x5   : > { %s2582_s12 = smov (%p26_p1, %s24_s12), 0  ;;  %p142_p3 = pnand %p1693_p0, %p141_p2 }
   0x6   : > { %v2031_v0 = vld [vmem:[%s2577_s1] sm:$0xff] (!%p142_p3)   ;;  %s1694_s15 = sshll.u32 (!%p142_p3), %s2080_s9, 6  ;;  %v2130_v1 = vld [vmem:[%s2577_s1 + $0x8] sm:$0xff] (!%p142_p3)   ;;  %vm197_vm0 = vcmask (!%p142_p3), 523264   ;;  %v2139_v2 = vld [vmem:[%s2577_s1 + $0x10] sm:$0xff] (!%p142_p3)   ;;  %v2090_v3 = vmov (!%p142_p3), 0.0  }
   0x7   : > { %145 = sbr.rel (%p142_p3) target bundleno = 330 (0x14a), region = 28  ;;  %p172_p4 = scmp.lt.s32.totalorder (!%p142_p3), %s1694_s15, 255  ;;  %1930 = vmatprep.subr.bf16.mxu0 (!%p142_p3), %v2031_v0  ;;  %2000 = vmatprep.subr.bf16.mxu1 (!%p142_p3), %v2031_v0  ;;  %200 = vst.msk [vmem:[#allocation2 + $0x10] sm:$0xff] (!%p142_p3), %vm197_vm0, %v2090_v3  ;;  %198 = vst.msk [vmem:[#allocation2] sm:$0xff] (!%p142_p3), %vm197_vm0, %v2090_v3  ;;  %vm574_vm1 = vcmask (!%p142_p3), 392192   ;;  %vm1540_vm2 = vcmask (!%p142_p3), 519168  }
   0x8   : > { %1931 = vmatpush3.bf16.msra.mxu0 (!%p142_p3), %v2031_v0  ;;  %2003 = vmatpush3.bf16.msra.mxu1 (!%p142_p3), %v2031_v0  ;;  %199 = vst.msk [vmem:[#allocation2 + $0x8] sm:$0xff] (!%p142_p3), %vm197_vm0, %v2090_v3  ;;  %201 = vst.msk [vmem:[#allocation2 + $0x18] sm:$0xff] (!%p142_p3), %vm197_vm0, %v2090_v3 }
   0x9   : > { %1932 = vmatprep.subr.bf16.mxu0 (!%p142_p3), %v2130_v1  ;;  %2001 = vmatprep.subr.bf16.mxu1 (!%p142_p3), %v2130_v1  ;;  %202 = vst.msk [vmem:[#allocation2 + $0x20] sm:$0xff] (!%p142_p3), %vm197_vm0, %v2090_v3  ;;  %203 = vst.msk [vmem:[#allocation2 + $0x28] sm:$0xff] (!%p142_p3), %vm197_vm0, %v2090_v3 }
   0xa   : > { %204 = vst.msk [vmem:[#allocation2 + $0x30] sm:$0xff] (!%p142_p3), %vm197_vm0, %v2090_v3  ;;  %205 = vst.msk [vmem:[#allocation2 + $0x38] sm:$0xff] (!%p142_p3), %vm197_vm0, %v2090_v3 }
   0xb   : > { %206 = vst.msk [vmem:[#allocation2 + $0x40] sm:$0xff] (!%p142_p3), %vm197_vm0, %v2090_v3  ;;  %207 = vst.msk [vmem:[#allocation2 + $0x48] sm:$0xff] (!%p142_p3), %vm197_vm0, %v2090_v3 }
   0xc   : > { %208 = vst.msk [vmem:[#allocation2 + $0x50] sm:$0xff] (!%p142_p3), %vm197_vm0, %v2090_v3  ;;  %209 = vst.msk [vmem:[#allocation2 + $0x58] sm:$0xff] (!%p142_p3), %vm197_vm0, %v2090_v3  ;;  %1933 = vmatpush3.bf16.msra.mxu0 (!%p142_p3), %v2130_v1  ;;  %2004 = vmatpush3.bf16.msra.mxu1 (!%p142_p3), %v2130_v1 }
   0xd   : > { %210 = vst.msk [vmem:[#allocation2 + $0x60] sm:$0xff] (!%p142_p3), %vm197_vm0, %v2090_v3  ;;  %211 = vst.msk [vmem:[#allocation2 + $0x68] sm:$0xff] (!%p142_p3), %vm197_vm0, %v2090_v3  ;;  %1934 = vmatprep.subr.bf16.mxu0 (!%p142_p3), %v2139_v2  ;;  %2002 = vmatprep.subr.bf16.mxu1 (!%p142_p3), %v2139_v2 }
   0xe   : > { %s2584_s15 = smov (!%p172_p4, %s1694_s15), 255  ;;  %212 = vst.msk [vmem:[#allocation2 + $0x70] sm:$0xff] %vm197_vm0, %v2090_v3  ;;  %213 = vst.msk [vmem:[#allocation2 + $0x78] sm:$0xff] %vm197_vm0, %v2090_v3  ;;  %v264_v36 = vld [vmem:[#allocation2 + $0x10] sm:$0xff]  ;;  %v262_v38 = vld [vmem:[#allocation2] sm:$0xff] }
   0xf   : > { %214 = vst.msk [vmem:[#allocation2 + $0x80] sm:$0xff] %vm197_vm0, %v2090_v3  ;;  %215 = vst.msk [vmem:[#allocation2 + $0x88] sm:$0xff] %vm197_vm0, %v2090_v3  ;;  %s1695_s20 = sshll.u32 %s2584_s15, 2  ;;  %v265_v42 = vld [vmem:[#allocation2 + $0x18] sm:$0xff]  ;;  %v263_v48 = vld [vmem:[#allocation2 + $0x8] sm:$0xff] }
  0x10   : > { %216 = vst.msk [vmem:[#allocation2 + $0x90] sm:$0xff] %vm197_vm0, %v2090_v3  ;;  %217 = vst.msk [vmem:[#allocation2 + $0x98] sm:$0xff] %vm197_vm0, %v2090_v3  ;;  %s2275_s23 = scalar_lea.vmem %s2576_s0, %s1695_s20  ;;  %1935 = vmatpush3.bf16.msra.mxu0 %v2139_v2  ;;  %2005 = vmatpush3.bf16.msra.mxu1 %v2139_v2  ;;  %v266_v62 = vld [vmem:[#allocation2 + $0x20] sm:$0xff]  ;;  %s2366_s26 = scalar_lea.vmem %s2578_s2, %s1695_s20 }
  0x11   : > { %218 = vst.msk [vmem:[#allocation2 + $0xa0] sm:$0xff] %vm197_vm0, %v2090_v3  ;;  %219 = vst.msk [vmem:[#allocation2 + $0xa8] sm:$0xff] %vm197_vm0, %v2090_v3  ;;  %v2034_v4 = vld [vmem:[%s2275_s23] sm:$0xff]   ;;  %v2036_v6 = vld [vmem:[%s2275_s23 + $0x8] sm:$0xff]  }
  0x12   : > { %220 = vst.msk [vmem:[#allocation2 + $0xb0] sm:$0xff] %vm197_vm0, %v2090_v3  ;;  %221 = vst.msk [vmem:[#allocation2 + $0xb8] sm:$0xff] %vm197_vm0, %v2090_v3  ;;  %v2035_v5 = vld [vmem:[%s2275_s23 + $0x80] sm:$0xff]   ;;  %1936 = vmatprep.mubr.msk.bf16.mxu0 %vm574_vm1, %v2034_v4  ;;  %v2037_v7 = vld [vmem:[%s2275_s23 + $0x88] sm:$0xff]  }
  0x13   : > { %222 = vst.msk [vmem:[#allocation2 + $0xc0] sm:$0xff] %vm197_vm0, %v2090_v3  ;;  %223 = vst.msk [vmem:[#allocation2 + $0xc8] sm:$0xff] %vm197_vm0, %v2090_v3  ;;  %1968 = vmatprep.mubr.msk.bf16.mxu1 %vm574_vm1, %v2035_v5  ;;  %v2038_v8 = vld [vmem:[%s2275_s23 + $0x10] sm:$0xff]   ;;  %1937 = vmatmul.mubr.msk.bf16.vlgmr.msra.gmra.mrb[0].mxu0 %vm574_vm1, %v2036_v6  ;;  %v2040_v10 = vld [vmem:[%s2275_s23 + $0x18] sm:$0xff]  }
  0x14   : > { %224 = vst.msk [vmem:[#allocation2 + $0xd0] sm:$0xff] %vm197_vm0, %v2090_v3  ;;  %225 = vst.msk [vmem:[#allocation2 + $0xd8] sm:$0xff] %vm197_vm0, %v2090_v3  ;;  %v2039_v9 = vld [vmem:[%s2275_s23 + $0x90] sm:$0xff]   ;;  %1969 = vmatmul.mubr.msk.bf16.vlgmr.msra.gmra.mrb[0].mxu1 %vm574_vm1, %v2037_v7  ;;  %1940 = vmatprep.mubr.msk.bf16.mxu0 %vm574_vm1, %v2038_v8  ;;  %v2041_v11 = vld [vmem:[%s2275_s23 + $0x98] sm:$0xff]  }
  0x15   : > { %226 = vst.msk [vmem:[#allocation2 + $0xe0] sm:$0xff] %vm197_vm0, %v2090_v3  ;;  %227 = vst.msk [vmem:[#allocation2 + $0xe8] sm:$0xff] %vm197_vm0, %v2090_v3  ;;  %1972 = vmatprep.mubr.msk.bf16.mxu1 %vm574_vm1, %v2039_v9  ;;  %v2042_v12 = vld [vmem:[%s2275_s23 + $0x20] sm:$0xff]   ;;  %v2044_v14 = vld [vmem:[%s2275_s23 + $0x28] sm:$0xff]  }
  0x16   : > { %228 = vst.msk [vmem:[#allocation2 + $0xf0] sm:$0xff] %vm197_vm0, %v2090_v3  ;;  %229 = vst.msk [vmem:[#allocation2 + $0xf8] sm:$0xff] %vm197_vm0, %v2090_v3  ;;  %v2043_v13 = vld [vmem:[%s2275_s23 + $0xa0] sm:$0xff]   ;;  %v2045_v15 = vld [vmem:[%s2275_s23 + $0xa8] sm:$0xff]  }
  0x17   : > { %230 = vst.msk [vmem:[#allocation2 + $0x100] sm:$0xff] %vm197_vm0, %v2090_v3  ;;  %231 = vst.msk [vmem:[#allocation2 + $0x108] sm:$0xff] %vm197_vm0, %v2090_v3  ;;  %v2046_v16 = vld [vmem:[%s2275_s23 + $0x30] sm:$0xff]   ;;  %v2048_v18 = vld [vmem:[%s2275_s23 + $0x38] sm:$0xff]  }
  0x18   : > { %232 = vst.msk [vmem:[#allocation2 + $0x110] sm:$0xff] %vm197_vm0, %v2090_v3  ;;  %233 = vst.msk [vmem:[#allocation2 + $0x118] sm:$0xff] %vm197_vm0, %v2090_v3  ;;  %v2047_v17 = vld [vmem:[%s2275_s23 + $0xb0] sm:$0xff]   ;;  %v2049_v19 = vld [vmem:[%s2275_s23 + $0xb8] sm:$0xff]  }
  0x19   : > { %234 = vst.msk [vmem:[#allocation2 + $0x120] sm:$0xff] %vm197_vm0, %v2090_v3  ;;  %235 = vst.msk [vmem:[#allocation2 + $0x128] sm:$0xff] %vm197_vm0, %v2090_v3  ;;  %v2050_v20 = vld [vmem:[%s2275_s23 + $0x40] sm:$0xff]   ;;  %v2052_v22 = vld [vmem:[%s2275_s23 + $0x48] sm:$0xff]  }
  0x1a   : > { %236 = vst.msk [vmem:[#allocation2 + $0x130] sm:$0xff] %vm197_vm0, %v2090_v3  ;;  %237 = vst.msk [vmem:[#allocation2 + $0x138] sm:$0xff] %vm197_vm0, %v2090_v3  ;;  %v2051_v21 = vld [vmem:[%s2275_s23 + $0xc0] sm:$0xff]   ;;  %v2053_v23 = vld [vmem:[%s2275_s23 + $0xc8] sm:$0xff]  }
  0x1b   : > { %238 = vst.msk [vmem:[#allocation2 + $0x140] sm:$0xff] %vm197_vm0, %v2090_v3  ;;  %239 = vst.msk [vmem:[#allocation2 + $0x148] sm:$0xff] %vm197_vm0, %v2090_v3  ;;  %1941 = vmatmul.mubr.msk.bf16.gmra.mrb[4].mxu0 %vm574_vm1, %v2040_v10  ;;  %v2054_v24 = vld [vmem:[%s2275_s23 + $0x50] sm:$0xff]   ;;  %v2056_v26 = vld [vmem:[%s2275_s23 + $0x58] sm:$0xff]  }
  0x1c   : > { %240 = vst.msk [vmem:[#allocation2 + $0x150] sm:$0xff] %vm197_vm0, %v2090_v3  ;;  %241 = vst.msk [vmem:[#allocation2 + $0x158] sm:$0xff] %vm197_vm0, %v2090_v3  ;;  %1973 = vmatmul.mubr.msk.bf16.gmra.mrb[4].mxu1 %vm574_vm1, %v2041_v11  ;;  %1944 = vmatprep.mubr.msk.bf16.mxu0 %vm574_vm1, %v2042_v12  ;;  %v2055_v25 = vld [vmem:[%s2275_s23 + $0xd0] sm:$0xff]   ;;  %v2057_v27 = vld [vmem:[%s2275_s23 + $0xd8] sm:$0xff]  }
  0x1d   : > { %242 = vst.msk [vmem:[#allocation2 + $0x160] sm:$0xff] %vm197_vm0, %v2090_v3  ;;  %243 = vst.msk [vmem:[#allocation2 + $0x168] sm:$0xff] %vm197_vm0, %v2090_v3  ;;  %1976 = vmatprep.mubr.msk.bf16.mxu1 %vm574_vm1, %v2043_v13  ;;  %v2058_v28 = vld [vmem:[%s2275_s23 + $0x60] sm:$0xff]   ;;  %v2060_v30 = vld [vmem:[%s2275_s23 + $0x68] sm:$0xff]  }
  0x1e   : > { %244 = vst.msk [vmem:[#allocation2 + $0x170] sm:$0xff] %vm197_vm0, %v2090_v3  ;;  %245 = vst.msk [vmem:[#allocation2 + $0x178] sm:$0xff] %vm197_vm0, %v2090_v3  ;;  %v2059_v29 = vld [vmem:[%s2275_s23 + $0xe0] sm:$0xff]   ;;  %v2061_v31 = vld [vmem:[%s2275_s23 + $0xe8] sm:$0xff]  }
  0x1f   : > { %246 = vst.msk [vmem:[#allocation2 + $0x180] sm:$0xff] %vm197_vm0, %v2090_v3  ;;  %247 = vst.msk [vmem:[#allocation2 + $0x188] sm:$0xff] %vm197_vm0, %v2090_v3  ;;  %v2062_v32 = vld [vmem:[%s2275_s23 + $0x70] sm:$0xff]   ;;  %v2064_v34 = vld [vmem:[%s2275_s23 + $0x78] sm:$0xff]  }
  0x20   : > { %248 = vst.msk [vmem:[#allocation2 + $0x190] sm:$0xff] %vm197_vm0, %v2090_v3  ;;  %249 = vst.msk [vmem:[#allocation2 + $0x198] sm:$0xff] %vm197_vm0, %v2090_v3  ;;  %v2063_v33 = vld [vmem:[%s2275_s23 + $0xf0] sm:$0xff]   ;;  %v2065_v35 = vld [vmem:[%s2275_s23 + $0xf8] sm:$0xff]  }
  0x21   : > { %250 = vst.msk [vmem:[#allocation2 + $0x1a0] sm:$0xff] %vm197_vm0, %v2090_v3  ;;  %251 = vst.msk [vmem:[#allocation2 + $0x1a8] sm:$0xff] %vm197_vm0, %v2090_v3  ;;  %v296_v37 = vld [vmem:[#allocation2 + $0x110] sm:$0xff]  ;;  %v294_v39 = vld [vmem:[#allocation2 + $0x100] sm:$0xff] }
  0x22   : > { %252 = vst.msk [vmem:[#allocation2 + $0x1b0] sm:$0xff] %vm197_vm0, %v2090_v3  ;;  %253 = vst.msk [vmem:[#allocation2 + $0x1b8] sm:$0xff] %vm197_vm0, %v2090_v3  ;;  %v297_v43 = vld [vmem:[#allocation2 + $0x118] sm:$0xff]  ;;  %v295_v49 = vld [vmem:[#allocation2 + $0x108] sm:$0xff] }
  0x23   : > { %254 = vst.msk [vmem:[#allocation2 + $0x1c0] sm:$0xff] %vm197_vm0, %v2090_v3  ;;  %255 = vst.msk [vmem:[#allocation2 + $0x1c8] sm:$0xff] %vm197_vm0, %v2090_v3  ;;  %1945 = vmatmul.mubr.msk.bf16.gmra.mrb[8].mxu0 %vm574_vm1, %v2044_v14  ;;  %v268_v60 = vld [vmem:[#allocation2 + $0x30] sm:$0xff]  ;;  %v298_v63 = vld [vmem:[#allocation2 + $0x120] sm:$0xff] }
  0x24   : > { %256 = vst.msk [vmem:[#allocation2 + $0x1d0] sm:$0xff] %vm197_vm0, %v2090_v3  ;;  %257 = vst.msk [vmem:[#allocation2 + $0x1d8] sm:$0xff] %vm197_vm0, %v2090_v3  ;;  %1977 = vmatmul.mubr.msk.bf16.gmra.mrb[8].mxu1 %vm574_vm1, %v2045_v15  ;;  %1948 = vmatprep.mubr.msk.bf16.mxu0 %vm574_vm1, %v2046_v16  ;;  %v300_v61 = vld [vmem:[#allocation2 + $0x130] sm:$0xff]  ;;  %v269_v2 = vld [vmem:[#allocation2 + $0x38] sm:$0xff] }
  0x25   : > { %258 = vst.msk [vmem:[#allocation2 + $0x1e0] sm:$0xff] %vm197_vm0, %v2090_v3  ;;  %259 = vst.msk [vmem:[#allocation2 + $0x1e8] sm:$0xff] %vm197_vm0, %v2090_v3  ;;  %1980 = vmatprep.mubr.msk.bf16.mxu1 %vm574_vm1, %v2047_v17 }
  0x26   : > { %260 = vst.msk [vmem:[#allocation2 + $0x1f0] sm:$0xff] %vm197_vm0, %v2090_v3  ;;  %261 = vst.msk [vmem:[#allocation2 + $0x1f8] sm:$0xff] %vm197_vm0, %v2090_v3  ;;  %v301_v3 = vld [vmem:[#allocation2 + $0x138] sm:$0xff] }
  0x2b   : > { %1949 = vmatmul.mubr.msk.bf16.gmra.mrb[12].mxu0 %vm574_vm1, %v2048_v18 }
  0x2c   : > { %1981 = vmatmul.mubr.msk.bf16.gmra.mrb[12].mxu1 %vm574_vm1, %v2049_v19  ;;  %1952 = vmatprep.mubr.msk.bf16.mxu0 %vm574_vm1, %v2050_v20 }
  0x2d   : > { %1984 = vmatprep.mubr.msk.bf16.mxu1 %vm574_vm1, %v2051_v21 }
  0x33   : > { %1953 = vmatmul.mubr.msk.bf16.gmra.mrb[16].mxu0 %vm574_vm1, %v2052_v22 }
  0x34   : > { %1985 = vmatmul.mubr.msk.bf16.gmra.mrb[16].mxu1 %vm574_vm1, %v2053_v23  ;;  %1956 = vmatprep.mubr.msk.bf16.mxu0 %vm574_vm1, %v2054_v24  ;;  %v267_v24 = vld [vmem:[#allocation2 + $0x28] sm:$0xff] }
  0x35   : > { %1988 = vmatprep.mubr.msk.bf16.mxu1 %vm574_vm1, %v2055_v25  ;;  %v299_v25 = vld [vmem:[#allocation2 + $0x128] sm:$0xff] }
  0x3b   : > { %1957 = vmatmul.mubr.msk.bf16.gmra.mrb[20].mxu0 %vm574_vm1, %v2056_v26 }
  0x3c   : > { %1989 = vmatmul.mubr.msk.bf16.gmra.mrb[20].mxu1 %vm574_vm1, %v2057_v27  ;;  %1960 = vmatprep.mubr.msk.bf16.mxu0 %vm574_vm1, %v2058_v28 }
  0x3d   : > { %1992 = vmatprep.mubr.msk.bf16.mxu1 %vm574_vm1, %v2059_v29 }
  0x43   : > { %1961 = vmatmul.mubr.msk.bf16.gmra.mrb[24].mxu0 %vm574_vm1, %v2060_v30 }
  0x44   : > { %1993 = vmatmul.mubr.msk.bf16.gmra.mrb[24].mxu1 %vm574_vm1, %v2061_v31  ;;  %1964 = vmatprep.mubr.msk.bf16.mxu0 %vm574_vm1, %v2062_v32 }
  0x45   : > { %1996 = vmatprep.mubr.msk.bf16.mxu1 %vm574_vm1, %v2063_v33 }
  0x4b   : > { %1965 = vmatmul.mubr.msk.bf16.gmra.mrb[28].mxu0 %vm574_vm1, %v2064_v34 }
  0x4c   : > { %1997 = vmatmul.mubr.msk.bf16.gmra.mrb[28].mxu1 %vm574_vm1, %v2065_v35 }
  0xe6   : > { %v1938_v40 = vpop.f32.mrb[0].mxu0 }
  0xe7   : > { %v1970_v41 = vpop.f32.mrb[0].mxu1  ;;  %v962_v44 = vadd.f32 %v1938_v40, %v264_v36  ;;  %v705_v46 = vpop.f32.mrb[1].mxu0 }
  0xe8   : > { %v994_v45 = vadd.f32 %v1970_v41, %v296_v37  ;;  %v833_v47 = vpop.f32.mrb[1].mxu1  ;;  %v960_v50 = vadd.f32 %v705_v46, %v262_v38  ;;  %v1939_v52 = vpop.f32.mrb[2].mxu0 }
  0xe9   : > { %v992_v51 = vadd.f32 %v833_v47, %v294_v39  ;;  %v1971_v53 = vpop.f32.mrb[2].mxu1  ;;  %1027 = vst.msk [vmem:[#allocation2 + $0x10] sm:$0xff] %vm197_vm0, %v962_v44  ;;  %v963_v54 = vadd.f32 %v1939_v52, %v265_v42  ;;  %v708_v56 = vpop.f32.mrb[3].mxu0  ;;  %v272_v42 = vld [vmem:[#allocation2 + $0x50] sm:$0xff] }
  0xea   : > { %1059 = vst.msk [vmem:[#allocation2 + $0x110] sm:$0xff] %vm197_vm0, %v994_v45  ;;  %v995_v55 = vadd.f32 %v1971_v53, %v297_v43  ;;  %v836_v57 = vpop.f32.mrb[3].mxu1  ;;  %1025 = vst.msk [vmem:[#allocation2] sm:$0xff] %vm197_vm0, %v960_v50  ;;  %v961_v58 = vadd.f32 %v708_v56, %v263_v48  ;;  %v304_v43 = vld [vmem:[#allocation2 + $0x150] sm:$0xff]  ;;  %v270_v50 = vld [vmem:[#allocation2 + $0x40] sm:$0xff] }
  0xeb   : > { %1057 = vst.msk [vmem:[#allocation2 + $0x100] sm:$0xff] %vm197_vm0, %v992_v51  ;;  %v993_v59 = vadd.f32 %v836_v57, %v295_v49  ;;  %1028 = vst.msk [vmem:[#allocation2 + $0x18] sm:$0xff] %vm197_vm0, %v963_v54  ;;  %v302_v51 = vld [vmem:[#allocation2 + $0x140] sm:$0xff] }
  0xec   : > { %1060 = vst.msk [vmem:[#allocation2 + $0x118] sm:$0xff] %vm197_vm0, %v995_v55  ;;  %1026 = vst.msk [vmem:[#allocation2 + $0x8] sm:$0xff] %vm197_vm0, %v961_v58  ;;  %v273_v58 = vld [vmem:[#allocation2 + $0x58] sm:$0xff] }
  0xed   : > { %1058 = vst.msk [vmem:[#allocation2 + $0x108] sm:$0xff] %vm197_vm0, %v993_v59  ;;  %v305_v59 = vld [vmem:[#allocation2 + $0x158] sm:$0xff] }
  0xee   : > { %v1942_v0 = vpop.f32.mrb[4].mxu0 }
  0xef   : > { %v1974_v1 = vpop.f32.mrb[4].mxu1  ;;  %v966_v4 = vadd.f32 %v1942_v0, %v268_v60  ;;  %v721_v6 = vpop.f32.mrb[5].mxu0  ;;  %v271_v60 = vld [vmem:[#allocation2 + $0x48] sm:$0xff] }
  0xf0   : > { %v998_v5 = vadd.f32 %v1974_v1, %v300_v61  ;;  %v849_v7 = vpop.f32.mrb[5].mxu1  ;;  %v1094_v8 = vld [vmem:[#allocation2 + $0x10] sm:$0xff]  ;;  %v964_v10 = vadd.f32 %v721_v6, %v266_v62  ;;  %v1943_v12 = vpop.f32.mrb[6].mxu0 }
  0xf1   : > { %v1126_v9 = vld [vmem:[#allocation2 + $0x110] sm:$0xff]  ;;  %v996_v11 = vadd.f32 %v849_v7, %v298_v63  ;;  %v1975_v13 = vpop.f32.mrb[6].mxu1  ;;  %v1158_v14 = vmul.f32 0.2, %v1094_v8  ;;  %v1092_v16 = vld [vmem:[#allocation2] sm:$0xff]  ;;  %1031 = vst.msk [vmem:[#allocation2 + $0x30] sm:$0xff] %vm197_vm0, %v966_v4  ;;  %v967_v18 = vadd.f32 %v1943_v12, %v269_v2 }
  0xf2   : > { %v1190_v15 = vmul.f32 0.2, %v1126_v9  ;;  %v1124_v17 = vld [vmem:[#allocation2 + $0x100] sm:$0xff]  ;;  %1063 = vst.msk [vmem:[#allocation2 + $0x130] sm:$0xff] %vm197_vm0, %v998_v5  ;;  %v999_v19 = vadd.f32 %v1975_v13, %v301_v3  ;;  %v1156_v20 = vmul.f32 0.2, %v1092_v16 }
  0xf3   : > { %v1188_v21 = vmul.f32 0.2, %v1124_v17  ;;  %v1095_v22 = vld [vmem:[#allocation2 + $0x18] sm:$0xff]  ;;  %1029 = vst.msk [vmem:[#allocation2 + $0x20] sm:$0xff] %vm197_vm0, %v964_v10  ;;  %1061 = vst.msk [vmem:[#allocation2 + $0x120] sm:$0xff] %vm197_vm0, %v996_v11  ;;  %v1222_v26 = vmax.f32 %v1094_v8, %v1158_v14  ;;  %v1093_v30 = vld [vmem:[#allocation2 + $0x8] sm:$0xff] }
  0xf4   : > { %v1127_v23 = vld [vmem:[#allocation2 + $0x118] sm:$0xff]  ;;  %v1254_v27 = vmax.f32 %v1126_v9, %v1190_v15  ;;  %v1159_v28 = vmul.f32 0.2, %v1095_v22  ;;  %v1125_v31 = vld [vmem:[#allocation2 + $0x108] sm:$0xff]  ;;  %1032 = vst.msk [vmem:[#allocation2 + $0x38] sm:$0xff] %vm197_vm0, %v967_v18  ;;  %1064 = vst.msk [vmem:[#allocation2 + $0x138] sm:$0xff] %vm197_vm0, %v999_v19  ;;  %v1220_v32 = vmax.f32 %v1092_v16, %v1156_v20 }
  0xf5   : > { %v1191_v29 = vmul.f32 0.2, %v1127_v23  ;;  %v1252_v33 = vmax.f32 %v1124_v17, %v1188_v21  ;;  %v1157_v34 = vmul.f32 0.2, %v1093_v30  ;;  %v1189_v35 = vmul.f32 0.2, %v1125_v31 }
  0xf6   : > { %v724_v36 = vpop.f32.mrb[7].mxu0  ;;  %v852_v37 = vpop.f32.mrb[7].mxu1  ;;  %v1833_v38 = vpack.c.bf16 %v1222_v26, %v1222_v26  ;;  %v1865_v39 = vpack.c.bf16 %v1254_v27, %v1254_v27  ;;  %v1223_v40 = vmax.f32 %v1095_v22, %v1159_v28  ;;  %v1831_v44 = vpack.c.bf16 %v1220_v32, %v1220_v32  ;;  %v303_v5 = vld [vmem:[#allocation2 + $0x148] sm:$0xff]  ;;  %v276_v28 = vld [vmem:[#allocation2 + $0x70] sm:$0xff] }
  0xf7   : > { %v1255_v41 = vmax.f32 %v1127_v23, %v1191_v29  ;;  %v1863_v45 = vpack.c.bf16 %v1252_v33, %v1252_v33  ;;  %v1221_v46 = vmax.f32 %v1093_v30, %v1157_v34  ;;  %v1253_v47 = vmax.f32 %v1125_v31, %v1189_v35  ;;  %v1946_v48 = vpop.f32.mrb[8].mxu0  ;;  %v1978_v49 = vpop.f32.mrb[8].mxu1  ;;  %v308_v29 = vld [vmem:[#allocation2 + $0x170] sm:$0xff]  ;;  %v274_v34 = vld [vmem:[#allocation2 + $0x60] sm:$0xff] }
  0xf8   : > { %1543 = vst.msk [vmem:[%s2366_s26 + $0x8] sm:$0xf] %vm1540_vm2, %v1833_v38  ;;  %1575 = vst.msk [vmem:[%s2366_s26 + $0x88] sm:$0xf] %vm1540_vm2, %v1865_v39  ;;  %v1834_v52 = vpack.c.bf16 %v1223_v40, %v1223_v40  ;;  %v965_v54 = vadd.f32 %v724_v36, %v267_v24  ;;  %v997_v55 = vadd.f32 %v852_v37, %v299_v25  ;;  %v737_v56 = vpop.f32.mrb[9].mxu0  ;;  %v865_v57 = vpop.f32.mrb[9].mxu1 }
  0xf9   : > { %v1866_v53 = vpack.c.bf16 %v1255_v41, %v1255_v41  ;;  %1541 = vst.msk [vmem:[%s2366_s26] sm:$0xf] %vm1540_vm2, %v1831_v44  ;;  %1573 = vst.msk [vmem:[%s2366_s26 + $0x80] sm:$0xf] %vm1540_vm2, %v1863_v45  ;;  %v1832_v61 = vpack.c.bf16 %v1221_v46, %v1221_v46  ;;  %v1864_v62 = vpack.c.bf16 %v1253_v47, %v1253_v47  ;;  %v1098_v63 = vld [vmem:[#allocation2 + $0x30] sm:$0xff]  ;;  %v1947_v3 = vpop.f32.mrb[10].mxu0 }
  0xfa   : > { %v1130_v0 = vld [vmem:[#allocation2 + $0x130] sm:$0xff]  ;;  %v970_v1 = vadd.f32 %v1946_v48, %v272_v42  ;;  %v1002_v2 = vadd.f32 %v1978_v49, %v304_v43  ;;  %v1979_v4 = vpop.f32.mrb[10].mxu1  ;;  %1544 = vst.msk [vmem:[%s2366_s26 + $0xc] sm:$0xf] %vm1540_vm2, %v1834_v52  ;;  %v1162_v6 = vmul.f32 0.2, %v1098_v63  ;;  %v968_v10 = vadd.f32 %v737_v56, %v270_v50 }
  0xfb   : > { %1576 = vst.msk [vmem:[%s2366_s26 + $0x8c] sm:$0xf] %vm1540_vm2, %v1866_v53  ;;  %v1194_v7 = vmul.f32 0.2, %v1130_v0  ;;  %v1096_v8 = vld [vmem:[#allocation2 + $0x20] sm:$0xff]  ;;  %v1000_v11 = vadd.f32 %v865_v57, %v302_v51  ;;  %v1099_v14 = vld [vmem:[#allocation2 + $0x38] sm:$0xff]  ;;  %v971_v16 = vadd.f32 %v1947_v3, %v273_v58  ;;  %v1003_v17 = vadd.f32 %v1979_v4, %v305_v59 }
  0xfc   : > { %v1128_v9 = vld [vmem:[#allocation2 + $0x120] sm:$0xff]  ;;  %1030 = vst.msk [vmem:[#allocation2 + $0x28] sm:$0xff] %vm197_vm0, %v965_v54  ;;  %1062 = vst.msk [vmem:[#allocation2 + $0x128] sm:$0xff] %vm197_vm0, %v997_v55  ;;  %v1160_v12 = vmul.f32 0.2, %v1096_v8  ;;  %v1131_v15 = vld [vmem:[#allocation2 + $0x138] sm:$0xff]  ;;  %v1226_v18 = vmax.f32 %v1098_v63, %v1162_v6 }
  0xfd   : > { %1542 = vst.msk [vmem:[%s2366_s26 + $0x4] sm:$0xf] %vm1540_vm2, %v1832_v61  ;;  %1574 = vst.msk [vmem:[%s2366_s26 + $0x84] sm:$0xf] %vm1540_vm2, %v1864_v62  ;;  %v1192_v13 = vmul.f32 0.2, %v1128_v9  ;;  %v1258_v19 = vmax.f32 %v1130_v0, %v1194_v7 }
  0xfe   : > { %1035 = vst.msk [vmem:[#allocation2 + $0x50] sm:$0xff] %vm197_vm0, %v970_v1  ;;  %1067 = vst.msk [vmem:[#allocation2 + $0x150] sm:$0xff] %vm197_vm0, %v1002_v2  ;;  %v1163_v20 = vmul.f32 0.2, %v1099_v14  ;;  %v1195_v21 = vmul.f32 0.2, %v1131_v15  ;;  %v1224_v24 = vmax.f32 %v1096_v8, %v1160_v12  ;;  %v1837_v30 = vpack.c.bf16 %v1226_v18, %v1226_v18 }
  0xff   : > { %1033 = vst.msk [vmem:[#allocation2 + $0x40] sm:$0xff] %vm197_vm0, %v968_v10  ;;  %1065 = vst.msk [vmem:[#allocation2 + $0x140] sm:$0xff] %vm197_vm0, %v1000_v11  ;;  %v740_v22 = vpop.f32.mrb[11].mxu0  ;;  %v868_v23 = vpop.f32.mrb[11].mxu1  ;;  %v1256_v25 = vmax.f32 %v1128_v9, %v1192_v13  ;;  %v1869_v31 = vpack.c.bf16 %v1258_v19, %v1258_v19  ;;  %v306_v35 = vld [vmem:[#allocation2 + $0x160] sm:$0xff]  ;;  %v277_v40 = vld [vmem:[#allocation2 + $0x78] sm:$0xff] }
 0x100   : > { %1036 = vst.msk [vmem:[#allocation2 + $0x58] sm:$0xff] %vm197_vm0, %v971_v16  ;;  %1068 = vst.msk [vmem:[#allocation2 + $0x158] sm:$0xff] %vm197_vm0, %v1003_v17  ;;  %v969_v26 = vadd.f32 %v740_v22, %v271_v60  ;;  %v1001_v27 = vadd.f32 %v868_v23, %v303_v5  ;;  %v1227_v32 = vmax.f32 %v1099_v14, %v1163_v20  ;;  %v1950_v38 = vpop.f32.mrb[12].mxu0  ;;  %v1982_v39 = vpop.f32.mrb[12].mxu1  ;;  %v309_v41 = vld [vmem:[#allocation2 + $0x178] sm:$0xff]  ;;  %v275_v6 = vld [vmem:[#allocation2 + $0x68] sm:$0xff] }
 0x101   : > { %v1259_v33 = vmax.f32 %v1131_v15, %v1195_v21  ;;  %v1835_v36 = vpack.c.bf16 %v1224_v24, %v1224_v24  ;;  %v1867_v37 = vpack.c.bf16 %v1256_v25, %v1256_v25  ;;  %1547 = vst.msk [vmem:[%s2366_s26 + $0x18] sm:$0xf] %vm1540_vm2, %v1837_v30  ;;  %1579 = vst.msk [vmem:[%s2366_s26 + $0x98] sm:$0xf] %vm1540_vm2, %v1869_v31  ;;  %v753_v46 = vpop.f32.mrb[13].mxu0  ;;  %v881_v47 = vpop.f32.mrb[13].mxu1 }
 0x102   : > { %1034 = vst.msk [vmem:[#allocation2 + $0x48] sm:$0xff] %vm197_vm0, %v969_v26  ;;  %1066 = vst.msk [vmem:[#allocation2 + $0x148] sm:$0xff] %vm197_vm0, %v1001_v27  ;;  %v1838_v42 = vpack.c.bf16 %v1227_v32, %v1227_v32  ;;  %v974_v44 = vadd.f32 %v1950_v38, %v276_v28  ;;  %v1006_v45 = vadd.f32 %v1982_v39, %v308_v29  ;;  %v1951_v52 = vpop.f32.mrb[14].mxu0  ;;  %v1983_v53 = vpop.f32.mrb[14].mxu1  ;;  %v307_v19 = vld [vmem:[#allocation2 + $0x168] sm:$0xff]  ;;  %v280_v24 = vld [vmem:[#allocation2 + $0x90] sm:$0xff] }
 0x103   : > { %v1870_v43 = vpack.c.bf16 %v1259_v33, %v1259_v33  ;;  %1545 = vst.msk [vmem:[%s2366_s26 + $0x10] sm:$0xf] %vm1540_vm2, %v1835_v36  ;;  %1577 = vst.msk [vmem:[%s2366_s26 + $0x90] sm:$0xf] %vm1540_vm2, %v1867_v37  ;;  %v1097_v48 = vld [vmem:[#allocation2 + $0x28] sm:$0xff]  ;;  %v972_v50 = vadd.f32 %v753_v46, %v274_v34  ;;  %v1004_v51 = vadd.f32 %v881_v47, %v306_v35  ;;  %v756_v11 = vpop.f32.mrb[15].mxu0 }
 0x104   : > { %v1129_v49 = vld [vmem:[#allocation2 + $0x128] sm:$0xff]  ;;  %1548 = vst.msk [vmem:[%s2366_s26 + $0x1c] sm:$0xf] %vm1540_vm2, %v1838_v42  ;;  %v1161_v54 = vmul.f32 0.2, %v1097_v48  ;;  %v975_v58 = vadd.f32 %v1951_v52, %v277_v40  ;;  %v1007_v59 = vadd.f32 %v1983_v53, %v309_v41  ;;  %v884_v12 = vpop.f32.mrb[15].mxu1  ;;  %v973_v38 = vadd.f32 %v756_v11, %v275_v6 }
 0x105   : > { %1580 = vst.msk [vmem:[%s2366_s26 + $0x9c] sm:$0xf] %vm1540_vm2, %v1870_v43  ;;  %v1193_v55 = vmul.f32 0.2, %v1129_v49  ;;  %v1102_v56 = vld [vmem:[#allocation2 + $0x50] sm:$0xff]  ;;  %v1005_v39 = vadd.f32 %v884_v12, %v307_v19  ;;  %v278_v40 = vld [vmem:[#allocation2 + $0x80] sm:$0xff] }
 0x106   : > { %v1134_v57 = vld [vmem:[#allocation2 + $0x150] sm:$0xff]  ;;  %1039 = vst.msk [vmem:[#allocation2 + $0x70] sm:$0xff] %vm197_vm0, %v974_v44  ;;  %1071 = vst.msk [vmem:[#allocation2 + $0x170] sm:$0xff] %vm197_vm0, %v1006_v45  ;;  %v1166_v60 = vmul.f32 0.2, %v1102_v56  ;;  %v1100_v62 = vld [vmem:[#allocation2 + $0x40] sm:$0xff]  ;;  %v1225_v0 = vmax.f32 %v1097_v48, %v1161_v54 }
 0x107   : > { %v1198_v61 = vmul.f32 0.2, %v1134_v57  ;;  %v1132_v63 = vld [vmem:[#allocation2 + $0x140] sm:$0xff]  ;;  %1037 = vst.msk [vmem:[#allocation2 + $0x60] sm:$0xff] %vm197_vm0, %v972_v50  ;;  %1069 = vst.msk [vmem:[#allocation2 + $0x160] sm:$0xff] %vm197_vm0, %v1004_v51  ;;  %v1257_v1 = vmax.f32 %v1129_v49, %v1193_v55  ;;  %v1103_v4 = vld [vmem:[#allocation2 + $0x58] sm:$0xff] }
 0x108   : > { %v1164_v2 = vmul.f32 0.2, %v1100_v62  ;;  %v1196_v3 = vmul.f32 0.2, %v1132_v63  ;;  %v1135_v5 = vld [vmem:[#allocation2 + $0x158] sm:$0xff]  ;;  %1040 = vst.msk [vmem:[#allocation2 + $0x78] sm:$0xff] %vm197_vm0, %v975_v58  ;;  %v1230_v7 = vmax.f32 %v1102_v56, %v1166_v60  ;;  %v1836_v13 = vpack.c.bf16 %v1225_v0, %v1225_v0 }
 0x109   : > { %1072 = vst.msk [vmem:[#allocation2 + $0x178] sm:$0xff] %vm197_vm0, %v1007_v59  ;;  %v1262_v8 = vmax.f32 %v1134_v57, %v1198_v61  ;;  %v1167_v9 = vmul.f32 0.2, %v1103_v4  ;;  %v1199_v10 = vmul.f32 0.2, %v1135_v5  ;;  %v1868_v14 = vpack.c.bf16 %v1257_v1, %v1257_v1  ;;  %v1101_v17 = vld [vmem:[#allocation2 + $0x48] sm:$0xff] }
 0x10a   : > { %v1228_v15 = vmax.f32 %v1100_v62, %v1164_v2  ;;  %v1260_v16 = vmax.f32 %v1132_v63, %v1196_v3  ;;  %v1133_v18 = vld [vmem:[#allocation2 + $0x148] sm:$0xff]  ;;  %v1841_v20 = vpack.c.bf16 %v1230_v7, %v1230_v7  ;;  %v1954_v25 = vpop.f32.mrb[16].mxu0  ;;  %v312_v26 = vld [vmem:[#allocation2 + $0x190] sm:$0xff]  ;;  %v1986_v27 = vpop.f32.mrb[16].mxu1  ;;  %1546 = vst.msk [vmem:[%s2366_s26 + $0x14] sm:$0xf] %vm1540_vm2, %v1836_v13 }
 0x10b   : > { %v1873_v21 = vpack.c.bf16 %v1262_v8, %v1262_v8  ;;  %v1231_v22 = vmax.f32 %v1103_v4, %v1167_v9  ;;  %v1263_v23 = vmax.f32 %v1135_v5, %v1199_v10  ;;  %1578 = vst.msk [vmem:[%s2366_s26 + $0x94] sm:$0xf] %vm1540_vm2, %v1868_v14  ;;  %v1165_v30 = vmul.f32 0.2, %v1101_v17  ;;  %v769_v32 = vpop.f32.mrb[17].mxu0  ;;  %v897_v33 = vpop.f32.mrb[17].mxu1 }
 0x10c   : > { %v1839_v28 = vpack.c.bf16 %v1228_v15, %v1228_v15  ;;  %v1871_v29 = vpack.c.bf16 %v1260_v16, %v1260_v16  ;;  %v1197_v31 = vmul.f32 0.2, %v1133_v18  ;;  %1551 = vst.msk [vmem:[%s2366_s26 + $0x28] sm:$0xf] %vm1540_vm2, %v1841_v20  ;;  %v310_v41 = vld [vmem:[#allocation2 + $0x180] sm:$0xff]  ;;  %v1955_v42 = vpop.f32.mrb[18].mxu0  ;;  %v978_v54 = vadd.f32 %v1954_v25, %v280_v24 }
 0x10d   : > { %1583 = vst.msk [vmem:[%s2366_s26 + $0xa8] sm:$0xf] %vm1540_vm2, %v1873_v21  ;;  %v1842_v34 = vpack.c.bf16 %v1231_v22, %v1231_v22  ;;  %v1874_v35 = vpack.c.bf16 %v1263_v23, %v1263_v23  ;;  %v1106_v36 = vld [vmem:[#allocation2 + $0x70] sm:$0xff]  ;;  %v1987_v43 = vpop.f32.mrb[18].mxu1  ;;  %v1229_v44 = vmax.f32 %v1101_v17, %v1165_v30  ;;  %v1010_v55 = vadd.f32 %v1986_v27, %v312_v26  ;;  %v281_v60 = vld [vmem:[#allocation2 + $0x98] sm:$0xff]  ;;  %v772_v62 = vpop.f32.mrb[19].mxu0 }
 0x10e   : > { %v1138_v37 = vld [vmem:[#allocation2 + $0x170] sm:$0xff]  ;;  %1549 = vst.msk [vmem:[%s2366_s26 + $0x20] sm:$0xf] %vm1540_vm2, %v1839_v28  ;;  %1581 = vst.msk [vmem:[%s2366_s26 + $0xa0] sm:$0xf] %vm1540_vm2, %v1871_v29  ;;  %v1261_v45 = vmax.f32 %v1133_v18, %v1197_v31  ;;  %v1104_v48 = vld [vmem:[#allocation2 + $0x60] sm:$0xff]  ;;  %v976_v8 = vadd.f32 %v769_v32, %v278_v40  ;;  %v1008_v9 = vadd.f32 %v897_v33, %v310_v41 }
 0x10f   : > { %v1170_v46 = vmul.f32 0.2, %v1106_v36  ;;  %v1202_v47 = vmul.f32 0.2, %v1138_v37  ;;  %v1136_v49 = vld [vmem:[#allocation2 + $0x160] sm:$0xff]  ;;  %v1107_v52 = vld [vmem:[#allocation2 + $0x78] sm:$0xff]  ;;  %v1840_v56 = vpack.c.bf16 %v1229_v44, %v1229_v44  ;;  %v979_v22 = vadd.f32 %v1955_v42, %v281_v60 }
 0x110   : > { %1552 = vst.msk [vmem:[%s2366_s26 + $0x2c] sm:$0xf] %vm1540_vm2, %v1842_v34  ;;  %1584 = vst.msk [vmem:[%s2366_s26 + $0xac] sm:$0xf] %vm1540_vm2, %v1874_v35  ;;  %v1168_v50 = vmul.f32 0.2, %v1104_v48  ;;  %v1872_v57 = vpack.c.bf16 %v1261_v45, %v1261_v45 }
 0x111   : > { %v1200_v51 = vmul.f32 0.2, %v1136_v49  ;;  %v1139_v53 = vld [vmem:[#allocation2 + $0x178] sm:$0xff]  ;;  %1038 = vst.msk [vmem:[#allocation2 + $0x68] sm:$0xff] %vm197_vm0, %v973_v38  ;;  %1070 = vst.msk [vmem:[#allocation2 + $0x168] sm:$0xff] %vm197_vm0, %v1005_v39  ;;  %v1234_v58 = vmax.f32 %v1106_v36, %v1170_v46  ;;  %v1266_v59 = vmax.f32 %v1138_v37, %v1202_v47  ;;  %v900_v63 = vpop.f32.mrb[19].mxu1 }
 0x112   : > { %v313_v61 = vld [vmem:[#allocation2 + $0x198] sm:$0xff]  ;;  %v1232_v0 = vmax.f32 %v1104_v48, %v1168_v50  ;;  %v1171_v2 = vmul.f32 0.2, %v1107_v52  ;;  %v1203_v3 = vmul.f32 0.2, %v1139_v53  ;;  %1043 = vst.msk [vmem:[#allocation2 + $0x90] sm:$0xff] %vm197_vm0, %v978_v54 }
 0x113   : > { %v1264_v1 = vmax.f32 %v1136_v49, %v1200_v51  ;;  %1075 = vst.msk [vmem:[#allocation2 + $0x190] sm:$0xff] %vm197_vm0, %v1010_v55  ;;  %v279_v4 = vld [vmem:[#allocation2 + $0x88] sm:$0xff]  ;;  %v1845_v6 = vpack.c.bf16 %v1234_v58, %v1234_v58  ;;  %v1877_v7 = vpack.c.bf16 %v1266_v59, %v1266_v59  ;;  %v284_v10 = vld [vmem:[#allocation2 + $0xb0] sm:$0xff]  ;;  %v282_v12 = vld [vmem:[#allocation2 + $0xa0] sm:$0xff]  ;;  %v1958_v17 = vpop.f32.mrb[20].mxu0  ;;  %v1990_v18 = vpop.f32.mrb[20].mxu1  ;;  %v1011_v23 = vadd.f32 %v1987_v43, %v313_v61 }
 0x114   : > { %v311_v5 = vld [vmem:[#allocation2 + $0x188] sm:$0xff]  ;;  %1550 = vst.msk [vmem:[%s2366_s26 + $0x24] sm:$0xf] %vm1540_vm2, %v1840_v56  ;;  %1582 = vst.msk [vmem:[%s2366_s26 + $0xa4] sm:$0xf] %vm1540_vm2, %v1872_v57  ;;  %v316_v11 = vld [vmem:[#allocation2 + $0x1b0] sm:$0xff]  ;;  %v1843_v13 = vpack.c.bf16 %v1232_v0, %v1232_v0  ;;  %v1235_v15 = vmax.f32 %v1107_v52, %v1171_v2  ;;  %v1267_v16 = vmax.f32 %v1139_v53, %v1203_v3 }
 0x115   : > { %v1875_v14 = vpack.c.bf16 %v1264_v1, %v1264_v1  ;;  %v314_v19 = vld [vmem:[#allocation2 + $0x1a0] sm:$0xff]  ;;  %v285_v20 = vld [vmem:[#allocation2 + $0xb8] sm:$0xff]  ;;  %1555 = vst.msk [vmem:[%s2366_s26 + $0x38] sm:$0xf] %vm1540_vm2, %v1845_v6  ;;  %1587 = vst.msk [vmem:[%s2366_s26 + $0xb8] sm:$0xf] %vm1540_vm2, %v1877_v7  ;;  %v977_v24 = vadd.f32 %v772_v62, %v279_v4  ;;  %v1009_v25 = vadd.f32 %v900_v63, %v311_v5 }
 0x116   : > { %v317_v21 = vld [vmem:[#allocation2 + $0x1b8] sm:$0xff]  ;;  %1041 = vst.msk [vmem:[#allocation2 + $0x80] sm:$0xff] %vm197_vm0, %v976_v8  ;;  %1073 = vst.msk [vmem:[#allocation2 + $0x180] sm:$0xff] %vm197_vm0, %v1008_v9  ;;  %v785_v26 = vpop.f32.mrb[21].mxu0  ;;  %v913_v27 = vpop.f32.mrb[21].mxu1  ;;  %v283_v28 = vld [vmem:[#allocation2 + $0xa8] sm:$0xff]  ;;  %v1846_v30 = vpack.c.bf16 %v1235_v15, %v1235_v15  ;;  %v1878_v31 = vpack.c.bf16 %v1267_v16, %v1267_v16  ;;  %v982_v32 = vadd.f32 %v1958_v17, %v284_v10 }
 0x117   : > { %v315_v29 = vld [vmem:[#allocation2 + $0x1a8] sm:$0xff]  ;;  %1553 = vst.msk [vmem:[%s2366_s26 + $0x30] sm:$0xf] %vm1540_vm2, %v1843_v13  ;;  %1585 = vst.msk [vmem:[%s2366_s26 + $0xb0] sm:$0xf] %vm1540_vm2, %v1875_v14  ;;  %v1014_v33 = vadd.f32 %v1990_v18, %v316_v11  ;;  %v1959_v34 = vpop.f32.mrb[22].mxu0  ;;  %v980_v38 = vadd.f32 %v785_v26, %v282_v12  ;;  %v1012_v39 = vadd.f32 %v913_v27, %v314_v19 }
 0x118   : > { %v1991_v35 = vpop.f32.mrb[22].mxu1  ;;  %v1105_v36 = vld [vmem:[#allocation2 + $0x68] sm:$0xff]  ;;  %1044 = vst.msk [vmem:[#allocation2 + $0x98] sm:$0xff] %vm197_vm0, %v979_v22  ;;  %1076 = vst.msk [vmem:[#allocation2 + $0x198] sm:$0xff] %vm197_vm0, %v1011_v23  ;;  %v983_v40 = vadd.f32 %v1959_v34, %v285_v20  ;;  %v788_v42 = vpop.f32.mrb[23].mxu0  ;;  %v288_v54 = vld [vmem:[#allocation2 + $0xd0] sm:$0xff] }
 0x119   : > { %v1137_v37 = vld [vmem:[#allocation2 + $0x168] sm:$0xff]  ;;  %1042 = vst.msk [vmem:[#allocation2 + $0x88] sm:$0xff] %vm197_vm0, %v977_v24  ;;  %1074 = vst.msk [vmem:[#allocation2 + $0x188] sm:$0xff] %vm197_vm0, %v1009_v25  ;;  %v1015_v41 = vadd.f32 %v1991_v35, %v317_v21  ;;  %v916_v43 = vpop.f32.mrb[23].mxu1  ;;  %v1169_v44 = vmul.f32 0.2, %v1105_v36  ;;  %v981_v46 = vadd.f32 %v788_v42, %v283_v28 }
 0x11a   : > { %1556 = vst.msk [vmem:[%s2366_s26 + $0x3c] sm:$0xf] %vm1540_vm2, %v1846_v30  ;;  %1588 = vst.msk [vmem:[%s2366_s26 + $0xbc] sm:$0xf] %vm1540_vm2, %v1878_v31  ;;  %v1201_v45 = vmul.f32 0.2, %v1137_v37  ;;  %v1013_v47 = vadd.f32 %v916_v43, %v315_v29 }
 0x11b   : > { %1047 = vst.msk [vmem:[#allocation2 + $0xb0] sm:$0xff] %vm197_vm0, %v982_v32  ;;  %1079 = vst.msk [vmem:[#allocation2 + $0x1b0] sm:$0xff] %vm197_vm0, %v1014_v33  ;;  %v1110_v48 = vld [vmem:[#allocation2 + $0x90] sm:$0xff]  ;;  %v1233_v50 = vmax.f32 %v1105_v36, %v1169_v44  ;;  %v286_v56 = vld [vmem:[#allocation2 + $0xc0] sm:$0xff]  ;;  %v1962_v0 = vpop.f32.mrb[24].mxu0  ;;  %v1994_v1 = vpop.f32.mrb[24].mxu1 }
 0x11c   : > { %v1142_v49 = vld [vmem:[#allocation2 + $0x190] sm:$0xff]  ;;  %1045 = vst.msk [vmem:[#allocation2 + $0xa0] sm:$0xff] %vm197_vm0, %v980_v38  ;;  %1077 = vst.msk [vmem:[#allocation2 + $0x1a0] sm:$0xff] %vm197_vm0, %v1012_v39  ;;  %v1265_v51 = vmax.f32 %v1137_v37, %v1201_v45  ;;  %v1174_v52 = vmul.f32 0.2, %v1110_v48  ;;  %v318_v57 = vld [vmem:[#allocation2 + $0x1c0] sm:$0xff]  ;;  %v986_v5 = vadd.f32 %v1962_v0, %v288_v54 }
 0x11d   : > { %1048 = vst.msk [vmem:[#allocation2 + $0xb8] sm:$0xff] %vm197_vm0, %v983_v40  ;;  %1080 = vst.msk [vmem:[#allocation2 + $0x1b8] sm:$0xff] %vm197_vm0, %v1015_v41  ;;  %v1206_v53 = vmul.f32 0.2, %v1142_v49  ;;  %v320_v55 = vld [vmem:[#allocation2 + $0x1d0] sm:$0xff]  ;;  %v1844_v58 = vpack.c.bf16 %v1233_v50, %v1233_v50  ;;  %v1108_v62 = vld [vmem:[#allocation2 + $0x80] sm:$0xff] }
 0x11e   : > { %1046 = vst.msk [vmem:[#allocation2 + $0xa8] sm:$0xff] %vm197_vm0, %v981_v46  ;;  %1078 = vst.msk [vmem:[#allocation2 + $0x1a8] sm:$0xff] %vm197_vm0, %v1013_v47  ;;  %v1876_v59 = vpack.c.bf16 %v1265_v51, %v1265_v51  ;;  %v1238_v60 = vmax.f32 %v1110_v48, %v1174_v52  ;;  %v1140_v63 = vld [vmem:[#allocation2 + $0x180] sm:$0xff]  ;;  %v289_v2 = vld [vmem:[#allocation2 + $0xd8] sm:$0xff]  ;;  %v1172_v3 = vmul.f32 0.2, %v1108_v62  ;;  %v1018_v6 = vadd.f32 %v1994_v1, %v320_v55 }
 0x11f   : > { %v1270_v61 = vmax.f32 %v1142_v49, %v1206_v53  ;;  %v1204_v4 = vmul.f32 0.2, %v1140_v63  ;;  %v801_v7 = vpop.f32.mrb[25].mxu0  ;;  %v929_v8 = vpop.f32.mrb[25].mxu1  ;;  %1554 = vst.msk [vmem:[%s2366_s26 + $0x34] sm:$0xf] %vm1540_vm2, %v1844_v58 }
 0x120   : > { %1586 = vst.msk [vmem:[%s2366_s26 + $0xb4] sm:$0xf] %vm1540_vm2, %v1876_v59  ;;  %v1849_v9 = vpack.c.bf16 %v1238_v60, %v1238_v60  ;;  %v1111_v11 = vld [vmem:[#allocation2 + $0x98] sm:$0xff]  ;;  %v1109_v13 = vld [vmem:[#allocation2 + $0x88] sm:$0xff]  ;;  %v984_v14 = vadd.f32 %v801_v7, %v286_v56  ;;  %v1016_v15 = vadd.f32 %v929_v8, %v318_v57  ;;  %v1963_v16 = vpop.f32.mrb[26].mxu0  ;;  %v2466_v17 = vpop.f32.mrb[26].mxu1  ;;  %v1236_v18 = vmax.f32 %v1108_v62, %v1172_v3 }
 0x121   : > { %v1881_v10 = vpack.c.bf16 %v1270_v61, %v1270_v61  ;;  %v1143_v12 = vld [vmem:[#allocation2 + $0x198] sm:$0xff]  ;;  %v1268_v19 = vmax.f32 %v1140_v63, %v1204_v4  ;;  %v1175_v20 = vmul.f32 0.2, %v1111_v11  ;;  %v1141_v22 = vld [vmem:[#allocation2 + $0x188] sm:$0xff]  ;;  %1051 = vst.msk [vmem:[#allocation2 + $0xd0] sm:$0xff] %vm197_vm0, %v986_v5  ;;  %1083 = vst.msk [vmem:[#allocation2 + $0x1d0] sm:$0xff] %vm197_vm0, %v1018_v6  ;;  %v987_v27 = vadd.f32 %v1963_v16, %v289_v2 }
 0x122   : > { %v1207_v21 = vmul.f32 0.2, %v1143_v12  ;;  %v1114_v23 = vld [vmem:[#allocation2 + $0xb0] sm:$0xff]  ;;  %1559 = vst.msk [vmem:[%s2366_s26 + $0x48] sm:$0xf] %vm1540_vm2, %v1849_v9  ;;  %v1847_v28 = vpack.c.bf16 %v1236_v18, %v1236_v18  ;;  %v2476_v35 = vpop.f32.mrb[27].mxu0 }
 0x123   : > { %1591 = vst.msk [vmem:[%s2366_s26 + $0xc8] sm:$0xf] %vm1540_vm2, %v1881_v10  ;;  %v1173_v24 = vmul.f32 0.2, %v1109_v13  ;;  %v1205_v25 = vmul.f32 0.2, %v1141_v22  ;;  %v1879_v29 = vpack.c.bf16 %v1268_v19, %v1268_v19  ;;  %v1239_v30 = vmax.f32 %v1111_v11, %v1175_v20 }
 0x124   : > { %v1178_v26 = vmul.f32 0.2, %v1114_v23  ;;  %1049 = vst.msk [vmem:[#allocation2 + $0xc0] sm:$0xff] %vm197_vm0, %v984_v14  ;;  %1081 = vst.msk [vmem:[#allocation2 + $0x1c0] sm:$0xff] %vm197_vm0, %v1016_v15  ;;  %v1271_v31 = vmax.f32 %v1143_v12, %v1207_v21  ;;  %v1146_v32 = vld [vmem:[#allocation2 + $0x1b0] sm:$0xff]  ;;  %v1112_v33 = vld [vmem:[#allocation2 + $0xa0] sm:$0xff] }
 0x125   : > { %v1144_v34 = vld [vmem:[#allocation2 + $0x1a0] sm:$0xff]  ;;  %v2478_v36 = vpop.f32.mrb[27].mxu1  ;;  %v1237_v37 = vmax.f32 %v1109_v13, %v1173_v24  ;;  %v1269_v38 = vmax.f32 %v1141_v22, %v1205_v25  ;;  %v1210_v40 = vmul.f32 0.2, %v1146_v32  ;;  %v1115_v41 = vld [vmem:[#allocation2 + $0xb8] sm:$0xff]  ;;  %1052 = vst.msk [vmem:[#allocation2 + $0xd8] sm:$0xff] %vm197_vm0, %v987_v27  ;;  %v1850_v44 = vpack.c.bf16 %v1239_v30, %v1239_v30 }
 0x126   : > { %v1242_v39 = vmax.f32 %v1114_v23, %v1178_v26  ;;  %v1147_v42 = vld [vmem:[#allocation2 + $0x1b8] sm:$0xff]  ;;  %1557 = vst.msk [vmem:[%s2366_s26 + $0x40] sm:$0xf] %vm1540_vm2, %v1847_v28  ;;  %1589 = vst.msk [vmem:[%s2366_s26 + $0xc0] sm:$0xf] %vm1540_vm2, %v1879_v29  ;;  %v1882_v45 = vpack.c.bf16 %v1271_v31, %v1271_v31  ;;  %v1113_v48 = vld [vmem:[#allocation2 + $0xa8] sm:$0xff] }
 0x127   : > { %v321_v43 = vld [vmem:[#allocation2 + $0x1d8] sm:$0xff]  ;;  %v1176_v46 = vmul.f32 0.2, %v1112_v33  ;;  %v1208_v47 = vmul.f32 0.2, %v1144_v34  ;;  %v1145_v49 = vld [vmem:[#allocation2 + $0x1a8] sm:$0xff]  ;;  %v1848_v50 = vpack.c.bf16 %v1237_v37, %v1237_v37  ;;  %v1880_v51 = vpack.c.bf16 %v1269_v38, %v1269_v38 }
 0x128   : > { %v1853_v52 = vpack.c.bf16 %v1242_v39, %v1242_v39  ;;  %v1274_v53 = vmax.f32 %v1146_v32, %v1210_v40  ;;  %v2485_v54 = vpop.f32.mrb[28].mxu0  ;;  %v2487_v55 = vpop.f32.mrb[28].mxu1  ;;  %1560 = vst.msk [vmem:[%s2366_s26 + $0x4c] sm:$0xf] %vm1540_vm2, %v1850_v44  ;;  %1592 = vst.msk [vmem:[%s2366_s26 + $0xcc] sm:$0xf] %vm1540_vm2, %v1882_v45  ;;  %v1019_v3 = vadd.f32 %v2466_v17, %v321_v43 }
 0x129   : > { %v1240_v56 = vmax.f32 %v1112_v33, %v1176_v46  ;;  %v1272_v57 = vmax.f32 %v1144_v34, %v1208_v47  ;;  %v1179_v58 = vmul.f32 0.2, %v1115_v41  ;;  %v1211_v59 = vmul.f32 0.2, %v1147_v42  ;;  %v2493_v60 = vpop.f32.mrb[29].mxu0  ;;  %v2495_v61 = vpop.f32.mrb[29].mxu1 }
 0x12a   : > { %1558 = vst.msk [vmem:[%s2366_s26 + $0x44] sm:$0xf] %vm1540_vm2, %v1848_v50  ;;  %1590 = vst.msk [vmem:[%s2366_s26 + $0xc4] sm:$0xf] %vm1540_vm2, %v1880_v51  ;;  %v1885_v62 = vpack.c.bf16 %v1274_v53, %v1274_v53  ;;  %v1177_v63 = vmul.f32 0.2, %v1113_v48 }
 0x12b   : > { %1563 = vst.msk [vmem:[%s2366_s26 + $0x58] sm:$0xf] %vm1540_vm2, %v1853_v52  ;;  %v1209_v0 = vmul.f32 0.2, %v1145_v49  ;;  %v1118_v1 = vld [vmem:[#allocation2 + $0xd0] sm:$0xff]  ;;  %v287_v4 = vld [vmem:[#allocation2 + $0xc8] sm:$0xff]  ;;  %v1851_v5 = vpack.c.bf16 %v1240_v56, %v1240_v56  ;;  %v1883_v6 = vpack.c.bf16 %v1272_v57, %v1272_v57  ;;  %v1243_v7 = vmax.f32 %v1115_v41, %v1179_v58 }
 0x12c   : > { %v1150_v2 = vld [vmem:[#allocation2 + $0x1d0] sm:$0xff]  ;;  %v1275_v8 = vmax.f32 %v1147_v42, %v1211_v59  ;;  %v1116_v9 = vld [vmem:[#allocation2 + $0xc0] sm:$0xff]  ;;  %v319_v11 = vld [vmem:[#allocation2 + $0x1c8] sm:$0xff]  ;;  %v1967_v12 = vpop.f32.mrb[30].mxu0  ;;  %v1999_v13 = vpop.f32.mrb[30].mxu1  ;;  %v1241_v14 = vmax.f32 %v1113_v48, %v1177_v63  ;;  %1084 = vst.msk [vmem:[#allocation2 + $0x1d8] sm:$0xff] %vm197_vm0, %v1019_v3  ;;  %v985_v37 = vadd.f32 %v2476_v35, %v287_v4 }
 0x12d   : > { %v1148_v10 = vld [vmem:[#allocation2 + $0x1c0] sm:$0xff]  ;;  %1595 = vst.msk [vmem:[%s2366_s26 + $0xd8] sm:$0xf] %vm1540_vm2, %v1885_v62  ;;  %v1273_v15 = vmax.f32 %v1145_v49, %v1209_v0  ;;  %v1182_v16 = vmul.f32 0.2, %v1118_v1  ;;  %v820_v17 = vpop.f32.mrb[31].mxu0  ;;  %v1854_v20 = vpack.c.bf16 %v1243_v7, %v1243_v7  ;;  %v1017_v43 = vadd.f32 %v2478_v36, %v319_v11 }
 0x12e   : > { %v1214_v18 = vmul.f32 0.2, %v1150_v2  ;;  %v948_v19 = vpop.f32.mrb[31].mxu1  ;;  %1561 = vst.msk [vmem:[%s2366_s26 + $0x50] sm:$0xf] %vm1540_vm2, %v1851_v5  ;;  %v1886_v21 = vpack.c.bf16 %v1275_v8, %v1275_v8  ;;  %v1119_v24 = vld [vmem:[#allocation2 + $0xd8] sm:$0xff]  ;;  %v1852_v26 = vpack.c.bf16 %v1241_v14, %v1241_v14 }
 0x12f   : > { %1593 = vst.msk [vmem:[%s2366_s26 + $0xd0] sm:$0xf] %vm1540_vm2, %v1883_v6  ;;  %v1180_v22 = vmul.f32 0.2, %v1116_v9  ;;  %v1212_v23 = vmul.f32 0.2, %v1148_v10  ;;  %v1884_v27 = vpack.c.bf16 %v1273_v15, %v1273_v15  ;;  %v1246_v28 = vmax.f32 %v1118_v1, %v1182_v16 }
 0x130   : > { %v292_v25 = vld [vmem:[#allocation2 + $0xf0] sm:$0xff]  ;;  %v1278_v29 = vmax.f32 %v1150_v2, %v1214_v18  ;;  %v290_v31 = vld [vmem:[#allocation2 + $0xe0] sm:$0xff]  ;;  %1564 = vst.msk [vmem:[%s2366_s26 + $0x5c] sm:$0xf] %vm1540_vm2, %v1854_v20  ;;  %1596 = vst.msk [vmem:[%s2366_s26 + $0xdc] sm:$0xf] %vm1540_vm2, %v1886_v21 }
 0x131   : > { %v324_v30 = vld [vmem:[#allocation2 + $0x1f0] sm:$0xff]  ;;  %v1244_v32 = vmax.f32 %v1116_v9, %v1180_v22  ;;  %v1276_v33 = vmax.f32 %v1148_v10, %v1212_v23  ;;  %v1183_v34 = vmul.f32 0.2, %v1119_v24  ;;  %v322_v38 = vld [vmem:[#allocation2 + $0x1e0] sm:$0xff]  ;;  %v293_v39 = vld [vmem:[#allocation2 + $0xf8] sm:$0xff]  ;;  %v1857_v41 = vpack.c.bf16 %v1246_v28, %v1246_v28  ;;  %1050 = vst.msk [vmem:[#allocation2 + $0xc8] sm:$0xff] %vm197_vm0, %v985_v37 }
 0x132   : > { %v325_v40 = vld [vmem:[#allocation2 + $0x1f8] sm:$0xff]  ;;  %1562 = vst.msk [vmem:[%s2366_s26 + $0x54] sm:$0xf] %vm1540_vm2, %v1852_v26  ;;  %1594 = vst.msk [vmem:[%s2366_s26 + $0xd4] sm:$0xf] %vm1540_vm2, %v1884_v27  ;;  %v1889_v42 = vpack.c.bf16 %v1278_v29, %v1278_v29  ;;  %v990_v44 = vadd.f32 %v2485_v54, %v292_v25  ;;  %v291_v45 = vld [vmem:[#allocation2 + $0xe8] sm:$0xff]  ;;  %v1022_v49 = vadd.f32 %v2487_v55, %v324_v30 }
 0x133   : > { %v323_v46 = vld [vmem:[#allocation2 + $0x1e8] sm:$0xff]  ;;  %v1855_v35 = vpack.c.bf16 %v1244_v32, %v1244_v32  ;;  %v1887_v47 = vpack.c.bf16 %v1276_v33, %v1276_v33  ;;  %v1247_v48 = vmax.f32 %v1119_v24, %v1183_v34  ;;  %1567 = vst.msk [vmem:[%s2366_s26 + $0x68] sm:$0xf] %vm1540_vm2, %v1857_v41  ;;  %v988_v36 = vadd.f32 %v2493_v60, %v290_v31  ;;  %v1151_v54 = vld [vmem:[#allocation2 + $0x1d8] sm:$0xff] }
 0x134   : > { %1599 = vst.msk [vmem:[%s2366_s26 + $0xe8] sm:$0xf] %vm1540_vm2, %v1889_v42  ;;  %v1020_v50 = vadd.f32 %v2495_v61, %v322_v38  ;;  %v991_v51 = vadd.f32 %v1967_v12, %v293_v39  ;;  %v1023_v52 = vadd.f32 %v1999_v13, %v325_v40  ;;  %v989_v55 = vadd.f32 %v820_v17, %v291_v45 }
 0x135   : > { %1082 = vst.msk [vmem:[#allocation2 + $0x1c8] sm:$0xff] %vm197_vm0, %v1017_v43  ;;  %1055 = vst.msk [vmem:[#allocation2 + $0xf0] sm:$0xff] %vm197_vm0, %v990_v44  ;;  %v1858_v53 = vpack.c.bf16 %v1247_v48, %v1247_v48  ;;  %v1021_v56 = vadd.f32 %v948_v19, %v323_v46  ;;  %v1215_v57 = vmul.f32 0.2, %v1151_v54 }
 0x136   : > { %1565 = vst.msk [vmem:[%s2366_s26 + $0x60] sm:$0xf] %vm1540_vm2, %v1855_v35  ;;  %1597 = vst.msk [vmem:[%s2366_s26 + $0xe0] sm:$0xf] %vm1540_vm2, %v1887_v47 }
 0x137   : > { %1087 = vst.msk [vmem:[#allocation2 + $0x1f0] sm:$0xff] %vm197_vm0, %v1022_v49  ;;  %1053 = vst.msk [vmem:[#allocation2 + $0xe0] sm:$0xff] %vm197_vm0, %v988_v36  ;;  %v1279_v58 = vmax.f32 %v1151_v54, %v1215_v57 }
 0x138   : > { %1085 = vst.msk [vmem:[#allocation2 + $0x1e0] sm:$0xff] %vm197_vm0, %v1020_v50  ;;  %1056 = vst.msk [vmem:[#allocation2 + $0xf8] sm:$0xff] %vm197_vm0, %v991_v51  ;;  %v1117_v60 = vld [vmem:[#allocation2 + $0xc8] sm:$0xff] }
 0x139   : > { %1088 = vst.msk [vmem:[#allocation2 + $0x1f8] sm:$0xff] %vm197_vm0, %v1023_v52  ;;  %1054 = vst.msk [vmem:[#allocation2 + $0xe8] sm:$0xff] %vm197_vm0, %v989_v55  ;;  %v1890_v59 = vpack.c.bf16 %v1279_v58, %v1279_v58  ;;  %v1181_v61 = vmul.f32 0.2, %v1117_v60 }
 0x13a   : > { %1568 = vst.msk [vmem:[%s2366_s26 + $0x6c] sm:$0xf] %vm1540_vm2, %v1858_v53 }
 0x13b   : > { %1086 = vst.msk [vmem:[#allocation2 + $0x1e8] sm:$0xff] %vm197_vm0, %v1021_v56  ;;  %v1245_v3 = vmax.f32 %v1117_v60, %v1181_v61 }
 0x13c   : > { %v1149_v62 = vld [vmem:[#allocation2 + $0x1c8] sm:$0xff]  ;;  %v1122_v63 = vld [vmem:[#allocation2 + $0xf0] sm:$0xff]  ;;  %1600 = vst.msk [vmem:[%s2366_s26 + $0xec] sm:$0xf] %vm1540_vm2, %v1890_v59 }
 0x13d   : > { %v1213_v0 = vmul.f32 0.2, %v1149_v62  ;;  %v1186_v1 = vmul.f32 0.2, %v1122_v63  ;;  %v1856_v14 = vpack.c.bf16 %v1245_v3, %v1245_v3 }
 0x13e   : > { %v1154_v2 = vld [vmem:[#allocation2 + $0x1f0] sm:$0xff]  ;;  %v1120_v5 = vld [vmem:[#allocation2 + $0xe0] sm:$0xff] }
 0x13f   : > { %v1218_v4 = vmul.f32 0.2, %v1154_v2  ;;  %v1152_v6 = vld [vmem:[#allocation2 + $0x1e0] sm:$0xff]  ;;  %v1123_v7 = vld [vmem:[#allocation2 + $0xf8] sm:$0xff]  ;;  %v1277_v8 = vmax.f32 %v1149_v62, %v1213_v0  ;;  %v1250_v9 = vmax.f32 %v1122_v63, %v1186_v1  ;;  %v1184_v10 = vmul.f32 0.2, %v1120_v5 }
 0x140   : > { %v1216_v11 = vmul.f32 0.2, %v1152_v6  ;;  %v1155_v12 = vld [vmem:[#allocation2 + $0x1f8] sm:$0xff]  ;;  %v1121_v13 = vld [vmem:[#allocation2 + $0xe8] sm:$0xff]  ;;  %v1187_v16 = vmul.f32 0.2, %v1123_v7 }
 0x141   : > { %v1282_v15 = vmax.f32 %v1154_v2, %v1218_v4  ;;  %v1219_v18 = vmul.f32 0.2, %v1155_v12  ;;  %v1888_v19 = vpack.c.bf16 %v1277_v8, %v1277_v8  ;;  %v1861_v20 = vpack.c.bf16 %v1250_v9, %v1250_v9  ;;  %1566 = vst.msk [vmem:[%s2366_s26 + $0x64] sm:$0xf] %vm1540_vm2, %v1856_v14 }
 0x142   : > { %v1153_v17 = vld [vmem:[#allocation2 + $0x1e8] sm:$0xff]  ;;  %v1248_v21 = vmax.f32 %v1120_v5, %v1184_v10  ;;  %v1280_v22 = vmax.f32 %v1152_v6, %v1216_v11  ;;  %v1251_v24 = vmax.f32 %v1123_v7, %v1187_v16  ;;  %v1185_v26 = vmul.f32 0.2, %v1121_v13 }
 0x143   : > { %v1893_v23 = vpack.c.bf16 %v1282_v15, %v1282_v15  ;;  %v1283_v25 = vmax.f32 %v1155_v12, %v1219_v18  ;;  %1598 = vst.msk [vmem:[%s2366_s26 + $0xe4] sm:$0xf] %vm1540_vm2, %v1888_v19  ;;  %1571 = vst.msk [vmem:[%s2366_s26 + $0x78] sm:$0xf] %vm1540_vm2, %v1861_v20  ;;  %v1217_v29 = vmul.f32 0.2, %v1153_v17 }
 0x144   : > { %v1859_v27 = vpack.c.bf16 %v1248_v21, %v1248_v21  ;;  %v1891_v28 = vpack.c.bf16 %v1280_v22, %v1280_v22  ;;  %v1862_v30 = vpack.c.bf16 %v1251_v24, %v1251_v24  ;;  %v1249_v32 = vmax.f32 %v1121_v13, %v1185_v26 }
 0x145   : > { %1603 = vst.msk [vmem:[%s2366_s26 + $0xf8] sm:$0xf] %vm1540_vm2, %v1893_v23  ;;  %v1894_v31 = vpack.c.bf16 %v1283_v25, %v1283_v25  ;;  %v1281_v33 = vmax.f32 %v1153_v17, %v1217_v29 }
 0x146   : > { %1569 = vst.msk [vmem:[%s2366_s26 + $0x70] sm:$0xf] %vm1540_vm2, %v1859_v27  ;;  %1601 = vst.msk [vmem:[%s2366_s26 + $0xf0] sm:$0xf] %vm1540_vm2, %v1891_v28  ;;  %v1860_v34 = vpack.c.bf16 %v1249_v32, %v1249_v32 }
 0x147   : > { %1572 = vst.msk [vmem:[%s2366_s26 + $0x7c] sm:$0xf] %vm1540_vm2, %v1862_v30  ;;  %1604 = vst.msk [vmem:[%s2366_s26 + $0xfc] sm:$0xf] %vm1540_vm2, %v1894_v31  ;;  %v1892_v37 = vpack.c.bf16 %v1281_v33, %v1281_v33 }
 0x148   : > { %1570 = vst.msk [vmem:[%s2366_s26 + $0x74] sm:$0xf] %vm1540_vm2, %v1860_v34 }
 0x149   : > { %1602 = vst.msk [vmem:[%s2366_s26 + $0xf4] sm:$0xf] %vm1540_vm2, %v1892_v37 }
 0x14a PF: > { %s12_s11 = sadd.s32 1, %s2088_s11   ;;  %s2579_s9 = smov %s2084_s10 }
 0x14b   : > { %p9_p5 = scmp.ge.s32.totalorder %s12_s11, 6   ;;  %s2580_s10 = smov %s2582_s12 }
 0x14d   :  { %11 = sbr.rel (!%p9_p5) target bundleno = 2 (0x2), region = 69 }

// kernel: discriminator_forward.9
= control target key start
LH: loop header
LB: loop body
LE: loop exit
PB: predicated region body
PF: predicated region fallthrough
CT: control target
= control target key end

     0   :  { %v4527_v0 = vmov 0   ;;  %vm3811_vm0 = vcmask 1040384   ;;  %s5783_s1 = inlined_call_operand.vmem [shape: bf16[1024,128], index: 1, kind: input, shape index: {}]   ;;  %s5784_s0 = inlined_call_operand.vmem [shape: bf16[512,1024], index: 0, kind: input, shape index: {}]   ;;  %s5785_s2 = inlined_call_operand.vmem [shape: f32[512,128], index: 2, kind: output, shape index: {0}]   ;;  %s5786_s3 = inlined_call_operand.vmem [shape: f32[1,2,128], index: 3, kind: output, shape index: {1}]  }
   0x1   :  { %2194 = vmatprep.subr.bf16.mxu1 %v4527_v0  ;;  %2772 = vmatprep.subr.bf16.mxu0 %v4527_v0  ;;  %v4463_v1 = vld [vmem:[%s5783_s1] sm:$0xff]   ;;  %v4465_v3 = vld [vmem:[%s5783_s1 + $0x8] sm:$0xff]   ;;  %v4467_v5 = vld [vmem:[%s5783_s1 + $0x10] sm:$0xff]  }
   0x2   :  { %v4464_v2 = vld [vmem:[%s5783_s1 + $0x100] sm:$0xff]   ;;  %2195 = vmatpush1.bf16.msra.mxu1 %v4463_v1  ;;  %v4466_v4 = vld [vmem:[%s5783_s1 + $0x108] sm:$0xff]   ;;  %v4468_v6 = vld [vmem:[%s5783_s1 + $0x110] sm:$0xff]  }
   0x3   :  { %2773 = vmatpush1.bf16.msra.mxu0 %v4464_v2  ;;  %2196 = vmatprep.subr.bf16.mxu1 %v4527_v0  ;;  %v4469_v7 = vld [vmem:[%s5783_s1 + $0x18] sm:$0xff]   ;;  %v4471_v9 = vld [vmem:[%s5783_s1 + $0x20] sm:$0xff]   ;;  %v4473_v11 = vld [vmem:[%s5783_s1 + $0x28] sm:$0xff]  }
   0x4   :  { %2774 = vmatprep.subr.bf16.mxu0 %v4527_v0  ;;  %v4470_v8 = vld [vmem:[%s5783_s1 + $0x118] sm:$0xff]   ;;  %v4472_v10 = vld [vmem:[%s5783_s1 + $0x120] sm:$0xff]   ;;  %v4474_v12 = vld [vmem:[%s5783_s1 + $0x128] sm:$0xff]  }
   0x5   :  { %v4475_v13 = vld [vmem:[%s5783_s1 + $0x30] sm:$0xff]   ;;  %v4477_v15 = vld [vmem:[%s5783_s1 + $0x38] sm:$0xff]   ;;  %v4479_v17 = vld [vmem:[%s5783_s1 + $0x40] sm:$0xff]  }
   0x6   :  { %2197 = vmatpush1.bf16.msra.mxu1 %v4465_v3  ;;  %v4476_v14 = vld [vmem:[%s5783_s1 + $0x130] sm:$0xff]   ;;  %v4478_v16 = vld [vmem:[%s5783_s1 + $0x138] sm:$0xff]   ;;  %v4480_v18 = vld [vmem:[%s5783_s1 + $0x140] sm:$0xff]  }
   0x7   :  { %2775 = vmatpush1.bf16.msra.mxu0 %v4466_v4  ;;  %2198 = vmatprep.subr.bf16.mxu1 %v4527_v0  ;;  %v4623_v19 = vld [vmem:[%s5784_s0] sm:$0xff]  ;;  %v4633_v21 = vld [vmem:[%s5784_s0 + $0x10] sm:$0xff]  ;;  %v4481_v24 = vld [vmem:[%s5783_s1 + $0x48] sm:$0xff]  }
   0x8   :  { %2776 = vmatprep.subr.bf16.mxu0 %v4527_v0  ;;  %v4628_v20 = vld [vmem:[%s5784_s0 + $0x20] sm:$0xff]  ;;  %v4640_v23 = vld [vmem:[%s5784_s0 + $0x30] sm:$0xff]  ;;  %v4482_v26 = vld [vmem:[%s5783_s1 + $0x148] sm:$0xff]  }
   0x9   :  { %v3823_v22 = vcombine.high %v4623_v19, %v4628_v20  ;;  %v3827_v25 = vcombine.high %v4633_v21, %v4640_v23  ;;  %v4483_v27 = vld [vmem:[%s5783_s1 + $0x50] sm:$0xff]   ;;  %v4485_v29 = vld [vmem:[%s5783_s1 + $0x58] sm:$0xff]   ;;  %v4487_v31 = vld [vmem:[%s5783_s1 + $0x60] sm:$0xff]   ;;  %v3822_v42 = vcombine.low %v4623_v19, %v4628_v20  ;;  %v3826_v44 = vcombine.low %v4633_v21, %v4640_v23 }
   0xa   :  { %2199 = vmatpush1.bf16.msra.mxu1 %v4467_v5  ;;  %v4484_v28 = vld [vmem:[%s5783_s1 + $0x150] sm:$0xff]   ;;  %v4486_v30 = vld [vmem:[%s5783_s1 + $0x158] sm:$0xff]   ;;  %v4488_v32 = vld [vmem:[%s5783_s1 + $0x160] sm:$0xff]  }
   0xb   :  { %2777 = vmatpush1.bf16.msra.mxu0 %v4468_v6  ;;  %2200 = vmatprep.subr.bf16.mxu1 %v4527_v0  ;;  %v4489_v33 = vld [vmem:[%s5783_s1 + $0x68] sm:$0xff]   ;;  %v4491_v35 = vld [vmem:[%s5783_s1 + $0x70] sm:$0xff]   ;;  %v4493_v37 = vld [vmem:[%s5783_s1 + $0x78] sm:$0xff]  }
   0xc   :  { %2778 = vmatprep.subr.bf16.mxu0 %v4527_v0  ;;  %2226 = vmatprep.mubr.bf16.mxu1 %v3823_v22  ;;  %v4490_v34 = vld [vmem:[%s5783_s1 + $0x168] sm:$0xff]   ;;  %v4492_v36 = vld [vmem:[%s5783_s1 + $0x170] sm:$0xff]   ;;  %v4494_v38 = vld [vmem:[%s5783_s1 + $0x178] sm:$0xff]  }
   0xd   :  { %2804 = vmatprep.mubr.bf16.mxu0 %v3827_v25  ;;  %v154_v39 = vld [vmem:[%s5784_s0 + $0x40] sm:$0xff]  ;;  %v156_v41 = vld [vmem:[%s5784_s0 + $0x50] sm:$0xff]  ;;  %v4497_v51 = vld [vmem:[%s5783_s1 + $0x88] sm:$0xff]  }
   0xe   :  { %2201 = vmatpush1.bf16.msra.mxu1 %v4469_v7  ;;  %v158_v40 = vld [vmem:[%s5784_s0 + $0x60] sm:$0xff]  ;;  %v160_v43 = vld [vmem:[%s5784_s0 + $0x70] sm:$0xff]  ;;  %v4498_v52 = vld [vmem:[%s5783_s1 + $0x188] sm:$0xff]  }
   0xf   :  { %2779 = vmatpush1.bf16.msra.mxu0 %v4470_v8  ;;  %2202 = vmatprep.subr.bf16.mxu1 %v4527_v0  ;;  %v4495_v45 = vld [vmem:[%s5783_s1 + $0x80] sm:$0xff]   ;;  %v3831_v47 = vcombine.high %v154_v39, %v158_v40  ;;  %v3835_v48 = vcombine.high %v156_v41, %v160_v43  ;;  %v164_v53 = vld [vmem:[%s5784_s0 + $0x90] sm:$0xff]  ;;  %v3830_v55 = vcombine.low %v154_v39, %v158_v40  ;;  %v4501_v2 = vld [vmem:[%s5783_s1 + $0x98] sm:$0xff]  }
  0x10   :  { %2780 = vmatprep.subr.bf16.mxu0 %v4527_v0  ;;  %v4496_v46 = vld [vmem:[%s5783_s1 + $0x180] sm:$0xff]   ;;  %v168_v54 = vld [vmem:[%s5784_s0 + $0xb0] sm:$0xff]  ;;  %v3834_v56 = vcombine.low %v156_v41, %v160_v43  ;;  %v4502_v3 = vld [vmem:[%s5783_s1 + $0x198] sm:$0xff]  }
  0x11   :  { %v162_v49 = vld [vmem:[%s5784_s0 + $0x80] sm:$0xff]  ;;  %v3843_v58 = vcombine.high %v164_v53, %v168_v54  ;;  %v4499_v59 = vld [vmem:[%s5783_s1 + $0x90] sm:$0xff]   ;;  %v3842_v6 = vcombine.low %v164_v53, %v168_v54  ;;  %v4514_v39 = vld [vmem:[%s5783_s1 + $0x1c8] sm:$0xff]  }
  0x12   :  { %2203 = vmatpush1.bf16.msra.mxu1 %v4471_v9  ;;  %v166_v50 = vld [vmem:[%s5784_s0 + $0xa0] sm:$0xff]  ;;  %v4500_v60 = vld [vmem:[%s5783_s1 + $0x190] sm:$0xff]   ;;  %v4517_v54 = vld [vmem:[%s5783_s1 + $0xd8] sm:$0xff]  }
  0x13   :  { %2781 = vmatpush1.bf16.msra.mxu0 %v4472_v10  ;;  %2204 = vmatprep.subr.bf16.mxu1 %v4527_v0  ;;  %v3839_v57 = vcombine.high %v162_v49, %v166_v50  ;;  %v170_v61 = vld [vmem:[%s5784_s0 + $0xc0] sm:$0xff]  ;;  %v172_v63 = vld [vmem:[%s5784_s0 + $0xd0] sm:$0xff]  ;;  %v3838_v4 = vcombine.low %v162_v49, %v166_v50 }
  0x14   :  { %2782 = vmatprep.subr.bf16.mxu0 %v4527_v0  ;;  %v174_v62 = vld [vmem:[%s5784_s0 + $0xe0] sm:$0xff]  ;;  %v176_v1 = vld [vmem:[%s5784_s0 + $0xf0] sm:$0xff] }
  0x15   :  { %v4503_v5 = vld [vmem:[%s5783_s1 + $0xa0] sm:$0xff]   ;;  %v3847_v7 = vcombine.high %v170_v61, %v174_v62  ;;  %v3851_v9 = vcombine.high %v172_v63, %v176_v1  ;;  %v4507_v20 = vld [vmem:[%s5783_s1 + $0xb0] sm:$0xff]  }
  0x16   :  { %2205 = vmatpush1.bf16.msra.mxu1 %v4473_v11  ;;  %v4504_v8 = vld [vmem:[%s5783_s1 + $0x1a0] sm:$0xff]   ;;  %v4508_v21 = vld [vmem:[%s5783_s1 + $0x1b0] sm:$0xff]  }
  0x17   :  { %2783 = vmatpush1.bf16.msra.mxu0 %v4474_v12  ;;  %2206 = vmatprep.subr.bf16.mxu1 %v4527_v0  ;;  %v178_v10 = vld [vmem:[%s5784_s0 + $0x100] sm:$0xff]  ;;  %v180_v12 = vld [vmem:[%s5784_s0 + $0x110] sm:$0xff] }
  0x18   :  { %2784 = vmatprep.subr.bf16.mxu0 %v4527_v0  ;;  %v182_v11 = vld [vmem:[%s5784_s0 + $0x120] sm:$0xff]  ;;  %v188_v25 = vld [vmem:[%s5784_s0 + $0x150] sm:$0xff] }
  0x19   :  { %v186_v22 = vld [vmem:[%s5784_s0 + $0x140] sm:$0xff]  ;;  %v208_v49 = vld [vmem:[%s5784_s0 + $0x1f0] sm:$0xff] }
  0x1a   :  { %2207 = vmatpush1.bf16.msra.mxu1 %v4475_v13  ;;  %v184_v13 = vld [vmem:[%s5784_s0 + $0x130] sm:$0xff]  ;;  %v190_v23 = vld [vmem:[%s5784_s0 + $0x160] sm:$0xff] }
  0x1b   :  { %2785 = vmatpush1.bf16.msra.mxu0 %v4476_v14  ;;  %2208 = vmatprep.subr.bf16.mxu1 %v4527_v0  ;;  %v4505_v14 = vld [vmem:[%s5783_s1 + $0xa8] sm:$0xff]   ;;  %v3859_v19 = vcombine.high %v180_v12, %v184_v13  ;;  %v3862_v40 = vcombine.low %v186_v22, %v190_v23 }
  0x1c   :  { %2786 = vmatprep.subr.bf16.mxu0 %v4527_v0 }
  0x1e   :  { %2209 = vmatpush1.bf16.msra.mxu1 %v4477_v15  ;;  %v4506_v15 = vld [vmem:[%s5783_s1 + $0x1a8] sm:$0xff]  }
  0x1f   :  { %2787 = vmatpush1.bf16.msra.mxu0 %v4478_v16  ;;  %2210 = vmatprep.subr.bf16.mxu1 %v4527_v0  ;;  %v3846_v16 = vcombine.low %v170_v61, %v174_v62 }
  0x20   :  { %2788 = vmatprep.subr.bf16.mxu0 %v4527_v0 }
  0x22   :  { %2211 = vmatpush1.bf16.msra.mxu1 %v4479_v17  ;;  %v3850_v17 = vcombine.low %v172_v63, %v176_v1  ;;  %v218_v1 = vld [vmem:[%s5784_s0 + $0x240] sm:$0xff] }
  0x23   :  { %2789 = vmatpush1.bf16.msra.mxu0 %v4480_v18  ;;  %2212 = vmatprep.subr.bf16.mxu1 %v4527_v0  ;;  %v3855_v18 = vcombine.high %v178_v10, %v182_v11 }
  0x24   :  { %2790 = vmatprep.subr.bf16.mxu0 %v4527_v0 }
  0x26   :  { %2213 = vmatpush1.bf16.msra.mxu1 %v4481_v24  ;;  %v4509_v24 = vld [vmem:[%s5783_s1 + $0xb8] sm:$0xff]  }
  0x27   :  { %2791 = vmatpush1.bf16.msra.mxu0 %v4482_v26  ;;  %2214 = vmatprep.subr.bf16.mxu1 %v4527_v0  ;;  %v192_v26 = vld [vmem:[%s5784_s0 + $0x170] sm:$0xff] }
  0x28   :  { %2792 = vmatprep.subr.bf16.mxu0 %v4527_v0  ;;  %v3866_v41 = vcombine.low %v188_v25, %v192_v26 }
  0x2a   :  { %2215 = vmatpush1.bf16.msra.mxu1 %v4483_v27  ;;  %v4510_v27 = vld [vmem:[%s5783_s1 + $0x1b8] sm:$0xff]  }
  0x2b   :  { %2793 = vmatpush1.bf16.msra.mxu0 %v4484_v28  ;;  %2216 = vmatprep.subr.bf16.mxu1 %v4527_v0  ;;  %v3854_v28 = vcombine.low %v178_v10, %v182_v11  ;;  %v4520_v10 = vld [vmem:[%s5783_s1 + $0x1e0] sm:$0xff]  }
  0x2c   :  { %2794 = vmatprep.subr.bf16.mxu0 %v4527_v0  ;;  %v226_v11 = vld [vmem:[%s5784_s0 + $0x280] sm:$0xff] }
  0x2e   :  { %2217 = vmatpush1.bf16.msra.mxu1 %v4485_v29  ;;  %v3858_v29 = vcombine.low %v180_v12, %v184_v13  ;;  %v230_v12 = vld [vmem:[%s5784_s0 + $0x2a0] sm:$0xff]  ;;  %v228_v13 = vld [vmem:[%s5784_s0 + $0x290] sm:$0xff] }
  0x2f   :  { %2795 = vmatpush1.bf16.msra.mxu0 %v4486_v30  ;;  %2218 = vmatprep.subr.bf16.mxu1 %v4527_v0  ;;  %v3863_v30 = vcombine.high %v186_v22, %v190_v23  ;;  %v240_v22 = vld [vmem:[%s5784_s0 + $0x2f0] sm:$0xff]  ;;  %v3902_v23 = vcombine.low %v226_v11, %v230_v12 }
  0x30   :  { %2796 = vmatprep.subr.bf16.mxu0 %v4527_v0 }
  0x32   :  { %2219 = vmatpush1.bf16.msra.mxu1 %v4487_v31  ;;  %v3867_v31 = vcombine.high %v188_v25, %v192_v26 }
  0x33   :  { %2797 = vmatpush1.bf16.msra.mxu0 %v4488_v32  ;;  %2220 = vmatprep.subr.bf16.mxu1 %v4527_v0  ;;  %v4511_v32 = vld [vmem:[%s5783_s1 + $0xc0] sm:$0xff]  }
  0x34   :  { %2798 = vmatprep.subr.bf16.mxu0 %v4527_v0 }
  0x36   :  { %2221 = vmatpush1.bf16.msra.mxu1 %v4489_v33  ;;  %v4512_v33 = vld [vmem:[%s5783_s1 + $0x1c0] sm:$0xff]  }
  0x37   :  { %2799 = vmatpush1.bf16.msra.mxu0 %v4490_v34  ;;  %2222 = vmatprep.subr.bf16.mxu1 %v4527_v0  ;;  %v194_v34 = vld [vmem:[%s5784_s0 + $0x180] sm:$0xff] }
  0x38   :  { %2800 = vmatprep.subr.bf16.mxu0 %v4527_v0 }
  0x3a   :  { %2223 = vmatpush1.bf16.msra.mxu1 %v4491_v35  ;;  %v198_v35 = vld [vmem:[%s5784_s0 + $0x1a0] sm:$0xff] }
  0x3b   :  { %2801 = vmatpush1.bf16.msra.mxu0 %v4492_v36  ;;  %2224 = vmatprep.subr.bf16.mxu1 %v4527_v0  ;;  %v4513_v36 = vld [vmem:[%s5783_s1 + $0xc8] sm:$0xff]   ;;  %v3870_v50 = vcombine.low %v194_v34, %v198_v35 }
  0x3c   :  { %2802 = vmatprep.subr.bf16.mxu0 %v4527_v0 }
  0x3e   :  { %2225 = vmatpush1.bf16.msra.mxu1 %v4493_v37  ;;  %v196_v37 = vld [vmem:[%s5784_s0 + $0x190] sm:$0xff] }
  0x3f   :  { %2803 = vmatpush1.bf16.msra.mxu0 %v4494_v38  ;;  %2483 = vmatprep.subr.bf16.mxu1 %v4527_v0  ;;  %v200_v38 = vld [vmem:[%s5784_s0 + $0x1b0] sm:$0xff] }
  0x40   :  { %3061 = vmatprep.subr.bf16.mxu0 %v4527_v0  ;;  %v3875_v43 = vcombine.high %v196_v37, %v200_v38 }
  0x41   :  { %2227 = vmatmul.mubr.bf16.vlgmr.msra.gmra.mrb[0].mxu1 %v3822_v42  ;;  %v3871_v42 = vcombine.high %v194_v34, %v198_v35 }
  0x42   :  { %2805 = vmatmul.mubr.bf16.vlgmr.msra.gmra.mrb[0].mxu0 %v3826_v44  ;;  %2484 = vmatpush1.bf16.msra.mxu1 %v4495_v45  ;;  %v4515_v44 = vld [vmem:[%s5783_s1 + $0xd0] sm:$0xff]  }
  0x43   :  { %3062 = vmatpush1.bf16.msra.mxu0 %v4496_v46  ;;  %2234 = vmatprep.mubr.bf16.mxu1 %v3831_v47  ;;  %v4516_v45 = vld [vmem:[%s5783_s1 + $0x1d0] sm:$0xff]   ;;  %v202_v46 = vld [vmem:[%s5784_s0 + $0x1c0] sm:$0xff] }
  0x44   :  { %2812 = vmatprep.mubr.bf16.mxu0 %v3835_v48  ;;  %2485 = vmatprep.subr.bf16.mxu1 %v4527_v0  ;;  %v206_v47 = vld [vmem:[%s5784_s0 + $0x1e0] sm:$0xff]  ;;  %v204_v48 = vld [vmem:[%s5784_s0 + $0x1d0] sm:$0xff] }
  0x45   :  { %3063 = vmatprep.subr.bf16.mxu0 %v4527_v0  ;;  %v3883_v53 = vcombine.high %v204_v48, %v208_v49  ;;  %v3882_v61 = vcombine.low %v204_v48, %v208_v49  ;;  %v262_v48 = vld [vmem:[%s5784_s0 + $0x3a0] sm:$0xff]  ;;  %v260_v49 = vld [vmem:[%s5784_s0 + $0x390] sm:$0xff] }
  0x46   :  { %2486 = vmatpush1.bf16.msra.mxu1 %v4497_v51  ;;  %v3874_v51 = vcombine.low %v196_v37, %v200_v38  ;;  %v250_v37 = vld [vmem:[%s5784_s0 + $0x340] sm:$0xff] }
  0x47   :  { %3064 = vmatpush1.bf16.msra.mxu0 %v4498_v52  ;;  %2487 = vmatprep.subr.bf16.mxu1 %v4527_v0  ;;  %v3879_v52 = vcombine.high %v202_v46, %v206_v47  ;;  %v254_v38 = vld [vmem:[%s5784_s0 + $0x360] sm:$0xff] }
  0x48   :  { %3065 = vmatprep.subr.bf16.mxu0 %v4527_v0 }
  0x49   :  { %2235 = vmatmul.mubr.bf16.gmra.mrb[4].mxu1 %v3830_v55  ;;  %v4518_v55 = vld [vmem:[%s5783_s1 + $0x1d8] sm:$0xff]  }
  0x4a   :  { %2813 = vmatmul.mubr.bf16.gmra.mrb[4].mxu0 %v3834_v56  ;;  %2242 = vmatprep.mubr.bf16.mxu1 %v3839_v57  ;;  %v210_v56 = vld [vmem:[%s5784_s0 + $0x200] sm:$0xff] }
  0x4b   :  { %2820 = vmatprep.mubr.bf16.mxu0 %v3843_v58  ;;  %2488 = vmatpush1.bf16.msra.mxu1 %v4499_v59  ;;  %v214_v57 = vld [vmem:[%s5784_s0 + $0x220] sm:$0xff]  ;;  %v212_v58 = vld [vmem:[%s5784_s0 + $0x210] sm:$0xff] }
  0x4c   :  { %3066 = vmatpush1.bf16.msra.mxu0 %v4500_v60  ;;  %2489 = vmatprep.subr.bf16.mxu1 %v4527_v0  ;;  %v216_v59 = vld [vmem:[%s5784_s0 + $0x230] sm:$0xff]  ;;  %v3878_v60 = vcombine.low %v202_v46, %v206_v47  ;;  %v3887_v62 = vcombine.high %v210_v56, %v214_v57  ;;  %v258_v47 = vld [vmem:[%s5784_s0 + $0x380] sm:$0xff] }
  0x4d   :  { %3067 = vmatprep.subr.bf16.mxu0 %v4527_v0  ;;  %v3891_v63 = vcombine.high %v212_v58, %v216_v59  ;;  %v4524_v46 = vld [vmem:[%s5783_s1 + $0x1f0] sm:$0xff]  }
  0x4f   :  { %2490 = vmatpush1.bf16.msra.mxu1 %v4501_v2  ;;  %v222_v2 = vld [vmem:[%s5784_s0 + $0x260] sm:$0xff] }
  0x50   :  { %3068 = vmatpush1.bf16.msra.mxu0 %v4502_v3  ;;  %2491 = vmatprep.subr.bf16.mxu1 %v4527_v0  ;;  %v220_v3 = vld [vmem:[%s5784_s0 + $0x250] sm:$0xff] }
  0x51   :  { %2243 = vmatmul.mubr.bf16.gmra.mrb[8].mxu1 %v3838_v4  ;;  %3069 = vmatprep.subr.bf16.mxu0 %v4527_v0  ;;  %v224_v4 = vld [vmem:[%s5784_s0 + $0x270] sm:$0xff] }
  0x52   :  { %2821 = vmatmul.mubr.bf16.gmra.mrb[8].mxu0 %v3842_v6  ;;  %2250 = vmatprep.mubr.bf16.mxu1 %v3847_v7  ;;  %v3890_v6 = vcombine.low %v212_v58, %v216_v59  ;;  %v3895_v7 = vcombine.high %v218_v1, %v222_v2  ;;  %v3934_v58 = vcombine.low %v258_v47, %v262_v48 }
  0x53   :  { %2828 = vmatprep.mubr.bf16.mxu0 %v3851_v9  ;;  %2492 = vmatpush1.bf16.msra.mxu1 %v4503_v5  ;;  %v3886_v5 = vcombine.low %v210_v56, %v214_v57  ;;  %v4519_v9 = vld [vmem:[%s5783_s1 + $0xe0] sm:$0xff]   ;;  %v268_v57 = vld [vmem:[%s5784_s0 + $0x3d0] sm:$0xff] }
  0x54   :  { %3070 = vmatpush1.bf16.msra.mxu0 %v4504_v8  ;;  %2493 = vmatprep.subr.bf16.mxu1 %v4527_v0  ;;  %v3899_v8 = vcombine.high %v220_v3, %v224_v4  ;;  %v270_v56 = vld [vmem:[%s5784_s0 + $0x3e0] sm:$0xff] }
  0x55   :  { %3071 = vmatprep.subr.bf16.mxu0 %v4527_v0 }
  0x57   :  { %2494 = vmatpush1.bf16.msra.mxu1 %v4505_v14  ;;  %v232_v14 = vld [vmem:[%s5784_s0 + $0x2b0] sm:$0xff] }
  0x58   :  { %3072 = vmatpush1.bf16.msra.mxu0 %v4506_v15  ;;  %2495 = vmatprep.subr.bf16.mxu1 %v4527_v0  ;;  %v3894_v15 = vcombine.low %v218_v1, %v222_v2  ;;  %v274_v1 = vld [vmem:[%s5784_s0 + $0x400] sm:$0xff] }
  0x59   :  { %2251 = vmatmul.mubr.bf16.gmra.mrb[12].mxu1 %v3846_v16  ;;  %3073 = vmatprep.subr.bf16.mxu0 %v4527_v0  ;;  %v3898_v16 = vcombine.low %v220_v3, %v224_v4  ;;  %v278_v2 = vld [vmem:[%s5784_s0 + $0x420] sm:$0xff]  ;;  %v276_v3 = vld [vmem:[%s5784_s0 + $0x410] sm:$0xff] }
  0x5a   :  { %2829 = vmatmul.mubr.bf16.gmra.mrb[12].mxu0 %v3850_v17  ;;  %2258 = vmatprep.mubr.bf16.mxu1 %v3855_v18  ;;  %v3903_v17 = vcombine.high %v226_v11, %v230_v12  ;;  %v3907_v18 = vcombine.high %v228_v13, %v232_v14  ;;  %v280_v4 = vld [vmem:[%s5784_s0 + $0x430] sm:$0xff] }
  0x5b   :  { %2836 = vmatprep.mubr.bf16.mxu0 %v3859_v19  ;;  %2496 = vmatpush1.bf16.msra.mxu1 %v4507_v20  ;;  %v234_v19 = vld [vmem:[%s5784_s0 + $0x2c0] sm:$0xff]  ;;  %v284_v11 = vld [vmem:[%s5784_s0 + $0x450] sm:$0xff] }
  0x5c   :  { %3074 = vmatpush1.bf16.msra.mxu0 %v4508_v21  ;;  %2497 = vmatprep.subr.bf16.mxu1 %v4527_v0  ;;  %v238_v20 = vld [vmem:[%s5784_s0 + $0x2e0] sm:$0xff]  ;;  %v236_v21 = vld [vmem:[%s5784_s0 + $0x2d0] sm:$0xff] }
  0x5d   :  { %3075 = vmatprep.subr.bf16.mxu0 %v4527_v0  ;;  %v3911_v25 = vcombine.high %v234_v19, %v238_v20  ;;  %v3915_v26 = vcombine.high %v236_v21, %v240_v22  ;;  %v3914_v34 = vcombine.low %v236_v21, %v240_v22  ;;  %v288_v12 = vld [vmem:[%s5784_s0 + $0x470] sm:$0xff] }
  0x5e   :  { %v3962_v22 = vcombine.low %v284_v11, %v288_v12 }
  0x5f   :  { %2498 = vmatpush1.bf16.msra.mxu1 %v4509_v24  ;;  %v3906_v24 = vcombine.low %v228_v13, %v232_v14  ;;  %v3950_v13 = vcombine.low %v274_v1, %v278_v2  ;;  %v3954_v14 = vcombine.low %v276_v3, %v280_v4 }
  0x60   :  { %3076 = vmatpush1.bf16.msra.mxu0 %v4510_v27  ;;  %2499 = vmatprep.subr.bf16.mxu1 %v4527_v0  ;;  %v4521_v27 = vld [vmem:[%s5783_s1 + $0xe8] sm:$0xff]  }
  0x61   :  { %2259 = vmatmul.mubr.bf16.gmra.mrb[16].mxu1 %v3854_v28  ;;  %3077 = vmatprep.subr.bf16.mxu0 %v4527_v0  ;;  %v4522_v28 = vld [vmem:[%s5783_s1 + $0x1e8] sm:$0xff]  }
  0x62   :  { %2837 = vmatmul.mubr.bf16.gmra.mrb[16].mxu0 %v3858_v29  ;;  %2266 = vmatprep.mubr.bf16.mxu1 %v3863_v30  ;;  %v242_v29 = vld [vmem:[%s5784_s0 + $0x300] sm:$0xff] }
  0x63   :  { %2844 = vmatprep.mubr.bf16.mxu0 %v3867_v31  ;;  %2500 = vmatpush1.bf16.msra.mxu1 %v4511_v32  ;;  %v246_v30 = vld [vmem:[%s5784_s0 + $0x320] sm:$0xff]  ;;  %v244_v31 = vld [vmem:[%s5784_s0 + $0x310] sm:$0xff] }
  0x64   :  { %3078 = vmatpush1.bf16.msra.mxu0 %v4512_v33  ;;  %2501 = vmatprep.subr.bf16.mxu1 %v4527_v0  ;;  %v248_v32 = vld [vmem:[%s5784_s0 + $0x330] sm:$0xff]  ;;  %v3910_v33 = vcombine.low %v234_v19, %v238_v20  ;;  %v3919_v35 = vcombine.high %v242_v29, %v246_v30 }
  0x65   :  { %3079 = vmatprep.subr.bf16.mxu0 %v4527_v0  ;;  %v292_v19 = vld [vmem:[%s5784_s0 + $0x490] sm:$0xff] }
  0x66   :  { %v296_v20 = vld [vmem:[%s5784_s0 + $0x4b0] sm:$0xff] }
  0x67   :  { %2502 = vmatpush1.bf16.msra.mxu1 %v4513_v36  ;;  %v3923_v36 = vcombine.high %v244_v31, %v248_v32 }
  0x68   :  { %3080 = vmatpush1.bf16.msra.mxu0 %v4514_v39  ;;  %2503 = vmatprep.subr.bf16.mxu1 %v4527_v0  ;;  %v252_v39 = vld [vmem:[%s5784_s0 + $0x350] sm:$0xff] }
  0x69   :  { %2267 = vmatmul.mubr.bf16.gmra.mrb[20].mxu1 %v3862_v40  ;;  %3081 = vmatprep.subr.bf16.mxu0 %v4527_v0  ;;  %v256_v40 = vld [vmem:[%s5784_s0 + $0x370] sm:$0xff] }
  0x6a   :  { %2845 = vmatmul.mubr.bf16.gmra.mrb[20].mxu0 %v3866_v41  ;;  %2274 = vmatprep.mubr.bf16.mxu1 %v3871_v42  ;;  %v3918_v41 = vcombine.low %v242_v29, %v246_v30  ;;  %v3922_v42 = vcombine.low %v244_v31, %v248_v32  ;;  %v3970_v30 = vcombine.low %v292_v19, %v296_v20 }
  0x6b   :  { %2852 = vmatprep.mubr.bf16.mxu0 %v3875_v43  ;;  %2504 = vmatpush1.bf16.msra.mxu1 %v4515_v44  ;;  %v3927_v43 = vcombine.high %v250_v37, %v254_v38  ;;  %v3931_v44 = vcombine.high %v252_v39, %v256_v40 }
  0x6c   :  { %3082 = vmatpush1.bf16.msra.mxu0 %v4516_v45  ;;  %2505 = vmatprep.subr.bf16.mxu1 %v4527_v0  ;;  %v4523_v45 = vld [vmem:[%s5783_s1 + $0xf0] sm:$0xff]  }
  0x6d   :  { %3083 = vmatprep.subr.bf16.mxu0 %v4527_v0 }
  0x6f   :  { %2506 = vmatpush1.bf16.msra.mxu1 %v4517_v54 }
  0x70   :  { %3084 = vmatpush1.bf16.msra.mxu0 %v4518_v55  ;;  %2507 = vmatprep.subr.bf16.mxu1 %v4527_v0  ;;  %v266_v55 = vld [vmem:[%s5784_s0 + $0x3c0] sm:$0xff] }
  0x71   :  { %2275 = vmatmul.mubr.bf16.gmra.mrb[24].mxu1 %v3870_v50  ;;  %3085 = vmatprep.subr.bf16.mxu0 %v4527_v0  ;;  %v264_v50 = vld [vmem:[%s5784_s0 + $0x3b0] sm:$0xff] }
  0x72   :  { %2853 = vmatmul.mubr.bf16.gmra.mrb[24].mxu0 %v3874_v51  ;;  %2282 = vmatprep.mubr.bf16.mxu1 %v3879_v52  ;;  %v3926_v51 = vcombine.low %v250_v37, %v254_v38  ;;  %v3930_v52 = vcombine.low %v252_v39, %v256_v40  ;;  %v3939_v54 = vcombine.high %v260_v49, %v264_v50 }
  0x73   :  { %2860 = vmatprep.mubr.bf16.mxu0 %v3883_v53  ;;  %2508 = vmatpush1.bf16.msra.mxu1 %v4519_v9  ;;  %v3935_v53 = vcombine.high %v258_v47, %v262_v48  ;;  %v3938_v59 = vcombine.low %v260_v49, %v264_v50  ;;  %v282_v9 = vld [vmem:[%s5784_s0 + $0x440] sm:$0xff] }
  0x74   :  { %3086 = vmatpush1.bf16.msra.mxu0 %v4520_v10  ;;  %2509 = vmatprep.subr.bf16.mxu1 %v4527_v0  ;;  %v286_v10 = vld [vmem:[%s5784_s0 + $0x460] sm:$0xff] }
  0x75   :  { %3087 = vmatprep.subr.bf16.mxu0 %v4527_v0  ;;  %v3958_v21 = vcombine.low %v282_v9, %v286_v10  ;;  %v322_v49 = vld [vmem:[%s5784_s0 + $0x580] sm:$0xff] }
  0x76   :  { %v326_v50 = vld [vmem:[%s5784_s0 + $0x5a0] sm:$0xff] }
  0x77   :  { %2510 = vmatpush1.bf16.msra.mxu1 %v4521_v27  ;;  %v300_v27 = vld [vmem:[%s5784_s0 + $0x4d0] sm:$0xff] }
  0x78   :  { %3088 = vmatpush1.bf16.msra.mxu0 %v4522_v28  ;;  %2511 = vmatprep.subr.bf16.mxu1 %v4527_v0  ;;  %v304_v28 = vld [vmem:[%s5784_s0 + $0x4f0] sm:$0xff] }
  0x79   :  { %2283 = vmatmul.mubr.bf16.gmra.mrb[28].mxu1 %v3878_v60  ;;  %3089 = vmatprep.subr.bf16.mxu0 %v4527_v0  ;;  %v3943_v60 = vcombine.high %v266_v55, %v270_v56  ;;  %v3979_v32 = vcombine.high %v300_v27, %v304_v28  ;;  %v3978_v38 = vcombine.low %v300_v27, %v304_v28  ;;  %v364_v27 = vld [vmem:[%s5784_s0 + $0x6d0] sm:$0xff] }
  0x7a   :  { %2861 = vmatmul.mubr.bf16.gmra.mrb[28].mxu0 %v3882_v61  ;;  %2290 = vmatprep.mubr.bf16.mxu1 %v3887_v62  ;;  %v4525_v62 = vld [vmem:[%s5783_s1 + $0xf8] sm:$0xff]   ;;  %v368_v28 = vld [vmem:[%s5784_s0 + $0x6f0] sm:$0xff] }
  0x7b   :  { %2868 = vmatprep.mubr.bf16.mxu0 %v3891_v63  ;;  %2512 = vmatpush1.bf16.msra.mxu1 %v4523_v45  ;;  %v4526_v63 = vld [vmem:[%s5783_s1 + $0x1f8] sm:$0xff]  }
  0x7c   :  { %3090 = vmatpush1.bf16.msra.mxu0 %v4524_v46  ;;  %2513 = vmatprep.subr.bf16.mxu1 %v4527_v0 }
  0x7d   :  { %3091 = vmatprep.subr.bf16.mxu0 %v4527_v0  ;;  %v272_v0 = vld [vmem:[%s5784_s0 + $0x3f0] sm:$0xff] }
  0x7e   :  { %v3947_v61 = vcombine.high %v268_v57, %v272_v0 }
  0x7f   :  { %2514 = vmatpush1.bf16.msra.mxu1 %v4525_v62 }
  0x80   :  { %3092 = vmatpush1.bf16.msra.mxu0 %v4526_v63 }
  0x81   :  { %2291 = vmatmul.mubr.bf16.gmra.mrb[32].mxu1 %v3886_v5  ;;  %v3942_v5 = vcombine.low %v266_v55, %v270_v56  ;;  %v3999_v55 = vcombine.high %v322_v49, %v326_v50 }
  0x82   :  { %2869 = vmatmul.mubr.bf16.gmra.mrb[32].mxu0 %v3890_v6  ;;  %2298 = vmatprep.mubr.bf16.mxu1 %v3895_v7  ;;  %v3946_v6 = vcombine.low %v268_v57, %v272_v0  ;;  %v3951_v7 = vcombine.high %v274_v1, %v278_v2  ;;  %v330_v57 = vld [vmem:[%s5784_s0 + $0x5c0] sm:$0xff] }
  0x83   :  { %2876 = vmatprep.mubr.bf16.mxu0 %v3899_v8  ;;  %v3955_v8 = vcombine.high %v276_v3, %v280_v4  ;;  %v334_v0 = vld [vmem:[%s5784_s0 + $0x5e0] sm:$0xff]  ;;  %v340_v3 = vld [vmem:[%s5784_s0 + $0x610] sm:$0xff] }
  0x84   :  { %v4007_v62 = vcombine.high %v330_v57, %v334_v0  ;;  %v338_v1 = vld [vmem:[%s5784_s0 + $0x600] sm:$0xff]  ;;  %v344_v4 = vld [vmem:[%s5784_s0 + $0x630] sm:$0xff] }
  0x85   :  { %v342_v2 = vld [vmem:[%s5784_s0 + $0x620] sm:$0xff] }
  0x89   :  { %2299 = vmatmul.mubr.bf16.gmra.mrb[36].mxu1 %v3894_v15  ;;  %v3959_v15 = vcombine.high %v282_v9, %v286_v10  ;;  %v346_v9 = vld [vmem:[%s5784_s0 + $0x640] sm:$0xff] }
  0x8a   :  { %2877 = vmatmul.mubr.bf16.gmra.mrb[36].mxu0 %v3898_v16  ;;  %2306 = vmatprep.mubr.bf16.mxu1 %v3903_v17  ;;  %v3963_v16 = vcombine.high %v284_v11, %v288_v12  ;;  %v290_v17 = vld [vmem:[%s5784_s0 + $0x480] sm:$0xff]  ;;  %v348_v11 = vld [vmem:[%s5784_s0 + $0x650] sm:$0xff] }
  0x8b   :  { %2884 = vmatprep.mubr.bf16.mxu0 %v3907_v18  ;;  %v294_v18 = vld [vmem:[%s5784_s0 + $0x4a0] sm:$0xff]  ;;  %v352_v12 = vld [vmem:[%s5784_s0 + $0x670] sm:$0xff] }
  0x8c   :  { %v3966_v29 = vcombine.low %v290_v17, %v294_v18  ;;  %v350_v10 = vld [vmem:[%s5784_s0 + $0x660] sm:$0xff] }
  0x91   :  { %2307 = vmatmul.mubr.bf16.gmra.mrb[40].mxu1 %v3902_v23  ;;  %v3967_v23 = vcombine.high %v290_v17, %v294_v18  ;;  %v354_v17 = vld [vmem:[%s5784_s0 + $0x680] sm:$0xff] }
  0x92   :  { %2885 = vmatmul.mubr.bf16.gmra.mrb[40].mxu0 %v3906_v24  ;;  %2314 = vmatprep.mubr.bf16.mxu1 %v3911_v25  ;;  %v3971_v24 = vcombine.high %v292_v19, %v296_v20  ;;  %v298_v25 = vld [vmem:[%s5784_s0 + $0x4c0] sm:$0xff]  ;;  %v356_v19 = vld [vmem:[%s5784_s0 + $0x690] sm:$0xff] }
  0x93   :  { %2892 = vmatprep.mubr.bf16.mxu0 %v3915_v26  ;;  %v302_v26 = vld [vmem:[%s5784_s0 + $0x4e0] sm:$0xff]  ;;  %v360_v20 = vld [vmem:[%s5784_s0 + $0x6b0] sm:$0xff] }
  0x94   :  { %v3975_v31 = vcombine.high %v298_v25, %v302_v26  ;;  %v3974_v37 = vcombine.low %v298_v25, %v302_v26  ;;  %v358_v18 = vld [vmem:[%s5784_s0 + $0x6a0] sm:$0xff] }
  0x95   :  { %v362_v25 = vld [vmem:[%s5784_s0 + $0x6c0] sm:$0xff] }
  0x96   :  { %v366_v26 = vld [vmem:[%s5784_s0 + $0x6e0] sm:$0xff] }
  0x99   :  { %2315 = vmatmul.mubr.bf16.gmra.mrb[44].mxu1 %v3910_v33  ;;  %v306_v33 = vld [vmem:[%s5784_s0 + $0x500] sm:$0xff] }
  0x9a   :  { %2893 = vmatmul.mubr.bf16.gmra.mrb[44].mxu0 %v3914_v34  ;;  %2322 = vmatprep.mubr.bf16.mxu1 %v3919_v35  ;;  %v310_v34 = vld [vmem:[%s5784_s0 + $0x520] sm:$0xff]  ;;  %v308_v35 = vld [vmem:[%s5784_s0 + $0x510] sm:$0xff] }
  0x9b   :  { %2900 = vmatprep.mubr.bf16.mxu0 %v3923_v36  ;;  %v312_v36 = vld [vmem:[%s5784_s0 + $0x530] sm:$0xff]  ;;  %v3983_v39 = vcombine.high %v306_v33, %v310_v34  ;;  %v3982_v45 = vcombine.low %v306_v33, %v310_v34  ;;  %v370_v33 = vld [vmem:[%s5784_s0 + $0x700] sm:$0xff] }
  0x9c   :  { %v3987_v40 = vcombine.high %v308_v35, %v312_v36  ;;  %v3986_v46 = vcombine.low %v308_v35, %v312_v36  ;;  %v374_v34 = vld [vmem:[%s5784_s0 + $0x720] sm:$0xff]  ;;  %v372_v35 = vld [vmem:[%s5784_s0 + $0x710] sm:$0xff] }
  0x9d   :  { %v376_v36 = vld [vmem:[%s5784_s0 + $0x730] sm:$0xff] }
  0xa1   :  { %2323 = vmatmul.mubr.bf16.gmra.mrb[48].mxu1 %v3918_v41  ;;  %v314_v41 = vld [vmem:[%s5784_s0 + $0x540] sm:$0xff] }
  0xa2   :  { %2901 = vmatmul.mubr.bf16.gmra.mrb[48].mxu0 %v3922_v42  ;;  %2330 = vmatprep.mubr.bf16.mxu1 %v3927_v43  ;;  %v318_v42 = vld [vmem:[%s5784_s0 + $0x560] sm:$0xff]  ;;  %v316_v43 = vld [vmem:[%s5784_s0 + $0x550] sm:$0xff] }
  0xa3   :  { %2908 = vmatprep.mubr.bf16.mxu0 %v3931_v44  ;;  %v320_v44 = vld [vmem:[%s5784_s0 + $0x570] sm:$0xff]  ;;  %v3991_v47 = vcombine.high %v314_v41, %v318_v42 }
  0xa4   :  { %v3995_v48 = vcombine.high %v316_v43, %v320_v44 }
  0xa9   :  { %2331 = vmatmul.mubr.bf16.gmra.mrb[52].mxu1 %v3926_v51  ;;  %v324_v51 = vld [vmem:[%s5784_s0 + $0x590] sm:$0xff] }
  0xaa   :  { %2909 = vmatmul.mubr.bf16.gmra.mrb[52].mxu0 %v3930_v52  ;;  %2338 = vmatprep.mubr.bf16.mxu1 %v3935_v53  ;;  %v328_v52 = vld [vmem:[%s5784_s0 + $0x5b0] sm:$0xff]  ;;  %v3990_v53 = vcombine.low %v314_v41, %v318_v42  ;;  %v378_v41 = vld [vmem:[%s5784_s0 + $0x740] sm:$0xff] }
  0xab   :  { %2916 = vmatprep.mubr.bf16.mxu0 %v3939_v54  ;;  %v3994_v54 = vcombine.low %v316_v43, %v320_v44  ;;  %v4003_v56 = vcombine.high %v324_v51, %v328_v52  ;;  %v382_v42 = vld [vmem:[%s5784_s0 + $0x760] sm:$0xff]  ;;  %v380_v43 = vld [vmem:[%s5784_s0 + $0x750] sm:$0xff] }
  0xac   :  { %v384_v44 = vld [vmem:[%s5784_s0 + $0x770] sm:$0xff] }
  0xb1   :  { %2339 = vmatmul.mubr.bf16.gmra.mrb[56].mxu1 %v3934_v58  ;;  %v332_v58 = vld [vmem:[%s5784_s0 + $0x5d0] sm:$0xff] }
  0xb2   :  { %2917 = vmatmul.mubr.bf16.gmra.mrb[56].mxu0 %v3938_v59  ;;  %2346 = vmatprep.mubr.bf16.mxu1 %v3943_v60  ;;  %v336_v59 = vld [vmem:[%s5784_s0 + $0x5f0] sm:$0xff]  ;;  %v3998_v60 = vcombine.low %v322_v49, %v326_v50  ;;  %v386_v49 = vld [vmem:[%s5784_s0 + $0x780] sm:$0xff] }
  0xb3   :  { %2924 = vmatprep.mubr.bf16.mxu0 %v3947_v61  ;;  %v4002_v61 = vcombine.low %v324_v51, %v328_v52  ;;  %v4011_v63 = vcombine.high %v332_v58, %v336_v59  ;;  %v390_v50 = vld [vmem:[%s5784_s0 + $0x7a0] sm:$0xff]  ;;  %v388_v51 = vld [vmem:[%s5784_s0 + $0x790] sm:$0xff] }
  0xb4   :  { %v392_v52 = vld [vmem:[%s5784_s0 + $0x7b0] sm:$0xff] }
  0xb9   :  { %2347 = vmatmul.mubr.bf16.gmra.mrb[60].mxu1 %v3942_v5  ;;  %v4006_v5 = vcombine.low %v330_v57, %v334_v0  ;;  %v394_v57 = vld [vmem:[%s5784_s0 + $0x7c0] sm:$0xff] }
  0xba   :  { %2925 = vmatmul.mubr.bf16.gmra.mrb[60].mxu0 %v3946_v6  ;;  %2354 = vmatprep.mubr.bf16.mxu1 %v3951_v7  ;;  %v4010_v6 = vcombine.low %v332_v58, %v336_v59  ;;  %v4015_v7 = vcombine.high %v338_v1, %v342_v2  ;;  %v398_v0 = vld [vmem:[%s5784_s0 + $0x7e0] sm:$0xff]  ;;  %v396_v58 = vld [vmem:[%s5784_s0 + $0x7d0] sm:$0xff] }
  0xbb   :  { %2932 = vmatprep.mubr.bf16.mxu0 %v3955_v8  ;;  %v4019_v8 = vcombine.high %v340_v3, %v344_v4  ;;  %v400_v59 = vld [vmem:[%s5784_s0 + $0x7f0] sm:$0xff] }
  0xc1   :  { %2355 = vmatmul.mubr.bf16.gmra.mrb[64].mxu1 %v3950_v13  ;;  %v4014_v13 = vcombine.low %v338_v1, %v342_v2  ;;  %v147_v1 = vld [vmem:[%s5784_s0 + $0x8] sm:$0xff] }
  0xc2   :  { %2933 = vmatmul.mubr.bf16.gmra.mrb[64].mxu0 %v3954_v14  ;;  %2362 = vmatprep.mubr.bf16.mxu1 %v3959_v15  ;;  %v4018_v14 = vcombine.low %v340_v3, %v344_v4  ;;  %v4023_v15 = vcombine.high %v346_v9, %v350_v10  ;;  %v151_v2 = vld [vmem:[%s5784_s0 + $0x28] sm:$0xff]  ;;  %v149_v3 = vld [vmem:[%s5784_s0 + $0x18] sm:$0xff] }
  0xc3   :  { %2940 = vmatprep.mubr.bf16.mxu0 %v3963_v16  ;;  %v4027_v16 = vcombine.high %v348_v11, %v352_v12  ;;  %v153_v4 = vld [vmem:[%s5784_s0 + $0x38] sm:$0xff] }
  0xc9   :  { %2363 = vmatmul.mubr.bf16.gmra.mrb[68].mxu1 %v3958_v21  ;;  %v4022_v21 = vcombine.low %v346_v9, %v350_v10  ;;  %v155_v9 = vld [vmem:[%s5784_s0 + $0x48] sm:$0xff] }
  0xca   :  { %2941 = vmatmul.mubr.bf16.gmra.mrb[68].mxu0 %v3962_v22  ;;  %2370 = vmatprep.mubr.bf16.mxu1 %v3967_v23  ;;  %v4026_v22 = vcombine.low %v348_v11, %v352_v12  ;;  %v4031_v23 = vcombine.high %v354_v17, %v358_v18  ;;  %v159_v10 = vld [vmem:[%s5784_s0 + $0x68] sm:$0xff]  ;;  %v157_v11 = vld [vmem:[%s5784_s0 + $0x58] sm:$0xff] }
  0xcb   :  { %2948 = vmatprep.mubr.bf16.mxu0 %v3971_v24  ;;  %v4035_v24 = vcombine.high %v356_v19, %v360_v20  ;;  %v161_v12 = vld [vmem:[%s5784_s0 + $0x78] sm:$0xff] }
  0xd1   :  { %2371 = vmatmul.mubr.bf16.gmra.mrb[72].mxu1 %v3966_v29  ;;  %v4030_v29 = vcombine.low %v354_v17, %v358_v18  ;;  %v163_v17 = vld [vmem:[%s5784_s0 + $0x88] sm:$0xff] }
  0xd2   :  { %2949 = vmatmul.mubr.bf16.gmra.mrb[72].mxu0 %v3970_v30  ;;  %2378 = vmatprep.mubr.bf16.mxu1 %v3975_v31  ;;  %v4034_v30 = vcombine.low %v356_v19, %v360_v20  ;;  %v4039_v31 = vcombine.high %v362_v25, %v366_v26  ;;  %v167_v18 = vld [vmem:[%s5784_s0 + $0xa8] sm:$0xff]  ;;  %v165_v19 = vld [vmem:[%s5784_s0 + $0x98] sm:$0xff] }
  0xd3   :  { %2956 = vmatprep.mubr.bf16.mxu0 %v3979_v32  ;;  %v4043_v32 = vcombine.high %v364_v27, %v368_v28  ;;  %v169_v20 = vld [vmem:[%s5784_s0 + $0xb8] sm:$0xff] }
  0xd9   :  { %2379 = vmatmul.mubr.bf16.gmra.mrb[76].mxu1 %v3974_v37  ;;  %v4038_v37 = vcombine.low %v362_v25, %v366_v26  ;;  %v171_v25 = vld [vmem:[%s5784_s0 + $0xc8] sm:$0xff] }
  0xda   :  { %2957 = vmatmul.mubr.bf16.gmra.mrb[76].mxu0 %v3978_v38  ;;  %2386 = vmatprep.mubr.bf16.mxu1 %v3983_v39  ;;  %v4042_v38 = vcombine.low %v364_v27, %v368_v28  ;;  %v4047_v39 = vcombine.high %v370_v33, %v374_v34  ;;  %v175_v26 = vld [vmem:[%s5784_s0 + $0xe8] sm:$0xff]  ;;  %v173_v27 = vld [vmem:[%s5784_s0 + $0xd8] sm:$0xff] }
  0xdb   :  { %2964 = vmatprep.mubr.bf16.mxu0 %v3987_v40  ;;  %v4051_v40 = vcombine.high %v372_v35, %v376_v36  ;;  %v177_v28 = vld [vmem:[%s5784_s0 + $0xf8] sm:$0xff] }
  0xe1   :  { %2387 = vmatmul.mubr.bf16.gmra.mrb[80].mxu1 %v3982_v45  ;;  %v4046_v45 = vcombine.low %v370_v33, %v374_v34  ;;  %v179_v33 = vld [vmem:[%s5784_s0 + $0x108] sm:$0xff] }
  0xe2   :  { %2965 = vmatmul.mubr.bf16.gmra.mrb[80].mxu0 %v3986_v46  ;;  %2394 = vmatprep.mubr.bf16.mxu1 %v3991_v47  ;;  %v4050_v46 = vcombine.low %v372_v35, %v376_v36  ;;  %v4055_v47 = vcombine.high %v378_v41, %v382_v42  ;;  %v183_v34 = vld [vmem:[%s5784_s0 + $0x128] sm:$0xff]  ;;  %v181_v35 = vld [vmem:[%s5784_s0 + $0x118] sm:$0xff] }
  0xe3   :  { %2972 = vmatprep.mubr.bf16.mxu0 %v3995_v48  ;;  %v4059_v48 = vcombine.high %v380_v43, %v384_v44  ;;  %v185_v36 = vld [vmem:[%s5784_s0 + $0x138] sm:$0xff] }
  0xe9   :  { %2395 = vmatmul.mubr.bf16.gmra.mrb[84].mxu1 %v3990_v53  ;;  %v4054_v53 = vcombine.low %v378_v41, %v382_v42  ;;  %v187_v41 = vld [vmem:[%s5784_s0 + $0x148] sm:$0xff] }
  0xea   :  { %2973 = vmatmul.mubr.bf16.gmra.mrb[84].mxu0 %v3994_v54  ;;  %2402 = vmatprep.mubr.bf16.mxu1 %v3999_v55  ;;  %v4058_v54 = vcombine.low %v380_v43, %v384_v44  ;;  %v4063_v55 = vcombine.high %v386_v49, %v390_v50  ;;  %v191_v42 = vld [vmem:[%s5784_s0 + $0x168] sm:$0xff]  ;;  %v189_v43 = vld [vmem:[%s5784_s0 + $0x158] sm:$0xff] }
  0xeb   :  { %2980 = vmatprep.mubr.bf16.mxu0 %v4003_v56  ;;  %v4067_v56 = vcombine.high %v388_v51, %v392_v52  ;;  %v193_v44 = vld [vmem:[%s5784_s0 + $0x178] sm:$0xff] }
  0xf1   :  { %2403 = vmatmul.mubr.bf16.gmra.mrb[88].mxu1 %v3998_v60  ;;  %v4062_v60 = vcombine.low %v386_v49, %v390_v50  ;;  %v195_v49 = vld [vmem:[%s5784_s0 + $0x188] sm:$0xff] }
  0xf2   :  { %2981 = vmatmul.mubr.bf16.gmra.mrb[88].mxu0 %v4002_v61  ;;  %2410 = vmatprep.mubr.bf16.mxu1 %v4007_v62  ;;  %v4066_v61 = vcombine.low %v388_v51, %v392_v52  ;;  %v4071_v62 = vcombine.high %v394_v57, %v398_v0  ;;  %v199_v50 = vld [vmem:[%s5784_s0 + $0x1a8] sm:$0xff]  ;;  %v197_v51 = vld [vmem:[%s5784_s0 + $0x198] sm:$0xff] }
  0xf3   :  { %2988 = vmatprep.mubr.bf16.mxu0 %v4011_v63  ;;  %v4075_v63 = vcombine.high %v396_v58, %v400_v59  ;;  %v201_v52 = vld [vmem:[%s5784_s0 + $0x1b8] sm:$0xff] }
  0xf9   :  { %2411 = vmatmul.mubr.bf16.gmra.mrb[92].mxu1 %v4006_v5  ;;  %v4070_v5 = vcombine.low %v394_v57, %v398_v0  ;;  %v203_v57 = vld [vmem:[%s5784_s0 + $0x1c8] sm:$0xff] }
  0xfa   :  { %2989 = vmatmul.mubr.bf16.gmra.mrb[92].mxu0 %v4010_v6  ;;  %2418 = vmatprep.mubr.bf16.mxu1 %v4015_v7  ;;  %v4074_v6 = vcombine.low %v396_v58, %v400_v59  ;;  %v3825_v7 = vcombine.high %v147_v1, %v151_v2  ;;  %v207_v0 = vld [vmem:[%s5784_s0 + $0x1e8] sm:$0xff]  ;;  %v205_v58 = vld [vmem:[%s5784_s0 + $0x1d8] sm:$0xff] }
  0xfb   :  { %2996 = vmatprep.mubr.bf16.mxu0 %v4019_v8  ;;  %v3829_v8 = vcombine.high %v149_v3, %v153_v4  ;;  %v209_v59 = vld [vmem:[%s5784_s0 + $0x1f8] sm:$0xff] }
 0x101   :  { %2419 = vmatmul.mubr.bf16.gmra.mrb[96].mxu1 %v4014_v13  ;;  %v3824_v13 = vcombine.low %v147_v1, %v151_v2  ;;  %v211_v1 = vld [vmem:[%s5784_s0 + $0x208] sm:$0xff] }
 0x102   :  { %2997 = vmatmul.mubr.bf16.gmra.mrb[96].mxu0 %v4018_v14  ;;  %2426 = vmatprep.mubr.bf16.mxu1 %v4023_v15  ;;  %v3828_v14 = vcombine.low %v149_v3, %v153_v4  ;;  %v3833_v15 = vcombine.high %v155_v9, %v159_v10  ;;  %v215_v2 = vld [vmem:[%s5784_s0 + $0x228] sm:$0xff]  ;;  %v213_v3 = vld [vmem:[%s5784_s0 + $0x218] sm:$0xff] }
 0x103   :  { %3004 = vmatprep.mubr.bf16.mxu0 %v4027_v16  ;;  %v3837_v16 = vcombine.high %v157_v11, %v161_v12  ;;  %v217_v4 = vld [vmem:[%s5784_s0 + $0x238] sm:$0xff] }
 0x109   :  { %2427 = vmatmul.mubr.bf16.gmra.mrb[100].mxu1 %v4022_v21  ;;  %v3832_v21 = vcombine.low %v155_v9, %v159_v10  ;;  %v219_v9 = vld [vmem:[%s5784_s0 + $0x248] sm:$0xff] }
 0x10a   :  { %3005 = vmatmul.mubr.bf16.gmra.mrb[100].mxu0 %v4026_v22  ;;  %2434 = vmatprep.mubr.bf16.mxu1 %v4031_v23  ;;  %v3836_v22 = vcombine.low %v157_v11, %v161_v12  ;;  %v3841_v23 = vcombine.high %v163_v17, %v167_v18  ;;  %v223_v10 = vld [vmem:[%s5784_s0 + $0x268] sm:$0xff]  ;;  %v221_v11 = vld [vmem:[%s5784_s0 + $0x258] sm:$0xff] }
 0x10b   :  { %3012 = vmatprep.mubr.bf16.mxu0 %v4035_v24  ;;  %v3845_v24 = vcombine.high %v165_v19, %v169_v20  ;;  %v225_v12 = vld [vmem:[%s5784_s0 + $0x278] sm:$0xff] }
 0x111   :  { %2435 = vmatmul.mubr.bf16.gmra.mrb[104].mxu1 %v4030_v29  ;;  %v3840_v29 = vcombine.low %v163_v17, %v167_v18  ;;  %v227_v17 = vld [vmem:[%s5784_s0 + $0x288] sm:$0xff] }
 0x112   :  { %3013 = vmatmul.mubr.bf16.gmra.mrb[104].mxu0 %v4034_v30  ;;  %2442 = vmatprep.mubr.bf16.mxu1 %v4039_v31  ;;  %v3844_v30 = vcombine.low %v165_v19, %v169_v20  ;;  %v3849_v31 = vcombine.high %v171_v25, %v175_v26  ;;  %v231_v18 = vld [vmem:[%s5784_s0 + $0x2a8] sm:$0xff]  ;;  %v229_v19 = vld [vmem:[%s5784_s0 + $0x298] sm:$0xff] }
 0x113   :  { %3020 = vmatprep.mubr.bf16.mxu0 %v4043_v32  ;;  %v3853_v32 = vcombine.high %v173_v27, %v177_v28  ;;  %v233_v20 = vld [vmem:[%s5784_s0 + $0x2b8] sm:$0xff] }
 0x119   :  { %2443 = vmatmul.mubr.bf16.gmra.mrb[108].mxu1 %v4038_v37  ;;  %v3848_v37 = vcombine.low %v171_v25, %v175_v26  ;;  %v235_v25 = vld [vmem:[%s5784_s0 + $0x2c8] sm:$0xff] }
 0x11a   :  { %3021 = vmatmul.mubr.bf16.gmra.mrb[108].mxu0 %v4042_v38  ;;  %2450 = vmatprep.mubr.bf16.mxu1 %v4047_v39  ;;  %v3852_v38 = vcombine.low %v173_v27, %v177_v28  ;;  %v3857_v39 = vcombine.high %v179_v33, %v183_v34  ;;  %v239_v26 = vld [vmem:[%s5784_s0 + $0x2e8] sm:$0xff]  ;;  %v237_v27 = vld [vmem:[%s5784_s0 + $0x2d8] sm:$0xff] }
 0x11b   :  { %3028 = vmatprep.mubr.bf16.mxu0 %v4051_v40  ;;  %v3861_v40 = vcombine.high %v181_v35, %v185_v36  ;;  %v241_v28 = vld [vmem:[%s5784_s0 + $0x2f8] sm:$0xff] }
 0x121   :  { %2451 = vmatmul.mubr.bf16.gmra.mrb[112].mxu1 %v4046_v45  ;;  %v3856_v45 = vcombine.low %v179_v33, %v183_v34  ;;  %v243_v33 = vld [vmem:[%s5784_s0 + $0x308] sm:$0xff] }
 0x122   :  { %3029 = vmatmul.mubr.bf16.gmra.mrb[112].mxu0 %v4050_v46  ;;  %2458 = vmatprep.mubr.bf16.mxu1 %v4055_v47  ;;  %v3860_v46 = vcombine.low %v181_v35, %v185_v36  ;;  %v3865_v47 = vcombine.high %v187_v41, %v191_v42  ;;  %v247_v34 = vld [vmem:[%s5784_s0 + $0x328] sm:$0xff]  ;;  %v245_v35 = vld [vmem:[%s5784_s0 + $0x318] sm:$0xff] }
 0x123   :  { %3036 = vmatprep.mubr.bf16.mxu0 %v4059_v48  ;;  %v3869_v48 = vcombine.high %v189_v43, %v193_v44  ;;  %v249_v36 = vld [vmem:[%s5784_s0 + $0x338] sm:$0xff] }
 0x129   :  { %2459 = vmatmul.mubr.bf16.gmra.mrb[116].mxu1 %v4054_v53  ;;  %v3864_v53 = vcombine.low %v187_v41, %v191_v42  ;;  %v251_v41 = vld [vmem:[%s5784_s0 + $0x348] sm:$0xff] }
 0x12a   :  { %3037 = vmatmul.mubr.bf16.gmra.mrb[116].mxu0 %v4058_v54  ;;  %2466 = vmatprep.mubr.bf16.mxu1 %v4063_v55  ;;  %v3868_v54 = vcombine.low %v189_v43, %v193_v44  ;;  %v3873_v55 = vcombine.high %v195_v49, %v199_v50  ;;  %v255_v42 = vld [vmem:[%s5784_s0 + $0x368] sm:$0xff]  ;;  %v253_v43 = vld [vmem:[%s5784_s0 + $0x358] sm:$0xff] }
 0x12b   :  { %3044 = vmatprep.mubr.bf16.mxu0 %v4067_v56  ;;  %v3877_v56 = vcombine.high %v197_v51, %v201_v52  ;;  %v257_v44 = vld [vmem:[%s5784_s0 + $0x378] sm:$0xff] }
 0x131   :  { %2467 = vmatmul.mubr.bf16.gmra.mrb[120].mxu1 %v4062_v60  ;;  %v3872_v60 = vcombine.low %v195_v49, %v199_v50  ;;  %v259_v49 = vld [vmem:[%s5784_s0 + $0x388] sm:$0xff] }
 0x132   :  { %3045 = vmatmul.mubr.bf16.gmra.mrb[120].mxu0 %v4066_v61  ;;  %2474 = vmatprep.mubr.bf16.mxu1 %v4071_v62  ;;  %v3876_v61 = vcombine.low %v197_v51, %v201_v52  ;;  %v3881_v62 = vcombine.high %v203_v57, %v207_v0  ;;  %v263_v50 = vld [vmem:[%s5784_s0 + $0x3a8] sm:$0xff]  ;;  %v261_v51 = vld [vmem:[%s5784_s0 + $0x398] sm:$0xff] }
 0x133   :  { %3052 = vmatprep.mubr.bf16.mxu0 %v4075_v63  ;;  %v3885_v63 = vcombine.high %v205_v58, %v209_v59  ;;  %v265_v52 = vld [vmem:[%s5784_s0 + $0x3b8] sm:$0xff] }
 0x139   :  { %2475 = vmatmul.mubr.bf16.gmra.mrb[124].mxu1 %v4070_v5  ;;  %v3880_v5 = vcombine.low %v203_v57, %v207_v0  ;;  %v267_v57 = vld [vmem:[%s5784_s0 + $0x3c8] sm:$0xff] }
 0x13a   :  { %3053 = vmatmul.mubr.bf16.gmra.mrb[124].mxu0 %v4074_v6  ;;  %2515 = vmatprep.mubr.bf16.mxu1 %v3825_v7  ;;  %v3884_v6 = vcombine.low %v205_v58, %v209_v59  ;;  %v3889_v7 = vcombine.high %v211_v1, %v215_v2  ;;  %v271_v0 = vld [vmem:[%s5784_s0 + $0x3e8] sm:$0xff]  ;;  %v269_v58 = vld [vmem:[%s5784_s0 + $0x3d8] sm:$0xff] }
 0x13b   :  { %3093 = vmatprep.mubr.bf16.mxu0 %v3829_v8  ;;  %v3893_v8 = vcombine.high %v213_v3, %v217_v4  ;;  %v273_v59 = vld [vmem:[%s5784_s0 + $0x3f8] sm:$0xff] }
 0x141   :  { %2516 = vmatmul.mubr.bf16.vlgmr.msra.gmra.mrb[0].mxu1 %v3824_v13  ;;  %v3888_v13 = vcombine.low %v211_v1, %v215_v2  ;;  %v275_v1 = vld [vmem:[%s5784_s0 + $0x408] sm:$0xff] }
 0x142   :  { %3094 = vmatmul.mubr.bf16.vlgmr.msra.gmra.mrb[0].mxu0 %v3828_v14  ;;  %2523 = vmatprep.mubr.bf16.mxu1 %v3833_v15  ;;  %v3892_v14 = vcombine.low %v213_v3, %v217_v4  ;;  %v3897_v15 = vcombine.high %v219_v9, %v223_v10  ;;  %v279_v2 = vld [vmem:[%s5784_s0 + $0x428] sm:$0xff]  ;;  %v277_v3 = vld [vmem:[%s5784_s0 + $0x418] sm:$0xff] }
 0x143   :  { %3101 = vmatprep.mubr.bf16.mxu0 %v3837_v16  ;;  %v3901_v16 = vcombine.high %v221_v11, %v225_v12  ;;  %v281_v4 = vld [vmem:[%s5784_s0 + $0x438] sm:$0xff] }
 0x149   :  { %2524 = vmatmul.mubr.bf16.gmra.mrb[4].mxu1 %v3832_v21  ;;  %v3896_v21 = vcombine.low %v219_v9, %v223_v10  ;;  %v283_v9 = vld [vmem:[%s5784_s0 + $0x448] sm:$0xff] }
 0x14a   :  { %3102 = vmatmul.mubr.bf16.gmra.mrb[4].mxu0 %v3836_v22  ;;  %2531 = vmatprep.mubr.bf16.mxu1 %v3841_v23  ;;  %v3900_v22 = vcombine.low %v221_v11, %v225_v12  ;;  %v3905_v23 = vcombine.high %v227_v17, %v231_v18  ;;  %v287_v10 = vld [vmem:[%s5784_s0 + $0x468] sm:$0xff]  ;;  %v285_v11 = vld [vmem:[%s5784_s0 + $0x458] sm:$0xff] }
 0x14b   :  { %3109 = vmatprep.mubr.bf16.mxu0 %v3845_v24  ;;  %v3909_v24 = vcombine.high %v229_v19, %v233_v20  ;;  %v289_v12 = vld [vmem:[%s5784_s0 + $0x478] sm:$0xff] }
 0x151   :  { %2532 = vmatmul.mubr.bf16.gmra.mrb[8].mxu1 %v3840_v29  ;;  %v3904_v29 = vcombine.low %v227_v17, %v231_v18  ;;  %v291_v17 = vld [vmem:[%s5784_s0 + $0x488] sm:$0xff] }
 0x152   :  { %3110 = vmatmul.mubr.bf16.gmra.mrb[8].mxu0 %v3844_v30  ;;  %2539 = vmatprep.mubr.bf16.mxu1 %v3849_v31  ;;  %v3908_v30 = vcombine.low %v229_v19, %v233_v20  ;;  %v3913_v31 = vcombine.high %v235_v25, %v239_v26  ;;  %v295_v18 = vld [vmem:[%s5784_s0 + $0x4a8] sm:$0xff]  ;;  %v293_v19 = vld [vmem:[%s5784_s0 + $0x498] sm:$0xff] }
 0x153   :  { %3117 = vmatprep.mubr.bf16.mxu0 %v3853_v32  ;;  %v3917_v32 = vcombine.high %v237_v27, %v241_v28  ;;  %v297_v20 = vld [vmem:[%s5784_s0 + $0x4b8] sm:$0xff] }
 0x159   :  { %2540 = vmatmul.mubr.bf16.gmra.mrb[12].mxu1 %v3848_v37  ;;  %v3912_v37 = vcombine.low %v235_v25, %v239_v26  ;;  %v299_v25 = vld [vmem:[%s5784_s0 + $0x4c8] sm:$0xff] }
 0x15a   :  { %3118 = vmatmul.mubr.bf16.gmra.mrb[12].mxu0 %v3852_v38  ;;  %2547 = vmatprep.mubr.bf16.mxu1 %v3857_v39  ;;  %v3916_v38 = vcombine.low %v237_v27, %v241_v28  ;;  %v3921_v39 = vcombine.high %v243_v33, %v247_v34  ;;  %v303_v26 = vld [vmem:[%s5784_s0 + $0x4e8] sm:$0xff]  ;;  %v301_v27 = vld [vmem:[%s5784_s0 + $0x4d8] sm:$0xff] }
 0x15b   :  { %3125 = vmatprep.mubr.bf16.mxu0 %v3861_v40  ;;  %v3925_v40 = vcombine.high %v245_v35, %v249_v36  ;;  %v305_v28 = vld [vmem:[%s5784_s0 + $0x4f8] sm:$0xff] }
 0x161   :  { %2548 = vmatmul.mubr.bf16.gmra.mrb[16].mxu1 %v3856_v45  ;;  %v3920_v45 = vcombine.low %v243_v33, %v247_v34  ;;  %v307_v33 = vld [vmem:[%s5784_s0 + $0x508] sm:$0xff] }
 0x162   :  { %3126 = vmatmul.mubr.bf16.gmra.mrb[16].mxu0 %v3860_v46  ;;  %2555 = vmatprep.mubr.bf16.mxu1 %v3865_v47  ;;  %v3924_v46 = vcombine.low %v245_v35, %v249_v36  ;;  %v3929_v47 = vcombine.high %v251_v41, %v255_v42  ;;  %v311_v34 = vld [vmem:[%s5784_s0 + $0x528] sm:$0xff]  ;;  %v309_v35 = vld [vmem:[%s5784_s0 + $0x518] sm:$0xff] }
 0x163   :  { %3133 = vmatprep.mubr.bf16.mxu0 %v3869_v48  ;;  %v3933_v48 = vcombine.high %v253_v43, %v257_v44  ;;  %v313_v36 = vld [vmem:[%s5784_s0 + $0x538] sm:$0xff] }
 0x169   :  { %2556 = vmatmul.mubr.bf16.gmra.mrb[20].mxu1 %v3864_v53  ;;  %v3928_v53 = vcombine.low %v251_v41, %v255_v42  ;;  %v315_v41 = vld [vmem:[%s5784_s0 + $0x548] sm:$0xff] }
 0x16a   :  { %3134 = vmatmul.mubr.bf16.gmra.mrb[20].mxu0 %v3868_v54  ;;  %2563 = vmatprep.mubr.bf16.mxu1 %v3873_v55  ;;  %v3932_v54 = vcombine.low %v253_v43, %v257_v44  ;;  %v3937_v55 = vcombine.high %v259_v49, %v263_v50  ;;  %v319_v42 = vld [vmem:[%s5784_s0 + $0x568] sm:$0xff]  ;;  %v317_v43 = vld [vmem:[%s5784_s0 + $0x558] sm:$0xff] }
 0x16b   :  { %3141 = vmatprep.mubr.bf16.mxu0 %v3877_v56  ;;  %v3941_v56 = vcombine.high %v261_v51, %v265_v52  ;;  %v321_v44 = vld [vmem:[%s5784_s0 + $0x578] sm:$0xff] }
 0x171   :  { %2564 = vmatmul.mubr.bf16.gmra.mrb[24].mxu1 %v3872_v60  ;;  %v3936_v60 = vcombine.low %v259_v49, %v263_v50  ;;  %v323_v49 = vld [vmem:[%s5784_s0 + $0x588] sm:$0xff] }
 0x172   :  { %3142 = vmatmul.mubr.bf16.gmra.mrb[24].mxu0 %v3876_v61  ;;  %2571 = vmatprep.mubr.bf16.mxu1 %v3881_v62  ;;  %v3940_v61 = vcombine.low %v261_v51, %v265_v52  ;;  %v3945_v62 = vcombine.high %v267_v57, %v271_v0  ;;  %v327_v50 = vld [vmem:[%s5784_s0 + $0x5a8] sm:$0xff]  ;;  %v325_v51 = vld [vmem:[%s5784_s0 + $0x598] sm:$0xff] }
 0x173   :  { %3149 = vmatprep.mubr.bf16.mxu0 %v3885_v63  ;;  %v3949_v63 = vcombine.high %v269_v58, %v273_v59  ;;  %v329_v52 = vld [vmem:[%s5784_s0 + $0x5b8] sm:$0xff] }
 0x179   :  { %2572 = vmatmul.mubr.bf16.gmra.mrb[28].mxu1 %v3880_v5  ;;  %v3944_v5 = vcombine.low %v267_v57, %v271_v0  ;;  %v331_v57 = vld [vmem:[%s5784_s0 + $0x5c8] sm:$0xff] }
 0x17a   :  { %3150 = vmatmul.mubr.bf16.gmra.mrb[28].mxu0 %v3884_v6  ;;  %2579 = vmatprep.mubr.bf16.mxu1 %v3889_v7  ;;  %v3948_v6 = vcombine.low %v269_v58, %v273_v59  ;;  %v3953_v7 = vcombine.high %v275_v1, %v279_v2  ;;  %v335_v0 = vld [vmem:[%s5784_s0 + $0x5e8] sm:$0xff]  ;;  %v333_v58 = vld [vmem:[%s5784_s0 + $0x5d8] sm:$0xff] }
 0x17b   :  { %3157 = vmatprep.mubr.bf16.mxu0 %v3893_v8  ;;  %v3957_v8 = vcombine.high %v277_v3, %v281_v4  ;;  %v337_v59 = vld [vmem:[%s5784_s0 + $0x5f8] sm:$0xff] }
 0x181   :  { %2580 = vmatmul.mubr.bf16.gmra.mrb[32].mxu1 %v3888_v13  ;;  %v3952_v13 = vcombine.low %v275_v1, %v279_v2  ;;  %v339_v1 = vld [vmem:[%s5784_s0 + $0x608] sm:$0xff] }
 0x182   :  { %3158 = vmatmul.mubr.bf16.gmra.mrb[32].mxu0 %v3892_v14  ;;  %2587 = vmatprep.mubr.bf16.mxu1 %v3897_v15  ;;  %v3956_v14 = vcombine.low %v277_v3, %v281_v4  ;;  %v3961_v15 = vcombine.high %v283_v9, %v287_v10  ;;  %v343_v2 = vld [vmem:[%s5784_s0 + $0x628] sm:$0xff]  ;;  %v341_v3 = vld [vmem:[%s5784_s0 + $0x618] sm:$0xff] }
 0x183   :  { %3165 = vmatprep.mubr.bf16.mxu0 %v3901_v16  ;;  %v3965_v16 = vcombine.high %v285_v11, %v289_v12  ;;  %v345_v4 = vld [vmem:[%s5784_s0 + $0x638] sm:$0xff] }
 0x189   :  { %2588 = vmatmul.mubr.bf16.gmra.mrb[36].mxu1 %v3896_v21  ;;  %v3960_v21 = vcombine.low %v283_v9, %v287_v10  ;;  %v347_v9 = vld [vmem:[%s5784_s0 + $0x648] sm:$0xff] }
 0x18a   :  { %3166 = vmatmul.mubr.bf16.gmra.mrb[36].mxu0 %v3900_v22  ;;  %2595 = vmatprep.mubr.bf16.mxu1 %v3905_v23  ;;  %v3964_v22 = vcombine.low %v285_v11, %v289_v12  ;;  %v3969_v23 = vcombine.high %v291_v17, %v295_v18  ;;  %v351_v10 = vld [vmem:[%s5784_s0 + $0x668] sm:$0xff]  ;;  %v349_v11 = vld [vmem:[%s5784_s0 + $0x658] sm:$0xff] }
 0x18b   :  { %3173 = vmatprep.mubr.bf16.mxu0 %v3909_v24  ;;  %v3973_v24 = vcombine.high %v293_v19, %v297_v20  ;;  %v353_v12 = vld [vmem:[%s5784_s0 + $0x678] sm:$0xff] }
 0x191   :  { %2596 = vmatmul.mubr.bf16.gmra.mrb[40].mxu1 %v3904_v29  ;;  %v3968_v29 = vcombine.low %v291_v17, %v295_v18  ;;  %v355_v17 = vld [vmem:[%s5784_s0 + $0x688] sm:$0xff] }
 0x192   :  { %3174 = vmatmul.mubr.bf16.gmra.mrb[40].mxu0 %v3908_v30  ;;  %2603 = vmatprep.mubr.bf16.mxu1 %v3913_v31  ;;  %v3972_v30 = vcombine.low %v293_v19, %v297_v20  ;;  %v3977_v31 = vcombine.high %v299_v25, %v303_v26  ;;  %v359_v18 = vld [vmem:[%s5784_s0 + $0x6a8] sm:$0xff]  ;;  %v357_v19 = vld [vmem:[%s5784_s0 + $0x698] sm:$0xff] }
 0x193   :  { %3181 = vmatprep.mubr.bf16.mxu0 %v3917_v32  ;;  %v3981_v32 = vcombine.high %v301_v27, %v305_v28  ;;  %v361_v20 = vld [vmem:[%s5784_s0 + $0x6b8] sm:$0xff] }
 0x199   :  { %2604 = vmatmul.mubr.bf16.gmra.mrb[44].mxu1 %v3912_v37  ;;  %v3976_v37 = vcombine.low %v299_v25, %v303_v26  ;;  %v363_v25 = vld [vmem:[%s5784_s0 + $0x6c8] sm:$0xff] }
 0x19a   :  { %3182 = vmatmul.mubr.bf16.gmra.mrb[44].mxu0 %v3916_v38  ;;  %2611 = vmatprep.mubr.bf16.mxu1 %v3921_v39  ;;  %v3980_v38 = vcombine.low %v301_v27, %v305_v28  ;;  %v3985_v39 = vcombine.high %v307_v33, %v311_v34  ;;  %v367_v26 = vld [vmem:[%s5784_s0 + $0x6e8] sm:$0xff]  ;;  %v365_v27 = vld [vmem:[%s5784_s0 + $0x6d8] sm:$0xff] }
 0x19b   :  { %3189 = vmatprep.mubr.bf16.mxu0 %v3925_v40  ;;  %v3989_v40 = vcombine.high %v309_v35, %v313_v36  ;;  %v369_v28 = vld [vmem:[%s5784_s0 + $0x6f8] sm:$0xff] }
 0x1a1   :  { %2612 = vmatmul.mubr.bf16.gmra.mrb[48].mxu1 %v3920_v45  ;;  %v3984_v45 = vcombine.low %v307_v33, %v311_v34  ;;  %v371_v33 = vld [vmem:[%s5784_s0 + $0x708] sm:$0xff] }
 0x1a2   :  { %3190 = vmatmul.mubr.bf16.gmra.mrb[48].mxu0 %v3924_v46  ;;  %2619 = vmatprep.mubr.bf16.mxu1 %v3929_v47  ;;  %v3988_v46 = vcombine.low %v309_v35, %v313_v36  ;;  %v3993_v47 = vcombine.high %v315_v41, %v319_v42  ;;  %v375_v34 = vld [vmem:[%s5784_s0 + $0x728] sm:$0xff]  ;;  %v373_v36 = vld [vmem:[%s5784_s0 + $0x718] sm:$0xff] }
 0x1a3   :  { %3197 = vmatprep.mubr.bf16.mxu0 %v3933_v48  ;;  %v3997_v48 = vcombine.high %v317_v43, %v321_v44 }
 0x1a9   :  { %2620 = vmatmul.mubr.bf16.gmra.mrb[52].mxu1 %v3928_v53  ;;  %v3992_v53 = vcombine.low %v315_v41, %v319_v42 }
 0x1aa   :  { %3198 = vmatmul.mubr.bf16.gmra.mrb[52].mxu0 %v3932_v54  ;;  %2627 = vmatprep.mubr.bf16.mxu1 %v3937_v55  ;;  %v3996_v54 = vcombine.low %v317_v43, %v321_v44  ;;  %v4001_v55 = vcombine.high %v323_v49, %v327_v50  ;;  %v4044_v44 = vcombine.low %v365_v27, %v369_v28 }
 0x1ab   :  { %3205 = vmatprep.mubr.bf16.mxu0 %v3941_v56  ;;  %v4005_v56 = vcombine.high %v325_v51, %v329_v52 }
 0x1b1   :  { %2628 = vmatmul.mubr.bf16.gmra.mrb[56].mxu1 %v3936_v60  ;;  %v4000_v60 = vcombine.low %v323_v49, %v327_v50 }
 0x1b2   :  { %3206 = vmatmul.mubr.bf16.gmra.mrb[56].mxu0 %v3940_v61  ;;  %2635 = vmatprep.mubr.bf16.mxu1 %v3945_v62  ;;  %v4004_v61 = vcombine.low %v325_v51, %v329_v52  ;;  %v4009_v62 = vcombine.high %v331_v57, %v335_v0 }
 0x1b3   :  { %3213 = vmatprep.mubr.bf16.mxu0 %v3949_v63  ;;  %v4013_v63 = vcombine.high %v333_v58, %v337_v59 }
 0x1b9   :  { %2636 = vmatmul.mubr.bf16.gmra.mrb[60].mxu1 %v3944_v5  ;;  %v4008_v5 = vcombine.low %v331_v57, %v335_v0  ;;  %v381_v0 = vld [vmem:[%s5784_s0 + $0x758] sm:$0xff] }
 0x1ba   :  { %3214 = vmatmul.mubr.bf16.gmra.mrb[60].mxu0 %v3948_v6  ;;  %2643 = vmatprep.mubr.bf16.mxu1 %v3953_v7  ;;  %v4012_v6 = vcombine.low %v333_v58, %v337_v59  ;;  %v4017_v7 = vcombine.high %v339_v1, %v343_v2  ;;  %v385_v58 = vld [vmem:[%s5784_s0 + $0x778] sm:$0xff] }
 0x1bb   :  { %3221 = vmatprep.mubr.bf16.mxu0 %v3957_v8  ;;  %v4021_v8 = vcombine.high %v341_v3, %v345_v4 }
 0x1c1   :  { %2644 = vmatmul.mubr.bf16.gmra.mrb[64].mxu1 %v3952_v13  ;;  %v4016_v13 = vcombine.low %v339_v1, %v343_v2 }
 0x1c2   :  { %3222 = vmatmul.mubr.bf16.gmra.mrb[64].mxu0 %v3956_v14  ;;  %2651 = vmatprep.mubr.bf16.mxu1 %v3961_v15  ;;  %v4020_v14 = vcombine.low %v341_v3, %v345_v4  ;;  %v4025_v15 = vcombine.high %v347_v9, %v351_v10 }
 0x1c3   :  { %3229 = vmatprep.mubr.bf16.mxu0 %v3965_v16  ;;  %v4029_v16 = vcombine.high %v349_v11, %v353_v12 }
 0x1c9   :  { %2652 = vmatmul.mubr.bf16.gmra.mrb[68].mxu1 %v3960_v21  ;;  %v4024_v21 = vcombine.low %v347_v9, %v351_v10 }
 0x1ca   :  { %3230 = vmatmul.mubr.bf16.gmra.mrb[68].mxu0 %v3964_v22  ;;  %2659 = vmatprep.mubr.bf16.mxu1 %v3969_v23  ;;  %v4028_v22 = vcombine.low %v349_v11, %v353_v12  ;;  %v4033_v23 = vcombine.high %v355_v17, %v359_v18 }
 0x1cb   :  { %3237 = vmatprep.mubr.bf16.mxu0 %v3973_v24  ;;  %v4037_v24 = vcombine.high %v357_v19, %v361_v20 }
 0x1d1   :  { %2660 = vmatmul.mubr.bf16.gmra.mrb[72].mxu1 %v3968_v29  ;;  %v4032_v29 = vcombine.low %v355_v17, %v359_v18  ;;  %v389_v18 = vld [vmem:[%s5784_s0 + $0x798] sm:$0xff] }
 0x1d2   :  { %3238 = vmatmul.mubr.bf16.gmra.mrb[72].mxu0 %v3972_v30  ;;  %2667 = vmatprep.mubr.bf16.mxu1 %v3977_v31  ;;  %v4036_v30 = vcombine.low %v357_v19, %v361_v20  ;;  %v4041_v31 = vcombine.high %v363_v25, %v367_v26  ;;  %v393_v19 = vld [vmem:[%s5784_s0 + $0x7b8] sm:$0xff] }
 0x1d3   :  { %3245 = vmatprep.mubr.bf16.mxu0 %v3981_v32  ;;  %v4045_v32 = vcombine.high %v365_v27, %v369_v28 }
 0x1d9   :  { %2668 = vmatmul.mubr.bf16.gmra.mrb[76].mxu1 %v3976_v37  ;;  %v377_v37 = vld [vmem:[%s5784_s0 + $0x738] sm:$0xff] }
 0x1da   :  { %3246 = vmatmul.mubr.bf16.gmra.mrb[76].mxu0 %v3980_v38  ;;  %2675 = vmatprep.mubr.bf16.mxu1 %v3985_v39  ;;  %v4052_v2 = vcombine.low %v373_v36, %v377_v37 }
 0x1db   :  { %3253 = vmatprep.mubr.bf16.mxu0 %v3989_v40  ;;  %v4040_v40 = vcombine.low %v363_v25, %v367_v26  ;;  %v4060_v26 = vcombine.low %v381_v0, %v385_v58 }
 0x1e1   :  { %2676 = vmatmul.mubr.bf16.gmra.mrb[80].mxu1 %v3984_v45  ;;  %v4049_v45 = vcombine.high %v371_v33, %v375_v34 }
 0x1e2   :  { %3254 = vmatmul.mubr.bf16.gmra.mrb[80].mxu0 %v3988_v46  ;;  %2683 = vmatprep.mubr.bf16.mxu1 %v3993_v47 }
 0x1e3   :  { %3261 = vmatprep.mubr.bf16.mxu0 %v3997_v48  ;;  %v4053_v48 = vcombine.high %v373_v36, %v377_v37 }
 0x1e9   :  { %2684 = vmatmul.mubr.bf16.gmra.mrb[84].mxu1 %v3992_v53 }
 0x1ea   :  { %3262 = vmatmul.mubr.bf16.gmra.mrb[84].mxu0 %v3996_v54  ;;  %2691 = vmatprep.mubr.bf16.mxu1 %v4001_v55  ;;  %v379_v54 = vld [vmem:[%s5784_s0 + $0x748] sm:$0xff] }
 0x1eb   :  { %3269 = vmatprep.mubr.bf16.mxu0 %v4005_v56  ;;  %v383_v55 = vld [vmem:[%s5784_s0 + $0x768] sm:$0xff] }
 0x1ec   :  { %v4057_v3 = vcombine.high %v379_v54, %v383_v55 }
 0x1f1   :  { %2692 = vmatmul.mubr.bf16.gmra.mrb[88].mxu1 %v4000_v60 }
 0x1f2   :  { %3270 = vmatmul.mubr.bf16.gmra.mrb[88].mxu0 %v4004_v61  ;;  %2699 = vmatprep.mubr.bf16.mxu1 %v4009_v62  ;;  %v4048_v61 = vcombine.low %v371_v33, %v375_v34 }
 0x1f3   :  { %3277 = vmatprep.mubr.bf16.mxu0 %v4013_v63 }
 0x1f9   :  { %2700 = vmatmul.mubr.bf16.gmra.mrb[92].mxu1 %v4008_v5 }
 0x1fa   :  { %3278 = vmatmul.mubr.bf16.gmra.mrb[92].mxu0 %v4012_v6  ;;  %2707 = vmatprep.mubr.bf16.mxu1 %v4017_v7  ;;  %v4061_v6 = vcombine.high %v381_v0, %v385_v58 }
 0x1fb   :  { %3285 = vmatprep.mubr.bf16.mxu0 %v4021_v8 }
 0x201   :  { %2708 = vmatmul.mubr.bf16.gmra.mrb[96].mxu1 %v4016_v13 }
 0x202   :  { %3286 = vmatmul.mubr.bf16.gmra.mrb[96].mxu0 %v4020_v14  ;;  %2715 = vmatprep.mubr.bf16.mxu1 %v4025_v15  ;;  %v387_v14 = vld [vmem:[%s5784_s0 + $0x788] sm:$0xff] }
 0x203   :  { %3293 = vmatprep.mubr.bf16.mxu0 %v4029_v16  ;;  %v391_v15 = vld [vmem:[%s5784_s0 + $0x7a8] sm:$0xff] }
 0x204   :  { %v4065_v27 = vcombine.high %v387_v14, %v391_v15 }
 0x209   :  { %2716 = vmatmul.mubr.bf16.gmra.mrb[100].mxu1 %v4024_v21 }
 0x20a   :  { %3294 = vmatmul.mubr.bf16.gmra.mrb[100].mxu0 %v4028_v22  ;;  %2723 = vmatprep.mubr.bf16.mxu1 %v4033_v23  ;;  %v4056_v22 = vcombine.low %v379_v54, %v383_v55 }
 0x20b   :  { %3301 = vmatprep.mubr.bf16.mxu0 %v4037_v24 }
 0x211   :  { %2724 = vmatmul.mubr.bf16.gmra.mrb[104].mxu1 %v4032_v29 }
 0x212   :  { %3302 = vmatmul.mubr.bf16.gmra.mrb[104].mxu0 %v4036_v30  ;;  %2731 = vmatprep.mubr.bf16.mxu1 %v4041_v31  ;;  %v4069_v30 = vcombine.high %v389_v18, %v393_v19 }
 0x213   :  { %3309 = vmatprep.mubr.bf16.mxu0 %v4045_v32 }
 0x214   :  { %v2517_v35 = vpop.f32.mrb[0].mxu1 }
 0x215   :  { %v3095_v38 = vpop.f32.mrb[0].mxu0  ;;  %v2519_v39 = vpop.f32.mrb[1].mxu1 }
 0x216   :  { %v4142_v41 = vadd.f32 %v3095_v38, %v2517_v35  ;;  %v3097_v42 = vpop.f32.mrb[1].mxu0  ;;  %v2520_v43 = vpop.f32.mrb[2].mxu1  ;;  %v395_v38 = vld [vmem:[%s5784_s0 + $0x7c8] sm:$0xff] }
 0x217   :  { %v3098_v46 = vpop.f32.mrb[2].mxu0  ;;  %v2522_v47 = vpop.f32.mrb[3].mxu1  ;;  %v399_v39 = vld [vmem:[%s5784_s0 + $0x7e8] sm:$0xff]  ;;  %v397_v42 = vld [vmem:[%s5784_s0 + $0x7d8] sm:$0xff] }
 0x218   :  { %3545 = vst [vmem:[%s5785_s2] sm:$0xff] %v4142_v41  ;;  %v4143_v49 = vadd.f32 %v3098_v46, %v2520_v43  ;;  %v3100_v50 = vpop.f32.mrb[3].mxu0  ;;  %v3678_v51 = vmul.f32 %v4142_v41, %v4142_v41  ;;  %v401_v43 = vld [vmem:[%s5784_s0 + $0x7f8] sm:$0xff]  ;;  %v4064_v46 = vcombine.low %v387_v14, %v391_v15 }
 0x219   :  { %2732 = vmatmul.mubr.bf16.gmra.mrb[108].mxu1 %v4040_v40  ;;  %v4068_v50 = vcombine.low %v389_v18, %v393_v19  ;;  %v4077_v54 = vcombine.high %v397_v42, %v401_v43 }
 0x21a   :  { %3546 = vst [vmem:[%s5785_s2 + $0x8] sm:$0xff] %v4143_v49  ;;  %v3609_v52 = vadd.f32 %v4143_v49, %v4142_v41  ;;  %v3679_v53 = vmul.f32 %v4143_v49, %v4143_v49  ;;  %3310 = vmatmul.mubr.bf16.gmra.mrb[108].mxu0 %v4044_v44  ;;  %2739 = vmatprep.mubr.bf16.mxu1 %v4049_v45 }
 0x21b   :  { %3317 = vmatprep.mubr.bf16.mxu0 %v4053_v48 }
 0x21c   :  { %v3742_v56 = vadd.f32 %v3679_v53, %v3678_v51  ;;  %v2525_v57 = vpop.f32.mrb[4].mxu1  ;;  %v4073_v51 = vcombine.high %v395_v38, %v399_v39 }
 0x21d   :  { %v3103_v59 = vpop.f32.mrb[4].mxu0  ;;  %v2527_v60 = vpop.f32.mrb[5].mxu1 }
 0x21e   :  { %v4144_v62 = vadd.f32 %v3103_v59, %v2525_v57  ;;  %v3105_v63 = vpop.f32.mrb[5].mxu0  ;;  %v2528_v1 = vpop.f32.mrb[6].mxu1 }
 0x21f   :  { %v3106_v4 = vpop.f32.mrb[6].mxu0  ;;  %v2530_v5 = vpop.f32.mrb[7].mxu1 }
 0x220   :  { %3547 = vst [vmem:[%s5785_s2 + $0x10] sm:$0xff] %v4144_v62  ;;  %v3610_v7 = vadd.f32 %v4144_v62, %v3609_v52  ;;  %v3680_v8 = vmul.f32 %v4144_v62, %v4144_v62  ;;  %v4145_v9 = vadd.f32 %v3106_v4, %v2528_v1  ;;  %v3108_v10 = vpop.f32.mrb[7].mxu0 }
 0x221   :  { %2740 = vmatmul.mubr.bf16.gmra.mrb[112].mxu1 %v4048_v61 }
 0x222   :  { %v3743_v11 = vadd.f32 %v3742_v56, %v3680_v8  ;;  %3548 = vst [vmem:[%s5785_s2 + $0x18] sm:$0xff] %v4145_v9  ;;  %v3611_v12 = vadd.f32 %v4145_v9, %v3610_v7  ;;  %v3681_v13 = vmul.f32 %v4145_v9, %v4145_v9  ;;  %3318 = vmatmul.mubr.bf16.gmra.mrb[112].mxu0 %v4052_v2 }
 0x223   :  { %2747 = vmatprep.mubr.bf16.mxu1 %v4057_v3  ;;  %3325 = vmatprep.mubr.bf16.mxu0 %v4061_v6  ;;  %v4072_v2 = vcombine.low %v395_v38, %v399_v39  ;;  %v4076_v6 = vcombine.low %v397_v42, %v401_v43 }
 0x224   :  { %v3744_v16 = vadd.f32 %v3743_v11, %v3681_v13  ;;  %v2533_v17 = vpop.f32.mrb[8].mxu1 }
 0x225   :  { %v3111_v20 = vpop.f32.mrb[8].mxu0  ;;  %v2535_v21 = vpop.f32.mrb[9].mxu1 }
 0x226   :  { %v4146_v23 = vadd.f32 %v3111_v20, %v2533_v17  ;;  %v3113_v24 = vpop.f32.mrb[9].mxu0  ;;  %v2536_v25 = vpop.f32.mrb[10].mxu1 }
 0x227   :  { %v3114_v28 = vpop.f32.mrb[10].mxu0  ;;  %v2538_v29 = vpop.f32.mrb[11].mxu1 }
 0x228   :  { %3549 = vst [vmem:[%s5785_s2 + $0x20] sm:$0xff] %v4146_v23  ;;  %v3612_v31 = vadd.f32 %v4146_v23, %v3611_v12  ;;  %v3682_v32 = vmul.f32 %v4146_v23, %v4146_v23  ;;  %v4147_v33 = vadd.f32 %v3114_v28, %v2536_v25  ;;  %v3116_v34 = vpop.f32.mrb[11].mxu0 }
 0x229   :  { %2748 = vmatmul.mubr.bf16.gmra.mrb[116].mxu1 %v4056_v22 }
 0x22a   :  { %v3745_v35 = vadd.f32 %v3744_v16, %v3682_v32  ;;  %3550 = vst [vmem:[%s5785_s2 + $0x28] sm:$0xff] %v4147_v33  ;;  %v3613_v36 = vadd.f32 %v4147_v33, %v3612_v31  ;;  %v3683_v37 = vmul.f32 %v4147_v33, %v4147_v33  ;;  %3326 = vmatmul.mubr.bf16.gmra.mrb[116].mxu0 %v4060_v26 }
 0x22b   :  { %2755 = vmatprep.mubr.bf16.mxu1 %v4065_v27  ;;  %3333 = vmatprep.mubr.bf16.mxu0 %v4069_v30 }
 0x22c   :  { %v3746_v40 = vadd.f32 %v3745_v35, %v3683_v37  ;;  %v2541_v41 = vpop.f32.mrb[12].mxu1 }
 0x22d   :  { %v3119_v44 = vpop.f32.mrb[12].mxu0  ;;  %v2543_v45 = vpop.f32.mrb[13].mxu1 }
 0x22e   :  { %v4148_v47 = vadd.f32 %v3119_v44, %v2541_v41  ;;  %v3121_v48 = vpop.f32.mrb[13].mxu0  ;;  %v2544_v49 = vpop.f32.mrb[14].mxu1 }
 0x22f   :  { %v3122_v52 = vpop.f32.mrb[14].mxu0  ;;  %v2546_v53 = vpop.f32.mrb[15].mxu1 }
 0x230   :  { %3551 = vst [vmem:[%s5785_s2 + $0x30] sm:$0xff] %v4148_v47  ;;  %v3614_v55 = vadd.f32 %v4148_v47, %v3613_v36  ;;  %v3684_v56 = vmul.f32 %v4148_v47, %v4148_v47  ;;  %v4149_v57 = vadd.f32 %v3122_v52, %v2544_v49  ;;  %v3124_v0 = vpop.f32.mrb[15].mxu0 }
 0x231   :  { %2756 = vmatmul.mubr.bf16.gmra.mrb[120].mxu1 %v4064_v46 }
 0x232   :  { %v3747_v58 = vadd.f32 %v3746_v40, %v3684_v56  ;;  %3552 = vst [vmem:[%s5785_s2 + $0x38] sm:$0xff] %v4149_v57  ;;  %v3615_v59 = vadd.f32 %v4149_v57, %v3614_v55  ;;  %v3685_v60 = vmul.f32 %v4149_v57, %v4149_v57  ;;  %3334 = vmatmul.mubr.bf16.gmra.mrb[120].mxu0 %v4068_v50 }
 0x233   :  { %2763 = vmatprep.mubr.bf16.mxu1 %v4073_v51  ;;  %3341 = vmatprep.mubr.bf16.mxu0 %v4077_v54 }
 0x234   :  { %v3748_v61 = vadd.f32 %v3747_v58, %v3685_v60  ;;  %v2549_v62 = vpop.f32.mrb[16].mxu1 }
 0x235   :  { %v3127_v63 = vpop.f32.mrb[16].mxu0  ;;  %v2551_v1 = vpop.f32.mrb[17].mxu1 }
 0x236   :  { %v4150_v3 = vadd.f32 %v3127_v63, %v2549_v62  ;;  %v3129_v4 = vpop.f32.mrb[17].mxu0  ;;  %v2552_v5 = vpop.f32.mrb[18].mxu1 }
 0x237   :  { %v3130_v7 = vpop.f32.mrb[18].mxu0  ;;  %v2554_v8 = vpop.f32.mrb[19].mxu1 }
 0x238   :  { %3553 = vst [vmem:[%s5785_s2 + $0x40] sm:$0xff] %v4150_v3  ;;  %v3616_v9 = vadd.f32 %v4150_v3, %v3615_v59  ;;  %v3686_v10 = vmul.f32 %v4150_v3, %v4150_v3  ;;  %v4151_v11 = vadd.f32 %v3130_v7, %v2552_v5  ;;  %v3132_v12 = vpop.f32.mrb[19].mxu0 }
 0x239   :  { %2764 = vmatmul.mubr.bf16.gmra.mrb[124].mxu1 %v4072_v2 }
 0x23a   :  { %v3749_v13 = vadd.f32 %v3748_v61, %v3686_v10  ;;  %3554 = vst [vmem:[%s5785_s2 + $0x48] sm:$0xff] %v4151_v11  ;;  %v3617_v14 = vadd.f32 %v4151_v11, %v3616_v9  ;;  %v3687_v15 = vmul.f32 %v4151_v11, %v4151_v11  ;;  %3342 = vmatmul.mubr.bf16.gmra.mrb[124].mxu0 %v4076_v6 }
 0x23c   :  { %v3750_v16 = vadd.f32 %v3749_v13, %v3687_v15  ;;  %v2557_v17 = vpop.f32.mrb[20].mxu1 }
 0x23d   :  { %v3135_v18 = vpop.f32.mrb[20].mxu0  ;;  %v2559_v19 = vpop.f32.mrb[21].mxu1 }
 0x23e   :  { %v4152_v20 = vadd.f32 %v3135_v18, %v2557_v17  ;;  %v3137_v21 = vpop.f32.mrb[21].mxu0  ;;  %v2560_v22 = vpop.f32.mrb[22].mxu1 }
 0x23f   :  { %v3138_v23 = vpop.f32.mrb[22].mxu0  ;;  %v2562_v24 = vpop.f32.mrb[23].mxu1 }
 0x240   :  { %3555 = vst [vmem:[%s5785_s2 + $0x50] sm:$0xff] %v4152_v20  ;;  %v3618_v25 = vadd.f32 %v4152_v20, %v3617_v14  ;;  %v3688_v26 = vmul.f32 %v4152_v20, %v4152_v20  ;;  %v4153_v27 = vadd.f32 %v3138_v23, %v2560_v22  ;;  %v3140_v28 = vpop.f32.mrb[23].mxu0 }
 0x242   :  { %v3751_v29 = vadd.f32 %v3750_v16, %v3688_v26  ;;  %3556 = vst [vmem:[%s5785_s2 + $0x58] sm:$0xff] %v4153_v27  ;;  %v3619_v30 = vadd.f32 %v4153_v27, %v3618_v25  ;;  %v3689_v31 = vmul.f32 %v4153_v27, %v4153_v27 }
 0x244   :  { %v3752_v32 = vadd.f32 %v3751_v29, %v3689_v31  ;;  %v2565_v33 = vpop.f32.mrb[24].mxu1 }
 0x245   :  { %v3143_v34 = vpop.f32.mrb[24].mxu0  ;;  %v2567_v35 = vpop.f32.mrb[25].mxu1 }
 0x246   :  { %v4154_v36 = vadd.f32 %v3143_v34, %v2565_v33  ;;  %v3145_v37 = vpop.f32.mrb[25].mxu0  ;;  %v2568_v38 = vpop.f32.mrb[26].mxu1 }
 0x247   :  { %v3146_v39 = vpop.f32.mrb[26].mxu0  ;;  %v2570_v40 = vpop.f32.mrb[27].mxu1 }
 0x248   :  { %3557 = vst [vmem:[%s5785_s2 + $0x60] sm:$0xff] %v4154_v36  ;;  %v3620_v41 = vadd.f32 %v4154_v36, %v3619_v30  ;;  %v3690_v42 = vmul.f32 %v4154_v36, %v4154_v36  ;;  %v4155_v43 = vadd.f32 %v3146_v39, %v2568_v38  ;;  %v3148_v44 = vpop.f32.mrb[27].mxu0 }
 0x24a   :  { %v3753_v45 = vadd.f32 %v3752_v32, %v3690_v42  ;;  %3558 = vst [vmem:[%s5785_s2 + $0x68] sm:$0xff] %v4155_v43  ;;  %v3621_v46 = vadd.f32 %v4155_v43, %v3620_v41  ;;  %v3691_v47 = vmul.f32 %v4155_v43, %v4155_v43 }
 0x24c   :  { %v3754_v48 = vadd.f32 %v3753_v45, %v3691_v47  ;;  %v2573_v49 = vpop.f32.mrb[28].mxu1 }
 0x24d   :  { %v3151_v50 = vpop.f32.mrb[28].mxu0  ;;  %v2575_v51 = vpop.f32.mrb[29].mxu1 }
 0x24e   :  { %v4156_v52 = vadd.f32 %v3151_v50, %v2573_v49  ;;  %v3153_v53 = vpop.f32.mrb[29].mxu0  ;;  %v2576_v54 = vpop.f32.mrb[30].mxu1 }
 0x24f   :  { %v3154_v55 = vpop.f32.mrb[30].mxu0  ;;  %v2578_v56 = vpop.f32.mrb[31].mxu1 }
 0x250   :  { %3559 = vst [vmem:[%s5785_s2 + $0x70] sm:$0xff] %v4156_v52  ;;  %v3622_v57 = vadd.f32 %v4156_v52, %v3621_v46  ;;  %v3692_v0 = vmul.f32 %v4156_v52, %v4156_v52  ;;  %v4157_v58 = vadd.f32 %v3154_v55, %v2576_v54  ;;  %v3156_v59 = vpop.f32.mrb[31].mxu0 }
 0x252   :  { %v3755_v60 = vadd.f32 %v3754_v48, %v3692_v0  ;;  %3560 = vst [vmem:[%s5785_s2 + $0x78] sm:$0xff] %v4157_v58  ;;  %v3623_v61 = vadd.f32 %v4157_v58, %v3622_v57  ;;  %v3693_v62 = vmul.f32 %v4157_v58, %v4157_v58 }
 0x254   :  { %v3756_v63 = vadd.f32 %v3755_v60, %v3693_v62  ;;  %v2581_v1 = vpop.f32.mrb[32].mxu1 }
 0x255   :  { %v3159_v2 = vpop.f32.mrb[32].mxu0  ;;  %v2583_v3 = vpop.f32.mrb[33].mxu1 }
 0x256   :  { %v4158_v4 = vadd.f32 %v3159_v2, %v2581_v1  ;;  %v3161_v5 = vpop.f32.mrb[33].mxu0  ;;  %v2584_v6 = vpop.f32.mrb[34].mxu1 }
 0x257   :  { %v3162_v7 = vpop.f32.mrb[34].mxu0  ;;  %v2586_v8 = vpop.f32.mrb[35].mxu1 }
 0x258   :  { %3561 = vst [vmem:[%s5785_s2 + $0x80] sm:$0xff] %v4158_v4  ;;  %v3624_v9 = vadd.f32 %v4158_v4, %v3623_v61  ;;  %v3694_v10 = vmul.f32 %v4158_v4, %v4158_v4  ;;  %v4159_v11 = vadd.f32 %v3162_v7, %v2584_v6  ;;  %v3164_v12 = vpop.f32.mrb[35].mxu0 }
 0x25a   :  { %v3757_v13 = vadd.f32 %v3756_v63, %v3694_v10  ;;  %3562 = vst [vmem:[%s5785_s2 + $0x88] sm:$0xff] %v4159_v11  ;;  %v3625_v14 = vadd.f32 %v4159_v11, %v3624_v9  ;;  %v3695_v15 = vmul.f32 %v4159_v11, %v4159_v11 }
 0x25c   :  { %v3758_v16 = vadd.f32 %v3757_v13, %v3695_v15  ;;  %v2589_v17 = vpop.f32.mrb[36].mxu1 }
 0x25d   :  { %v3167_v18 = vpop.f32.mrb[36].mxu0  ;;  %v2591_v19 = vpop.f32.mrb[37].mxu1 }
 0x25e   :  { %v4160_v20 = vadd.f32 %v3167_v18, %v2589_v17  ;;  %v3169_v21 = vpop.f32.mrb[37].mxu0  ;;  %v2592_v22 = vpop.f32.mrb[38].mxu1 }
 0x25f   :  { %v3170_v23 = vpop.f32.mrb[38].mxu0  ;;  %v2594_v24 = vpop.f32.mrb[39].mxu1 }
 0x260   :  { %3563 = vst [vmem:[%s5785_s2 + $0x90] sm:$0xff] %v4160_v20  ;;  %v3626_v25 = vadd.f32 %v4160_v20, %v3625_v14  ;;  %v3696_v26 = vmul.f32 %v4160_v20, %v4160_v20  ;;  %v4161_v27 = vadd.f32 %v3170_v23, %v2592_v22  ;;  %v3172_v28 = vpop.f32.mrb[39].mxu0 }
 0x262   :  { %v3759_v29 = vadd.f32 %v3758_v16, %v3696_v26  ;;  %3564 = vst [vmem:[%s5785_s2 + $0x98] sm:$0xff] %v4161_v27  ;;  %v3627_v30 = vadd.f32 %v4161_v27, %v3626_v25  ;;  %v3697_v31 = vmul.f32 %v4161_v27, %v4161_v27 }
 0x264   :  { %v3760_v32 = vadd.f32 %v3759_v29, %v3697_v31  ;;  %v2597_v33 = vpop.f32.mrb[40].mxu1 }
 0x265   :  { %v3175_v34 = vpop.f32.mrb[40].mxu0  ;;  %v2599_v35 = vpop.f32.mrb[41].mxu1 }
 0x266   :  { %v4162_v36 = vadd.f32 %v3175_v34, %v2597_v33  ;;  %v3177_v37 = vpop.f32.mrb[41].mxu0  ;;  %v2600_v38 = vpop.f32.mrb[42].mxu1 }
 0x267   :  { %v3178_v39 = vpop.f32.mrb[42].mxu0  ;;  %v2602_v40 = vpop.f32.mrb[43].mxu1 }
 0x268   :  { %3565 = vst [vmem:[%s5785_s2 + $0xa0] sm:$0xff] %v4162_v36  ;;  %v3628_v41 = vadd.f32 %v4162_v36, %v3627_v30  ;;  %v3698_v42 = vmul.f32 %v4162_v36, %v4162_v36  ;;  %v4163_v43 = vadd.f32 %v3178_v39, %v2600_v38  ;;  %v3180_v44 = vpop.f32.mrb[43].mxu0 }
 0x26a   :  { %v3761_v45 = vadd.f32 %v3760_v32, %v3698_v42  ;;  %3566 = vst [vmem:[%s5785_s2 + $0xa8] sm:$0xff] %v4163_v43  ;;  %v3629_v46 = vadd.f32 %v4163_v43, %v3628_v41  ;;  %v3699_v47 = vmul.f32 %v4163_v43, %v4163_v43 }
 0x26c   :  { %v3762_v48 = vadd.f32 %v3761_v45, %v3699_v47  ;;  %v2605_v49 = vpop.f32.mrb[44].mxu1 }
 0x26d   :  { %v3183_v50 = vpop.f32.mrb[44].mxu0  ;;  %v2607_v51 = vpop.f32.mrb[45].mxu1 }
 0x26e   :  { %v4164_v52 = vadd.f32 %v3183_v50, %v2605_v49  ;;  %v3185_v53 = vpop.f32.mrb[45].mxu0  ;;  %v2608_v54 = vpop.f32.mrb[46].mxu1 }
 0x26f   :  { %v3186_v55 = vpop.f32.mrb[46].mxu0  ;;  %v2610_v56 = vpop.f32.mrb[47].mxu1 }
 0x270   :  { %3567 = vst [vmem:[%s5785_s2 + $0xb0] sm:$0xff] %v4164_v52  ;;  %v3630_v57 = vadd.f32 %v4164_v52, %v3629_v46  ;;  %v3700_v0 = vmul.f32 %v4164_v52, %v4164_v52  ;;  %v4165_v58 = vadd.f32 %v3186_v55, %v2608_v54  ;;  %v3188_v59 = vpop.f32.mrb[47].mxu0 }
 0x272   :  { %v3763_v60 = vadd.f32 %v3762_v48, %v3700_v0  ;;  %3568 = vst [vmem:[%s5785_s2 + $0xb8] sm:$0xff] %v4165_v58  ;;  %v3631_v61 = vadd.f32 %v4165_v58, %v3630_v57  ;;  %v3701_v62 = vmul.f32 %v4165_v58, %v4165_v58 }
 0x274   :  { %v3764_v63 = vadd.f32 %v3763_v60, %v3701_v62  ;;  %v2613_v1 = vpop.f32.mrb[48].mxu1 }
 0x275   :  { %v3191_v2 = vpop.f32.mrb[48].mxu0  ;;  %v2615_v3 = vpop.f32.mrb[49].mxu1 }
 0x276   :  { %v4166_v4 = vadd.f32 %v3191_v2, %v2613_v1  ;;  %v3193_v5 = vpop.f32.mrb[49].mxu0  ;;  %v2616_v6 = vpop.f32.mrb[50].mxu1 }
 0x277   :  { %v3194_v7 = vpop.f32.mrb[50].mxu0  ;;  %v2618_v8 = vpop.f32.mrb[51].mxu1 }
 0x278   :  { %3569 = vst [vmem:[%s5785_s2 + $0xc0] sm:$0xff] %v4166_v4  ;;  %v3632_v9 = vadd.f32 %v4166_v4, %v3631_v61  ;;  %v3702_v10 = vmul.f32 %v4166_v4, %v4166_v4  ;;  %v4167_v11 = vadd.f32 %v3194_v7, %v2616_v6  ;;  %v3196_v12 = vpop.f32.mrb[51].mxu0 }
 0x27a   :  { %v3765_v13 = vadd.f32 %v3764_v63, %v3702_v10  ;;  %3570 = vst [vmem:[%s5785_s2 + $0xc8] sm:$0xff] %v4167_v11  ;;  %v3633_v14 = vadd.f32 %v4167_v11, %v3632_v9  ;;  %v3703_v15 = vmul.f32 %v4167_v11, %v4167_v11 }
 0x27c   :  { %v3766_v16 = vadd.f32 %v3765_v13, %v3703_v15  ;;  %v2621_v17 = vpop.f32.mrb[52].mxu1 }
 0x27d   :  { %v3199_v18 = vpop.f32.mrb[52].mxu0  ;;  %v2623_v19 = vpop.f32.mrb[53].mxu1 }
 0x27e   :  { %v4168_v20 = vadd.f32 %v3199_v18, %v2621_v17  ;;  %v3201_v21 = vpop.f32.mrb[53].mxu0  ;;  %v2624_v22 = vpop.f32.mrb[54].mxu1 }
 0x27f   :  { %v3202_v23 = vpop.f32.mrb[54].mxu0  ;;  %v2626_v24 = vpop.f32.mrb[55].mxu1 }
 0x280   :  { %3571 = vst [vmem:[%s5785_s2 + $0xd0] sm:$0xff] %v4168_v20  ;;  %v3634_v25 = vadd.f32 %v4168_v20, %v3633_v14  ;;  %v3704_v26 = vmul.f32 %v4168_v20, %v4168_v20  ;;  %v4169_v27 = vadd.f32 %v3202_v23, %v2624_v22  ;;  %v3204_v28 = vpop.f32.mrb[55].mxu0 }
 0x282   :  { %v3767_v29 = vadd.f32 %v3766_v16, %v3704_v26  ;;  %3572 = vst [vmem:[%s5785_s2 + $0xd8] sm:$0xff] %v4169_v27  ;;  %v3635_v30 = vadd.f32 %v4169_v27, %v3634_v25  ;;  %v3705_v31 = vmul.f32 %v4169_v27, %v4169_v27 }
 0x284   :  { %v3768_v32 = vadd.f32 %v3767_v29, %v3705_v31  ;;  %v2629_v33 = vpop.f32.mrb[56].mxu1 }
 0x285   :  { %v3207_v34 = vpop.f32.mrb[56].mxu0  ;;  %v2631_v35 = vpop.f32.mrb[57].mxu1 }
 0x286   :  { %v4170_v36 = vadd.f32 %v3207_v34, %v2629_v33  ;;  %v3209_v37 = vpop.f32.mrb[57].mxu0  ;;  %v2632_v38 = vpop.f32.mrb[58].mxu1 }
 0x287   :  { %v3210_v39 = vpop.f32.mrb[58].mxu0  ;;  %v2634_v40 = vpop.f32.mrb[59].mxu1 }
 0x288   :  { %3573 = vst [vmem:[%s5785_s2 + $0xe0] sm:$0xff] %v4170_v36  ;;  %v3636_v41 = vadd.f32 %v4170_v36, %v3635_v30  ;;  %v3706_v42 = vmul.f32 %v4170_v36, %v4170_v36  ;;  %v4171_v43 = vadd.f32 %v3210_v39, %v2632_v38  ;;  %v3212_v44 = vpop.f32.mrb[59].mxu0 }
 0x28a   :  { %v3769_v45 = vadd.f32 %v3768_v32, %v3706_v42  ;;  %3574 = vst [vmem:[%s5785_s2 + $0xe8] sm:$0xff] %v4171_v43  ;;  %v3637_v46 = vadd.f32 %v4171_v43, %v3636_v41  ;;  %v3707_v47 = vmul.f32 %v4171_v43, %v4171_v43 }
 0x28c   :  { %v3770_v48 = vadd.f32 %v3769_v45, %v3707_v47  ;;  %v2637_v49 = vpop.f32.mrb[60].mxu1 }
 0x28d   :  { %v3215_v50 = vpop.f32.mrb[60].mxu0  ;;  %v2639_v51 = vpop.f32.mrb[61].mxu1 }
 0x28e   :  { %v4172_v52 = vadd.f32 %v3215_v50, %v2637_v49  ;;  %v3217_v53 = vpop.f32.mrb[61].mxu0  ;;  %v2640_v54 = vpop.f32.mrb[62].mxu1 }
 0x28f   :  { %v3218_v55 = vpop.f32.mrb[62].mxu0  ;;  %v2642_v56 = vpop.f32.mrb[63].mxu1 }
 0x290   :  { %3575 = vst [vmem:[%s5785_s2 + $0xf0] sm:$0xff] %v4172_v52  ;;  %v3638_v57 = vadd.f32 %v4172_v52, %v3637_v46  ;;  %v3708_v0 = vmul.f32 %v4172_v52, %v4172_v52  ;;  %v4173_v58 = vadd.f32 %v3218_v55, %v2640_v54  ;;  %v3220_v59 = vpop.f32.mrb[63].mxu0 }
 0x292   :  { %v3771_v60 = vadd.f32 %v3770_v48, %v3708_v0  ;;  %3576 = vst [vmem:[%s5785_s2 + $0xf8] sm:$0xff] %v4173_v58  ;;  %v3639_v61 = vadd.f32 %v4173_v58, %v3638_v57  ;;  %v3709_v62 = vmul.f32 %v4173_v58, %v4173_v58 }
 0x294   :  { %v3772_v63 = vadd.f32 %v3771_v60, %v3709_v62  ;;  %v2645_v1 = vpop.f32.mrb[64].mxu1 }
 0x295   :  { %v3223_v2 = vpop.f32.mrb[64].mxu0  ;;  %v2647_v3 = vpop.f32.mrb[65].mxu1 }
 0x296   :  { %v4174_v4 = vadd.f32 %v3223_v2, %v2645_v1  ;;  %v3225_v5 = vpop.f32.mrb[65].mxu0  ;;  %v2648_v6 = vpop.f32.mrb[66].mxu1 }
 0x297   :  { %v3226_v7 = vpop.f32.mrb[66].mxu0  ;;  %v2650_v8 = vpop.f32.mrb[67].mxu1 }
 0x298   :  { %3577 = vst [vmem:[%s5785_s2 + $0x100] sm:$0xff] %v4174_v4  ;;  %v3640_v9 = vadd.f32 %v4174_v4, %v3639_v61  ;;  %v3710_v10 = vmul.f32 %v4174_v4, %v4174_v4  ;;  %v4175_v11 = vadd.f32 %v3226_v7, %v2648_v6  ;;  %v3228_v12 = vpop.f32.mrb[67].mxu0 }
 0x29a   :  { %v3773_v13 = vadd.f32 %v3772_v63, %v3710_v10  ;;  %3578 = vst [vmem:[%s5785_s2 + $0x108] sm:$0xff] %v4175_v11  ;;  %v3641_v14 = vadd.f32 %v4175_v11, %v3640_v9  ;;  %v3711_v15 = vmul.f32 %v4175_v11, %v4175_v11 }
 0x29c   :  { %v3774_v16 = vadd.f32 %v3773_v13, %v3711_v15  ;;  %v2653_v17 = vpop.f32.mrb[68].mxu1 }
 0x29d   :  { %v3231_v18 = vpop.f32.mrb[68].mxu0  ;;  %v2655_v19 = vpop.f32.mrb[69].mxu1 }
 0x29e   :  { %v4176_v20 = vadd.f32 %v3231_v18, %v2653_v17  ;;  %v3233_v21 = vpop.f32.mrb[69].mxu0  ;;  %v2656_v22 = vpop.f32.mrb[70].mxu1 }
 0x29f   :  { %v3234_v23 = vpop.f32.mrb[70].mxu0  ;;  %v2658_v24 = vpop.f32.mrb[71].mxu1 }
 0x2a0   :  { %3579 = vst [vmem:[%s5785_s2 + $0x110] sm:$0xff] %v4176_v20  ;;  %v3642_v25 = vadd.f32 %v4176_v20, %v3641_v14  ;;  %v3712_v26 = vmul.f32 %v4176_v20, %v4176_v20  ;;  %v4177_v27 = vadd.f32 %v3234_v23, %v2656_v22  ;;  %v3236_v28 = vpop.f32.mrb[71].mxu0 }
 0x2a2   :  { %v3775_v29 = vadd.f32 %v3774_v16, %v3712_v26  ;;  %3580 = vst [vmem:[%s5785_s2 + $0x118] sm:$0xff] %v4177_v27  ;;  %v3643_v30 = vadd.f32 %v4177_v27, %v3642_v25  ;;  %v3713_v31 = vmul.f32 %v4177_v27, %v4177_v27 }
 0x2a4   :  { %v3776_v32 = vadd.f32 %v3775_v29, %v3713_v31  ;;  %v2661_v33 = vpop.f32.mrb[72].mxu1 }
 0x2a5   :  { %v3239_v34 = vpop.f32.mrb[72].mxu0  ;;  %v2663_v35 = vpop.f32.mrb[73].mxu1 }
 0x2a6   :  { %v4178_v36 = vadd.f32 %v3239_v34, %v2661_v33  ;;  %v3241_v37 = vpop.f32.mrb[73].mxu0  ;;  %v2664_v38 = vpop.f32.mrb[74].mxu1 }
 0x2a7   :  { %v3242_v39 = vpop.f32.mrb[74].mxu0  ;;  %v2666_v40 = vpop.f32.mrb[75].mxu1 }
 0x2a8   :  { %3581 = vst [vmem:[%s5785_s2 + $0x120] sm:$0xff] %v4178_v36  ;;  %v3644_v41 = vadd.f32 %v4178_v36, %v3643_v30  ;;  %v3714_v42 = vmul.f32 %v4178_v36, %v4178_v36  ;;  %v4179_v43 = vadd.f32 %v3242_v39, %v2664_v38  ;;  %v3244_v44 = vpop.f32.mrb[75].mxu0 }
 0x2aa   :  { %v3777_v45 = vadd.f32 %v3776_v32, %v3714_v42  ;;  %3582 = vst [vmem:[%s5785_s2 + $0x128] sm:$0xff] %v4179_v43  ;;  %v3645_v46 = vadd.f32 %v4179_v43, %v3644_v41  ;;  %v3715_v47 = vmul.f32 %v4179_v43, %v4179_v43 }
 0x2ac   :  { %v3778_v48 = vadd.f32 %v3777_v45, %v3715_v47  ;;  %v2669_v49 = vpop.f32.mrb[76].mxu1 }
 0x2ad   :  { %v3247_v50 = vpop.f32.mrb[76].mxu0  ;;  %v2671_v51 = vpop.f32.mrb[77].mxu1 }
 0x2ae   :  { %v4180_v52 = vadd.f32 %v3247_v50, %v2669_v49  ;;  %v3249_v53 = vpop.f32.mrb[77].mxu0  ;;  %v2672_v54 = vpop.f32.mrb[78].mxu1 }
 0x2af   :  { %v3250_v55 = vpop.f32.mrb[78].mxu0  ;;  %v2674_v56 = vpop.f32.mrb[79].mxu1 }
 0x2b0   :  { %3583 = vst [vmem:[%s5785_s2 + $0x130] sm:$0xff] %v4180_v52  ;;  %v3646_v57 = vadd.f32 %v4180_v52, %v3645_v46  ;;  %v3716_v0 = vmul.f32 %v4180_v52, %v4180_v52  ;;  %v4181_v58 = vadd.f32 %v3250_v55, %v2672_v54  ;;  %v3252_v59 = vpop.f32.mrb[79].mxu0 }
 0x2b2   :  { %v3779_v60 = vadd.f32 %v3778_v48, %v3716_v0  ;;  %3584 = vst [vmem:[%s5785_s2 + $0x138] sm:$0xff] %v4181_v58  ;;  %v3647_v61 = vadd.f32 %v4181_v58, %v3646_v57  ;;  %v3717_v62 = vmul.f32 %v4181_v58, %v4181_v58 }
 0x2b4   :  { %v3780_v63 = vadd.f32 %v3779_v60, %v3717_v62  ;;  %v2677_v1 = vpop.f32.mrb[80].mxu1 }
 0x2b5   :  { %v3255_v2 = vpop.f32.mrb[80].mxu0  ;;  %v2679_v3 = vpop.f32.mrb[81].mxu1 }
 0x2b6   :  { %v4182_v4 = vadd.f32 %v3255_v2, %v2677_v1  ;;  %v3257_v5 = vpop.f32.mrb[81].mxu0  ;;  %v2680_v6 = vpop.f32.mrb[82].mxu1 }
 0x2b7   :  { %v3258_v7 = vpop.f32.mrb[82].mxu0  ;;  %v2682_v8 = vpop.f32.mrb[83].mxu1 }
 0x2b8   :  { %3585 = vst [vmem:[%s5785_s2 + $0x140] sm:$0xff] %v4182_v4  ;;  %v3648_v9 = vadd.f32 %v4182_v4, %v3647_v61  ;;  %v3718_v10 = vmul.f32 %v4182_v4, %v4182_v4  ;;  %v4183_v11 = vadd.f32 %v3258_v7, %v2680_v6  ;;  %v3260_v12 = vpop.f32.mrb[83].mxu0 }
 0x2ba   :  { %v3781_v13 = vadd.f32 %v3780_v63, %v3718_v10  ;;  %3586 = vst [vmem:[%s5785_s2 + $0x148] sm:$0xff] %v4183_v11  ;;  %v3649_v14 = vadd.f32 %v4183_v11, %v3648_v9  ;;  %v3719_v15 = vmul.f32 %v4183_v11, %v4183_v11 }
 0x2bc   :  { %v3782_v16 = vadd.f32 %v3781_v13, %v3719_v15  ;;  %v2685_v17 = vpop.f32.mrb[84].mxu1 }
 0x2bd   :  { %v3263_v18 = vpop.f32.mrb[84].mxu0  ;;  %v2687_v19 = vpop.f32.mrb[85].mxu1 }
 0x2be   :  { %v4184_v20 = vadd.f32 %v3263_v18, %v2685_v17  ;;  %v3265_v21 = vpop.f32.mrb[85].mxu0  ;;  %v2688_v22 = vpop.f32.mrb[86].mxu1 }
 0x2bf   :  { %v3266_v23 = vpop.f32.mrb[86].mxu0  ;;  %v2690_v24 = vpop.f32.mrb[87].mxu1 }
 0x2c0   :  { %3587 = vst [vmem:[%s5785_s2 + $0x150] sm:$0xff] %v4184_v20  ;;  %v3650_v25 = vadd.f32 %v4184_v20, %v3649_v14  ;;  %v3720_v26 = vmul.f32 %v4184_v20, %v4184_v20  ;;  %v4185_v27 = vadd.f32 %v3266_v23, %v2688_v22  ;;  %v3268_v28 = vpop.f32.mrb[87].mxu0 }
 0x2c2   :  { %v3783_v29 = vadd.f32 %v3782_v16, %v3720_v26  ;;  %3588 = vst [vmem:[%s5785_s2 + $0x158] sm:$0xff] %v4185_v27  ;;  %v3651_v30 = vadd.f32 %v4185_v27, %v3650_v25  ;;  %v3721_v31 = vmul.f32 %v4185_v27, %v4185_v27 }
 0x2c4   :  { %v3784_v32 = vadd.f32 %v3783_v29, %v3721_v31  ;;  %v2693_v33 = vpop.f32.mrb[88].mxu1 }
 0x2c5   :  { %v3271_v34 = vpop.f32.mrb[88].mxu0  ;;  %v2695_v35 = vpop.f32.mrb[89].mxu1 }
 0x2c6   :  { %v4186_v36 = vadd.f32 %v3271_v34, %v2693_v33  ;;  %v3273_v37 = vpop.f32.mrb[89].mxu0  ;;  %v2696_v38 = vpop.f32.mrb[90].mxu1 }
 0x2c7   :  { %v3274_v39 = vpop.f32.mrb[90].mxu0  ;;  %v2698_v40 = vpop.f32.mrb[91].mxu1 }
 0x2c8   :  { %3589 = vst [vmem:[%s5785_s2 + $0x160] sm:$0xff] %v4186_v36  ;;  %v3652_v41 = vadd.f32 %v4186_v36, %v3651_v30  ;;  %v3722_v42 = vmul.f32 %v4186_v36, %v4186_v36  ;;  %v4187_v43 = vadd.f32 %v3274_v39, %v2696_v38  ;;  %v3276_v44 = vpop.f32.mrb[91].mxu0 }
 0x2ca   :  { %v3785_v45 = vadd.f32 %v3784_v32, %v3722_v42  ;;  %3590 = vst [vmem:[%s5785_s2 + $0x168] sm:$0xff] %v4187_v43  ;;  %v3653_v46 = vadd.f32 %v4187_v43, %v3652_v41  ;;  %v3723_v47 = vmul.f32 %v4187_v43, %v4187_v43 }
 0x2cc   :  { %v3786_v48 = vadd.f32 %v3785_v45, %v3723_v47  ;;  %v2701_v49 = vpop.f32.mrb[92].mxu1 }
 0x2cd   :  { %v3279_v50 = vpop.f32.mrb[92].mxu0  ;;  %v2703_v51 = vpop.f32.mrb[93].mxu1 }
 0x2ce   :  { %v4188_v52 = vadd.f32 %v3279_v50, %v2701_v49  ;;  %v3281_v53 = vpop.f32.mrb[93].mxu0  ;;  %v2704_v54 = vpop.f32.mrb[94].mxu1 }
 0x2cf   :  { %v3282_v55 = vpop.f32.mrb[94].mxu0  ;;  %v2706_v56 = vpop.f32.mrb[95].mxu1 }
 0x2d0   :  { %3591 = vst [vmem:[%s5785_s2 + $0x170] sm:$0xff] %v4188_v52  ;;  %v3654_v57 = vadd.f32 %v4188_v52, %v3653_v46  ;;  %v3724_v0 = vmul.f32 %v4188_v52, %v4188_v52  ;;  %v4189_v58 = vadd.f32 %v3282_v55, %v2704_v54  ;;  %v3284_v59 = vpop.f32.mrb[95].mxu0 }
 0x2d2   :  { %v3787_v60 = vadd.f32 %v3786_v48, %v3724_v0  ;;  %3592 = vst [vmem:[%s5785_s2 + $0x178] sm:$0xff] %v4189_v58  ;;  %v3655_v61 = vadd.f32 %v4189_v58, %v3654_v57  ;;  %v3725_v62 = vmul.f32 %v4189_v58, %v4189_v58 }
 0x2d4   :  { %v3788_v63 = vadd.f32 %v3787_v60, %v3725_v62  ;;  %v2709_v1 = vpop.f32.mrb[96].mxu1 }
 0x2d5   :  { %v3287_v2 = vpop.f32.mrb[96].mxu0  ;;  %v2711_v3 = vpop.f32.mrb[97].mxu1 }
 0x2d6   :  { %v4190_v4 = vadd.f32 %v3287_v2, %v2709_v1  ;;  %v3289_v5 = vpop.f32.mrb[97].mxu0  ;;  %v2712_v6 = vpop.f32.mrb[98].mxu1 }
 0x2d7   :  { %v3290_v7 = vpop.f32.mrb[98].mxu0  ;;  %v2714_v8 = vpop.f32.mrb[99].mxu1 }
 0x2d8   :  { %3593 = vst [vmem:[%s5785_s2 + $0x180] sm:$0xff] %v4190_v4  ;;  %v3656_v9 = vadd.f32 %v4190_v4, %v3655_v61  ;;  %v3726_v10 = vmul.f32 %v4190_v4, %v4190_v4  ;;  %v4191_v11 = vadd.f32 %v3290_v7, %v2712_v6  ;;  %v3292_v12 = vpop.f32.mrb[99].mxu0 }
 0x2da   :  { %v3789_v13 = vadd.f32 %v3788_v63, %v3726_v10  ;;  %3594 = vst [vmem:[%s5785_s2 + $0x188] sm:$0xff] %v4191_v11  ;;  %v3657_v14 = vadd.f32 %v4191_v11, %v3656_v9  ;;  %v3727_v15 = vmul.f32 %v4191_v11, %v4191_v11 }
 0x2dc   :  { %v3790_v16 = vadd.f32 %v3789_v13, %v3727_v15  ;;  %v2717_v17 = vpop.f32.mrb[100].mxu1 }
 0x2dd   :  { %v3295_v18 = vpop.f32.mrb[100].mxu0  ;;  %v2719_v19 = vpop.f32.mrb[101].mxu1 }
 0x2de   :  { %v4192_v20 = vadd.f32 %v3295_v18, %v2717_v17  ;;  %v3297_v21 = vpop.f32.mrb[101].mxu0  ;;  %v2720_v22 = vpop.f32.mrb[102].mxu1 }
 0x2df   :  { %v3298_v23 = vpop.f32.mrb[102].mxu0  ;;  %v2722_v24 = vpop.f32.mrb[103].mxu1 }
 0x2e0   :  { %3595 = vst [vmem:[%s5785_s2 + $0x190] sm:$0xff] %v4192_v20  ;;  %v3658_v25 = vadd.f32 %v4192_v20, %v3657_v14  ;;  %v3728_v26 = vmul.f32 %v4192_v20, %v4192_v20  ;;  %v4193_v27 = vadd.f32 %v3298_v23, %v2720_v22  ;;  %v3300_v28 = vpop.f32.mrb[103].mxu0 }
 0x2e2   :  { %v3791_v29 = vadd.f32 %v3790_v16, %v3728_v26  ;;  %3596 = vst [vmem:[%s5785_s2 + $0x198] sm:$0xff] %v4193_v27  ;;  %v3659_v30 = vadd.f32 %v4193_v27, %v3658_v25  ;;  %v3729_v31 = vmul.f32 %v4193_v27, %v4193_v27 }
 0x2e4   :  { %v3792_v32 = vadd.f32 %v3791_v29, %v3729_v31  ;;  %v2725_v33 = vpop.f32.mrb[104].mxu1 }
 0x2e5   :  { %v3303_v34 = vpop.f32.mrb[104].mxu0  ;;  %v2727_v35 = vpop.f32.mrb[105].mxu1 }
 0x2e6   :  { %v4194_v36 = vadd.f32 %v3303_v34, %v2725_v33  ;;  %v3305_v37 = vpop.f32.mrb[105].mxu0  ;;  %v2728_v38 = vpop.f32.mrb[106].mxu1 }
 0x2e7   :  { %v3306_v39 = vpop.f32.mrb[106].mxu0  ;;  %v2730_v40 = vpop.f32.mrb[107].mxu1 }
 0x2e8   :  { %3597 = vst [vmem:[%s5785_s2 + $0x1a0] sm:$0xff] %v4194_v36  ;;  %v3660_v41 = vadd.f32 %v4194_v36, %v3659_v30  ;;  %v3730_v42 = vmul.f32 %v4194_v36, %v4194_v36  ;;  %v4195_v43 = vadd.f32 %v3306_v39, %v2728_v38  ;;  %v3308_v44 = vpop.f32.mrb[107].mxu0 }
 0x2ea   :  { %v3793_v45 = vadd.f32 %v3792_v32, %v3730_v42  ;;  %3598 = vst [vmem:[%s5785_s2 + $0x1a8] sm:$0xff] %v4195_v43  ;;  %v3661_v46 = vadd.f32 %v4195_v43, %v3660_v41  ;;  %v3731_v47 = vmul.f32 %v4195_v43, %v4195_v43 }
 0x2ec   :  { %v3794_v48 = vadd.f32 %v3793_v45, %v3731_v47  ;;  %v2733_v49 = vpop.f32.mrb[108].mxu1 }
 0x2ed   :  { %v3311_v50 = vpop.f32.mrb[108].mxu0  ;;  %v2735_v51 = vpop.f32.mrb[109].mxu1 }
 0x2ee   :  { %v4196_v52 = vadd.f32 %v3311_v50, %v2733_v49  ;;  %v3313_v53 = vpop.f32.mrb[109].mxu0  ;;  %v2736_v54 = vpop.f32.mrb[110].mxu1 }
 0x2ef   :  { %v3314_v55 = vpop.f32.mrb[110].mxu0  ;;  %v2738_v56 = vpop.f32.mrb[111].mxu1 }
 0x2f0   :  { %3599 = vst [vmem:[%s5785_s2 + $0x1b0] sm:$0xff] %v4196_v52  ;;  %v3662_v57 = vadd.f32 %v4196_v52, %v3661_v46  ;;  %v3732_v0 = vmul.f32 %v4196_v52, %v4196_v52  ;;  %v4197_v58 = vadd.f32 %v3314_v55, %v2736_v54  ;;  %v3316_v59 = vpop.f32.mrb[111].mxu0 }
 0x2f2   :  { %v3795_v60 = vadd.f32 %v3794_v48, %v3732_v0  ;;  %3600 = vst [vmem:[%s5785_s2 + $0x1b8] sm:$0xff] %v4197_v58  ;;  %v3663_v61 = vadd.f32 %v4197_v58, %v3662_v57  ;;  %v3733_v62 = vmul.f32 %v4197_v58, %v4197_v58 }
 0x2f4   :  { %v3796_v63 = vadd.f32 %v3795_v60, %v3733_v62  ;;  %v2741_v1 = vpop.f32.mrb[112].mxu1 }
 0x2f5   :  { %v3319_v2 = vpop.f32.mrb[112].mxu0  ;;  %v2743_v3 = vpop.f32.mrb[113].mxu1 }
 0x2f6   :  { %v4198_v4 = vadd.f32 %v3319_v2, %v2741_v1  ;;  %v3321_v5 = vpop.f32.mrb[113].mxu0  ;;  %v2744_v6 = vpop.f32.mrb[114].mxu1 }
 0x2f7   :  { %v3322_v7 = vpop.f32.mrb[114].mxu0  ;;  %v2746_v8 = vpop.f32.mrb[115].mxu1 }
 0x2f8   :  { %3601 = vst [vmem:[%s5785_s2 + $0x1c0] sm:$0xff] %v4198_v4  ;;  %v3664_v9 = vadd.f32 %v4198_v4, %v3663_v61  ;;  %v3734_v10 = vmul.f32 %v4198_v4, %v4198_v4  ;;  %v4199_v11 = vadd.f32 %v3322_v7, %v2744_v6  ;;  %v3324_v12 = vpop.f32.mrb[115].mxu0 }
 0x2fa   :  { %v3797_v13 = vadd.f32 %v3796_v63, %v3734_v10  ;;  %3602 = vst [vmem:[%s5785_s2 + $0x1c8] sm:$0xff] %v4199_v11  ;;  %v3665_v14 = vadd.f32 %v4199_v11, %v3664_v9  ;;  %v3735_v15 = vmul.f32 %v4199_v11, %v4199_v11 }
 0x2fc   :  { %v3798_v16 = vadd.f32 %v3797_v13, %v3735_v15  ;;  %v2749_v17 = vpop.f32.mrb[116].mxu1 }
 0x2fd   :  { %v3327_v18 = vpop.f32.mrb[116].mxu0  ;;  %v2751_v19 = vpop.f32.mrb[117].mxu1 }
 0x2fe   :  { %v4200_v20 = vadd.f32 %v3327_v18, %v2749_v17  ;;  %v3329_v21 = vpop.f32.mrb[117].mxu0  ;;  %v2752_v22 = vpop.f32.mrb[118].mxu1 }
 0x2ff   :  { %v3330_v23 = vpop.f32.mrb[118].mxu0  ;;  %v2754_v24 = vpop.f32.mrb[119].mxu1 }
 0x300   :  { %3603 = vst [vmem:[%s5785_s2 + $0x1d0] sm:$0xff] %v4200_v20  ;;  %v3666_v25 = vadd.f32 %v4200_v20, %v3665_v14  ;;  %v3736_v26 = vmul.f32 %v4200_v20, %v4200_v20  ;;  %v4201_v27 = vadd.f32 %v3330_v23, %v2752_v22  ;;  %v3332_v28 = vpop.f32.mrb[119].mxu0 }
 0x302   :  { %v3799_v29 = vadd.f32 %v3798_v16, %v3736_v26  ;;  %3604 = vst [vmem:[%s5785_s2 + $0x1d8] sm:$0xff] %v4201_v27  ;;  %v3667_v30 = vadd.f32 %v4201_v27, %v3666_v25  ;;  %v3737_v31 = vmul.f32 %v4201_v27, %v4201_v27 }
 0x304   :  { %v3800_v32 = vadd.f32 %v3799_v29, %v3737_v31  ;;  %v2757_v33 = vpop.f32.mrb[120].mxu1 }
 0x305   :  { %v3335_v34 = vpop.f32.mrb[120].mxu0  ;;  %v2759_v35 = vpop.f32.mrb[121].mxu1 }
 0x306   :  { %v4202_v36 = vadd.f32 %v3335_v34, %v2757_v33  ;;  %v3337_v37 = vpop.f32.mrb[121].mxu0  ;;  %v2760_v38 = vpop.f32.mrb[122].mxu1 }
 0x307   :  { %v3338_v39 = vpop.f32.mrb[122].mxu0  ;;  %v2762_v40 = vpop.f32.mrb[123].mxu1 }
 0x308   :  { %3605 = vst [vmem:[%s5785_s2 + $0x1e0] sm:$0xff] %v4202_v36  ;;  %v3668_v41 = vadd.f32 %v4202_v36, %v3667_v30  ;;  %v3738_v42 = vmul.f32 %v4202_v36, %v4202_v36  ;;  %v4203_v43 = vadd.f32 %v3338_v39, %v2760_v38  ;;  %v3340_v44 = vpop.f32.mrb[123].mxu0 }
 0x30a   :  { %v3801_v45 = vadd.f32 %v3800_v32, %v3738_v42  ;;  %3606 = vst [vmem:[%s5785_s2 + $0x1e8] sm:$0xff] %v4203_v43  ;;  %v3669_v46 = vadd.f32 %v4203_v43, %v3668_v41  ;;  %v3739_v47 = vmul.f32 %v4203_v43, %v4203_v43 }
 0x30c   :  { %v3802_v48 = vadd.f32 %v3801_v45, %v3739_v47  ;;  %v2765_v49 = vpop.f32.mrb[124].mxu1 }
 0x30d   :  { %v3343_v50 = vpop.f32.mrb[124].mxu0  ;;  %v2767_v51 = vpop.f32.mrb[125].mxu1 }
 0x30e   :  { %v4204_v52 = vadd.f32 %v3343_v50, %v2765_v49  ;;  %v3345_v53 = vpop.f32.mrb[125].mxu0  ;;  %v2768_v54 = vpop.f32.mrb[126].mxu1 }
 0x30f   :  { %v3346_v55 = vpop.f32.mrb[126].mxu0  ;;  %v2770_v56 = vpop.f32.mrb[127].mxu1 }
 0x310   :  { %3607 = vst [vmem:[%s5785_s2 + $0x1f0] sm:$0xff] %v4204_v52  ;;  %v3670_v57 = vadd.f32 %v4204_v52, %v3669_v46  ;;  %v3740_v0 = vmul.f32 %v4204_v52, %v4204_v52  ;;  %v4205_v58 = vadd.f32 %v3346_v55, %v2768_v54  ;;  %v3348_v59 = vpop.f32.mrb[127].mxu0 }
 0x312   :  { %v3803_v60 = vadd.f32 %v3802_v48, %v3740_v0  ;;  %3608 = vst [vmem:[%s5785_s2 + $0x1f8] sm:$0xff] %v4205_v58  ;;  %v3671_v61 = vadd.f32 %v4205_v58, %v3670_v57  ;;  %v3741_v62 = vmul.f32 %v4205_v58, %v4205_v58 }
 0x314   :  { %v3672_v63 = vrot.slane %v3671_v61, 4  ;;  %v3804_v1 = vadd.f32 %v3803_v60, %v3741_v62 }
 0x316   :  { %v3673_v2 = vadd.f32 %v3672_v63, %v3671_v61  ;;  %v3805_v3 = vrot.slane %v3804_v1, 4 }
 0x318   :  { %v3674_v4 = vrot.slane %v3673_v2, 2  ;;  %v3806_v5 = vadd.f32 %v3805_v3, %v3804_v1 }
 0x31a   :  { %v3675_v6 = vadd.f32 %v3674_v4, %v3673_v2  ;;  %v3807_v7 = vrot.slane %v3806_v5, 2 }
 0x31c   :  { %v3676_v8 = vrot.slane %v3675_v6, 1  ;;  %v3808_v9 = vadd.f32 %v3807_v7, %v3806_v5 }
 0x31e   :  { %v3809_v10 = vrot.slane %v3808_v9, 1  ;;  %v3677_v11 = vadd.f32 %v3676_v8, %v3675_v6 }
 0x320   :  { %v3810_v12 = vadd.f32 %v3809_v10, %v3808_v9 }
 0x322   :  { %v3812_v13 = vsel %vm3811_vm0, %v3677_v11, %v3810_v12 }
 0x323   :  { %3813 = vst [vmem:[%s5786_s3] sm:$0x3] %v3812_v13 }

// kernel: discriminator_forward.10
= control target key start
LH: loop header
LB: loop body
LE: loop exit
PB: predicated region body
PF: predicated region fallthrough
CT: control target
= control target key end

     0   :  { %s1439_s0 = inlined_call_operand.vmem [shape: f32[512,128], index: 0, kind: input, shape index: {}]   ;;  %s1440_s1 = inlined_call_operand.vmem [shape: f32[1,128], index: 1, kind: input, shape index: {}]   ;;  %s1441_s2 = inlined_call_operand.vmem [shape: f32[1,128], index: 2, kind: input, shape index: {}]   ;;  %s1442_s3 = inlined_call_operand.vmem [shape: bf16[512,128], index: 3, kind: output, shape index: {}]  }
   0x1   :  { %v14_v0 = vld [vmem:[%s1439_s0] sm:$0xff]  ;;  %v15_v1 = vld [vmem:[%s1439_s0 + $0x8] sm:$0xff]  ;;  %v16_v6 = vld [vmem:[%s1439_s0 + $0x10] sm:$0xff] }
   0x2   :  { %v1022_v2 = vld [vmem:[%s1440_s1] ss:$0 sm:$0xff]  ;;  %v17_v7 = vld [vmem:[%s1439_s0 + $0x18] sm:$0xff]  ;;  %v19_v11 = vld [vmem:[%s1439_s0 + $0x28] sm:$0xff] }
   0x3   :  { %v85_v3 = vmul.f32 %v1022_v2, %v14_v0  ;;  %v86_v4 = vmul.f32 %v1022_v2, %v15_v1  ;;  %v1029_v5 = vld [vmem:[%s1441_s2] ss:$0 sm:$0xff]  ;;  %v87_v8 = vmul.f32 %v1022_v2, %v16_v6  ;;  %v88_v9 = vmul.f32 %v1022_v2, %v17_v7  ;;  %v20_v12 = vld [vmem:[%s1439_s0 + $0x30] sm:$0xff]  ;;  %v21_v17 = vld [vmem:[%s1439_s0 + $0x38] sm:$0xff] }
   0x4   :  { %v18_v10 = vld [vmem:[%s1439_s0 + $0x20] sm:$0xff]  ;;  %v90_v16 = vmul.f32 %v1022_v2, %v19_v11  ;;  %v91_v20 = vmul.f32 %v1022_v2, %v20_v12  ;;  %v92_v21 = vmul.f32 %v1022_v2, %v21_v17  ;;  %v23_v35 = vld [vmem:[%s1439_s0 + $0x48] sm:$0xff]  ;;  %v24_v40 = vld [vmem:[%s1439_s0 + $0x50] sm:$0xff] }
   0x5   :  { %v156_v13 = vadd.f32 %v1029_v5, %v85_v3  ;;  %v157_v14 = vadd.f32 %v1029_v5, %v86_v4  ;;  %v89_v15 = vmul.f32 %v1022_v2, %v18_v10  ;;  %v158_v18 = vadd.f32 %v1029_v5, %v87_v8  ;;  %v22_v30 = vld [vmem:[%s1439_s0 + $0x40] sm:$0xff]  ;;  %v25_v41 = vld [vmem:[%s1439_s0 + $0x58] sm:$0xff]  ;;  %v27_v47 = vld [vmem:[%s1439_s0 + $0x68] sm:$0xff] }
   0x6   :  { %v159_v19 = vadd.f32 %v1029_v5, %v88_v9  ;;  %v161_v25 = vadd.f32 %v1029_v5, %v90_v16  ;;  %v162_v28 = vadd.f32 %v1029_v5, %v91_v20  ;;  %v163_v29 = vadd.f32 %v1029_v5, %v92_v21  ;;  %v26_v46 = vld [vmem:[%s1439_s0 + $0x60] sm:$0xff]  ;;  %v28_v52 = vld [vmem:[%s1439_s0 + $0x70] sm:$0xff]  ;;  %v29_v57 = vld [vmem:[%s1439_s0 + $0x78] sm:$0xff] }
   0x7   :  { %v220_v22 = vmul.f32 0.2, %v156_v13  ;;  %v221_v23 = vmul.f32 0.2, %v157_v14  ;;  %v160_v24 = vadd.f32 %v1029_v5, %v89_v15  ;;  %v222_v26 = vmul.f32 0.2, %v158_v18 }
   0x8   :  { %v223_v27 = vmul.f32 0.2, %v159_v19  ;;  %v225_v34 = vmul.f32 0.2, %v161_v25  ;;  %v226_v38 = vmul.f32 0.2, %v162_v28  ;;  %v93_v45 = vmul.f32 %v1022_v2, %v22_v30 }
   0x9   :  { %v284_v31 = vmax.f32 %v156_v13, %v220_v22  ;;  %v285_v32 = vmax.f32 %v157_v14, %v221_v23  ;;  %v224_v33 = vmul.f32 0.2, %v160_v24  ;;  %v286_v36 = vmax.f32 %v158_v18, %v222_v26  ;;  %v30_v8 = vld [vmem:[%s1439_s0 + $0x80] sm:$0xff]  ;;  %v31_v17 = vld [vmem:[%s1439_s0 + $0x88] sm:$0xff]  ;;  %v32_v22 = vld [vmem:[%s1439_s0 + $0x90] sm:$0xff] }
   0xa   :  { %v287_v37 = vmax.f32 %v159_v19, %v223_v27  ;;  %v227_v39 = vmul.f32 0.2, %v163_v29  ;;  %v289_v44 = vmax.f32 %v161_v25, %v225_v34  ;;  %v290_v49 = vmax.f32 %v162_v28, %v226_v38  ;;  %v33_v23 = vld [vmem:[%s1439_s0 + $0x98] sm:$0xff]  ;;  %v34_v28 = vld [vmem:[%s1439_s0 + $0xa0] sm:$0xff]  ;;  %v36_v34 = vld [vmem:[%s1439_s0 + $0xb0] sm:$0xff] }
   0xb   :  { %v805_v42 = vpack.c.bf16 %v285_v32, %v284_v31  ;;  %v288_v43 = vmax.f32 %v160_v24, %v224_v33  ;;  %v94_v51 = vmul.f32 %v1022_v2, %v23_v35  ;;  %v164_v54 = vadd.f32 %v1029_v5, %v93_v45 }
   0xc   :  { %v810_v48 = vpack.c.bf16 %v287_v37, %v286_v36  ;;  %v291_v50 = vmax.f32 %v163_v29, %v227_v39  ;;  %v95_v55 = vmul.f32 %v1022_v2, %v24_v40  ;;  %v96_v56 = vmul.f32 %v1022_v2, %v25_v41  ;;  %v35_v29 = vld [vmem:[%s1439_s0 + $0xa8] sm:$0xff] }
   0xd   :  { %806 = vst [vmem:[%s1442_s3] sm:$0xff] %v805_v42   ;;  %v815_v53 = vpack.c.bf16 %v289_v44, %v288_v43  ;;  %v165_v59 = vadd.f32 %v1029_v5, %v94_v51  ;;  %v97_v60 = vmul.f32 %v1022_v2, %v26_v46  ;;  %v98_v61 = vmul.f32 %v1022_v2, %v27_v47  ;;  %v37_v43 = vld [vmem:[%s1439_s0 + $0xb8] sm:$0xff] }
   0xe   :  { %962 = vst [vmem:[%s1442_s3 + $0x8] sm:$0xff] %v810_v48   ;;  %v820_v58 = vpack.c.bf16 %v291_v50, %v290_v49  ;;  %v228_v62 = vmul.f32 0.2, %v164_v54  ;;  %v166_v63 = vadd.f32 %v1029_v5, %v95_v55  ;;  %v167_v0 = vadd.f32 %v1029_v5, %v96_v56  ;;  %v38_v48 = vld [vmem:[%s1439_s0 + $0xc0] sm:$0xff] }
   0xf   :  { %963 = vst [vmem:[%s1442_s3 + $0x10] sm:$0xff] %v815_v53   ;;  %v99_v1 = vmul.f32 %v1022_v2, %v28_v52  ;;  %v229_v3 = vmul.f32 0.2, %v165_v59  ;;  %v168_v4 = vadd.f32 %v1029_v5, %v97_v60  ;;  %v169_v6 = vadd.f32 %v1029_v5, %v98_v61 }
  0x10   :  { %964 = vst [vmem:[%s1442_s3 + $0x18] sm:$0xff] %v820_v58   ;;  %v100_v7 = vmul.f32 %v1022_v2, %v29_v57  ;;  %v292_v9 = vmax.f32 %v164_v54, %v228_v62  ;;  %v230_v10 = vmul.f32 0.2, %v166_v63  ;;  %v231_v11 = vmul.f32 0.2, %v167_v0  ;;  %v39_v57 = vld [vmem:[%s1439_s0 + $0xc8] sm:$0xff] }
  0x11   :  { %v170_v12 = vadd.f32 %v1029_v5, %v99_v1  ;;  %v293_v13 = vmax.f32 %v165_v59, %v229_v3  ;;  %v232_v14 = vmul.f32 0.2, %v168_v4  ;;  %v233_v15 = vmul.f32 0.2, %v169_v6  ;;  %v40_v3 = vld [vmem:[%s1439_s0 + $0xd0] sm:$0xff] }
  0x12   :  { %v171_v16 = vadd.f32 %v1029_v5, %v100_v7  ;;  %v294_v18 = vmax.f32 %v166_v63, %v230_v10  ;;  %v295_v19 = vmax.f32 %v167_v0, %v231_v11  ;;  %v101_v21 = vmul.f32 %v1022_v2, %v30_v8  ;;  %v42_v10 = vld [vmem:[%s1439_s0 + $0xe0] sm:$0xff]  ;;  %v43_v11 = vld [vmem:[%s1439_s0 + $0xe8] sm:$0xff] }
  0x13   :  { %v234_v20 = vmul.f32 0.2, %v170_v12  ;;  %v825_v24 = vpack.c.bf16 %v293_v13, %v292_v9  ;;  %v296_v25 = vmax.f32 %v168_v4, %v232_v14  ;;  %v297_v26 = vmax.f32 %v169_v6, %v233_v15  ;;  %v41_v4 = vld [vmem:[%s1439_s0 + $0xd8] sm:$0xff] }
  0x14   :  { %v235_v27 = vmul.f32 0.2, %v171_v16  ;;  %v830_v30 = vpack.c.bf16 %v295_v19, %v294_v18  ;;  %v102_v32 = vmul.f32 %v1022_v2, %v31_v17  ;;  %v172_v33 = vadd.f32 %v1029_v5, %v101_v21 }
  0x15   :  { %v298_v31 = vmax.f32 %v170_v12, %v234_v20  ;;  %965 = vst [vmem:[%s1442_s3 + $0x20] sm:$0xff] %v825_v24   ;;  %v835_v35 = vpack.c.bf16 %v297_v26, %v296_v25  ;;  %v103_v37 = vmul.f32 %v1022_v2, %v32_v22  ;;  %v104_v38 = vmul.f32 %v1022_v2, %v33_v23  ;;  %v45_v25 = vld [vmem:[%s1439_s0 + $0xf8] sm:$0xff] }
  0x16   :  { %v299_v36 = vmax.f32 %v171_v16, %v235_v27  ;;  %966 = vst [vmem:[%s1442_s3 + $0x28] sm:$0xff] %v830_v30   ;;  %v173_v39 = vadd.f32 %v1029_v5, %v102_v32  ;;  %v236_v40 = vmul.f32 0.2, %v172_v33  ;;  %v105_v41 = vmul.f32 %v1022_v2, %v34_v28  ;;  %v44_v16 = vld [vmem:[%s1439_s0 + $0xf0] sm:$0xff]  ;;  %v46_v30 = vld [vmem:[%s1439_s0 + $0x100] sm:$0xff] }
  0x17   :  { %v106_v42 = vmul.f32 %v1022_v2, %v35_v29  ;;  %967 = vst [vmem:[%s1442_s3 + $0x30] sm:$0xff] %v835_v35   ;;  %v174_v45 = vadd.f32 %v1029_v5, %v103_v37  ;;  %v175_v46 = vadd.f32 %v1029_v5, %v104_v38  ;;  %v107_v47 = vmul.f32 %v1022_v2, %v36_v34 }
  0x18   :  { %v840_v44 = vpack.c.bf16 %v299_v36, %v298_v31  ;;  %v237_v49 = vmul.f32 0.2, %v173_v39  ;;  %v300_v50 = vmax.f32 %v172_v33, %v236_v40  ;;  %v176_v51 = vadd.f32 %v1029_v5, %v105_v41 }
  0x19   :  { %v177_v52 = vadd.f32 %v1029_v5, %v106_v42  ;;  %v238_v53 = vmul.f32 0.2, %v174_v45  ;;  %v239_v54 = vmul.f32 0.2, %v175_v46  ;;  %v108_v55 = vmul.f32 %v1022_v2, %v37_v43 }
  0x1a   :  { %968 = vst [vmem:[%s1442_s3 + $0x38] sm:$0xff] %v840_v44   ;;  %v178_v56 = vadd.f32 %v1029_v5, %v107_v47  ;;  %v301_v58 = vmax.f32 %v173_v39, %v237_v49  ;;  %v240_v59 = vmul.f32 0.2, %v176_v51  ;;  %v109_v61 = vmul.f32 %v1022_v2, %v38_v48  ;;  %v47_v39 = vld [vmem:[%s1439_s0 + $0x108] sm:$0xff]  ;;  %v48_v44 = vld [vmem:[%s1439_s0 + $0x110] sm:$0xff]  ;;  %v49_v49 = vld [vmem:[%s1439_s0 + $0x118] sm:$0xff] }
  0x1b   :  { %v241_v60 = vmul.f32 0.2, %v177_v52  ;;  %v302_v62 = vmax.f32 %v174_v45, %v238_v53  ;;  %v303_v63 = vmax.f32 %v175_v46, %v239_v54  ;;  %v179_v0 = vadd.f32 %v1029_v5, %v108_v55  ;;  %v50_v54 = vld [vmem:[%s1439_s0 + $0x120] sm:$0xff] }
  0x1c   :  { %v242_v1 = vmul.f32 0.2, %v178_v56  ;;  %v845_v6 = vpack.c.bf16 %v301_v58, %v300_v50  ;;  %v304_v7 = vmax.f32 %v176_v51, %v240_v59  ;;  %v110_v9 = vmul.f32 %v1022_v2, %v39_v57  ;;  %v51_v59 = vld [vmem:[%s1439_s0 + $0x128] sm:$0xff] }
  0x1d   :  { %v305_v8 = vmax.f32 %v177_v52, %v241_v60  ;;  %v850_v12 = vpack.c.bf16 %v303_v63, %v302_v62  ;;  %v243_v13 = vmul.f32 0.2, %v179_v0  ;;  %v180_v15 = vadd.f32 %v1029_v5, %v109_v61  ;;  %v52_v60 = vld [vmem:[%s1439_s0 + $0x130] sm:$0xff] }
  0x1e   :  { %v306_v14 = vmax.f32 %v178_v56, %v242_v1  ;;  %969 = vst [vmem:[%s1442_s3 + $0x40] sm:$0xff] %v845_v6   ;;  %v181_v18 = vadd.f32 %v1029_v5, %v110_v9  ;;  %v111_v19 = vmul.f32 %v1022_v2, %v40_v3  ;;  %v112_v20 = vmul.f32 %v1022_v2, %v41_v4 }
  0x1f   :  { %v855_v17 = vpack.c.bf16 %v305_v8, %v304_v7  ;;  %970 = vst [vmem:[%s1442_s3 + $0x48] sm:$0xff] %v850_v12   ;;  %v307_v21 = vmax.f32 %v179_v0, %v243_v13  ;;  %v244_v22 = vmul.f32 0.2, %v180_v15  ;;  %v113_v23 = vmul.f32 %v1022_v2, %v42_v10  ;;  %v53_v7 = vld [vmem:[%s1439_s0 + $0x138] sm:$0xff]  ;;  %v54_v12 = vld [vmem:[%s1439_s0 + $0x140] sm:$0xff] }
  0x20   :  { %v114_v24 = vmul.f32 %v1022_v2, %v43_v11  ;;  %v245_v26 = vmul.f32 0.2, %v181_v18  ;;  %v182_v27 = vadd.f32 %v1029_v5, %v111_v19  ;;  %v183_v28 = vadd.f32 %v1029_v5, %v112_v20 }
  0x21   :  { %971 = vst [vmem:[%s1442_s3 + $0x50] sm:$0xff] %v855_v17   ;;  %v115_v29 = vmul.f32 %v1022_v2, %v44_v16  ;;  %v860_v31 = vpack.c.bf16 %v307_v21, %v306_v14  ;;  %v308_v32 = vmax.f32 %v180_v15, %v244_v22  ;;  %v184_v33 = vadd.f32 %v1029_v5, %v113_v23  ;;  %v55_v21 = vld [vmem:[%s1439_s0 + $0x148] sm:$0xff] }
  0x22   :  { %v185_v34 = vadd.f32 %v1029_v5, %v114_v24  ;;  %v309_v35 = vmax.f32 %v181_v18, %v245_v26  ;;  %v246_v36 = vmul.f32 0.2, %v182_v27  ;;  %v247_v37 = vmul.f32 0.2, %v183_v28  ;;  %v56_v26 = vld [vmem:[%s1439_s0 + $0x150] sm:$0xff] }
  0x23   :  { %v116_v38 = vmul.f32 %v1022_v2, %v45_v25  ;;  %972 = vst [vmem:[%s1442_s3 + $0x58] sm:$0xff] %v860_v31   ;;  %v248_v40 = vmul.f32 0.2, %v184_v33  ;;  %v186_v42 = vadd.f32 %v1029_v5, %v115_v29  ;;  %v117_v43 = vmul.f32 %v1022_v2, %v46_v30  ;;  %v57_v31 = vld [vmem:[%s1439_s0 + $0x158] sm:$0xff] }
  0x24   :  { %v249_v41 = vmul.f32 0.2, %v185_v34  ;;  %v865_v45 = vpack.c.bf16 %v309_v35, %v308_v32  ;;  %v310_v46 = vmax.f32 %v182_v27, %v246_v36  ;;  %v311_v47 = vmax.f32 %v183_v28, %v247_v37  ;;  %v58_v36 = vld [vmem:[%s1439_s0 + $0x160] sm:$0xff] }
  0x25   :  { %v187_v48 = vadd.f32 %v1029_v5, %v116_v38  ;;  %v312_v50 = vmax.f32 %v184_v33, %v248_v40  ;;  %v250_v52 = vmul.f32 0.2, %v186_v42  ;;  %v118_v53 = vmul.f32 %v1022_v2, %v47_v39 }
  0x26   :  { %v313_v51 = vmax.f32 %v185_v34, %v249_v41  ;;  %973 = vst [vmem:[%s1442_s3 + $0x60] sm:$0xff] %v865_v45   ;;  %v870_v55 = vpack.c.bf16 %v311_v47, %v310_v46  ;;  %v188_v57 = vadd.f32 %v1029_v5, %v117_v43  ;;  %v119_v58 = vmul.f32 %v1022_v2, %v48_v44  ;;  %v59_v41 = vld [vmem:[%s1439_s0 + $0x168] sm:$0xff]  ;;  %v60_v46 = vld [vmem:[%s1439_s0 + $0x170] sm:$0xff] }
  0x27   :  { %v251_v56 = vmul.f32 0.2, %v187_v48  ;;  %v314_v62 = vmax.f32 %v186_v42, %v250_v52  ;;  %v189_v63 = vadd.f32 %v1029_v5, %v118_v53  ;;  %v120_v0 = vmul.f32 %v1022_v2, %v49_v49 }
  0x28   :  { %v875_v61 = vpack.c.bf16 %v313_v51, %v312_v50  ;;  %974 = vst [vmem:[%s1442_s3 + $0x68] sm:$0xff] %v870_v55   ;;  %v252_v3 = vmul.f32 0.2, %v188_v57  ;;  %v190_v4 = vadd.f32 %v1029_v5, %v119_v58  ;;  %v121_v6 = vmul.f32 %v1022_v2, %v50_v54  ;;  %v61_v51 = vld [vmem:[%s1439_s0 + $0x178] sm:$0xff] }
  0x29   :  { %v315_v1 = vmax.f32 %v187_v48, %v251_v56  ;;  %v253_v8 = vmul.f32 0.2, %v189_v63  ;;  %v191_v9 = vadd.f32 %v1029_v5, %v120_v0  ;;  %v122_v10 = vmul.f32 %v1022_v2, %v51_v59  ;;  %v62_v56 = vld [vmem:[%s1439_s0 + $0x180] sm:$0xff] }
  0x2a   :  { %975 = vst [vmem:[%s1442_s3 + $0x70] sm:$0xff] %v875_v61   ;;  %v123_v11 = vmul.f32 %v1022_v2, %v52_v60  ;;  %v316_v14 = vmax.f32 %v188_v57, %v252_v3  ;;  %v254_v15 = vmul.f32 0.2, %v190_v4  ;;  %v192_v16 = vadd.f32 %v1029_v5, %v121_v6 }
  0x2b   :  { %v880_v13 = vpack.c.bf16 %v315_v1, %v314_v62  ;;  %v317_v17 = vmax.f32 %v189_v63, %v253_v8  ;;  %v255_v18 = vmul.f32 0.2, %v191_v9  ;;  %v193_v19 = vadd.f32 %v1029_v5, %v122_v10  ;;  %v63_v1 = vld [vmem:[%s1439_s0 + $0x188] sm:$0xff]  ;;  %v64_v8 = vld [vmem:[%s1439_s0 + $0x190] sm:$0xff] }
  0x2c   :  { %v124_v20 = vmul.f32 %v1022_v2, %v53_v7  ;;  %v318_v22 = vmax.f32 %v190_v4, %v254_v15  ;;  %v256_v23 = vmul.f32 0.2, %v192_v16  ;;  %v194_v24 = vadd.f32 %v1029_v5, %v123_v11 }
  0x2d   :  { %976 = vst [vmem:[%s1442_s3 + $0x78] sm:$0xff] %v880_v13   ;;  %v125_v25 = vmul.f32 %v1022_v2, %v54_v12  ;;  %v885_v27 = vpack.c.bf16 %v317_v17, %v316_v14  ;;  %v319_v28 = vmax.f32 %v191_v9, %v255_v18  ;;  %v257_v29 = vmul.f32 0.2, %v193_v19  ;;  %v65_v13 = vld [vmem:[%s1439_s0 + $0x198] sm:$0xff]  ;;  %v66_v18 = vld [vmem:[%s1439_s0 + $0x1a0] sm:$0xff] }
  0x2e   :  { %v195_v30 = vadd.f32 %v1029_v5, %v124_v20  ;;  %v320_v32 = vmax.f32 %v192_v16, %v256_v23  ;;  %v258_v33 = vmul.f32 0.2, %v194_v24  ;;  %v126_v34 = vmul.f32 %v1022_v2, %v55_v21  ;;  %v67_v23 = vld [vmem:[%s1439_s0 + $0x1a8] sm:$0xff] }
  0x2f   :  { %v196_v35 = vadd.f32 %v1029_v5, %v125_v25  ;;  %977 = vst [vmem:[%s1442_s3 + $0x80] sm:$0xff] %v885_v27   ;;  %v890_v37 = vpack.c.bf16 %v319_v28, %v318_v22  ;;  %v321_v38 = vmax.f32 %v193_v19, %v257_v29  ;;  %v127_v40 = vmul.f32 %v1022_v2, %v56_v26  ;;  %v68_v28 = vld [vmem:[%s1439_s0 + $0x1b0] sm:$0xff] }
  0x30   :  { %v259_v39 = vmul.f32 0.2, %v195_v30  ;;  %v322_v42 = vmax.f32 %v194_v24, %v258_v33  ;;  %v197_v43 = vadd.f32 %v1029_v5, %v126_v34  ;;  %v128_v45 = vmul.f32 %v1022_v2, %v57_v31  ;;  %v69_v33 = vld [vmem:[%s1439_s0 + $0x1b8] sm:$0xff] }
  0x31   :  { %v260_v44 = vmul.f32 0.2, %v196_v35  ;;  %978 = vst [vmem:[%s1442_s3 + $0x88] sm:$0xff] %v890_v37   ;;  %v895_v47 = vpack.c.bf16 %v321_v38, %v320_v32  ;;  %v198_v49 = vadd.f32 %v1029_v5, %v127_v40  ;;  %v129_v50 = vmul.f32 %v1022_v2, %v58_v36  ;;  %v70_v38 = vld [vmem:[%s1439_s0 + $0x1c0] sm:$0xff] }
  0x32   :  { %v323_v48 = vmax.f32 %v195_v30, %v259_v39  ;;  %v261_v52 = vmul.f32 0.2, %v197_v43  ;;  %v199_v54 = vadd.f32 %v1029_v5, %v128_v45  ;;  %v130_v55 = vmul.f32 %v1022_v2, %v59_v41 }
  0x33   :  { %v324_v53 = vmax.f32 %v196_v35, %v260_v44  ;;  %979 = vst [vmem:[%s1442_s3 + $0x90] sm:$0xff] %v895_v47   ;;  %v262_v58 = vmul.f32 0.2, %v198_v49  ;;  %v200_v59 = vadd.f32 %v1029_v5, %v129_v50  ;;  %v131_v60 = vmul.f32 %v1022_v2, %v60_v46  ;;  %v71_v47 = vld [vmem:[%s1439_s0 + $0x1c8] sm:$0xff] }
  0x34   :  { %v900_v57 = vpack.c.bf16 %v323_v48, %v322_v42  ;;  %v325_v61 = vmax.f32 %v197_v43, %v261_v52  ;;  %v263_v62 = vmul.f32 0.2, %v199_v54  ;;  %v201_v63 = vadd.f32 %v1029_v5, %v130_v55  ;;  %v72_v52 = vld [vmem:[%s1439_s0 + $0x1d0] sm:$0xff] }
  0x35   :  { %v132_v0 = vmul.f32 %v1022_v2, %v61_v51  ;;  %v326_v3 = vmax.f32 %v198_v49, %v262_v58  ;;  %v264_v4 = vmul.f32 0.2, %v200_v59  ;;  %v202_v6 = vadd.f32 %v1029_v5, %v131_v60 }
  0x36   :  { %980 = vst [vmem:[%s1442_s3 + $0x98] sm:$0xff] %v900_v57   ;;  %v133_v7 = vmul.f32 %v1022_v2, %v62_v56  ;;  %v905_v9 = vpack.c.bf16 %v325_v61, %v324_v53  ;;  %v327_v10 = vmax.f32 %v199_v54, %v263_v62  ;;  %v265_v11 = vmul.f32 0.2, %v201_v63  ;;  %v73_v57 = vld [vmem:[%s1439_s0 + $0x1d8] sm:$0xff]  ;;  %v74_v62 = vld [vmem:[%s1439_s0 + $0x1e0] sm:$0xff] }
  0x37   :  { %v203_v12 = vadd.f32 %v1029_v5, %v132_v0  ;;  %v328_v14 = vmax.f32 %v200_v59, %v264_v4  ;;  %v266_v15 = vmul.f32 0.2, %v202_v6  ;;  %v134_v16 = vmul.f32 %v1022_v2, %v63_v1  ;;  %v75_v4 = vld [vmem:[%s1439_s0 + $0x1e8] sm:$0xff] }
  0x38   :  { %v204_v17 = vadd.f32 %v1029_v5, %v133_v7  ;;  %981 = vst [vmem:[%s1442_s3 + $0xa0] sm:$0xff] %v905_v9   ;;  %v910_v19 = vpack.c.bf16 %v327_v10, %v326_v3  ;;  %v329_v20 = vmax.f32 %v201_v63, %v265_v11  ;;  %v135_v22 = vmul.f32 %v1022_v2, %v64_v8  ;;  %v76_v10 = vld [vmem:[%s1439_s0 + $0x1f0] sm:$0xff] }
  0x39   :  { %v267_v21 = vmul.f32 0.2, %v203_v12  ;;  %v330_v24 = vmax.f32 %v202_v6, %v266_v15  ;;  %v205_v25 = vadd.f32 %v1029_v5, %v134_v16  ;;  %v136_v27 = vmul.f32 %v1022_v2, %v65_v13  ;;  %v77_v15 = vld [vmem:[%s1439_s0 + $0x1f8] sm:$0xff] }
  0x3a   :  { %v268_v26 = vmul.f32 0.2, %v204_v17  ;;  %982 = vst [vmem:[%s1442_s3 + $0xa8] sm:$0xff] %v910_v19   ;;  %v915_v29 = vpack.c.bf16 %v329_v20, %v328_v14  ;;  %v206_v31 = vadd.f32 %v1029_v5, %v135_v22  ;;  %v137_v32 = vmul.f32 %v1022_v2, %v66_v18 }
  0x3b   :  { %v331_v30 = vmax.f32 %v203_v12, %v267_v21  ;;  %v269_v34 = vmul.f32 0.2, %v205_v25  ;;  %v207_v36 = vadd.f32 %v1029_v5, %v136_v27  ;;  %v138_v37 = vmul.f32 %v1022_v2, %v67_v23 }
  0x3c   :  { %v332_v35 = vmax.f32 %v204_v17, %v268_v26  ;;  %983 = vst [vmem:[%s1442_s3 + $0xb0] sm:$0xff] %v915_v29   ;;  %v270_v40 = vmul.f32 0.2, %v206_v31  ;;  %v208_v41 = vadd.f32 %v1029_v5, %v137_v32  ;;  %v139_v42 = vmul.f32 %v1022_v2, %v68_v28 }
  0x3d   :  { %v920_v39 = vpack.c.bf16 %v331_v30, %v330_v24  ;;  %v333_v43 = vmax.f32 %v205_v25, %v269_v34  ;;  %v271_v44 = vmul.f32 0.2, %v207_v36  ;;  %v209_v45 = vadd.f32 %v1029_v5, %v138_v37 }
  0x3e   :  { %v140_v46 = vmul.f32 %v1022_v2, %v69_v33  ;;  %v334_v48 = vmax.f32 %v206_v31, %v270_v40  ;;  %v272_v49 = vmul.f32 0.2, %v208_v41  ;;  %v210_v50 = vadd.f32 %v1029_v5, %v139_v42 }
  0x3f   :  { %984 = vst [vmem:[%s1442_s3 + $0xb8] sm:$0xff] %v920_v39   ;;  %v141_v51 = vmul.f32 %v1022_v2, %v70_v38  ;;  %v925_v53 = vpack.c.bf16 %v333_v43, %v332_v35  ;;  %v335_v54 = vmax.f32 %v207_v36, %v271_v44  ;;  %v273_v55 = vmul.f32 0.2, %v209_v45 }
  0x40   :  { %v211_v56 = vadd.f32 %v1029_v5, %v140_v46  ;;  %v336_v58 = vmax.f32 %v208_v41, %v272_v49  ;;  %v274_v59 = vmul.f32 0.2, %v210_v50  ;;  %v142_v60 = vmul.f32 %v1022_v2, %v71_v47 }
  0x41   :  { %v212_v61 = vadd.f32 %v1029_v5, %v141_v51  ;;  %985 = vst [vmem:[%s1442_s3 + $0xc0] sm:$0xff] %v925_v53   ;;  %v930_v63 = vpack.c.bf16 %v335_v54, %v334_v48  ;;  %v337_v0 = vmax.f32 %v209_v45, %v273_v55  ;;  %v143_v3 = vmul.f32 %v1022_v2, %v72_v52 }
  0x42   :  { %v275_v1 = vmul.f32 0.2, %v211_v56  ;;  %v338_v6 = vmax.f32 %v210_v50, %v274_v59  ;;  %v213_v7 = vadd.f32 %v1029_v5, %v142_v60  ;;  %v144_v9 = vmul.f32 %v1022_v2, %v73_v57 }
  0x43   :  { %v276_v8 = vmul.f32 0.2, %v212_v61  ;;  %986 = vst [vmem:[%s1442_s3 + $0xc8] sm:$0xff] %v930_v63   ;;  %v935_v11 = vpack.c.bf16 %v337_v0, %v336_v58  ;;  %v214_v13 = vadd.f32 %v1029_v5, %v143_v3  ;;  %v145_v14 = vmul.f32 %v1022_v2, %v74_v62 }
  0x44   :  { %v339_v12 = vmax.f32 %v211_v56, %v275_v1  ;;  %v277_v16 = vmul.f32 0.2, %v213_v7  ;;  %v215_v18 = vadd.f32 %v1029_v5, %v144_v9  ;;  %v146_v19 = vmul.f32 %v1022_v2, %v75_v4 }
  0x45   :  { %v340_v17 = vmax.f32 %v212_v61, %v276_v8  ;;  %987 = vst [vmem:[%s1442_s3 + $0xd0] sm:$0xff] %v935_v11   ;;  %v278_v21 = vmul.f32 0.2, %v214_v13  ;;  %v216_v22 = vadd.f32 %v1029_v5, %v145_v14  ;;  %v147_v23 = vmul.f32 %v1022_v2, %v76_v10 }
  0x46   :  { %v940_v20 = vpack.c.bf16 %v339_v12, %v338_v6  ;;  %v341_v24 = vmax.f32 %v213_v7, %v277_v16  ;;  %v279_v25 = vmul.f32 0.2, %v215_v18  ;;  %v217_v26 = vadd.f32 %v1029_v5, %v146_v19 }
  0x47   :  { %v148_v27 = vmul.f32 %v1022_v2, %v77_v15  ;;  %v342_v28 = vmax.f32 %v214_v13, %v278_v21  ;;  %v280_v29 = vmul.f32 0.2, %v216_v22  ;;  %v218_v30 = vadd.f32 %v1029_v5, %v147_v23 }
  0x48   :  { %988 = vst [vmem:[%s1442_s3 + $0xd8] sm:$0xff] %v940_v20   ;;  %v945_v31 = vpack.c.bf16 %v341_v24, %v340_v17  ;;  %v343_v32 = vmax.f32 %v215_v18, %v279_v25  ;;  %v281_v33 = vmul.f32 0.2, %v217_v26 }
  0x49   :  { %v219_v34 = vadd.f32 %v1029_v5, %v148_v27  ;;  %v344_v35 = vmax.f32 %v216_v22, %v280_v29  ;;  %v282_v36 = vmul.f32 0.2, %v218_v30 }
  0x4a   :  { %989 = vst [vmem:[%s1442_s3 + $0xe0] sm:$0xff] %v945_v31   ;;  %v950_v2 = vpack.c.bf16 %v343_v32, %v342_v28  ;;  %v345_v37 = vmax.f32 %v217_v26, %v281_v33 }
  0x4b   :  { %v283_v38 = vmul.f32 0.2, %v219_v34  ;;  %v346_v39 = vmax.f32 %v218_v30, %v282_v36 }
  0x4c   :  { %990 = vst [vmem:[%s1442_s3 + $0xe8] sm:$0xff] %v950_v2   ;;  %v955_v40 = vpack.c.bf16 %v345_v37, %v344_v35 }
  0x4d   :  { %v347_v41 = vmax.f32 %v219_v34, %v283_v38 }
  0x4e   :  { %991 = vst [vmem:[%s1442_s3 + $0xf0] sm:$0xff] %v955_v40  }
  0x4f   :  { %v960_v5 = vpack.c.bf16 %v347_v41, %v346_v39 }
  0x51   :  { %992 = vst [vmem:[%s1442_s3 + $0xf8] sm:$0xff] %v960_v5  }

// kernel: discriminator_forward.12
= control target key start
LH: loop header
LB: loop body
LE: loop exit
PB: predicated region body
PF: predicated region fallthrough
CT: control target
= control target key end

     0   :  { %v48_v0 = vlaneseq  ;;  %s588_s1 = inlined_call_operand.vmem [shape: f32[1,256], index: 1, kind: input, shape index: {}]   ;;  %s589_s2 = inlined_call_operand.vmem [shape: f32[1,256], index: 2, kind: input, shape index: {}]   ;;  %s590_s0 = inlined_call_operand.vmem [shape: f32[128,256], index: 0, kind: input, shape index: {}]   ;;  %s591_s3 = inlined_call_operand.vmem [shape: bf16[128,256], index: 3, kind: output, shape index: {}]  }
   0x1   :  { %v46_v2 = vld [vmem:[%s588_s1] sm:$0x3]  ;;  %v15_v5 = vld [vmem:[%s590_s0 + $0x8] sm:$0xff]  ;;  %v16_v8 = vld [vmem:[%s590_s0 + $0x10] sm:$0xff] }
   0x2   :  { %v49_v1 = vshrl.u32 %v48_v0, 7  ;;  %v90_v3 = vld [vmem:[%s589_s2] sm:$0x3]  ;;  %v17_v9 = vld [vmem:[%s590_s0 + $0x18] sm:$0xff]  ;;  %v19_v15 = vld [vmem:[%s590_s0 + $0x28] sm:$0xff] }
   0x3   :  { %v14_v4 = vld [vmem:[%s590_s0] sm:$0xff]  ;;  %v20_v16 = vld [vmem:[%s590_s0 + $0x30] sm:$0xff]  ;;  %v21_v17 = vld [vmem:[%s590_s0 + $0x38] sm:$0xff] }
   0x4   :  { %v50_v6 = vsub.s32 0, %v49_v1  ;;  %v54_v7 = vsub.s32 1, %v49_v1  ;;  %v18_v10 = vld [vmem:[%s590_s0 + $0x20] sm:$0xff]  ;;  %v23_v31 = vld [vmem:[%s590_s0 + $0x48] sm:$0xff]  ;;  %v24_v48 = vld [vmem:[%s590_s0 + $0x50] sm:$0xff] }
   0x5   :  { %v22_v26 = vld [vmem:[%s590_s0 + $0x40] sm:$0xff]  ;;  %v25_v53 = vld [vmem:[%s590_s0 + $0x58] sm:$0xff]  ;;  %v27_v59 = vld [vmem:[%s590_s0 + $0x68] sm:$0xff] }
   0x6   :  { %v387_v11 = vrot.slane %v46_v2, %v50_v6  ;;  %v389_v12 = vrot.slane %v46_v2, %v54_v7  ;;  %v391_v13 = vrot.slane %v90_v3, %v50_v6  ;;  %v393_v14 = vrot.slane %v90_v3, %v54_v7  ;;  %v26_v54 = vld [vmem:[%s590_s0 + $0x60] sm:$0xff]  ;;  %v28_v60 = vld [vmem:[%s590_s0 + $0x70] sm:$0xff] }
   0x8   :  { %v58_v18 = vmul.f32 %v387_v11, %v14_v4  ;;  %v59_v19 = vmul.f32 %v389_v12, %v15_v5  ;;  %v60_v20 = vmul.f32 %v387_v11, %v16_v8  ;;  %v61_v21 = vmul.f32 %v389_v12, %v17_v9  ;;  %v29_v5 = vld [vmem:[%s590_s0 + $0x78] sm:$0xff] }
   0x9   :  { %v62_v22 = vmul.f32 %v387_v11, %v18_v10  ;;  %v63_v23 = vmul.f32 %v389_v12, %v19_v15  ;;  %v64_v24 = vmul.f32 %v387_v11, %v20_v16  ;;  %v65_v25 = vmul.f32 %v389_v12, %v21_v17  ;;  %v30_v10 = vld [vmem:[%s590_s0 + $0x80] sm:$0xff] }
   0xa   :  { %v102_v27 = vadd.f32 %v391_v13, %v58_v18  ;;  %v103_v28 = vadd.f32 %v393_v14, %v59_v19  ;;  %v104_v29 = vadd.f32 %v391_v13, %v60_v20  ;;  %v105_v30 = vadd.f32 %v393_v14, %v61_v21 }
   0xb   :  { %v106_v32 = vadd.f32 %v391_v13, %v62_v22  ;;  %v107_v33 = vadd.f32 %v393_v14, %v63_v23  ;;  %v108_v34 = vadd.f32 %v391_v13, %v64_v24  ;;  %v109_v35 = vadd.f32 %v393_v14, %v65_v25  ;;  %v31_v23 = vld [vmem:[%s590_s0 + $0x88] sm:$0xff] }
   0xc   :  { %v134_v36 = vmul.f32 0.2, %v102_v27  ;;  %v135_v37 = vmul.f32 0.2, %v103_v28  ;;  %v136_v38 = vmul.f32 0.2, %v104_v29  ;;  %v66_v39 = vmul.f32 %v387_v11, %v22_v26 }
   0xd   :  { %v137_v40 = vmul.f32 0.2, %v105_v30  ;;  %v138_v41 = vmul.f32 0.2, %v106_v32  ;;  %v139_v42 = vmul.f32 0.2, %v107_v33  ;;  %v67_v43 = vmul.f32 %v389_v12, %v23_v31 }
   0xe   :  { %v166_v44 = vmax.f32 %v102_v27, %v134_v36  ;;  %v167_v45 = vmax.f32 %v103_v28, %v135_v37  ;;  %v168_v46 = vmax.f32 %v104_v29, %v136_v38  ;;  %v140_v47 = vmul.f32 0.2, %v108_v34  ;;  %v32_v28 = vld [vmem:[%s590_s0 + $0x90] sm:$0xff]  ;;  %v34_v38 = vld [vmem:[%s590_s0 + $0xa0] sm:$0xff] }
   0xf   :  { %v169_v49 = vmax.f32 %v105_v30, %v137_v40  ;;  %v170_v50 = vmax.f32 %v106_v32, %v138_v41  ;;  %v171_v51 = vmax.f32 %v107_v33, %v139_v42  ;;  %v141_v52 = vmul.f32 0.2, %v109_v35  ;;  %v33_v33 = vld [vmem:[%s590_s0 + $0x98] sm:$0xff] }
  0x10   :  { %v330_v55 = vpack.c.bf16 %v167_v45, %v166_v44  ;;  %v172_v56 = vmax.f32 %v108_v34, %v140_v47  ;;  %v110_v57 = vadd.f32 %v391_v13, %v66_v39  ;;  %v111_v58 = vadd.f32 %v393_v14, %v67_v43  ;;  %v35_v43 = vld [vmem:[%s590_s0 + $0xa8] sm:$0xff] }
  0x11   :  { %v331_v61 = vpack.c.bf16 %v169_v49, %v168_v46  ;;  %v332_v62 = vpack.c.bf16 %v171_v51, %v170_v50  ;;  %v173_v63 = vmax.f32 %v109_v35, %v141_v52  ;;  %v68_v0 = vmul.f32 %v387_v11, %v24_v48  ;;  %v36_v48 = vld [vmem:[%s590_s0 + $0xb0] sm:$0xff] }
  0x12   :  { %294 = vst [vmem:[%s591_s3] sm:$0xff] %v330_v55  ;;  %v142_v1 = vmul.f32 0.2, %v110_v57  ;;  %v143_v2 = vmul.f32 0.2, %v111_v58  ;;  %v69_v3 = vmul.f32 %v389_v12, %v25_v53  ;;  %v70_v4 = vmul.f32 %v387_v11, %v26_v54  ;;  %v37_v53 = vld [vmem:[%s590_s0 + $0xb8] sm:$0xff] }
  0x13   :  { %295 = vst [vmem:[%s591_s3 + $0x8] sm:$0xff] %v331_v61  ;;  %296 = vst [vmem:[%s591_s3 + $0x10] sm:$0xff] %v332_v62  ;;  %v333_v6 = vpack.c.bf16 %v173_v63, %v172_v56  ;;  %v112_v7 = vadd.f32 %v391_v13, %v68_v0  ;;  %v71_v8 = vmul.f32 %v389_v12, %v27_v59 }
  0x14   :  { %v72_v9 = vmul.f32 %v387_v11, %v28_v60  ;;  %v174_v15 = vmax.f32 %v110_v57, %v142_v1  ;;  %v175_v16 = vmax.f32 %v111_v58, %v143_v2  ;;  %v113_v17 = vadd.f32 %v393_v14, %v69_v3  ;;  %v38_v58 = vld [vmem:[%s590_s0 + $0xc0] sm:$0xff]  ;;  %v39_v3 = vld [vmem:[%s590_s0 + $0xc8] sm:$0xff] }
  0x15   :  { %v114_v18 = vadd.f32 %v391_v13, %v70_v4  ;;  %297 = vst [vmem:[%s591_s3 + $0x18] sm:$0xff] %v333_v6  ;;  %v144_v19 = vmul.f32 0.2, %v112_v7  ;;  %v115_v20 = vadd.f32 %v393_v14, %v71_v8  ;;  %v73_v21 = vmul.f32 %v389_v12, %v29_v5  ;;  %v40_v8 = vld [vmem:[%s590_s0 + $0xd0] sm:$0xff] }
  0x16   :  { %v116_v22 = vadd.f32 %v391_v13, %v72_v9  ;;  %v334_v24 = vpack.c.bf16 %v175_v16, %v174_v15  ;;  %v145_v25 = vmul.f32 0.2, %v113_v17  ;;  %v74_v27 = vmul.f32 %v387_v11, %v30_v10 }
  0x17   :  { %v146_v26 = vmul.f32 0.2, %v114_v18  ;;  %v176_v29 = vmax.f32 %v112_v7, %v144_v19  ;;  %v147_v30 = vmul.f32 0.2, %v115_v20  ;;  %v117_v31 = vadd.f32 %v393_v14, %v73_v21 }
  0x18   :  { %v148_v32 = vmul.f32 0.2, %v116_v22  ;;  %298 = vst [vmem:[%s591_s3 + $0x20] sm:$0xff] %v334_v24  ;;  %v177_v34 = vmax.f32 %v113_v17, %v145_v25  ;;  %v75_v36 = vmul.f32 %v389_v12, %v31_v23  ;;  %v118_v37 = vadd.f32 %v391_v13, %v74_v27  ;;  %v41_v17 = vld [vmem:[%s590_s0 + $0xd8] sm:$0xff]  ;;  %v43_v27 = vld [vmem:[%s590_s0 + $0xe8] sm:$0xff] }
  0x19   :  { %v178_v35 = vmax.f32 %v114_v18, %v146_v26  ;;  %v179_v39 = vmax.f32 %v115_v20, %v147_v30  ;;  %v149_v40 = vmul.f32 0.2, %v117_v31  ;;  %v76_v42 = vmul.f32 %v387_v11, %v32_v28 }
  0x1a   :  { %v180_v41 = vmax.f32 %v116_v22, %v148_v32  ;;  %v335_v44 = vpack.c.bf16 %v177_v34, %v176_v29  ;;  %v119_v45 = vadd.f32 %v393_v14, %v75_v36  ;;  %v150_v46 = vmul.f32 0.2, %v118_v37  ;;  %v42_v22 = vld [vmem:[%s590_s0 + $0xe0] sm:$0xff]  ;;  %v44_v32 = vld [vmem:[%s590_s0 + $0xf0] sm:$0xff] }
  0x1b   :  { %v77_v47 = vmul.f32 %v389_v12, %v33_v33  ;;  %v336_v49 = vpack.c.bf16 %v179_v39, %v178_v35  ;;  %v181_v50 = vmax.f32 %v117_v31, %v149_v40  ;;  %v120_v51 = vadd.f32 %v391_v13, %v76_v42 }
  0x1c   :  { %v78_v52 = vmul.f32 %v387_v11, %v34_v38  ;;  %299 = vst [vmem:[%s591_s3 + $0x28] sm:$0xff] %v335_v44  ;;  %v151_v54 = vmul.f32 0.2, %v119_v45  ;;  %v182_v55 = vmax.f32 %v118_v37, %v150_v46  ;;  %v79_v57 = vmul.f32 %v389_v12, %v35_v43  ;;  %v45_v37 = vld [vmem:[%s590_s0 + $0xf8] sm:$0xff] }
  0x1d   :  { %v121_v56 = vadd.f32 %v393_v14, %v77_v47  ;;  %300 = vst [vmem:[%s591_s3 + $0x30] sm:$0xff] %v336_v49  ;;  %v337_v59 = vpack.c.bf16 %v181_v50, %v180_v41  ;;  %v152_v60 = vmul.f32 0.2, %v120_v51  ;;  %v80_v62 = vmul.f32 %v387_v11, %v36_v48 }
  0x1e   :  { %v122_v61 = vadd.f32 %v391_v13, %v78_v52  ;;  %v183_v63 = vmax.f32 %v119_v45, %v151_v54  ;;  %v123_v1 = vadd.f32 %v393_v14, %v79_v57  ;;  %v81_v2 = vmul.f32 %v389_v12, %v37_v53 }
  0x1f   :  { %v153_v0 = vmul.f32 0.2, %v121_v56  ;;  %301 = vst [vmem:[%s591_s3 + $0x38] sm:$0xff] %v337_v59  ;;  %v184_v4 = vmax.f32 %v120_v51, %v152_v60  ;;  %v124_v6 = vadd.f32 %v391_v13, %v80_v62  ;;  %v82_v7 = vmul.f32 %v387_v11, %v38_v58 }
  0x20   :  { %v154_v5 = vmul.f32 0.2, %v122_v61  ;;  %v338_v9 = vpack.c.bf16 %v183_v63, %v182_v55  ;;  %v155_v15 = vmul.f32 0.2, %v123_v1  ;;  %v125_v16 = vadd.f32 %v393_v14, %v81_v2 }
  0x21   :  { %v185_v10 = vmax.f32 %v121_v56, %v153_v0  ;;  %v156_v19 = vmul.f32 0.2, %v124_v6  ;;  %v83_v20 = vmul.f32 %v389_v12, %v39_v3  ;;  %v126_v21 = vadd.f32 %v391_v13, %v82_v7 }
  0x22   :  { %v186_v18 = vmax.f32 %v122_v61, %v154_v5  ;;  %302 = vst [vmem:[%s591_s3 + $0x40] sm:$0xff] %v338_v9  ;;  %v187_v24 = vmax.f32 %v123_v1, %v155_v15  ;;  %v157_v25 = vmul.f32 0.2, %v125_v16  ;;  %v84_v26 = vmul.f32 %v387_v11, %v40_v8 }
  0x23   :  { %v339_v23 = vpack.c.bf16 %v185_v10, %v184_v4  ;;  %v188_v28 = vmax.f32 %v124_v6, %v156_v19  ;;  %v127_v29 = vadd.f32 %v393_v14, %v83_v20  ;;  %v158_v30 = vmul.f32 0.2, %v126_v21 }
  0x24   :  { %v85_v31 = vmul.f32 %v389_v12, %v41_v17  ;;  %v340_v33 = vpack.c.bf16 %v187_v24, %v186_v18  ;;  %v189_v34 = vmax.f32 %v125_v16, %v157_v25  ;;  %v128_v35 = vadd.f32 %v391_v13, %v84_v26 }
  0x25   :  { %303 = vst [vmem:[%s591_s3 + $0x48] sm:$0xff] %v339_v23  ;;  %v86_v36 = vmul.f32 %v387_v11, %v42_v22  ;;  %v159_v38 = vmul.f32 0.2, %v127_v29  ;;  %v190_v39 = vmax.f32 %v126_v21, %v158_v30  ;;  %v87_v41 = vmul.f32 %v389_v12, %v43_v27 }
  0x26   :  { %v129_v40 = vadd.f32 %v393_v14, %v85_v31  ;;  %304 = vst [vmem:[%s591_s3 + $0x50] sm:$0xff] %v340_v33  ;;  %v341_v42 = vpack.c.bf16 %v189_v34, %v188_v28  ;;  %v160_v43 = vmul.f32 0.2, %v128_v35  ;;  %v88_v45 = vmul.f32 %v387_v11, %v44_v32 }
  0x27   :  { %v130_v44 = vadd.f32 %v391_v13, %v86_v36  ;;  %v191_v46 = vmax.f32 %v127_v29, %v159_v38  ;;  %v131_v48 = vadd.f32 %v393_v14, %v87_v41  ;;  %v89_v49 = vmul.f32 %v389_v12, %v45_v37 }
  0x28   :  { %v161_v47 = vmul.f32 0.2, %v129_v40  ;;  %305 = vst [vmem:[%s591_s3 + $0x58] sm:$0xff] %v341_v42  ;;  %v192_v50 = vmax.f32 %v128_v35, %v160_v43  ;;  %v132_v52 = vadd.f32 %v391_v13, %v88_v45 }
  0x29   :  { %v162_v51 = vmul.f32 0.2, %v130_v44  ;;  %v342_v53 = vpack.c.bf16 %v191_v46, %v190_v39  ;;  %v163_v55 = vmul.f32 0.2, %v131_v48  ;;  %v133_v56 = vadd.f32 %v393_v14, %v89_v49 }
  0x2a   :  { %v193_v54 = vmax.f32 %v129_v40, %v161_v47  ;;  %v164_v57 = vmul.f32 0.2, %v132_v52 }
  0x2b   :  { %v194_v11 = vmax.f32 %v130_v44, %v162_v51  ;;  %306 = vst [vmem:[%s591_s3 + $0x60] sm:$0xff] %v342_v53  ;;  %v195_v58 = vmax.f32 %v131_v48, %v163_v55  ;;  %v165_v59 = vmul.f32 0.2, %v133_v56 }
  0x2c   :  { %v343_v12 = vpack.c.bf16 %v193_v54, %v192_v50  ;;  %v196_v60 = vmax.f32 %v132_v52, %v164_v57 }
  0x2d   :  { %v344_v13 = vpack.c.bf16 %v195_v58, %v194_v11  ;;  %v197_v61 = vmax.f32 %v133_v56, %v165_v59 }
  0x2e   :  { %307 = vst [vmem:[%s591_s3 + $0x68] sm:$0xff] %v343_v12 }
  0x2f   :  { %308 = vst [vmem:[%s591_s3 + $0x70] sm:$0xff] %v344_v13  ;;  %v345_v14 = vpack.c.bf16 %v197_v61, %v196_v60 }
  0x31   :  { %309 = vst [vmem:[%s591_s3 + $0x78] sm:$0xff] %v345_v14 }

// kernel: discriminator_forward.11
= control target key start
LH: loop header
LB: loop body
LE: loop exit
PB: predicated region body
PF: predicated region fallthrough
CT: control target
= control target key end

     0   :  { %vm3536_vm0 = vcmask 1040384   ;;  %s5823_s1 = inlined_call_operand.vmem [shape: bf16[2048,256], index: 1, kind: input, shape index: {}]   ;;  %s5824_s0 = inlined_call_operand.vmem [shape: bf16[128,2048], index: 0, kind: input, shape index: {}]   ;;  %s5825_s2 = inlined_call_operand.vmem [shape: f32[128,256], index: 2, kind: output, shape index: {0}]   ;;  %s5826_s3 = inlined_call_operand.vmem [shape: f32[1,2,256], index: 3, kind: output, shape index: {1}]  }
   0x1   :  { %v4168_v0 = vld [vmem:[%s5823_s1 + $0x4] ss:$8 sps:$4 sm:$0xff]   ;;  %v4172_v2 = vld [vmem:[%s5823_s1] ss:$8 sps:$4 sm:$0xff]   ;;  %v4174_v4 = vld [vmem:[%s5823_s1 + $0x14] ss:$8 sps:$4 sm:$0xff]  }
   0x2   :  { %v4170_v1 = vld [vmem:[%s5823_s1 + $0x404] ss:$8 sps:$4 sm:$0xff]   ;;  %2385 = vmatprep.subr.bf16.mxu1 %v4168_v0  ;;  %v4173_v3 = vld [vmem:[%s5823_s1 + $0x400] ss:$8 sps:$4 sm:$0xff]   ;;  %v4176_v5 = vld [vmem:[%s5823_s1 + $0x414] ss:$8 sps:$4 sm:$0xff]  }
   0x3   :  { %2837 = vmatprep.subr.bf16.mxu0 %v4170_v1  ;;  %2386 = vmatpush1.bf16.msra.mxu1 %v4172_v2  ;;  %v4178_v6 = vld [vmem:[%s5823_s1 + $0x10] ss:$8 sps:$4 sm:$0xff]   ;;  %v4180_v8 = vld [vmem:[%s5823_s1 + $0x24] ss:$8 sps:$4 sm:$0xff]   ;;  %v4184_v10 = vld [vmem:[%s5823_s1 + $0x20] ss:$8 sps:$4 sm:$0xff]  }
   0x4   :  { %2838 = vmatpush1.bf16.msra.mxu0 %v4173_v3  ;;  %2387 = vmatprep.subr.bf16.mxu1 %v4174_v4  ;;  %v4179_v7 = vld [vmem:[%s5823_s1 + $0x410] ss:$8 sps:$4 sm:$0xff]   ;;  %v4182_v9 = vld [vmem:[%s5823_s1 + $0x424] ss:$8 sps:$4 sm:$0xff]   ;;  %v4185_v11 = vld [vmem:[%s5823_s1 + $0x420] ss:$8 sps:$4 sm:$0xff]  }
   0x5   :  { %2839 = vmatprep.subr.bf16.mxu0 %v4176_v5  ;;  %v4186_v12 = vld [vmem:[%s5823_s1 + $0x34] ss:$8 sps:$4 sm:$0xff]   ;;  %v4190_v14 = vld [vmem:[%s5823_s1 + $0x30] ss:$8 sps:$4 sm:$0xff]   ;;  %v4192_v16 = vld [vmem:[%s5823_s1 + $0x44] ss:$8 sps:$4 sm:$0xff]  }
   0x6   :  { %v4188_v13 = vld [vmem:[%s5823_s1 + $0x434] ss:$8 sps:$4 sm:$0xff]   ;;  %v4191_v15 = vld [vmem:[%s5823_s1 + $0x430] ss:$8 sps:$4 sm:$0xff]   ;;  %v4194_v17 = vld [vmem:[%s5823_s1 + $0x444] ss:$8 sps:$4 sm:$0xff]  }
   0x7   :  { %2388 = vmatpush1.bf16.msra.mxu1 %v4178_v6  ;;  %v4196_v18 = vld [vmem:[%s5823_s1 + $0x40] ss:$8 sps:$4 sm:$0xff]   ;;  %v4198_v20 = vld [vmem:[%s5823_s1 + $0x54] ss:$8 sps:$4 sm:$0xff]   ;;  %v4202_v22 = vld [vmem:[%s5823_s1 + $0x50] ss:$8 sps:$4 sm:$0xff]  }
   0x8   :  { %2840 = vmatpush1.bf16.msra.mxu0 %v4179_v7  ;;  %2389 = vmatprep.subr.bf16.mxu1 %v4180_v8  ;;  %v4197_v19 = vld [vmem:[%s5823_s1 + $0x440] ss:$8 sps:$4 sm:$0xff]   ;;  %v4200_v21 = vld [vmem:[%s5823_s1 + $0x454] ss:$8 sps:$4 sm:$0xff]   ;;  %v4203_v23 = vld [vmem:[%s5823_s1 + $0x450] ss:$8 sps:$4 sm:$0xff]  }
   0x9   :  { %2841 = vmatprep.subr.bf16.mxu0 %v4182_v9  ;;  %v4204_v24 = vld [vmem:[%s5823_s1 + $0x64] ss:$8 sps:$4 sm:$0xff]   ;;  %v4208_v26 = vld [vmem:[%s5823_s1 + $0x60] ss:$8 sps:$4 sm:$0xff]   ;;  %v4210_v28 = vld [vmem:[%s5823_s1 + $0x74] ss:$8 sps:$4 sm:$0xff]  }
   0xa   :  { %v4206_v25 = vld [vmem:[%s5823_s1 + $0x464] ss:$8 sps:$4 sm:$0xff]   ;;  %v4209_v27 = vld [vmem:[%s5823_s1 + $0x460] ss:$8 sps:$4 sm:$0xff]   ;;  %v4212_v29 = vld [vmem:[%s5823_s1 + $0x474] ss:$8 sps:$4 sm:$0xff]  }
   0xb   :  { %2390 = vmatpush1.bf16.msra.mxu1 %v4184_v10  ;;  %v4214_v30 = vld [vmem:[%s5823_s1 + $0x70] ss:$8 sps:$4 sm:$0xff]   ;;  %v4216_v32 = vld [vmem:[%s5823_s1 + $0x84] ss:$8 sps:$4 sm:$0xff]   ;;  %v4220_v34 = vld [vmem:[%s5823_s1 + $0x80] ss:$8 sps:$4 sm:$0xff]  }
   0xc   :  { %2842 = vmatpush1.bf16.msra.mxu0 %v4185_v11  ;;  %2391 = vmatprep.subr.bf16.mxu1 %v4186_v12  ;;  %v4215_v31 = vld [vmem:[%s5823_s1 + $0x470] ss:$8 sps:$4 sm:$0xff]   ;;  %v4218_v33 = vld [vmem:[%s5823_s1 + $0x484] ss:$8 sps:$4 sm:$0xff]   ;;  %v4221_v35 = vld [vmem:[%s5823_s1 + $0x480] ss:$8 sps:$4 sm:$0xff]  }
   0xd   :  { %2843 = vmatprep.subr.bf16.mxu0 %v4188_v13  ;;  %v4222_v36 = vld [vmem:[%s5823_s1 + $0x94] ss:$8 sps:$4 sm:$0xff]   ;;  %v4226_v38 = vld [vmem:[%s5823_s1 + $0x90] ss:$8 sps:$4 sm:$0xff]   ;;  %v4228_v40 = vld [vmem:[%s5823_s1 + $0xa4] ss:$8 sps:$4 sm:$0xff]  }
   0xe   :  { %v4224_v37 = vld [vmem:[%s5823_s1 + $0x494] ss:$8 sps:$4 sm:$0xff]   ;;  %v4227_v39 = vld [vmem:[%s5823_s1 + $0x490] ss:$8 sps:$4 sm:$0xff]   ;;  %v4230_v41 = vld [vmem:[%s5823_s1 + $0x4a4] ss:$8 sps:$4 sm:$0xff]  }
   0xf   :  { %2392 = vmatpush1.bf16.msra.mxu1 %v4190_v14  ;;  %v4232_v42 = vld [vmem:[%s5823_s1 + $0xa0] ss:$8 sps:$4 sm:$0xff]   ;;  %v4234_v44 = vld [vmem:[%s5823_s1 + $0xb4] ss:$8 sps:$4 sm:$0xff]   ;;  %v4238_v46 = vld [vmem:[%s5823_s1 + $0xb0] ss:$8 sps:$4 sm:$0xff]  }
  0x10   :  { %2844 = vmatpush1.bf16.msra.mxu0 %v4191_v15  ;;  %2393 = vmatprep.subr.bf16.mxu1 %v4192_v16  ;;  %v4233_v43 = vld [vmem:[%s5823_s1 + $0x4a0] ss:$8 sps:$4 sm:$0xff]   ;;  %v4236_v45 = vld [vmem:[%s5823_s1 + $0x4b4] ss:$8 sps:$4 sm:$0xff]   ;;  %v4239_v47 = vld [vmem:[%s5823_s1 + $0x4b0] ss:$8 sps:$4 sm:$0xff]  }
  0x11   :  { %2845 = vmatprep.subr.bf16.mxu0 %v4194_v17  ;;  %v81_v48 = vld [vmem:[%s5824_s0] sm:$0xff]  ;;  %v4246_v58 = vld [vmem:[%s5823_s1 + $0xd4] ss:$8 sps:$4 sm:$0xff]   ;;  %v4250_v60 = vld [vmem:[%s5823_s1 + $0xd0] ss:$8 sps:$4 sm:$0xff]  }
  0x12   :  { %v89_v49 = vld [vmem:[%s5824_s0 + $0x40] sm:$0xff]  ;;  %v4248_v59 = vld [vmem:[%s5823_s1 + $0x4d4] ss:$8 sps:$4 sm:$0xff]   ;;  %v4251_v61 = vld [vmem:[%s5823_s1 + $0x4d0] ss:$8 sps:$4 sm:$0xff]  }
  0x13   :  { %2394 = vmatpush1.bf16.msra.mxu1 %v4196_v18  ;;  %v85_v50 = vld [vmem:[%s5824_s0 + $0x20] sm:$0xff]  ;;  %v3560_v53 = vcombine.high %v81_v48, %v89_v49  ;;  %v4258_v2 = vld [vmem:[%s5823_s1 + $0xf4] ss:$8 sps:$4 sm:$0xff]   ;;  %v4262_v4 = vld [vmem:[%s5823_s1 + $0xf0] ss:$8 sps:$4 sm:$0xff]   ;;  %v3559_v11 = vcombine.low %v81_v48, %v89_v49 }
  0x14   :  { %2846 = vmatpush1.bf16.msra.mxu0 %v4197_v19  ;;  %2395 = vmatprep.subr.bf16.mxu1 %v4198_v20  ;;  %v93_v51 = vld [vmem:[%s5824_s0 + $0x60] sm:$0xff]  ;;  %v4260_v3 = vld [vmem:[%s5823_s1 + $0x4f4] ss:$8 sps:$4 sm:$0xff]   ;;  %v4263_v5 = vld [vmem:[%s5823_s1 + $0x4f0] ss:$8 sps:$4 sm:$0xff]  }
  0x15   :  { %2847 = vmatprep.subr.bf16.mxu0 %v4200_v21  ;;  %v4240_v52 = vld [vmem:[%s5823_s1 + $0xc4] ss:$8 sps:$4 sm:$0xff]   ;;  %v3568_v55 = vcombine.high %v85_v50, %v93_v51  ;;  %2417 = vmatprep.mubr.bf16.mxu1 %v3560_v53  ;;  %v4244_v56 = vld [vmem:[%s5823_s1 + $0xc0] ss:$8 sps:$4 sm:$0xff]   ;;  %v3567_v12 = vcombine.low %v85_v50, %v93_v51  ;;  %v4272_v16 = vld [vmem:[%s5823_s1 + $0x114] ss:$8 sps:$4 sm:$0xff]  }
  0x16   :  { %v4242_v54 = vld [vmem:[%s5823_s1 + $0x4c4] ss:$8 sps:$4 sm:$0xff]   ;;  %v4245_v57 = vld [vmem:[%s5823_s1 + $0x4c0] ss:$8 sps:$4 sm:$0xff]   ;;  %v4275_v17 = vld [vmem:[%s5823_s1 + $0x514] ss:$8 sps:$4 sm:$0xff]  }
  0x17   :  { %2396 = vmatpush1.bf16.msra.mxu1 %v4202_v22  ;;  %2869 = vmatprep.mubr.bf16.mxu0 %v3568_v55  ;;  %v4252_v62 = vld [vmem:[%s5823_s1 + $0xe4] ss:$8 sps:$4 sm:$0xff]   ;;  %v4256_v0 = vld [vmem:[%s5823_s1 + $0xe0] ss:$8 sps:$4 sm:$0xff]   ;;  %v4270_v20 = vld [vmem:[%s5823_s1 + $0x110] ss:$8 sps:$4 sm:$0xff]  }
  0x18   :  { %2848 = vmatpush1.bf16.msra.mxu0 %v4203_v23  ;;  %2397 = vmatprep.subr.bf16.mxu1 %v4204_v24  ;;  %v4254_v63 = vld [vmem:[%s5823_s1 + $0x4e4] ss:$8 sps:$4 sm:$0xff]   ;;  %v4257_v1 = vld [vmem:[%s5823_s1 + $0x4e0] ss:$8 sps:$4 sm:$0xff]   ;;  %v4273_v21 = vld [vmem:[%s5823_s1 + $0x510] ss:$8 sps:$4 sm:$0xff]  }
  0x19   :  { %2849 = vmatprep.subr.bf16.mxu0 %v4206_v25  ;;  %v4266_v6 = vld [vmem:[%s5823_s1 + $0x104] ss:$8 sps:$4 sm:$0xff]   ;;  %v4264_v8 = vld [vmem:[%s5823_s1 + $0x100] ss:$8 sps:$4 sm:$0xff]   ;;  %v4296_v48 = vld [vmem:[%s5823_s1 + $0x154] ss:$8 sps:$4 sm:$0xff]  }
  0x1a   :  { %v4269_v7 = vld [vmem:[%s5823_s1 + $0x504] ss:$8 sps:$4 sm:$0xff]   ;;  %v4267_v9 = vld [vmem:[%s5823_s1 + $0x500] ss:$8 sps:$4 sm:$0xff]   ;;  %v4299_v49 = vld [vmem:[%s5823_s1 + $0x554] ss:$8 sps:$4 sm:$0xff]  }
  0x1b   :  { %2398 = vmatpush1.bf16.msra.mxu1 %v4208_v26  ;;  %v97_v10 = vld [vmem:[%s5824_s0 + $0x80] sm:$0xff]  ;;  %v4297_v53 = vld [vmem:[%s5823_s1 + $0x550] ss:$8 sps:$4 sm:$0xff]  }
  0x1c   :  { %2850 = vmatpush1.bf16.msra.mxu0 %v4209_v27  ;;  %2399 = vmatprep.subr.bf16.mxu1 %v4210_v28  ;;  %v105_v13 = vld [vmem:[%s5824_s0 + $0xc0] sm:$0xff] }
  0x1d   :  { %2851 = vmatprep.subr.bf16.mxu0 %v4212_v29  ;;  %v101_v14 = vld [vmem:[%s5824_s0 + $0xa0] sm:$0xff]  ;;  %v3576_v18 = vcombine.high %v97_v10, %v105_v13  ;;  %v3575_v28 = vcombine.low %v97_v10, %v105_v13 }
  0x1e   :  { %v109_v15 = vld [vmem:[%s5824_s0 + $0xe0] sm:$0xff] }
  0x1f   :  { %2400 = vmatpush1.bf16.msra.mxu1 %v4214_v30  ;;  %v3584_v19 = vcombine.high %v101_v14, %v109_v15  ;;  %v4278_v22 = vld [vmem:[%s5823_s1 + $0x124] ss:$8 sps:$4 sm:$0xff]   ;;  %v4276_v24 = vld [vmem:[%s5823_s1 + $0x120] ss:$8 sps:$4 sm:$0xff]   ;;  %v3583_v29 = vcombine.low %v101_v14, %v109_v15 }
  0x20   :  { %2852 = vmatpush1.bf16.msra.mxu0 %v4215_v31  ;;  %2401 = vmatprep.subr.bf16.mxu1 %v4216_v32  ;;  %v4281_v23 = vld [vmem:[%s5823_s1 + $0x524] ss:$8 sps:$4 sm:$0xff]   ;;  %v4279_v25 = vld [vmem:[%s5823_s1 + $0x520] ss:$8 sps:$4 sm:$0xff]   ;;  %v4284_v32 = vld [vmem:[%s5823_s1 + $0x134] ss:$8 sps:$4 sm:$0xff]  }
  0x21   :  { %2853 = vmatprep.subr.bf16.mxu0 %v4218_v33  ;;  %v113_v26 = vld [vmem:[%s5824_s0 + $0x100] sm:$0xff]  ;;  %v4287_v33 = vld [vmem:[%s5823_s1 + $0x534] ss:$8 sps:$4 sm:$0xff]  }
  0x22   :  { %v121_v27 = vld [vmem:[%s5824_s0 + $0x140] sm:$0xff] }
  0x23   :  { %2402 = vmatpush1.bf16.msra.mxu1 %v4220_v34  ;;  %v117_v30 = vld [vmem:[%s5824_s0 + $0x120] sm:$0xff]  ;;  %v3592_v34 = vcombine.high %v113_v26, %v121_v27 }
  0x24   :  { %2854 = vmatpush1.bf16.msra.mxu0 %v4221_v35  ;;  %2403 = vmatprep.subr.bf16.mxu1 %v4222_v36  ;;  %v125_v31 = vld [vmem:[%s5824_s0 + $0x160] sm:$0xff]  ;;  %v4282_v36 = vld [vmem:[%s5823_s1 + $0x130] ss:$8 sps:$4 sm:$0xff]  }
  0x25   :  { %2855 = vmatprep.subr.bf16.mxu0 %v4224_v37  ;;  %v3600_v35 = vcombine.high %v117_v30, %v125_v31  ;;  %v4285_v37 = vld [vmem:[%s5823_s1 + $0x530] ss:$8 sps:$4 sm:$0xff]   ;;  %v4305_v55 = vld [vmem:[%s5823_s1 + $0x564] ss:$8 sps:$4 sm:$0xff]   ;;  %v4312_v14 = vld [vmem:[%s5823_s1 + $0x180] ss:$8 sps:$4 sm:$0xff]  }
  0x26   :  { %v173_v13 = vld [vmem:[%s5824_s0 + $0x2e0] sm:$0xff] }
  0x27   :  { %2404 = vmatpush1.bf16.msra.mxu1 %v4226_v38  ;;  %v4290_v38 = vld [vmem:[%s5823_s1 + $0x144] ss:$8 sps:$4 sm:$0xff]   ;;  %v4315_v15 = vld [vmem:[%s5823_s1 + $0x580] ss:$8 sps:$4 sm:$0xff]  }
  0x28   :  { %2856 = vmatpush1.bf16.msra.mxu0 %v4227_v39  ;;  %2405 = vmatprep.subr.bf16.mxu1 %v4228_v40  ;;  %v4293_v39 = vld [vmem:[%s5823_s1 + $0x544] ss:$8 sps:$4 sm:$0xff]   ;;  %v4288_v40 = vld [vmem:[%s5823_s1 + $0x140] ss:$8 sps:$4 sm:$0xff]  }
  0x29   :  { %2857 = vmatprep.subr.bf16.mxu0 %v4230_v41  ;;  %v4291_v41 = vld [vmem:[%s5823_s1 + $0x540] ss:$8 sps:$4 sm:$0xff]  }
  0x2b   :  { %2406 = vmatpush1.bf16.msra.mxu1 %v4232_v42  ;;  %v129_v42 = vld [vmem:[%s5824_s0 + $0x180] sm:$0xff] }
  0x2c   :  { %2858 = vmatpush1.bf16.msra.mxu0 %v4233_v43  ;;  %2407 = vmatprep.subr.bf16.mxu1 %v4234_v44  ;;  %v137_v43 = vld [vmem:[%s5824_s0 + $0x1c0] sm:$0xff]  ;;  %v3591_v44 = vcombine.low %v113_v26, %v121_v27 }
  0x2d   :  { %2859 = vmatprep.subr.bf16.mxu0 %v4236_v45  ;;  %v3599_v45 = vcombine.low %v117_v30, %v125_v31  ;;  %v3608_v50 = vcombine.high %v129_v42, %v137_v43  ;;  %v177_v26 = vld [vmem:[%s5824_s0 + $0x300] sm:$0xff] }
  0x2e   :  { %v181_v30 = vld [vmem:[%s5824_s0 + $0x320] sm:$0xff] }
  0x2f   :  { %2408 = vmatpush1.bf16.msra.mxu1 %v4238_v46  ;;  %v133_v46 = vld [vmem:[%s5824_s0 + $0x1a0] sm:$0xff] }
  0x30   :  { %2860 = vmatpush1.bf16.msra.mxu0 %v4239_v47  ;;  %2409 = vmatprep.subr.bf16.mxu1 %v4240_v52  ;;  %v141_v47 = vld [vmem:[%s5824_s0 + $0x1e0] sm:$0xff]  ;;  %v4294_v52 = vld [vmem:[%s5823_s1 + $0x150] ss:$8 sps:$4 sm:$0xff]  }
  0x31   :  { %2861 = vmatprep.subr.bf16.mxu0 %v4242_v54  ;;  %v3616_v51 = vcombine.high %v133_v46, %v141_v47  ;;  %v4302_v54 = vld [vmem:[%s5823_s1 + $0x164] ss:$8 sps:$4 sm:$0xff]  }
  0x32   :  { %v189_v31 = vld [vmem:[%s5824_s0 + $0x360] sm:$0xff] }
  0x33   :  { %2410 = vmatpush1.bf16.msra.mxu1 %v4244_v56  ;;  %v4300_v56 = vld [vmem:[%s5823_s1 + $0x160] ss:$8 sps:$4 sm:$0xff]  }
  0x34   :  { %2862 = vmatpush1.bf16.msra.mxu0 %v4245_v57  ;;  %2411 = vmatprep.subr.bf16.mxu1 %v4246_v58  ;;  %v145_v57 = vld [vmem:[%s5824_s0 + $0x200] sm:$0xff] }
  0x35   :  { %2863 = vmatprep.subr.bf16.mxu0 %v4248_v59  ;;  %v153_v58 = vld [vmem:[%s5824_s0 + $0x240] sm:$0xff]  ;;  %v3607_v59 = vcombine.low %v129_v42, %v137_v43 }
  0x36   :  { %v3623_v10 = vcombine.low %v145_v57, %v153_v58  ;;  %v193_v42 = vld [vmem:[%s5824_s0 + $0x380] sm:$0xff] }
  0x37   :  { %2412 = vmatpush1.bf16.msra.mxu1 %v4250_v60  ;;  %v3615_v60 = vcombine.low %v133_v46, %v141_v47  ;;  %v201_v43 = vld [vmem:[%s5824_s0 + $0x3c0] sm:$0xff] }
  0x38   :  { %2864 = vmatpush1.bf16.msra.mxu0 %v4251_v61  ;;  %2413 = vmatprep.subr.bf16.mxu1 %v4252_v62  ;;  %v149_v61 = vld [vmem:[%s5824_s0 + $0x220] sm:$0xff] }
  0x39   :  { %2865 = vmatprep.subr.bf16.mxu0 %v4254_v63  ;;  %v157_v62 = vld [vmem:[%s5824_s0 + $0x260] sm:$0xff] }
  0x3a   :  { %v4303_v63 = vld [vmem:[%s5823_s1 + $0x560] ss:$8 sps:$4 sm:$0xff]  }
  0x3b   :  { %2414 = vmatpush1.bf16.msra.mxu1 %v4256_v0  ;;  %v4308_v0 = vld [vmem:[%s5823_s1 + $0x174] ss:$8 sps:$4 sm:$0xff]   ;;  %v197_v46 = vld [vmem:[%s5824_s0 + $0x3a0] sm:$0xff] }
  0x3c   :  { %2866 = vmatpush1.bf16.msra.mxu0 %v4257_v1  ;;  %2415 = vmatprep.subr.bf16.mxu1 %v4258_v2  ;;  %v4311_v1 = vld [vmem:[%s5823_s1 + $0x574] ss:$8 sps:$4 sm:$0xff]   ;;  %v3624_v2 = vcombine.high %v145_v57, %v153_v58  ;;  %v205_v47 = vld [vmem:[%s5824_s0 + $0x3e0] sm:$0xff]  ;;  %v82_v58 = vld [vmem:[%s5824_s0 + $0x8] sm:$0xff] }
  0x3d   :  { %2867 = vmatprep.subr.bf16.mxu0 %v4260_v3  ;;  %v3632_v3 = vcombine.high %v149_v61, %v157_v62  ;;  %v4351_v57 = vld [vmem:[%s5823_s1 + $0x5e0] ss:$8 sps:$4 sm:$0xff]  }
  0x3f   :  { %2416 = vmatpush1.bf16.msra.mxu1 %v4262_v4  ;;  %v4306_v4 = vld [vmem:[%s5823_s1 + $0x170] ss:$8 sps:$4 sm:$0xff]  }
  0x40   :  { %2868 = vmatpush1.bf16.msra.mxu0 %v4263_v5  ;;  %2498 = vmatprep.subr.bf16.mxu1 %v4266_v6  ;;  %v4309_v5 = vld [vmem:[%s5823_s1 + $0x570] ss:$8 sps:$4 sm:$0xff]   ;;  %v4314_v6 = vld [vmem:[%s5823_s1 + $0x184] ss:$8 sps:$4 sm:$0xff]  }
  0x41   :  { %2950 = vmatprep.subr.bf16.mxu0 %v4269_v7  ;;  %v4317_v7 = vld [vmem:[%s5823_s1 + $0x584] ss:$8 sps:$4 sm:$0xff]  }
  0x42   :  { %2418 = vmatmul.mubr.bf16.vlgmr.msra.gmra.mrb[0].mxu1 %v3559_v11  ;;  %v3631_v11 = vcombine.low %v149_v61, %v157_v62  ;;  %v3679_v61 = vcombine.low %v197_v46, %v205_v47  ;;  %v86_v62 = vld [vmem:[%s5824_s0 + $0x28] sm:$0xff] }
  0x43   :  { %2870 = vmatmul.mubr.bf16.vlgmr.msra.gmra.mrb[0].mxu0 %v3567_v12  ;;  %2499 = vmatpush1.bf16.msra.mxu1 %v4264_v8  ;;  %v161_v8 = vld [vmem:[%s5824_s0 + $0x280] sm:$0xff] }
  0x44   :  { %2951 = vmatpush1.bf16.msra.mxu0 %v4267_v9  ;;  %2500 = vmatprep.subr.bf16.mxu1 %v4272_v16  ;;  %v169_v9 = vld [vmem:[%s5824_s0 + $0x2c0] sm:$0xff]  ;;  %v4320_v16 = vld [vmem:[%s5823_s1 + $0x194] ss:$8 sps:$4 sm:$0xff]  }
  0x45   :  { %2952 = vmatprep.subr.bf16.mxu0 %v4275_v17  ;;  %2427 = vmatprep.mubr.bf16.mxu1 %v3576_v18  ;;  %v165_v12 = vld [vmem:[%s5824_s0 + $0x2a0] sm:$0xff]  ;;  %v4323_v17 = vld [vmem:[%s5823_s1 + $0x594] ss:$8 sps:$4 sm:$0xff]   ;;  %v3640_v18 = vcombine.high %v161_v8, %v169_v9  ;;  %v3639_v27 = vcombine.low %v161_v8, %v169_v9  ;;  %v98_v9 = vld [vmem:[%s5824_s0 + $0x88] sm:$0xff] }
  0x46   :  { %2879 = vmatprep.mubr.bf16.mxu0 %v3584_v19  ;;  %v3648_v19 = vcombine.high %v165_v12, %v173_v13  ;;  %v4360_v8 = vld [vmem:[%s5823_s1 + $0x200] ss:$8 sps:$4 sm:$0xff]  }
  0x47   :  { %2501 = vmatpush1.bf16.msra.mxu1 %v4270_v20  ;;  %v4318_v20 = vld [vmem:[%s5823_s1 + $0x190] ss:$8 sps:$4 sm:$0xff]  }
  0x48   :  { %2953 = vmatpush1.bf16.msra.mxu0 %v4273_v21  ;;  %2502 = vmatprep.subr.bf16.mxu1 %v4278_v22  ;;  %v4321_v21 = vld [vmem:[%s5823_s1 + $0x590] ss:$8 sps:$4 sm:$0xff]   ;;  %v4326_v22 = vld [vmem:[%s5823_s1 + $0x1a4] ss:$8 sps:$4 sm:$0xff]  }
  0x49   :  { %2954 = vmatprep.subr.bf16.mxu0 %v4281_v23  ;;  %v4329_v23 = vld [vmem:[%s5823_s1 + $0x5a4] ss:$8 sps:$4 sm:$0xff]  }
  0x4a   :  { %2428 = vmatmul.mubr.bf16.gmra.mrb[4].mxu1 %v3575_v28  ;;  %v3647_v28 = vcombine.low %v165_v12, %v173_v13  ;;  %v102_v13 = vld [vmem:[%s5824_s0 + $0xa8] sm:$0xff] }
  0x4b   :  { %2880 = vmatmul.mubr.bf16.gmra.mrb[4].mxu0 %v3583_v29  ;;  %2503 = vmatpush1.bf16.msra.mxu1 %v4276_v24  ;;  %v4324_v24 = vld [vmem:[%s5823_s1 + $0x1a0] ss:$8 sps:$4 sm:$0xff]  }
  0x4c   :  { %2955 = vmatpush1.bf16.msra.mxu0 %v4279_v25  ;;  %2504 = vmatprep.subr.bf16.mxu1 %v4284_v32  ;;  %v4327_v25 = vld [vmem:[%s5823_s1 + $0x5a0] ss:$8 sps:$4 sm:$0xff]   ;;  %v4332_v32 = vld [vmem:[%s5823_s1 + $0x1b4] ss:$8 sps:$4 sm:$0xff]  }
  0x4d   :  { %2956 = vmatprep.subr.bf16.mxu0 %v4287_v33  ;;  %2437 = vmatprep.mubr.bf16.mxu1 %v3592_v34  ;;  %v185_v29 = vld [vmem:[%s5824_s0 + $0x340] sm:$0xff]  ;;  %v4335_v33 = vld [vmem:[%s5823_s1 + $0x5b4] ss:$8 sps:$4 sm:$0xff]  }
  0x4e   :  { %2889 = vmatprep.mubr.bf16.mxu0 %v3600_v35  ;;  %v3656_v34 = vcombine.high %v177_v26, %v185_v29  ;;  %v3664_v35 = vcombine.high %v181_v30, %v189_v31 }
  0x4f   :  { %2505 = vmatpush1.bf16.msra.mxu1 %v4282_v36  ;;  %v4330_v36 = vld [vmem:[%s5823_s1 + $0x1b0] ss:$8 sps:$4 sm:$0xff]  }
  0x50   :  { %2957 = vmatpush1.bf16.msra.mxu0 %v4285_v37  ;;  %2506 = vmatprep.subr.bf16.mxu1 %v4290_v38  ;;  %v4333_v37 = vld [vmem:[%s5823_s1 + $0x5b0] ss:$8 sps:$4 sm:$0xff]   ;;  %v4338_v38 = vld [vmem:[%s5823_s1 + $0x1c4] ss:$8 sps:$4 sm:$0xff]  }
  0x51   :  { %2958 = vmatprep.subr.bf16.mxu0 %v4293_v39  ;;  %v4341_v39 = vld [vmem:[%s5823_s1 + $0x5c4] ss:$8 sps:$4 sm:$0xff]  }
  0x52   :  { %2438 = vmatmul.mubr.bf16.gmra.mrb[8].mxu1 %v3591_v44  ;;  %v3655_v44 = vcombine.low %v177_v26, %v185_v29  ;;  %v126_v29 = vld [vmem:[%s5824_s0 + $0x168] sm:$0xff] }
  0x53   :  { %2890 = vmatmul.mubr.bf16.gmra.mrb[8].mxu0 %v3599_v45  ;;  %2507 = vmatpush1.bf16.msra.mxu1 %v4288_v40  ;;  %v4336_v40 = vld [vmem:[%s5823_s1 + $0x1c0] ss:$8 sps:$4 sm:$0xff]   ;;  %v3663_v45 = vcombine.low %v181_v30, %v189_v31 }
  0x54   :  { %2959 = vmatpush1.bf16.msra.mxu0 %v4291_v41  ;;  %2508 = vmatprep.subr.bf16.mxu1 %v4296_v48  ;;  %v4339_v41 = vld [vmem:[%s5823_s1 + $0x5c0] ss:$8 sps:$4 sm:$0xff]   ;;  %v4344_v48 = vld [vmem:[%s5823_s1 + $0x1d4] ss:$8 sps:$4 sm:$0xff]  }
  0x55   :  { %2960 = vmatprep.subr.bf16.mxu0 %v4299_v49  ;;  %2447 = vmatprep.mubr.bf16.mxu1 %v3608_v50  ;;  %v4347_v49 = vld [vmem:[%s5823_s1 + $0x5d4] ss:$8 sps:$4 sm:$0xff]   ;;  %v3672_v50 = vcombine.high %v193_v42, %v201_v43  ;;  %v4372_v30 = vld [vmem:[%s5823_s1 + $0x220] ss:$8 sps:$4 sm:$0xff]  }
  0x56   :  { %2899 = vmatprep.mubr.bf16.mxu0 %v3616_v51  ;;  %v3680_v51 = vcombine.high %v197_v46, %v205_v47  ;;  %v4375_v31 = vld [vmem:[%s5823_s1 + $0x620] ss:$8 sps:$4 sm:$0xff]  }
  0x57   :  { %2509 = vmatpush1.bf16.msra.mxu1 %v4294_v52  ;;  %v4342_v52 = vld [vmem:[%s5823_s1 + $0x1d0] ss:$8 sps:$4 sm:$0xff]   ;;  %v134_v46 = vld [vmem:[%s5824_s0 + $0x1a8] sm:$0xff] }
  0x58   :  { %2961 = vmatpush1.bf16.msra.mxu0 %v4297_v53  ;;  %2510 = vmatprep.subr.bf16.mxu1 %v4302_v54  ;;  %v4345_v53 = vld [vmem:[%s5823_s1 + $0x5d0] ss:$8 sps:$4 sm:$0xff]   ;;  %v4350_v54 = vld [vmem:[%s5823_s1 + $0x1e4] ss:$8 sps:$4 sm:$0xff]  }
  0x59   :  { %2962 = vmatprep.subr.bf16.mxu0 %v4305_v55  ;;  %v4353_v55 = vld [vmem:[%s5823_s1 + $0x5e4] ss:$8 sps:$4 sm:$0xff]  }
  0x5a   :  { %2448 = vmatmul.mubr.bf16.gmra.mrb[12].mxu1 %v3607_v59  ;;  %v90_v59 = vld [vmem:[%s5824_s0 + $0x48] sm:$0xff] }
  0x5b   :  { %2900 = vmatmul.mubr.bf16.gmra.mrb[12].mxu0 %v3615_v60  ;;  %2511 = vmatpush1.bf16.msra.mxu1 %v4300_v56  ;;  %v4348_v56 = vld [vmem:[%s5823_s1 + $0x1e0] ss:$8 sps:$4 sm:$0xff]   ;;  %v3671_v60 = vcombine.low %v193_v42, %v201_v43 }
  0x5c   :  { %2963 = vmatpush1.bf16.msra.mxu0 %v4303_v63  ;;  %2512 = vmatprep.subr.bf16.mxu1 %v4308_v0  ;;  %v94_v63 = vld [vmem:[%s5824_s0 + $0x68] sm:$0xff]  ;;  %v4356_v0 = vld [vmem:[%s5823_s1 + $0x1f4] ss:$8 sps:$4 sm:$0xff]  }
  0x5d   :  { %2964 = vmatprep.subr.bf16.mxu0 %v4311_v1  ;;  %2457 = vmatprep.mubr.bf16.mxu1 %v3624_v2  ;;  %v4359_v1 = vld [vmem:[%s5823_s1 + $0x5f4] ss:$8 sps:$4 sm:$0xff]   ;;  %v3562_v2 = vcombine.high %v82_v58, %v90_v59  ;;  %v3569_v12 = vcombine.low %v86_v62, %v94_v63  ;;  %v130_v42 = vld [vmem:[%s5824_s0 + $0x188] sm:$0xff] }
  0x5e   :  { %2909 = vmatprep.mubr.bf16.mxu0 %v3632_v3  ;;  %v3570_v3 = vcombine.high %v86_v62, %v94_v63  ;;  %v142_v47 = vld [vmem:[%s5824_s0 + $0x1e8] sm:$0xff] }
  0x5f   :  { %2513 = vmatpush1.bf16.msra.mxu1 %v4306_v4  ;;  %v4354_v4 = vld [vmem:[%s5823_s1 + $0x1f0] ss:$8 sps:$4 sm:$0xff]   ;;  %v150_v62 = vld [vmem:[%s5824_s0 + $0x228] sm:$0xff] }
  0x60   :  { %2965 = vmatpush1.bf16.msra.mxu0 %v4309_v5  ;;  %2514 = vmatprep.subr.bf16.mxu1 %v4314_v6  ;;  %v4357_v5 = vld [vmem:[%s5823_s1 + $0x5f0] ss:$8 sps:$4 sm:$0xff]   ;;  %v4362_v6 = vld [vmem:[%s5823_s1 + $0x204] ss:$8 sps:$4 sm:$0xff]  }
  0x61   :  { %2966 = vmatprep.subr.bf16.mxu0 %v4317_v7  ;;  %v4365_v7 = vld [vmem:[%s5823_s1 + $0x604] ss:$8 sps:$4 sm:$0xff]  }
  0x62   :  { %2458 = vmatmul.mubr.bf16.gmra.mrb[16].mxu1 %v3623_v10  ;;  %v106_v10 = vld [vmem:[%s5824_s0 + $0xc8] sm:$0xff] }
  0x63   :  { %2910 = vmatmul.mubr.bf16.gmra.mrb[16].mxu0 %v3631_v11  ;;  %2515 = vmatpush1.bf16.msra.mxu1 %v4312_v14  ;;  %v3561_v11 = vcombine.low %v82_v58, %v90_v59  ;;  %v110_v14 = vld [vmem:[%s5824_s0 + $0xe8] sm:$0xff]  ;;  %v3577_v26 = vcombine.low %v98_v9, %v106_v10 }
  0x64   :  { %2967 = vmatpush1.bf16.msra.mxu0 %v4315_v15  ;;  %2516 = vmatprep.subr.bf16.mxu1 %v4320_v16  ;;  %v4363_v15 = vld [vmem:[%s5823_s1 + $0x600] ss:$8 sps:$4 sm:$0xff]   ;;  %v4368_v16 = vld [vmem:[%s5823_s1 + $0x214] ss:$8 sps:$4 sm:$0xff]  }
  0x65   :  { %2968 = vmatprep.subr.bf16.mxu0 %v4323_v17  ;;  %2467 = vmatprep.mubr.bf16.mxu1 %v3640_v18  ;;  %v4371_v17 = vld [vmem:[%s5823_s1 + $0x614] ss:$8 sps:$4 sm:$0xff]   ;;  %v3578_v18 = vcombine.high %v98_v9, %v106_v10  ;;  %v146_v58 = vld [vmem:[%s5824_s0 + $0x208] sm:$0xff] }
  0x66   :  { %2919 = vmatprep.mubr.bf16.mxu0 %v3648_v19  ;;  %v3586_v19 = vcombine.high %v102_v13, %v110_v14  ;;  %v154_v59 = vld [vmem:[%s5824_s0 + $0x248] sm:$0xff] }
  0x67   :  { %2517 = vmatpush1.bf16.msra.mxu1 %v4318_v20  ;;  %v4366_v20 = vld [vmem:[%s5823_s1 + $0x210] ss:$8 sps:$4 sm:$0xff]   ;;  %v158_v63 = vld [vmem:[%s5824_s0 + $0x268] sm:$0xff] }
  0x68   :  { %2969 = vmatpush1.bf16.msra.mxu0 %v4321_v21  ;;  %2518 = vmatprep.subr.bf16.mxu1 %v4326_v22  ;;  %v4369_v21 = vld [vmem:[%s5823_s1 + $0x610] ss:$8 sps:$4 sm:$0xff]   ;;  %v4374_v22 = vld [vmem:[%s5823_s1 + $0x224] ss:$8 sps:$4 sm:$0xff]   ;;  %v4411_v9 = vld [vmem:[%s5823_s1 + $0x680] ss:$8 sps:$4 sm:$0xff]  }
  0x69   :  { %2970 = vmatprep.subr.bf16.mxu0 %v4329_v23  ;;  %v4377_v23 = vld [vmem:[%s5823_s1 + $0x624] ss:$8 sps:$4 sm:$0xff]  }
  0x6a   :  { %2468 = vmatmul.mubr.bf16.gmra.mrb[20].mxu1 %v3639_v27  ;;  %v3585_v27 = vcombine.low %v102_v13, %v110_v14  ;;  %v162_v10 = vld [vmem:[%s5824_s0 + $0x288] sm:$0xff]  ;;  %v3633_v13 = vcombine.low %v150_v62, %v158_v63 }
  0x6b   :  { %2920 = vmatmul.mubr.bf16.gmra.mrb[20].mxu0 %v3647_v28  ;;  %2519 = vmatpush1.bf16.msra.mxu1 %v4324_v24  ;;  %v114_v24 = vld [vmem:[%s5824_s0 + $0x108] sm:$0xff] }
  0x6c   :  { %2971 = vmatpush1.bf16.msra.mxu0 %v4327_v25  ;;  %2520 = vmatprep.subr.bf16.mxu1 %v4332_v32  ;;  %v122_v25 = vld [vmem:[%s5824_s0 + $0x148] sm:$0xff]  ;;  %v4380_v32 = vld [vmem:[%s5823_s1 + $0x234] ss:$8 sps:$4 sm:$0xff]  }
  0x6d   :  { %2972 = vmatprep.subr.bf16.mxu0 %v4335_v33  ;;  %2477 = vmatprep.mubr.bf16.mxu1 %v3656_v34  ;;  %v118_v28 = vld [vmem:[%s5824_s0 + $0x128] sm:$0xff]  ;;  %v4383_v33 = vld [vmem:[%s5823_s1 + $0x634] ss:$8 sps:$4 sm:$0xff]   ;;  %v3594_v34 = vcombine.high %v114_v24, %v122_v25  ;;  %v3593_v43 = vcombine.low %v114_v24, %v122_v25 }
  0x6e   :  { %2929 = vmatprep.mubr.bf16.mxu0 %v3664_v35  ;;  %v3602_v35 = vcombine.high %v118_v28, %v126_v29  ;;  %v166_v14 = vld [vmem:[%s5824_s0 + $0x2a8] sm:$0xff] }
  0x6f   :  { %2521 = vmatpush1.bf16.msra.mxu1 %v4330_v36  ;;  %v4378_v36 = vld [vmem:[%s5823_s1 + $0x230] ss:$8 sps:$4 sm:$0xff]   ;;  %v4420_v24 = vld [vmem:[%s5823_s1 + $0x2a0] ss:$8 sps:$4 sm:$0xff]  }
  0x70   :  { %2973 = vmatpush1.bf16.msra.mxu0 %v4333_v37  ;;  %2522 = vmatprep.subr.bf16.mxu1 %v4338_v38  ;;  %v4381_v37 = vld [vmem:[%s5823_s1 + $0x630] ss:$8 sps:$4 sm:$0xff]   ;;  %v4386_v38 = vld [vmem:[%s5823_s1 + $0x244] ss:$8 sps:$4 sm:$0xff]  }
  0x71   :  { %2974 = vmatprep.subr.bf16.mxu0 %v4341_v39  ;;  %v4389_v39 = vld [vmem:[%s5823_s1 + $0x644] ss:$8 sps:$4 sm:$0xff]  }
  0x72   :  { %2478 = vmatmul.mubr.bf16.gmra.mrb[24].mxu1 %v3655_v44  ;;  %v3601_v44 = vcombine.low %v118_v28, %v126_v29  ;;  %v178_v25 = vld [vmem:[%s5824_s0 + $0x308] sm:$0xff] }
  0x73   :  { %2930 = vmatmul.mubr.bf16.gmra.mrb[24].mxu0 %v3663_v45  ;;  %2523 = vmatpush1.bf16.msra.mxu1 %v4336_v40  ;;  %v4384_v40 = vld [vmem:[%s5823_s1 + $0x240] ss:$8 sps:$4 sm:$0xff]  }
  0x74   :  { %2975 = vmatpush1.bf16.msra.mxu0 %v4339_v41  ;;  %2524 = vmatprep.subr.bf16.mxu1 %v4344_v48  ;;  %v4387_v41 = vld [vmem:[%s5823_s1 + $0x640] ss:$8 sps:$4 sm:$0xff]   ;;  %v4392_v48 = vld [vmem:[%s5823_s1 + $0x254] ss:$8 sps:$4 sm:$0xff]  }
  0x75   :  { %2976 = vmatprep.subr.bf16.mxu0 %v4347_v49  ;;  %2487 = vmatprep.mubr.bf16.mxu1 %v3672_v50  ;;  %v138_v45 = vld [vmem:[%s5824_s0 + $0x1c8] sm:$0xff]  ;;  %v4395_v49 = vld [vmem:[%s5823_s1 + $0x654] ss:$8 sps:$4 sm:$0xff]  }
  0x76   :  { %2939 = vmatprep.mubr.bf16.mxu0 %v3680_v51  ;;  %v3610_v50 = vcombine.high %v130_v42, %v138_v45  ;;  %v3618_v51 = vcombine.high %v134_v46, %v142_v47  ;;  %v182_v29 = vld [vmem:[%s5824_s0 + $0x328] sm:$0xff] }
  0x77   :  { %2525 = vmatpush1.bf16.msra.mxu1 %v4342_v52  ;;  %v4390_v52 = vld [vmem:[%s5823_s1 + $0x250] ss:$8 sps:$4 sm:$0xff]  }
  0x78   :  { %2977 = vmatpush1.bf16.msra.mxu0 %v4345_v53  ;;  %2526 = vmatprep.subr.bf16.mxu1 %v4350_v54  ;;  %v4393_v53 = vld [vmem:[%s5823_s1 + $0x650] ss:$8 sps:$4 sm:$0xff]   ;;  %v4398_v54 = vld [vmem:[%s5823_s1 + $0x264] ss:$8 sps:$4 sm:$0xff]  }
  0x79   :  { %2978 = vmatprep.subr.bf16.mxu0 %v4353_v55  ;;  %v4401_v55 = vld [vmem:[%s5823_s1 + $0x664] ss:$8 sps:$4 sm:$0xff]  }
  0x7a   :  { %2488 = vmatmul.mubr.bf16.gmra.mrb[28].mxu1 %v3671_v60  ;;  %v3609_v60 = vcombine.low %v130_v42, %v138_v45  ;;  %v206_v45 = vld [vmem:[%s5824_s0 + $0x3e8] sm:$0xff] }
  0x7b   :  { %2940 = vmatmul.mubr.bf16.gmra.mrb[28].mxu0 %v3679_v61  ;;  %2527 = vmatpush1.bf16.msra.mxu1 %v4348_v56  ;;  %v4396_v56 = vld [vmem:[%s5823_s1 + $0x260] ss:$8 sps:$4 sm:$0xff]   ;;  %v3617_v61 = vcombine.low %v134_v46, %v142_v47 }
  0x7c   :  { %2979 = vmatpush1.bf16.msra.mxu0 %v4351_v57  ;;  %2528 = vmatprep.subr.bf16.mxu1 %v4356_v0  ;;  %v4399_v57 = vld [vmem:[%s5823_s1 + $0x660] ss:$8 sps:$4 sm:$0xff]   ;;  %v4404_v0 = vld [vmem:[%s5823_s1 + $0x274] ss:$8 sps:$4 sm:$0xff]  }
  0x7d   :  { %2980 = vmatprep.subr.bf16.mxu0 %v4359_v1  ;;  %2530 = vmatprep.mubr.bf16.mxu1 %v3562_v2  ;;  %v4407_v1 = vld [vmem:[%s5823_s1 + $0x674] ss:$8 sps:$4 sm:$0xff]   ;;  %v3626_v2 = vcombine.high %v146_v58, %v154_v59  ;;  %v4432_v46 = vld [vmem:[%s5823_s1 + $0x2c0] ss:$8 sps:$4 sm:$0xff]  }
  0x7e   :  { %2982 = vmatprep.mubr.bf16.mxu0 %v3570_v3  ;;  %v3634_v3 = vcombine.high %v150_v62, %v158_v63  ;;  %v4435_v47 = vld [vmem:[%s5823_s1 + $0x6c0] ss:$8 sps:$4 sm:$0xff]   ;;  %v87_v62 = vld [vmem:[%s5824_s0 + $0x30] sm:$0xff] }
  0x7f   :  { %2529 = vmatpush1.bf16.msra.mxu1 %v4354_v4  ;;  %v4402_v4 = vld [vmem:[%s5823_s1 + $0x270] ss:$8 sps:$4 sm:$0xff]  }
  0x80   :  { %2981 = vmatpush1.bf16.msra.mxu0 %v4357_v5  ;;  %2611 = vmatprep.subr.bf16.mxu1 %v4362_v6  ;;  %v4405_v5 = vld [vmem:[%s5823_s1 + $0x670] ss:$8 sps:$4 sm:$0xff]   ;;  %v4410_v6 = vld [vmem:[%s5823_s1 + $0x284] ss:$8 sps:$4 sm:$0xff]  }
  0x81   :  { %3063 = vmatprep.subr.bf16.mxu0 %v4365_v7  ;;  %v4413_v7 = vld [vmem:[%s5823_s1 + $0x684] ss:$8 sps:$4 sm:$0xff]   ;;  %v95_v63 = vld [vmem:[%s5824_s0 + $0x70] sm:$0xff] }
  0x82   :  { %2531 = vmatmul.mubr.bf16.vlgmr.msra.gmra.mrb[0].mxu1 %v3561_v11  ;;  %v170_v11 = vld [vmem:[%s5824_s0 + $0x2c8] sm:$0xff] }
  0x83   :  { %2983 = vmatmul.mubr.bf16.vlgmr.msra.gmra.mrb[0].mxu0 %v3569_v12  ;;  %2612 = vmatpush1.bf16.msra.mxu1 %v4360_v8  ;;  %v4408_v8 = vld [vmem:[%s5823_s1 + $0x280] ss:$8 sps:$4 sm:$0xff]   ;;  %v3625_v12 = vcombine.low %v146_v58, %v154_v59  ;;  %v83_v58 = vld [vmem:[%s5824_s0 + $0x10] sm:$0xff] }
  0x84   :  { %3064 = vmatpush1.bf16.msra.mxu0 %v4363_v15  ;;  %2613 = vmatprep.subr.bf16.mxu1 %v4368_v16  ;;  %v174_v15 = vld [vmem:[%s5824_s0 + $0x2e8] sm:$0xff]  ;;  %v4416_v16 = vld [vmem:[%s5823_s1 + $0x294] ss:$8 sps:$4 sm:$0xff]  }
  0x85   :  { %3065 = vmatprep.subr.bf16.mxu0 %v4371_v17  ;;  %2540 = vmatprep.mubr.bf16.mxu1 %v3578_v18  ;;  %v4419_v17 = vld [vmem:[%s5823_s1 + $0x694] ss:$8 sps:$4 sm:$0xff]   ;;  %v3642_v18 = vcombine.high %v162_v10, %v170_v11  ;;  %v3649_v28 = vcombine.low %v166_v14, %v174_v15 }
  0x86   :  { %2992 = vmatprep.mubr.bf16.mxu0 %v3586_v19  ;;  %v3650_v19 = vcombine.high %v166_v14, %v174_v15  ;;  %v103_v14 = vld [vmem:[%s5824_s0 + $0xb0] sm:$0xff] }
  0x87   :  { %2614 = vmatpush1.bf16.msra.mxu1 %v4366_v20  ;;  %v4414_v20 = vld [vmem:[%s5823_s1 + $0x290] ss:$8 sps:$4 sm:$0xff]  }
  0x88   :  { %3066 = vmatpush1.bf16.msra.mxu0 %v4369_v21  ;;  %2615 = vmatprep.subr.bf16.mxu1 %v4374_v22  ;;  %v4417_v21 = vld [vmem:[%s5823_s1 + $0x690] ss:$8 sps:$4 sm:$0xff]   ;;  %v4422_v22 = vld [vmem:[%s5823_s1 + $0x2a4] ss:$8 sps:$4 sm:$0xff]  }
  0x89   :  { %3067 = vmatprep.subr.bf16.mxu0 %v4377_v23  ;;  %v4425_v23 = vld [vmem:[%s5823_s1 + $0x6a4] ss:$8 sps:$4 sm:$0xff]   ;;  %v111_v15 = vld [vmem:[%s5824_s0 + $0xf0] sm:$0xff] }
  0x8a   :  { %2541 = vmatmul.mubr.bf16.gmra.mrb[4].mxu1 %v3577_v26  ;;  %v186_v26 = vld [vmem:[%s5824_s0 + $0x348] sm:$0xff] }
  0x8b   :  { %2993 = vmatmul.mubr.bf16.gmra.mrb[4].mxu0 %v3585_v27  ;;  %2616 = vmatpush1.bf16.msra.mxu1 %v4372_v30  ;;  %v3641_v27 = vcombine.low %v162_v10, %v170_v11  ;;  %v190_v30 = vld [vmem:[%s5824_s0 + $0x368] sm:$0xff]  ;;  %v3657_v42 = vcombine.low %v178_v25, %v186_v26  ;;  %v99_v10 = vld [vmem:[%s5824_s0 + $0x90] sm:$0xff] }
  0x8c   :  { %3068 = vmatpush1.bf16.msra.mxu0 %v4375_v31  ;;  %2617 = vmatprep.subr.bf16.mxu1 %v4380_v32  ;;  %v4423_v31 = vld [vmem:[%s5823_s1 + $0x6a0] ss:$8 sps:$4 sm:$0xff]   ;;  %v4428_v32 = vld [vmem:[%s5823_s1 + $0x2b4] ss:$8 sps:$4 sm:$0xff]  }
  0x8d   :  { %3069 = vmatprep.subr.bf16.mxu0 %v4383_v33  ;;  %2550 = vmatprep.mubr.bf16.mxu1 %v3594_v34  ;;  %v4431_v33 = vld [vmem:[%s5823_s1 + $0x6b4] ss:$8 sps:$4 sm:$0xff]   ;;  %v3658_v34 = vcombine.high %v178_v25, %v186_v26  ;;  %v4471_v25 = vld [vmem:[%s5823_s1 + $0x720] ss:$8 sps:$4 sm:$0xff]  }
  0x8e   :  { %3002 = vmatprep.mubr.bf16.mxu0 %v3602_v35  ;;  %v3666_v35 = vcombine.high %v182_v29, %v190_v30  ;;  %v107_v11 = vld [vmem:[%s5824_s0 + $0xd0] sm:$0xff] }
  0x8f   :  { %2618 = vmatpush1.bf16.msra.mxu1 %v4378_v36  ;;  %v4426_v36 = vld [vmem:[%s5823_s1 + $0x2b0] ss:$8 sps:$4 sm:$0xff]  }
  0x90   :  { %3070 = vmatpush1.bf16.msra.mxu0 %v4381_v37  ;;  %2619 = vmatprep.subr.bf16.mxu1 %v4386_v38  ;;  %v4429_v37 = vld [vmem:[%s5823_s1 + $0x6b0] ss:$8 sps:$4 sm:$0xff]   ;;  %v4434_v38 = vld [vmem:[%s5823_s1 + $0x2c4] ss:$8 sps:$4 sm:$0xff]  }
  0x91   :  { %3071 = vmatprep.subr.bf16.mxu0 %v4389_v39  ;;  %v4437_v39 = vld [vmem:[%s5823_s1 + $0x6c4] ss:$8 sps:$4 sm:$0xff]   ;;  %v115_v26 = vld [vmem:[%s5824_s0 + $0x110] sm:$0xff] }
  0x92   :  { %2551 = vmatmul.mubr.bf16.gmra.mrb[8].mxu1 %v3593_v43  ;;  %v3665_v43 = vcombine.low %v182_v29, %v190_v30  ;;  %v3587_v29 = vcombine.low %v103_v14, %v111_v15  ;;  %v119_v30 = vld [vmem:[%s5824_s0 + $0x130] sm:$0xff] }
  0x93   :  { %3003 = vmatmul.mubr.bf16.gmra.mrb[8].mxu0 %v3601_v44  ;;  %2620 = vmatpush1.bf16.msra.mxu1 %v4384_v40  ;;  %v194_v40 = vld [vmem:[%s5824_s0 + $0x388] sm:$0xff] }
  0x94   :  { %3072 = vmatpush1.bf16.msra.mxu0 %v4387_v41  ;;  %2621 = vmatprep.subr.bf16.mxu1 %v4392_v48  ;;  %v202_v41 = vld [vmem:[%s5824_s0 + $0x3c8] sm:$0xff]  ;;  %v4440_v48 = vld [vmem:[%s5823_s1 + $0x2d4] ss:$8 sps:$4 sm:$0xff]  }
  0x95   :  { %3073 = vmatprep.subr.bf16.mxu0 %v4395_v49  ;;  %2560 = vmatprep.mubr.bf16.mxu1 %v3610_v50  ;;  %v198_v44 = vld [vmem:[%s5824_s0 + $0x3a8] sm:$0xff]  ;;  %v4443_v49 = vld [vmem:[%s5823_s1 + $0x6d4] ss:$8 sps:$4 sm:$0xff]   ;;  %v3674_v50 = vcombine.high %v194_v40, %v202_v41  ;;  %v3673_v59 = vcombine.low %v194_v40, %v202_v41 }
  0x96   :  { %3012 = vmatprep.mubr.bf16.mxu0 %v3618_v51  ;;  %v3682_v51 = vcombine.high %v198_v44, %v206_v45  ;;  %v131_v40 = vld [vmem:[%s5824_s0 + $0x190] sm:$0xff] }
  0x97   :  { %2622 = vmatpush1.bf16.msra.mxu1 %v4390_v52  ;;  %v4438_v52 = vld [vmem:[%s5823_s1 + $0x2d0] ss:$8 sps:$4 sm:$0xff]  }
  0x98   :  { %3074 = vmatpush1.bf16.msra.mxu0 %v4393_v53  ;;  %2623 = vmatprep.subr.bf16.mxu1 %v4398_v54  ;;  %v4441_v53 = vld [vmem:[%s5823_s1 + $0x6d0] ss:$8 sps:$4 sm:$0xff]   ;;  %v4446_v54 = vld [vmem:[%s5823_s1 + $0x2e4] ss:$8 sps:$4 sm:$0xff]  }
  0x99   :  { %3075 = vmatprep.subr.bf16.mxu0 %v4401_v55  ;;  %v4449_v55 = vld [vmem:[%s5823_s1 + $0x6e4] ss:$8 sps:$4 sm:$0xff]  }
  0x9a   :  { %2561 = vmatmul.mubr.bf16.gmra.mrb[12].mxu1 %v3609_v60  ;;  %v3681_v60 = vcombine.low %v198_v44, %v206_v45  ;;  %v135_v44 = vld [vmem:[%s5824_s0 + $0x1b0] sm:$0xff] }
  0x9b   :  { %3013 = vmatmul.mubr.bf16.gmra.mrb[12].mxu0 %v3617_v61  ;;  %2624 = vmatpush1.bf16.msra.mxu1 %v4396_v56  ;;  %v4444_v56 = vld [vmem:[%s5823_s1 + $0x2e0] ss:$8 sps:$4 sm:$0xff]   ;;  %v91_v61 = vld [vmem:[%s5824_s0 + $0x50] sm:$0xff] }
  0x9c   :  { %3076 = vmatpush1.bf16.msra.mxu0 %v4399_v57  ;;  %2625 = vmatprep.subr.bf16.mxu1 %v4404_v0  ;;  %v4447_v57 = vld [vmem:[%s5823_s1 + $0x6e0] ss:$8 sps:$4 sm:$0xff]   ;;  %v4452_v0 = vld [vmem:[%s5823_s1 + $0x2f4] ss:$8 sps:$4 sm:$0xff]  }
  0x9d   :  { %3077 = vmatprep.subr.bf16.mxu0 %v4407_v1  ;;  %2570 = vmatprep.mubr.bf16.mxu1 %v3626_v2  ;;  %v4455_v1 = vld [vmem:[%s5823_s1 + $0x6f4] ss:$8 sps:$4 sm:$0xff]   ;;  %v3564_v2 = vcombine.high %v83_v58, %v91_v61 }
  0x9e   :  { %3022 = vmatprep.mubr.bf16.mxu0 %v3634_v3  ;;  %v3572_v3 = vcombine.high %v87_v62, %v95_v63  ;;  %v143_v45 = vld [vmem:[%s5824_s0 + $0x1f0] sm:$0xff] }
  0x9f   :  { %2626 = vmatpush1.bf16.msra.mxu1 %v4402_v4  ;;  %v4450_v4 = vld [vmem:[%s5823_s1 + $0x2f0] ss:$8 sps:$4 sm:$0xff]  }
  0xa0   :  { %3078 = vmatpush1.bf16.msra.mxu0 %v4405_v5  ;;  %2627 = vmatprep.subr.bf16.mxu1 %v4410_v6  ;;  %v4453_v5 = vld [vmem:[%s5823_s1 + $0x6f0] ss:$8 sps:$4 sm:$0xff]   ;;  %v4458_v6 = vld [vmem:[%s5823_s1 + $0x304] ss:$8 sps:$4 sm:$0xff]  }
  0xa1   :  { %3079 = vmatprep.subr.bf16.mxu0 %v4413_v7  ;;  %v4461_v7 = vld [vmem:[%s5823_s1 + $0x704] ss:$8 sps:$4 sm:$0xff]  }
  0xa2   :  { %2571 = vmatmul.mubr.bf16.gmra.mrb[16].mxu1 %v3625_v12  ;;  %v3563_v12 = vcombine.low %v83_v58, %v91_v61  ;;  %v3619_v58 = vcombine.low %v135_v44, %v143_v45  ;;  %v159_v61 = vld [vmem:[%s5824_s0 + $0x270] sm:$0xff] }
  0xa3   :  { %3023 = vmatmul.mubr.bf16.gmra.mrb[16].mxu0 %v3633_v13  ;;  %2628 = vmatpush1.bf16.msra.mxu1 %v4408_v8  ;;  %v4456_v8 = vld [vmem:[%s5823_s1 + $0x300] ss:$8 sps:$4 sm:$0xff]   ;;  %v3571_v13 = vcombine.low %v87_v62, %v95_v63 }
  0xa4   :  { %3080 = vmatpush1.bf16.msra.mxu0 %v4411_v9  ;;  %2629 = vmatprep.subr.bf16.mxu1 %v4416_v16  ;;  %v4459_v9 = vld [vmem:[%s5823_s1 + $0x700] ss:$8 sps:$4 sm:$0xff]   ;;  %v4464_v16 = vld [vmem:[%s5823_s1 + $0x314] ss:$8 sps:$4 sm:$0xff]  }
  0xa5   :  { %3081 = vmatprep.subr.bf16.mxu0 %v4419_v17  ;;  %2580 = vmatprep.mubr.bf16.mxu1 %v3642_v18  ;;  %v4467_v17 = vld [vmem:[%s5823_s1 + $0x714] ss:$8 sps:$4 sm:$0xff]   ;;  %v3580_v18 = vcombine.high %v99_v10, %v107_v11  ;;  %v4492_v62 = vld [vmem:[%s5823_s1 + $0x360] ss:$8 sps:$4 sm:$0xff]  }
  0xa6   :  { %3032 = vmatprep.mubr.bf16.mxu0 %v3650_v19  ;;  %v3588_v19 = vcombine.high %v103_v14, %v111_v15  ;;  %v4495_v63 = vld [vmem:[%s5823_s1 + $0x760] ss:$8 sps:$4 sm:$0xff]  }
  0xa7   :  { %2630 = vmatpush1.bf16.msra.mxu1 %v4414_v20  ;;  %v4462_v20 = vld [vmem:[%s5823_s1 + $0x310] ss:$8 sps:$4 sm:$0xff]   ;;  %v4504_v14 = vld [vmem:[%s5823_s1 + $0x380] ss:$8 sps:$4 sm:$0xff]  }
  0xa8   :  { %3082 = vmatpush1.bf16.msra.mxu0 %v4417_v21  ;;  %2631 = vmatprep.subr.bf16.mxu1 %v4422_v22  ;;  %v4465_v21 = vld [vmem:[%s5823_s1 + $0x710] ss:$8 sps:$4 sm:$0xff]   ;;  %v4470_v22 = vld [vmem:[%s5823_s1 + $0x324] ss:$8 sps:$4 sm:$0xff]   ;;  %v4507_v15 = vld [vmem:[%s5823_s1 + $0x780] ss:$8 sps:$4 sm:$0xff]  }
  0xa9   :  { %3083 = vmatprep.subr.bf16.mxu0 %v4425_v23  ;;  %v4473_v23 = vld [vmem:[%s5823_s1 + $0x724] ss:$8 sps:$4 sm:$0xff]  }
  0xaa   :  { %2581 = vmatmul.mubr.bf16.gmra.mrb[20].mxu1 %v3641_v27  ;;  %v123_v27 = vld [vmem:[%s5824_s0 + $0x150] sm:$0xff] }
  0xab   :  { %3033 = vmatmul.mubr.bf16.gmra.mrb[20].mxu0 %v3649_v28  ;;  %2632 = vmatpush1.bf16.msra.mxu1 %v4420_v24  ;;  %v4468_v24 = vld [vmem:[%s5823_s1 + $0x320] ss:$8 sps:$4 sm:$0xff]   ;;  %v3579_v28 = vcombine.low %v99_v10, %v107_v11  ;;  %v3595_v41 = vcombine.low %v115_v26, %v123_v27  ;;  %v171_v11 = vld [vmem:[%s5824_s0 + $0x2d0] sm:$0xff] }
  0xac   :  { %3084 = vmatpush1.bf16.msra.mxu0 %v4423_v31  ;;  %2633 = vmatprep.subr.bf16.mxu1 %v4428_v32  ;;  %v127_v31 = vld [vmem:[%s5824_s0 + $0x170] sm:$0xff] }
  0xad   :  { %3085 = vmatprep.subr.bf16.mxu0 %v4431_v33  ;;  %2590 = vmatprep.mubr.bf16.mxu1 %v3658_v34  ;;  %v4476_v32 = vld [vmem:[%s5823_s1 + $0x334] ss:$8 sps:$4 sm:$0xff]   ;;  %v3596_v34 = vcombine.high %v115_v26, %v123_v27 }
  0xae   :  { %3042 = vmatprep.mubr.bf16.mxu0 %v3666_v35  ;;  %v4479_v33 = vld [vmem:[%s5823_s1 + $0x734] ss:$8 sps:$4 sm:$0xff]   ;;  %v3604_v35 = vcombine.high %v119_v30, %v127_v31 }
  0xaf   :  { %2634 = vmatpush1.bf16.msra.mxu1 %v4426_v36  ;;  %v4474_v36 = vld [vmem:[%s5823_s1 + $0x330] ss:$8 sps:$4 sm:$0xff]  }
  0xb0   :  { %3086 = vmatpush1.bf16.msra.mxu0 %v4429_v37  ;;  %2635 = vmatprep.subr.bf16.mxu1 %v4434_v38  ;;  %v4477_v37 = vld [vmem:[%s5823_s1 + $0x730] ss:$8 sps:$4 sm:$0xff]   ;;  %v4482_v38 = vld [vmem:[%s5823_s1 + $0x344] ss:$8 sps:$4 sm:$0xff]  }
  0xb1   :  { %3087 = vmatprep.subr.bf16.mxu0 %v4437_v39  ;;  %v4485_v39 = vld [vmem:[%s5823_s1 + $0x744] ss:$8 sps:$4 sm:$0xff]   ;;  %v187_v27 = vld [vmem:[%s5824_s0 + $0x350] sm:$0xff] }
  0xb2   :  { %2591 = vmatmul.mubr.bf16.gmra.mrb[24].mxu1 %v3657_v42  ;;  %v3603_v42 = vcombine.low %v119_v30, %v127_v31  ;;  %v4516_v30 = vld [vmem:[%s5823_s1 + $0x3a0] ss:$8 sps:$4 sm:$0xff]  }
  0xb3   :  { %3043 = vmatmul.mubr.bf16.gmra.mrb[24].mxu0 %v3665_v43  ;;  %2636 = vmatpush1.bf16.msra.mxu1 %v4432_v46  ;;  %v139_v43 = vld [vmem:[%s5824_s0 + $0x1d0] sm:$0xff]  ;;  %v4480_v46 = vld [vmem:[%s5823_s1 + $0x340] ss:$8 sps:$4 sm:$0xff]  }
  0xb4   :  { %3088 = vmatpush1.bf16.msra.mxu0 %v4435_v47  ;;  %2637 = vmatprep.subr.bf16.mxu1 %v4440_v48  ;;  %v4483_v47 = vld [vmem:[%s5823_s1 + $0x740] ss:$8 sps:$4 sm:$0xff]   ;;  %v4488_v48 = vld [vmem:[%s5823_s1 + $0x354] ss:$8 sps:$4 sm:$0xff]  }
  0xb5   :  { %3089 = vmatprep.subr.bf16.mxu0 %v4443_v49  ;;  %2600 = vmatprep.mubr.bf16.mxu1 %v3674_v50  ;;  %v4491_v49 = vld [vmem:[%s5823_s1 + $0x754] ss:$8 sps:$4 sm:$0xff]   ;;  %v3612_v50 = vcombine.high %v131_v40, %v139_v43  ;;  %v4519_v31 = vld [vmem:[%s5823_s1 + $0x7a0] ss:$8 sps:$4 sm:$0xff]  }
  0xb6   :  { %3052 = vmatprep.mubr.bf16.mxu0 %v3682_v51  ;;  %v3620_v51 = vcombine.high %v135_v44, %v143_v45  ;;  %v199_v44 = vld [vmem:[%s5824_s0 + $0x3b0] sm:$0xff] }
  0xb7   :  { %2638 = vmatpush1.bf16.msra.mxu1 %v4438_v52  ;;  %v4486_v52 = vld [vmem:[%s5823_s1 + $0x350] ss:$8 sps:$4 sm:$0xff]  }
  0xb8   :  { %3090 = vmatpush1.bf16.msra.mxu0 %v4441_v53  ;;  %2639 = vmatprep.subr.bf16.mxu1 %v4446_v54  ;;  %v4489_v53 = vld [vmem:[%s5823_s1 + $0x750] ss:$8 sps:$4 sm:$0xff]   ;;  %v4494_v54 = vld [vmem:[%s5823_s1 + $0x364] ss:$8 sps:$4 sm:$0xff]  }
  0xb9   :  { %3091 = vmatprep.subr.bf16.mxu0 %v4449_v55  ;;  %v4497_v55 = vld [vmem:[%s5823_s1 + $0x764] ss:$8 sps:$4 sm:$0xff]   ;;  %v207_v45 = vld [vmem:[%s5824_s0 + $0x3f0] sm:$0xff] }
  0xba   :  { %2601 = vmatmul.mubr.bf16.gmra.mrb[28].mxu1 %v3673_v59  ;;  %v155_v59 = vld [vmem:[%s5824_s0 + $0x250] sm:$0xff] }
  0xbb   :  { %3053 = vmatmul.mubr.bf16.gmra.mrb[28].mxu0 %v3681_v60  ;;  %2640 = vmatpush1.bf16.msra.mxu1 %v4444_v56  ;;  %v147_v56 = vld [vmem:[%s5824_s0 + $0x210] sm:$0xff] }
  0xbc   :  { %3092 = vmatpush1.bf16.msra.mxu0 %v4447_v57  ;;  %2641 = vmatprep.subr.bf16.mxu1 %v4452_v0  ;;  %v3611_v57 = vcombine.low %v131_v40, %v139_v43  ;;  %v151_v60 = vld [vmem:[%s5824_s0 + $0x230] sm:$0xff] }
  0xbd   :  { %3093 = vmatprep.subr.bf16.mxu0 %v4455_v1  ;;  %2643 = vmatprep.mubr.bf16.mxu1 %v3564_v2  ;;  %v4500_v0 = vld [vmem:[%s5823_s1 + $0x374] ss:$8 sps:$4 sm:$0xff]   ;;  %v3628_v2 = vcombine.high %v147_v56, %v155_v59  ;;  %v3635_v10 = vcombine.low %v151_v60, %v159_v61 }
  0xbe   :  { %3095 = vmatprep.mubr.bf16.mxu0 %v3572_v3  ;;  %v4503_v1 = vld [vmem:[%s5823_s1 + $0x774] ss:$8 sps:$4 sm:$0xff]   ;;  %v3636_v3 = vcombine.high %v151_v60, %v159_v61 }
  0xbf   :  { %2642 = vmatpush1.bf16.msra.mxu1 %v4450_v4  ;;  %v4498_v4 = vld [vmem:[%s5823_s1 + $0x370] ss:$8 sps:$4 sm:$0xff]  }
  0xc0   :  { %3094 = vmatpush1.bf16.msra.mxu0 %v4453_v5  ;;  %2724 = vmatprep.subr.bf16.mxu1 %v4458_v6  ;;  %v4501_v5 = vld [vmem:[%s5823_s1 + $0x770] ss:$8 sps:$4 sm:$0xff]   ;;  %v4506_v6 = vld [vmem:[%s5823_s1 + $0x384] ss:$8 sps:$4 sm:$0xff]  }
  0xc1   :  { %3176 = vmatprep.subr.bf16.mxu0 %v4461_v7  ;;  %v4509_v7 = vld [vmem:[%s5823_s1 + $0x784] ss:$8 sps:$4 sm:$0xff]   ;;  %v195_v40 = vld [vmem:[%s5824_s0 + $0x390] sm:$0xff]  ;;  %v88_v60 = vld [vmem:[%s5824_s0 + $0x38] sm:$0xff] }
  0xc2   :  { %2644 = vmatmul.mubr.bf16.vlgmr.msra.gmra.mrb[0].mxu1 %v3563_v12  ;;  %v167_v12 = vld [vmem:[%s5824_s0 + $0x2b0] sm:$0xff]  ;;  %v96_v61 = vld [vmem:[%s5824_s0 + $0x78] sm:$0xff] }
  0xc3   :  { %3096 = vmatmul.mubr.bf16.vlgmr.msra.gmra.mrb[0].mxu0 %v3571_v13  ;;  %2725 = vmatpush1.bf16.msra.mxu1 %v4456_v8  ;;  %v163_v8 = vld [vmem:[%s5824_s0 + $0x290] sm:$0xff] }
  0xc4   :  { %3177 = vmatpush1.bf16.msra.mxu0 %v4459_v9  ;;  %2726 = vmatprep.subr.bf16.mxu1 %v4464_v16  ;;  %v3627_v9 = vcombine.low %v147_v56, %v155_v59  ;;  %v175_v13 = vld [vmem:[%s5824_s0 + $0x2f0] sm:$0xff]  ;;  %v84_v56 = vld [vmem:[%s5824_s0 + $0x18] sm:$0xff] }
  0xc5   :  { %3178 = vmatprep.subr.bf16.mxu0 %v4467_v17  ;;  %2653 = vmatprep.mubr.bf16.mxu1 %v3580_v18  ;;  %v4512_v16 = vld [vmem:[%s5823_s1 + $0x394] ss:$8 sps:$4 sm:$0xff]   ;;  %v3644_v18 = vcombine.high %v163_v8, %v171_v11  ;;  %v3651_v26 = vcombine.low %v167_v12, %v175_v13 }
  0xc6   :  { %3105 = vmatprep.mubr.bf16.mxu0 %v3588_v19  ;;  %v4515_v17 = vld [vmem:[%s5823_s1 + $0x794] ss:$8 sps:$4 sm:$0xff]   ;;  %v3652_v19 = vcombine.high %v167_v12, %v175_v13 }
  0xc7   :  { %2727 = vmatpush1.bf16.msra.mxu1 %v4462_v20  ;;  %v4510_v20 = vld [vmem:[%s5823_s1 + $0x390] ss:$8 sps:$4 sm:$0xff]  }
  0xc8   :  { %3179 = vmatpush1.bf16.msra.mxu0 %v4465_v21  ;;  %2728 = vmatprep.subr.bf16.mxu1 %v4470_v22  ;;  %v4513_v21 = vld [vmem:[%s5823_s1 + $0x790] ss:$8 sps:$4 sm:$0xff]   ;;  %v4518_v22 = vld [vmem:[%s5823_s1 + $0x3a4] ss:$8 sps:$4 sm:$0xff]  }
  0xc9   :  { %3180 = vmatprep.subr.bf16.mxu0 %v4473_v23  ;;  %v4521_v23 = vld [vmem:[%s5823_s1 + $0x7a4] ss:$8 sps:$4 sm:$0xff]   ;;  %v203_v43 = vld [vmem:[%s5824_s0 + $0x3d0] sm:$0xff]  ;;  %v92_v59 = vld [vmem:[%s5824_s0 + $0x58] sm:$0xff] }
  0xca   :  { %2654 = vmatmul.mubr.bf16.gmra.mrb[4].mxu1 %v3579_v28  ;;  %v183_v28 = vld [vmem:[%s5824_s0 + $0x330] sm:$0xff] }
  0xcb   :  { %3106 = vmatmul.mubr.bf16.gmra.mrb[4].mxu0 %v3587_v29  ;;  %2729 = vmatpush1.bf16.msra.mxu1 %v4468_v24  ;;  %v179_v24 = vld [vmem:[%s5824_s0 + $0x310] sm:$0xff] }
  0xcc   :  { %3181 = vmatpush1.bf16.msra.mxu0 %v4471_v25  ;;  %2730 = vmatprep.subr.bf16.mxu1 %v4476_v32  ;;  %v3643_v25 = vcombine.low %v163_v8, %v171_v11  ;;  %v191_v29 = vld [vmem:[%s5824_s0 + $0x370] sm:$0xff]  ;;  %v104_v8 = vld [vmem:[%s5824_s0 + $0xb8] sm:$0xff]  ;;  %v3573_v11 = vcombine.low %v88_v60, %v96_v61 }
  0xcd   :  { %3182 = vmatprep.subr.bf16.mxu0 %v4479_v33  ;;  %2663 = vmatprep.mubr.bf16.mxu1 %v3596_v34  ;;  %v4524_v32 = vld [vmem:[%s5823_s1 + $0x3b4] ss:$8 sps:$4 sm:$0xff]   ;;  %v3660_v34 = vcombine.high %v179_v24, %v187_v27 }
  0xce   :  { %3115 = vmatprep.mubr.bf16.mxu0 %v3604_v35  ;;  %v4527_v33 = vld [vmem:[%s5823_s1 + $0x7b4] ss:$8 sps:$4 sm:$0xff]   ;;  %v3668_v35 = vcombine.high %v183_v28, %v191_v29 }
  0xcf   :  { %2731 = vmatpush1.bf16.msra.mxu1 %v4474_v36  ;;  %v4522_v36 = vld [vmem:[%s5823_s1 + $0x3b0] ss:$8 sps:$4 sm:$0xff]  }
  0xd0   :  { %3183 = vmatpush1.bf16.msra.mxu0 %v4477_v37  ;;  %2732 = vmatprep.subr.bf16.mxu1 %v4482_v38  ;;  %v4525_v37 = vld [vmem:[%s5823_s1 + $0x7b0] ss:$8 sps:$4 sm:$0xff]   ;;  %v4530_v38 = vld [vmem:[%s5823_s1 + $0x3c4] ss:$8 sps:$4 sm:$0xff]  }
  0xd1   :  { %3184 = vmatprep.subr.bf16.mxu0 %v4485_v39  ;;  %v4533_v39 = vld [vmem:[%s5823_s1 + $0x7c4] ss:$8 sps:$4 sm:$0xff]  }
  0xd2   :  { %2664 = vmatmul.mubr.bf16.gmra.mrb[8].mxu1 %v3595_v41  ;;  %v3659_v41 = vcombine.low %v179_v24, %v187_v27  ;;  %v136_v24 = vld [vmem:[%s5824_s0 + $0x1b8] sm:$0xff] }
  0xd3   :  { %3116 = vmatmul.mubr.bf16.gmra.mrb[8].mxu0 %v3603_v42  ;;  %2733 = vmatpush1.bf16.msra.mxu1 %v4480_v46  ;;  %v3667_v42 = vcombine.low %v183_v28, %v191_v29  ;;  %v4528_v46 = vld [vmem:[%s5823_s1 + $0x3c0] ss:$8 sps:$4 sm:$0xff]  }
  0xd4   :  { %3185 = vmatpush1.bf16.msra.mxu0 %v4483_v47  ;;  %2734 = vmatprep.subr.bf16.mxu1 %v4488_v48  ;;  %v4531_v47 = vld [vmem:[%s5823_s1 + $0x7c0] ss:$8 sps:$4 sm:$0xff]   ;;  %v4536_v48 = vld [vmem:[%s5823_s1 + $0x3d4] ss:$8 sps:$4 sm:$0xff]  }
  0xd5   :  { %3186 = vmatprep.subr.bf16.mxu0 %v4491_v49  ;;  %2673 = vmatprep.mubr.bf16.mxu1 %v3612_v50  ;;  %v4539_v49 = vld [vmem:[%s5823_s1 + $0x7d4] ss:$8 sps:$4 sm:$0xff]   ;;  %v3676_v50 = vcombine.high %v195_v40, %v203_v43 }
  0xd6   :  { %3125 = vmatprep.mubr.bf16.mxu0 %v3620_v51  ;;  %v3684_v51 = vcombine.high %v199_v44, %v207_v45 }
  0xd7   :  { %2735 = vmatpush1.bf16.msra.mxu1 %v4486_v52  ;;  %v4534_v52 = vld [vmem:[%s5823_s1 + $0x3d0] ss:$8 sps:$4 sm:$0xff]  }
  0xd8   :  { %3187 = vmatpush1.bf16.msra.mxu0 %v4489_v53  ;;  %2736 = vmatprep.subr.bf16.mxu1 %v4494_v54  ;;  %v4537_v53 = vld [vmem:[%s5823_s1 + $0x7d0] ss:$8 sps:$4 sm:$0xff]   ;;  %v4542_v54 = vld [vmem:[%s5823_s1 + $0x3e4] ss:$8 sps:$4 sm:$0xff]  }
  0xd9   :  { %3188 = vmatprep.subr.bf16.mxu0 %v4497_v55  ;;  %v4545_v55 = vld [vmem:[%s5823_s1 + $0x7e4] ss:$8 sps:$4 sm:$0xff]  }
  0xda   :  { %2674 = vmatmul.mubr.bf16.gmra.mrb[12].mxu1 %v3611_v57  ;;  %v3675_v57 = vcombine.low %v195_v40, %v203_v43  ;;  %v168_v40 = vld [vmem:[%s5824_s0 + $0x2b8] sm:$0xff] }
  0xdb   :  { %3126 = vmatmul.mubr.bf16.gmra.mrb[12].mxu0 %v3619_v58  ;;  %2737 = vmatpush1.bf16.msra.mxu1 %v4492_v62  ;;  %v3683_v58 = vcombine.low %v199_v44, %v207_v45  ;;  %v4540_v62 = vld [vmem:[%s5823_s1 + $0x3e0] ss:$8 sps:$4 sm:$0xff]  }
  0xdc   :  { %3189 = vmatpush1.bf16.msra.mxu0 %v4495_v63  ;;  %2738 = vmatprep.subr.bf16.mxu1 %v4500_v0  ;;  %v4543_v63 = vld [vmem:[%s5823_s1 + $0x7e0] ss:$8 sps:$4 sm:$0xff]   ;;  %v4548_v0 = vld [vmem:[%s5823_s1 + $0x3f4] ss:$8 sps:$4 sm:$0xff]  }
  0xdd   :  { %3190 = vmatprep.subr.bf16.mxu0 %v4503_v1  ;;  %2683 = vmatprep.mubr.bf16.mxu1 %v3628_v2  ;;  %v4551_v1 = vld [vmem:[%s5823_s1 + $0x7f4] ss:$8 sps:$4 sm:$0xff]   ;;  %v3566_v2 = vcombine.high %v84_v56, %v92_v59 }
  0xde   :  { %3135 = vmatprep.mubr.bf16.mxu0 %v3636_v3  ;;  %v3574_v3 = vcombine.high %v88_v60, %v96_v61 }
  0xdf   :  { %2739 = vmatpush1.bf16.msra.mxu1 %v4498_v4  ;;  %v4546_v4 = vld [vmem:[%s5823_s1 + $0x3f0] ss:$8 sps:$4 sm:$0xff]  }
  0xe0   :  { %3191 = vmatpush1.bf16.msra.mxu0 %v4501_v5  ;;  %2740 = vmatprep.subr.bf16.mxu1 %v4506_v6  ;;  %v4549_v5 = vld [vmem:[%s5823_s1 + $0x7f0] ss:$8 sps:$4 sm:$0xff]  }
  0xe1   :  { %3192 = vmatprep.subr.bf16.mxu0 %v4509_v7  ;;  %v100_v6 = vld [vmem:[%s5824_s0 + $0x98] sm:$0xff] }
  0xe2   :  { %2684 = vmatmul.mubr.bf16.gmra.mrb[16].mxu1 %v3627_v9  ;;  %v108_v7 = vld [vmem:[%s5824_s0 + $0xd8] sm:$0xff] }
  0xe3   :  { %3136 = vmatmul.mubr.bf16.gmra.mrb[16].mxu0 %v3635_v10  ;;  %2741 = vmatpush1.bf16.msra.mxu1 %v4504_v14  ;;  %v112_v9 = vld [vmem:[%s5824_s0 + $0xf8] sm:$0xff]  ;;  %v3565_v10 = vcombine.low %v84_v56, %v92_v59  ;;  %v3582_v12 = vcombine.high %v100_v6, %v108_v7 }
  0xe4   :  { %3193 = vmatpush1.bf16.msra.mxu0 %v4507_v15  ;;  %2742 = vmatprep.subr.bf16.mxu1 %v4512_v16  ;;  %v3590_v13 = vcombine.high %v104_v8, %v112_v9  ;;  %v116_v14 = vld [vmem:[%s5824_s0 + $0x118] sm:$0xff] }
  0xe5   :  { %3194 = vmatprep.subr.bf16.mxu0 %v4515_v17  ;;  %2693 = vmatprep.mubr.bf16.mxu1 %v3644_v18  ;;  %v124_v15 = vld [vmem:[%s5824_s0 + $0x158] sm:$0xff]  ;;  %v3581_v18 = vcombine.low %v100_v6, %v108_v7 }
  0xe6   :  { %3145 = vmatprep.mubr.bf16.mxu0 %v3652_v19  ;;  %v120_v16 = vld [vmem:[%s5824_s0 + $0x138] sm:$0xff]  ;;  %v3589_v19 = vcombine.low %v104_v8, %v112_v9 }
  0xe7   :  { %2743 = vmatpush1.bf16.msra.mxu1 %v4510_v20  ;;  %v128_v17 = vld [vmem:[%s5824_s0 + $0x178] sm:$0xff]  ;;  %v3598_v20 = vcombine.high %v116_v14, %v124_v15 }
  0xe8   :  { %3195 = vmatpush1.bf16.msra.mxu0 %v4513_v21  ;;  %2744 = vmatprep.subr.bf16.mxu1 %v4518_v22  ;;  %v3606_v21 = vcombine.high %v120_v16, %v128_v17  ;;  %v132_v22 = vld [vmem:[%s5824_s0 + $0x198] sm:$0xff]  ;;  %v3605_v27 = vcombine.low %v120_v16, %v128_v17 }
  0xe9   :  { %3196 = vmatprep.subr.bf16.mxu0 %v4521_v23  ;;  %v140_v23 = vld [vmem:[%s5824_s0 + $0x1d8] sm:$0xff] }
  0xea   :  { %2694 = vmatmul.mubr.bf16.gmra.mrb[20].mxu1 %v3643_v25  ;;  %v144_v25 = vld [vmem:[%s5824_s0 + $0x1f8] sm:$0xff]  ;;  %v3614_v28 = vcombine.high %v132_v22, %v140_v23 }
  0xeb   :  { %3146 = vmatmul.mubr.bf16.gmra.mrb[20].mxu0 %v3651_v26  ;;  %2745 = vmatpush1.bf16.msra.mxu1 %v4516_v30  ;;  %v3597_v26 = vcombine.low %v116_v14, %v124_v15  ;;  %v3622_v29 = vcombine.high %v136_v24, %v144_v25  ;;  %v148_v30 = vld [vmem:[%s5824_s0 + $0x218] sm:$0xff] }
  0xec   :  { %3197 = vmatpush1.bf16.msra.mxu0 %v4519_v31  ;;  %2746 = vmatprep.subr.bf16.mxu1 %v4524_v32  ;;  %v156_v31 = vld [vmem:[%s5824_s0 + $0x258] sm:$0xff] }
  0xed   :  { %3198 = vmatprep.subr.bf16.mxu0 %v4527_v33  ;;  %2703 = vmatprep.mubr.bf16.mxu1 %v3660_v34  ;;  %v152_v32 = vld [vmem:[%s5824_s0 + $0x238] sm:$0xff]  ;;  %v3613_v34 = vcombine.low %v132_v22, %v140_v23 }
  0xee   :  { %3155 = vmatprep.mubr.bf16.mxu0 %v3668_v35  ;;  %v160_v33 = vld [vmem:[%s5824_s0 + $0x278] sm:$0xff]  ;;  %v3621_v35 = vcombine.low %v136_v24, %v144_v25 }
  0xef   :  { %2747 = vmatpush1.bf16.msra.mxu1 %v4522_v36  ;;  %v3630_v36 = vcombine.high %v148_v30, %v156_v31  ;;  %v3637_v43 = vcombine.low %v152_v32, %v160_v33  ;;  %v200_v56 = vld [vmem:[%s5824_s0 + $0x3b8] sm:$0xff] }
  0xf0   :  { %3199 = vmatpush1.bf16.msra.mxu0 %v4525_v37  ;;  %2748 = vmatprep.subr.bf16.mxu1 %v4530_v38  ;;  %v3638_v37 = vcombine.high %v152_v32, %v160_v33  ;;  %v164_v38 = vld [vmem:[%s5824_s0 + $0x298] sm:$0xff] }
  0xf1   :  { %3200 = vmatprep.subr.bf16.mxu0 %v4533_v39  ;;  %v172_v39 = vld [vmem:[%s5824_s0 + $0x2d8] sm:$0xff] }
  0xf2   :  { %2704 = vmatmul.mubr.bf16.gmra.mrb[24].mxu1 %v3659_v41  ;;  %v176_v41 = vld [vmem:[%s5824_s0 + $0x2f8] sm:$0xff]  ;;  %v3646_v44 = vcombine.high %v164_v38, %v172_v39 }
  0xf3   :  { %3156 = vmatmul.mubr.bf16.gmra.mrb[24].mxu0 %v3667_v42  ;;  %2749 = vmatpush1.bf16.msra.mxu1 %v4528_v46  ;;  %v3629_v42 = vcombine.low %v148_v30, %v156_v31  ;;  %v3654_v45 = vcombine.high %v168_v40, %v176_v41  ;;  %v180_v46 = vld [vmem:[%s5824_s0 + $0x318] sm:$0xff] }
  0xf4   :  { %3201 = vmatpush1.bf16.msra.mxu0 %v4531_v47  ;;  %2750 = vmatprep.subr.bf16.mxu1 %v4536_v48  ;;  %v188_v47 = vld [vmem:[%s5824_s0 + $0x358] sm:$0xff] }
  0xf5   :  { %3202 = vmatprep.subr.bf16.mxu0 %v4539_v49  ;;  %2713 = vmatprep.mubr.bf16.mxu1 %v3676_v50  ;;  %v184_v48 = vld [vmem:[%s5824_s0 + $0x338] sm:$0xff]  ;;  %v3645_v50 = vcombine.low %v164_v38, %v172_v39 }
  0xf6   :  { %3165 = vmatprep.mubr.bf16.mxu0 %v3684_v51  ;;  %v192_v49 = vld [vmem:[%s5824_s0 + $0x378] sm:$0xff]  ;;  %v3653_v51 = vcombine.low %v168_v40, %v176_v41 }
  0xf7   :  { %2751 = vmatpush1.bf16.msra.mxu1 %v4534_v52  ;;  %v3662_v52 = vcombine.high %v180_v46, %v188_v47  ;;  %v3669_v59 = vcombine.low %v184_v48, %v192_v49 }
  0xf8   :  { %3203 = vmatpush1.bf16.msra.mxu0 %v4537_v53  ;;  %2752 = vmatprep.subr.bf16.mxu1 %v4542_v54  ;;  %v3670_v53 = vcombine.high %v184_v48, %v192_v49  ;;  %v196_v54 = vld [vmem:[%s5824_s0 + $0x398] sm:$0xff] }
  0xf9   :  { %3204 = vmatprep.subr.bf16.mxu0 %v4545_v55  ;;  %v204_v55 = vld [vmem:[%s5824_s0 + $0x3d8] sm:$0xff] }
  0xfa   :  { %2714 = vmatmul.mubr.bf16.gmra.mrb[28].mxu1 %v3675_v57  ;;  %v208_v57 = vld [vmem:[%s5824_s0 + $0x3f8] sm:$0xff]  ;;  %v3678_v60 = vcombine.high %v196_v54, %v204_v55 }
  0xfb   :  { %3166 = vmatmul.mubr.bf16.gmra.mrb[28].mxu0 %v3683_v58  ;;  %2753 = vmatpush1.bf16.msra.mxu1 %v4540_v62  ;;  %v3661_v58 = vcombine.low %v180_v46, %v188_v47  ;;  %v3686_v61 = vcombine.high %v200_v56, %v208_v57  ;;  %v3677_v62 = vcombine.low %v196_v54, %v204_v55 }
  0xfc   :  { %3205 = vmatpush1.bf16.msra.mxu0 %v4543_v63  ;;  %2754 = vmatprep.subr.bf16.mxu1 %v4548_v0  ;;  %v3685_v63 = vcombine.low %v200_v56, %v208_v57 }
  0xfd   :  { %3206 = vmatprep.subr.bf16.mxu0 %v4551_v1  ;;  %2756 = vmatprep.mubr.bf16.mxu1 %v3566_v2 }
  0xfe   :  { %3208 = vmatprep.mubr.bf16.mxu0 %v3574_v3 }
  0xff   :  { %2755 = vmatpush1.bf16.msra.mxu1 %v4546_v4 }
 0x100   :  { %3207 = vmatpush1.bf16.msra.mxu0 %v4549_v5 }
 0x102   :  { %2757 = vmatmul.mubr.bf16.vlgmr.msra.gmra.mrb[0].mxu1 %v3565_v10 }
 0x103   :  { %3209 = vmatmul.mubr.bf16.vlgmr.msra.gmra.mrb[0].mxu0 %v3573_v11  ;;  %2766 = vmatprep.mubr.bf16.mxu1 %v3582_v12 }
 0x104   :  { %3218 = vmatprep.mubr.bf16.mxu0 %v3590_v13 }
 0x10a   :  { %2767 = vmatmul.mubr.bf16.gmra.mrb[4].mxu1 %v3581_v18 }
 0x10b   :  { %3219 = vmatmul.mubr.bf16.gmra.mrb[4].mxu0 %v3589_v19  ;;  %2776 = vmatprep.mubr.bf16.mxu1 %v3598_v20 }
 0x10c   :  { %3228 = vmatprep.mubr.bf16.mxu0 %v3606_v21 }
 0x112   :  { %2777 = vmatmul.mubr.bf16.gmra.mrb[8].mxu1 %v3597_v26 }
 0x113   :  { %3229 = vmatmul.mubr.bf16.gmra.mrb[8].mxu0 %v3605_v27  ;;  %2786 = vmatprep.mubr.bf16.mxu1 %v3614_v28 }
 0x114   :  { %3238 = vmatprep.mubr.bf16.mxu0 %v3622_v29 }
 0x11a   :  { %2787 = vmatmul.mubr.bf16.gmra.mrb[12].mxu1 %v3613_v34 }
 0x11b   :  { %3239 = vmatmul.mubr.bf16.gmra.mrb[12].mxu0 %v3621_v35  ;;  %2796 = vmatprep.mubr.bf16.mxu1 %v3630_v36 }
 0x11c   :  { %3248 = vmatprep.mubr.bf16.mxu0 %v3638_v37 }
 0x122   :  { %2797 = vmatmul.mubr.bf16.gmra.mrb[16].mxu1 %v3629_v42 }
 0x123   :  { %3249 = vmatmul.mubr.bf16.gmra.mrb[16].mxu0 %v3637_v43  ;;  %2806 = vmatprep.mubr.bf16.mxu1 %v3646_v44 }
 0x124   :  { %3258 = vmatprep.mubr.bf16.mxu0 %v3654_v45 }
 0x12a   :  { %2807 = vmatmul.mubr.bf16.gmra.mrb[20].mxu1 %v3645_v50 }
 0x12b   :  { %3259 = vmatmul.mubr.bf16.gmra.mrb[20].mxu0 %v3653_v51  ;;  %2816 = vmatprep.mubr.bf16.mxu1 %v3662_v52 }
 0x12c   :  { %3268 = vmatprep.mubr.bf16.mxu0 %v3670_v53 }
 0x132   :  { %2817 = vmatmul.mubr.bf16.gmra.mrb[24].mxu1 %v3661_v58 }
 0x133   :  { %3269 = vmatmul.mubr.bf16.gmra.mrb[24].mxu0 %v3669_v59  ;;  %2826 = vmatprep.mubr.bf16.mxu1 %v3678_v60 }
 0x134   :  { %3278 = vmatprep.mubr.bf16.mxu0 %v3686_v61 }
 0x13a   :  { %2827 = vmatmul.mubr.bf16.gmra.mrb[28].mxu1 %v3677_v62 }
 0x13b   :  { %3279 = vmatmul.mubr.bf16.gmra.mrb[28].mxu0 %v3685_v63 }
 0x1d5   :  { %v2758_v0 = vpop.f32.mrb[0].mxu1 }
 0x1d6   :  { %v3210_v1 = vpop.f32.mrb[0].mxu0  ;;  %v2760_v3 = vpop.f32.mrb[1].mxu1 }
 0x1d7   :  { %v3944_v2 = vadd.f32 %v3210_v1, %v2758_v0  ;;  %v3212_v4 = vpop.f32.mrb[1].mxu0  ;;  %v2762_v6 = vpop.f32.mrb[2].mxu1 }
 0x1d8   :  { %v3945_v5 = vadd.f32 %v3212_v4, %v2760_v3  ;;  %v3214_v7 = vpop.f32.mrb[2].mxu0  ;;  %v2764_v9 = vpop.f32.mrb[3].mxu1 }
 0x1d9   :  { %3388 = vst [vmem:[%s5825_s2] sm:$0xff] %v3944_v2  ;;  %v3946_v8 = vadd.f32 %v3214_v7, %v2762_v6  ;;  %v3216_v10 = vpop.f32.mrb[3].mxu0  ;;  %v3462_v12 = vmul.f32 %v3944_v2, %v3944_v2 }
 0x1da   :  { %3389 = vst [vmem:[%s5825_s2 + $0x8] sm:$0xff] %v3945_v5  ;;  %v3947_v11 = vadd.f32 %v3216_v10, %v2764_v9  ;;  %v3463_v15 = vmul.f32 %v3945_v5, %v3945_v5 }
 0x1db   :  { %3390 = vst [vmem:[%s5825_s2 + $0x10] sm:$0xff] %v3946_v8  ;;  %v3420_v13 = vadd.f32 %v3946_v8, %v3944_v2  ;;  %v3464_v14 = vmul.f32 %v3946_v8, %v3946_v8 }
 0x1dc   :  { %3391 = vst [vmem:[%s5825_s2 + $0x18] sm:$0xff] %v3947_v11  ;;  %v3441_v16 = vadd.f32 %v3947_v11, %v3945_v5  ;;  %v3465_v17 = vmul.f32 %v3947_v11, %v3947_v11 }
 0x1dd   :  { %v3494_v18 = vadd.f32 %v3464_v14, %v3462_v12  ;;  %v2768_v20 = vpop.f32.mrb[4].mxu1 }
 0x1de   :  { %v3515_v19 = vadd.f32 %v3465_v17, %v3463_v15  ;;  %v3220_v21 = vpop.f32.mrb[4].mxu0  ;;  %v2770_v23 = vpop.f32.mrb[5].mxu1 }
 0x1df   :  { %v3948_v22 = vadd.f32 %v3220_v21, %v2768_v20  ;;  %v3222_v24 = vpop.f32.mrb[5].mxu0  ;;  %v2772_v26 = vpop.f32.mrb[6].mxu1 }
 0x1e0   :  { %v3949_v25 = vadd.f32 %v3222_v24, %v2770_v23  ;;  %v3224_v27 = vpop.f32.mrb[6].mxu0  ;;  %v2774_v31 = vpop.f32.mrb[7].mxu1 }
 0x1e1   :  { %3392 = vst [vmem:[%s5825_s2 + $0x20] sm:$0xff] %v3948_v22  ;;  %v3421_v28 = vadd.f32 %v3948_v22, %v3420_v13  ;;  %v3466_v29 = vmul.f32 %v3948_v22, %v3948_v22  ;;  %v3950_v30 = vadd.f32 %v3224_v27, %v2772_v26  ;;  %v3226_v32 = vpop.f32.mrb[7].mxu0 }
 0x1e2   :  { %3393 = vst [vmem:[%s5825_s2 + $0x28] sm:$0xff] %v3949_v25  ;;  %v3442_v33 = vadd.f32 %v3949_v25, %v3441_v16  ;;  %v3467_v34 = vmul.f32 %v3949_v25, %v3949_v25  ;;  %v3951_v35 = vadd.f32 %v3226_v32, %v2774_v31 }
 0x1e3   :  { %v3495_v36 = vadd.f32 %v3494_v18, %v3466_v29  ;;  %3394 = vst [vmem:[%s5825_s2 + $0x30] sm:$0xff] %v3950_v30  ;;  %v3422_v37 = vadd.f32 %v3950_v30, %v3421_v28  ;;  %v3468_v38 = vmul.f32 %v3950_v30, %v3950_v30 }
 0x1e4   :  { %v3516_v39 = vadd.f32 %v3515_v19, %v3467_v34  ;;  %3395 = vst [vmem:[%s5825_s2 + $0x38] sm:$0xff] %v3951_v35  ;;  %v3443_v40 = vadd.f32 %v3951_v35, %v3442_v33  ;;  %v3469_v41 = vmul.f32 %v3951_v35, %v3951_v35 }
 0x1e5   :  { %v3496_v42 = vadd.f32 %v3495_v36, %v3468_v38  ;;  %v2778_v44 = vpop.f32.mrb[8].mxu1 }
 0x1e6   :  { %v3517_v43 = vadd.f32 %v3516_v39, %v3469_v41  ;;  %v3230_v45 = vpop.f32.mrb[8].mxu0  ;;  %v2780_v47 = vpop.f32.mrb[9].mxu1 }
 0x1e7   :  { %v3952_v46 = vadd.f32 %v3230_v45, %v2778_v44  ;;  %v3232_v48 = vpop.f32.mrb[9].mxu0  ;;  %v2782_v50 = vpop.f32.mrb[10].mxu1 }
 0x1e8   :  { %v3953_v49 = vadd.f32 %v3232_v48, %v2780_v47  ;;  %v3234_v51 = vpop.f32.mrb[10].mxu0  ;;  %v2784_v55 = vpop.f32.mrb[11].mxu1 }
 0x1e9   :  { %3396 = vst [vmem:[%s5825_s2 + $0x40] sm:$0xff] %v3952_v46  ;;  %v3423_v52 = vadd.f32 %v3952_v46, %v3422_v37  ;;  %v3470_v53 = vmul.f32 %v3952_v46, %v3952_v46  ;;  %v3954_v54 = vadd.f32 %v3234_v51, %v2782_v50  ;;  %v3236_v56 = vpop.f32.mrb[11].mxu0 }
 0x1ea   :  { %3397 = vst [vmem:[%s5825_s2 + $0x48] sm:$0xff] %v3953_v49  ;;  %v3444_v57 = vadd.f32 %v3953_v49, %v3443_v40  ;;  %v3471_v58 = vmul.f32 %v3953_v49, %v3953_v49  ;;  %v3955_v59 = vadd.f32 %v3236_v56, %v2784_v55 }
 0x1eb   :  { %v3497_v60 = vadd.f32 %v3496_v42, %v3470_v53  ;;  %3398 = vst [vmem:[%s5825_s2 + $0x50] sm:$0xff] %v3954_v54  ;;  %v3424_v61 = vadd.f32 %v3954_v54, %v3423_v52  ;;  %v3472_v62 = vmul.f32 %v3954_v54, %v3954_v54 }
 0x1ec   :  { %v3518_v63 = vadd.f32 %v3517_v43, %v3471_v58  ;;  %3399 = vst [vmem:[%s5825_s2 + $0x58] sm:$0xff] %v3955_v59  ;;  %v3445_v0 = vadd.f32 %v3955_v59, %v3444_v57  ;;  %v3473_v1 = vmul.f32 %v3955_v59, %v3955_v59 }
 0x1ed   :  { %v3498_v2 = vadd.f32 %v3497_v60, %v3472_v62  ;;  %v2788_v4 = vpop.f32.mrb[12].mxu1 }
 0x1ee   :  { %v3519_v3 = vadd.f32 %v3518_v63, %v3473_v1  ;;  %v3240_v5 = vpop.f32.mrb[12].mxu0  ;;  %v2790_v7 = vpop.f32.mrb[13].mxu1 }
 0x1ef   :  { %v3956_v6 = vadd.f32 %v3240_v5, %v2788_v4  ;;  %v3242_v8 = vpop.f32.mrb[13].mxu0  ;;  %v2792_v10 = vpop.f32.mrb[14].mxu1 }
 0x1f0   :  { %v3957_v9 = vadd.f32 %v3242_v8, %v2790_v7  ;;  %v3244_v11 = vpop.f32.mrb[14].mxu0  ;;  %v2794_v15 = vpop.f32.mrb[15].mxu1 }
 0x1f1   :  { %3400 = vst [vmem:[%s5825_s2 + $0x60] sm:$0xff] %v3956_v6  ;;  %v3425_v12 = vadd.f32 %v3956_v6, %v3424_v61  ;;  %v3474_v13 = vmul.f32 %v3956_v6, %v3956_v6  ;;  %v3958_v14 = vadd.f32 %v3244_v11, %v2792_v10  ;;  %v3246_v16 = vpop.f32.mrb[15].mxu0 }
 0x1f2   :  { %3401 = vst [vmem:[%s5825_s2 + $0x68] sm:$0xff] %v3957_v9  ;;  %v3446_v17 = vadd.f32 %v3957_v9, %v3445_v0  ;;  %v3475_v18 = vmul.f32 %v3957_v9, %v3957_v9  ;;  %v3959_v19 = vadd.f32 %v3246_v16, %v2794_v15 }
 0x1f3   :  { %v3499_v20 = vadd.f32 %v3498_v2, %v3474_v13  ;;  %3402 = vst [vmem:[%s5825_s2 + $0x70] sm:$0xff] %v3958_v14  ;;  %v3426_v21 = vadd.f32 %v3958_v14, %v3425_v12  ;;  %v3476_v22 = vmul.f32 %v3958_v14, %v3958_v14 }
 0x1f4   :  { %v3520_v23 = vadd.f32 %v3519_v3, %v3475_v18  ;;  %3403 = vst [vmem:[%s5825_s2 + $0x78] sm:$0xff] %v3959_v19  ;;  %v3447_v24 = vadd.f32 %v3959_v19, %v3446_v17  ;;  %v3477_v25 = vmul.f32 %v3959_v19, %v3959_v19 }
 0x1f5   :  { %v3500_v26 = vadd.f32 %v3499_v20, %v3476_v22  ;;  %v2798_v28 = vpop.f32.mrb[16].mxu1 }
 0x1f6   :  { %v3521_v27 = vadd.f32 %v3520_v23, %v3477_v25  ;;  %v3250_v29 = vpop.f32.mrb[16].mxu0  ;;  %v2800_v31 = vpop.f32.mrb[17].mxu1 }
 0x1f7   :  { %v3960_v30 = vadd.f32 %v3250_v29, %v2798_v28  ;;  %v3252_v32 = vpop.f32.mrb[17].mxu0  ;;  %v2802_v34 = vpop.f32.mrb[18].mxu1 }
 0x1f8   :  { %v3961_v33 = vadd.f32 %v3252_v32, %v2800_v31  ;;  %v3254_v35 = vpop.f32.mrb[18].mxu0  ;;  %v2804_v39 = vpop.f32.mrb[19].mxu1 }
 0x1f9   :  { %3404 = vst [vmem:[%s5825_s2 + $0x80] sm:$0xff] %v3960_v30  ;;  %v3427_v36 = vadd.f32 %v3960_v30, %v3426_v21  ;;  %v3478_v37 = vmul.f32 %v3960_v30, %v3960_v30  ;;  %v3962_v38 = vadd.f32 %v3254_v35, %v2802_v34  ;;  %v3256_v40 = vpop.f32.mrb[19].mxu0 }
 0x1fa   :  { %3405 = vst [vmem:[%s5825_s2 + $0x88] sm:$0xff] %v3961_v33  ;;  %v3448_v41 = vadd.f32 %v3961_v33, %v3447_v24  ;;  %v3479_v42 = vmul.f32 %v3961_v33, %v3961_v33  ;;  %v3963_v43 = vadd.f32 %v3256_v40, %v2804_v39 }
 0x1fb   :  { %v3501_v44 = vadd.f32 %v3500_v26, %v3478_v37  ;;  %3406 = vst [vmem:[%s5825_s2 + $0x90] sm:$0xff] %v3962_v38  ;;  %v3428_v45 = vadd.f32 %v3962_v38, %v3427_v36  ;;  %v3480_v46 = vmul.f32 %v3962_v38, %v3962_v38 }
 0x1fc   :  { %v3522_v47 = vadd.f32 %v3521_v27, %v3479_v42  ;;  %3407 = vst [vmem:[%s5825_s2 + $0x98] sm:$0xff] %v3963_v43  ;;  %v3449_v48 = vadd.f32 %v3963_v43, %v3448_v41  ;;  %v3481_v49 = vmul.f32 %v3963_v43, %v3963_v43 }
 0x1fd   :  { %v3502_v50 = vadd.f32 %v3501_v44, %v3480_v46  ;;  %v2808_v52 = vpop.f32.mrb[20].mxu1 }
 0x1fe   :  { %v3523_v51 = vadd.f32 %v3522_v47, %v3481_v49  ;;  %v3260_v53 = vpop.f32.mrb[20].mxu0  ;;  %v2810_v55 = vpop.f32.mrb[21].mxu1 }
 0x1ff   :  { %v3964_v54 = vadd.f32 %v3260_v53, %v2808_v52  ;;  %v3262_v56 = vpop.f32.mrb[21].mxu0  ;;  %v2812_v58 = vpop.f32.mrb[22].mxu1 }
 0x200   :  { %v3965_v57 = vadd.f32 %v3262_v56, %v2810_v55  ;;  %v3264_v59 = vpop.f32.mrb[22].mxu0  ;;  %v2814_v63 = vpop.f32.mrb[23].mxu1 }
 0x201   :  { %3408 = vst [vmem:[%s5825_s2 + $0xa0] sm:$0xff] %v3964_v54  ;;  %v3429_v60 = vadd.f32 %v3964_v54, %v3428_v45  ;;  %v3482_v61 = vmul.f32 %v3964_v54, %v3964_v54  ;;  %v3966_v62 = vadd.f32 %v3264_v59, %v2812_v58  ;;  %v3266_v0 = vpop.f32.mrb[23].mxu0 }
 0x202   :  { %3409 = vst [vmem:[%s5825_s2 + $0xa8] sm:$0xff] %v3965_v57  ;;  %v3450_v1 = vadd.f32 %v3965_v57, %v3449_v48  ;;  %v3483_v2 = vmul.f32 %v3965_v57, %v3965_v57  ;;  %v3967_v3 = vadd.f32 %v3266_v0, %v2814_v63 }
 0x203   :  { %v3503_v4 = vadd.f32 %v3502_v50, %v3482_v61  ;;  %3410 = vst [vmem:[%s5825_s2 + $0xb0] sm:$0xff] %v3966_v62  ;;  %v3430_v5 = vadd.f32 %v3966_v62, %v3429_v60  ;;  %v3484_v6 = vmul.f32 %v3966_v62, %v3966_v62 }
 0x204   :  { %v3524_v7 = vadd.f32 %v3523_v51, %v3483_v2  ;;  %3411 = vst [vmem:[%s5825_s2 + $0xb8] sm:$0xff] %v3967_v3  ;;  %v3451_v8 = vadd.f32 %v3967_v3, %v3450_v1  ;;  %v3485_v9 = vmul.f32 %v3967_v3, %v3967_v3 }
 0x205   :  { %v3504_v10 = vadd.f32 %v3503_v4, %v3484_v6  ;;  %v2818_v12 = vpop.f32.mrb[24].mxu1 }
 0x206   :  { %v3525_v11 = vadd.f32 %v3524_v7, %v3485_v9  ;;  %v3270_v13 = vpop.f32.mrb[24].mxu0  ;;  %v2820_v15 = vpop.f32.mrb[25].mxu1 }
 0x207   :  { %v3968_v14 = vadd.f32 %v3270_v13, %v2818_v12  ;;  %v3272_v16 = vpop.f32.mrb[25].mxu0  ;;  %v2822_v18 = vpop.f32.mrb[26].mxu1 }
 0x208   :  { %v3969_v17 = vadd.f32 %v3272_v16, %v2820_v15  ;;  %v3274_v19 = vpop.f32.mrb[26].mxu0  ;;  %v2824_v23 = vpop.f32.mrb[27].mxu1 }
 0x209   :  { %3412 = vst [vmem:[%s5825_s2 + $0xc0] sm:$0xff] %v3968_v14  ;;  %v3431_v20 = vadd.f32 %v3968_v14, %v3430_v5  ;;  %v3486_v21 = vmul.f32 %v3968_v14, %v3968_v14  ;;  %v3970_v22 = vadd.f32 %v3274_v19, %v2822_v18  ;;  %v3276_v24 = vpop.f32.mrb[27].mxu0 }
 0x20a   :  { %3413 = vst [vmem:[%s5825_s2 + $0xc8] sm:$0xff] %v3969_v17  ;;  %v3452_v25 = vadd.f32 %v3969_v17, %v3451_v8  ;;  %v3487_v26 = vmul.f32 %v3969_v17, %v3969_v17  ;;  %v3971_v27 = vadd.f32 %v3276_v24, %v2824_v23 }
 0x20b   :  { %v3505_v28 = vadd.f32 %v3504_v10, %v3486_v21  ;;  %3414 = vst [vmem:[%s5825_s2 + $0xd0] sm:$0xff] %v3970_v22  ;;  %v3432_v29 = vadd.f32 %v3970_v22, %v3431_v20  ;;  %v3488_v30 = vmul.f32 %v3970_v22, %v3970_v22 }
 0x20c   :  { %v3526_v31 = vadd.f32 %v3525_v11, %v3487_v26  ;;  %3415 = vst [vmem:[%s5825_s2 + $0xd8] sm:$0xff] %v3971_v27  ;;  %v3453_v32 = vadd.f32 %v3971_v27, %v3452_v25  ;;  %v3489_v33 = vmul.f32 %v3971_v27, %v3971_v27 }
 0x20d   :  { %v3506_v34 = vadd.f32 %v3505_v28, %v3488_v30  ;;  %v2828_v36 = vpop.f32.mrb[28].mxu1 }
 0x20e   :  { %v3527_v35 = vadd.f32 %v3526_v31, %v3489_v33  ;;  %v3280_v37 = vpop.f32.mrb[28].mxu0  ;;  %v2830_v39 = vpop.f32.mrb[29].mxu1 }
 0x20f   :  { %v3972_v38 = vadd.f32 %v3280_v37, %v2828_v36  ;;  %v3282_v40 = vpop.f32.mrb[29].mxu0  ;;  %v2832_v42 = vpop.f32.mrb[30].mxu1 }
 0x210   :  { %v3973_v41 = vadd.f32 %v3282_v40, %v2830_v39  ;;  %v3284_v43 = vpop.f32.mrb[30].mxu0  ;;  %v2834_v47 = vpop.f32.mrb[31].mxu1 }
 0x211   :  { %3416 = vst [vmem:[%s5825_s2 + $0xe0] sm:$0xff] %v3972_v38  ;;  %v3433_v44 = vadd.f32 %v3972_v38, %v3432_v29  ;;  %v3490_v45 = vmul.f32 %v3972_v38, %v3972_v38  ;;  %v3974_v46 = vadd.f32 %v3284_v43, %v2832_v42  ;;  %v3286_v48 = vpop.f32.mrb[31].mxu0 }
 0x212   :  { %3417 = vst [vmem:[%s5825_s2 + $0xe8] sm:$0xff] %v3973_v41  ;;  %v3454_v49 = vadd.f32 %v3973_v41, %v3453_v32  ;;  %v3491_v50 = vmul.f32 %v3973_v41, %v3973_v41  ;;  %v3975_v51 = vadd.f32 %v3286_v48, %v2834_v47 }
 0x213   :  { %v3507_v52 = vadd.f32 %v3506_v34, %v3490_v45  ;;  %3418 = vst [vmem:[%s5825_s2 + $0xf0] sm:$0xff] %v3974_v46  ;;  %v3434_v53 = vadd.f32 %v3974_v46, %v3433_v44  ;;  %v3492_v54 = vmul.f32 %v3974_v46, %v3974_v46 }
 0x214   :  { %v3528_v55 = vadd.f32 %v3527_v35, %v3491_v50  ;;  %3419 = vst [vmem:[%s5825_s2 + $0xf8] sm:$0xff] %v3975_v51  ;;  %v3455_v56 = vadd.f32 %v3975_v51, %v3454_v49  ;;  %v3493_v57 = vmul.f32 %v3975_v51, %v3975_v51 }
 0x215   :  { %v3435_v58 = vrot.slane %v3434_v53, 4  ;;  %v3508_v59 = vadd.f32 %v3507_v52, %v3492_v54 }
 0x216   :  { %v3456_v60 = vrot.slane %v3455_v56, 4  ;;  %v3529_v61 = vadd.f32 %v3528_v55, %v3493_v57 }
 0x217   :  { %v3436_v62 = vadd.f32 %v3435_v58, %v3434_v53  ;;  %v3509_v63 = vrot.slane %v3508_v59, 4 }
 0x218   :  { %v3457_v0 = vadd.f32 %v3456_v60, %v3455_v56  ;;  %v3530_v1 = vrot.slane %v3529_v61, 4 }
 0x219   :  { %v3437_v2 = vrot.slane %v3436_v62, 2  ;;  %v3510_v3 = vadd.f32 %v3509_v63, %v3508_v59 }
 0x21a   :  { %v3458_v4 = vrot.slane %v3457_v0, 2  ;;  %v3531_v5 = vadd.f32 %v3530_v1, %v3529_v61 }
 0x21b   :  { %v3438_v6 = vadd.f32 %v3437_v2, %v3436_v62  ;;  %v3511_v7 = vrot.slane %v3510_v3, 2 }
 0x21c   :  { %v3459_v8 = vadd.f32 %v3458_v4, %v3457_v0  ;;  %v3532_v9 = vrot.slane %v3531_v5, 2 }
 0x21d   :  { %v3439_v10 = vrot.slane %v3438_v6, 1  ;;  %v3512_v11 = vadd.f32 %v3511_v7, %v3510_v3 }
 0x21e   :  { %v3460_v12 = vrot.slane %v3459_v8, 1  ;;  %v3533_v13 = vadd.f32 %v3532_v9, %v3531_v5 }
 0x21f   :  { %v3513_v14 = vrot.slane %v3512_v11, 1  ;;  %v3440_v16 = vadd.f32 %v3439_v10, %v3438_v6 }
 0x220   :  { %v3534_v15 = vrot.slane %v3533_v13, 1  ;;  %v3461_v18 = vadd.f32 %v3460_v12, %v3459_v8 }
 0x221   :  { %v3514_v17 = vadd.f32 %v3513_v14, %v3512_v11 }
 0x222   :  { %v3535_v19 = vadd.f32 %v3534_v15, %v3533_v13 }
 0x223   :  { %v3537_v20 = vsel %vm3536_vm0, %v3440_v16, %v3514_v17 }
 0x224   :  { %v3538_v21 = vsel %vm3536_vm0, %v3461_v18, %v3535_v19 }
 0x225   :  { %v3541_v22 = vcombine.low %v3537_v20, %v3538_v21 }
 0x227   :  { %3943 = vst.sshfl [vmem:[%s5826_s3] sm:$0x33 pattern:$0x76325410] %v3541_v22 }

// kernel: discriminator_forward.14
= control target key start
LH: loop header
LB: loop body
LE: loop exit
PB: predicated region body
PF: predicated region fallthrough
CT: control target
= control target key end

     0   :  { %v32_v0 = vlaneseq  ;;  %s360_s1 = inlined_call_operand.vmem [shape: f32[1,512], index: 1, kind: input, shape index: {}]   ;;  %s361_s2 = inlined_call_operand.vmem [shape: f32[1,512], index: 2, kind: input, shape index: {}]   ;;  %s362_s0 = inlined_call_operand.vmem [shape: f32[32,512], index: 0, kind: input, shape index: {}]   ;;  %s363_s3 = inlined_call_operand.vmem [shape: bf16[32,512], index: 3, kind: output, shape index: {}]  }
   0x1   :  { %v30_v2 = vld [vmem:[%s360_s1] sm:$0xf]  ;;  %v15_v5 = vld [vmem:[%s362_s0 + $0x8] sm:$0xff]  ;;  %v16_v10 = vld [vmem:[%s362_s0 + $0x10] sm:$0xff] }
   0x2   :  { %v33_v1 = vshrl.u32 %v32_v0, 7  ;;  %v68_v3 = vld [vmem:[%s361_s2] sm:$0xf]  ;;  %v19_v12 = vld [vmem:[%s362_s0 + $0x28] sm:$0xff]  ;;  %v17_v17 = vld [vmem:[%s362_s0 + $0x18] sm:$0xff] }
   0x3   :  { %v14_v4 = vld [vmem:[%s362_s0] sm:$0xff]  ;;  %v20_v18 = vld [vmem:[%s362_s0 + $0x30] sm:$0xff]  ;;  %v21_v19 = vld [vmem:[%s362_s0 + $0x38] sm:$0xff] }
   0x4   :  { %v34_v6 = vsub.s32 0, %v33_v1  ;;  %v38_v7 = vsub.s32 1, %v33_v1  ;;  %v42_v8 = vsub.s32 2, %v33_v1  ;;  %v46_v9 = vsub.s32 3, %v33_v1  ;;  %v18_v11 = vld [vmem:[%s362_s0 + $0x20] sm:$0xff]  ;;  %v23_v37 = vld [vmem:[%s362_s0 + $0x48] sm:$0xff] }
   0x5   :  { %v22_v32 = vld [vmem:[%s362_s0 + $0x40] sm:$0xff]  ;;  %v24_v54 = vld [vmem:[%s362_s0 + $0x50] sm:$0xff]  ;;  %v25_v59 = vld [vmem:[%s362_s0 + $0x58] sm:$0xff] }
   0x6   :  { %v255_v13 = vrot.slane %v30_v2, %v34_v6  ;;  %v257_v14 = vrot.slane %v30_v2, %v38_v7  ;;  %v259_v15 = vrot.slane %v68_v3, %v34_v6  ;;  %v261_v16 = vrot.slane %v68_v3, %v38_v7  ;;  %v26_v60 = vld [vmem:[%s362_s0 + $0x60] sm:$0xff]  ;;  %v27_v1 = vld [vmem:[%s362_s0 + $0x68] sm:$0xff] }
   0x7   :  { %v272_v20 = vrot.slane %v30_v2, %v42_v8  ;;  %v274_v21 = vrot.slane %v30_v2, %v46_v9  ;;  %v276_v22 = vrot.slane %v68_v3, %v42_v8  ;;  %v278_v23 = vrot.slane %v68_v3, %v46_v9  ;;  %v28_v2 = vld [vmem:[%s362_s0 + $0x70] sm:$0xff] }
   0x8   :  { %v52_v24 = vmul.f32 %v255_v13, %v14_v4  ;;  %v53_v25 = vmul.f32 %v257_v14, %v15_v5  ;;  %v56_v26 = vmul.f32 %v255_v13, %v18_v11  ;;  %v57_v27 = vmul.f32 %v257_v14, %v19_v12  ;;  %v29_v11 = vld [vmem:[%s362_s0 + $0x78] sm:$0xff] }
   0x9   :  { %v54_v28 = vmul.f32 %v272_v20, %v16_v10  ;;  %v55_v29 = vmul.f32 %v274_v21, %v17_v17  ;;  %v58_v30 = vmul.f32 %v272_v20, %v20_v18  ;;  %v59_v31 = vmul.f32 %v274_v21, %v21_v19 }
   0xa   :  { %v90_v33 = vadd.f32 %v259_v15, %v52_v24  ;;  %v91_v34 = vadd.f32 %v261_v16, %v53_v25  ;;  %v94_v35 = vadd.f32 %v259_v15, %v56_v26  ;;  %v95_v36 = vadd.f32 %v261_v16, %v57_v27 }
   0xb   :  { %v92_v38 = vadd.f32 %v276_v22, %v54_v28  ;;  %v93_v39 = vadd.f32 %v278_v23, %v55_v29  ;;  %v96_v40 = vadd.f32 %v276_v22, %v58_v30  ;;  %v97_v41 = vadd.f32 %v278_v23, %v59_v31 }
   0xc   :  { %v106_v42 = vmul.f32 0.2, %v90_v33  ;;  %v107_v43 = vmul.f32 0.2, %v91_v34  ;;  %v110_v44 = vmul.f32 0.2, %v94_v35  ;;  %v60_v45 = vmul.f32 %v255_v13, %v22_v32 }
   0xd   :  { %v108_v46 = vmul.f32 0.2, %v92_v38  ;;  %v109_v47 = vmul.f32 0.2, %v93_v39  ;;  %v111_v48 = vmul.f32 0.2, %v95_v36  ;;  %v61_v49 = vmul.f32 %v257_v14, %v23_v37 }
   0xe   :  { %v122_v50 = vmax.f32 %v90_v33, %v106_v42  ;;  %v123_v51 = vmax.f32 %v91_v34, %v107_v43  ;;  %v126_v52 = vmax.f32 %v94_v35, %v110_v44  ;;  %v112_v53 = vmul.f32 0.2, %v96_v40 }
   0xf   :  { %v124_v55 = vmax.f32 %v92_v38, %v108_v46  ;;  %v125_v56 = vmax.f32 %v93_v39, %v109_v47  ;;  %v127_v57 = vmax.f32 %v95_v36, %v111_v48  ;;  %v113_v58 = vmul.f32 0.2, %v97_v41 }
  0x10   :  { %v206_v61 = vpack.c.bf16 %v123_v51, %v122_v50  ;;  %v128_v62 = vmax.f32 %v96_v40, %v112_v53  ;;  %v98_v63 = vadd.f32 %v259_v15, %v60_v45  ;;  %v99_v0 = vadd.f32 %v261_v16, %v61_v49 }
  0x11   :  { %v207_v3 = vpack.c.bf16 %v125_v56, %v124_v55  ;;  %v208_v4 = vpack.c.bf16 %v127_v57, %v126_v52  ;;  %v129_v5 = vmax.f32 %v97_v41, %v113_v58  ;;  %v62_v6 = vmul.f32 %v272_v20, %v24_v54 }
  0x12   :  { %186 = vst [vmem:[%s363_s3] sm:$0xff] %v206_v61  ;;  %v114_v7 = vmul.f32 0.2, %v98_v63  ;;  %v115_v8 = vmul.f32 0.2, %v99_v0  ;;  %v63_v9 = vmul.f32 %v274_v21, %v25_v59  ;;  %v64_v10 = vmul.f32 %v255_v13, %v26_v60 }
  0x13   :  { %187 = vst [vmem:[%s363_s3 + $0x8] sm:$0xff] %v207_v3  ;;  %188 = vst [vmem:[%s363_s3 + $0x10] sm:$0xff] %v208_v4  ;;  %v209_v12 = vpack.c.bf16 %v129_v5, %v128_v62  ;;  %v100_v17 = vadd.f32 %v276_v22, %v62_v6  ;;  %v65_v18 = vmul.f32 %v257_v14, %v27_v1 }
  0x14   :  { %v66_v19 = vmul.f32 %v272_v20, %v28_v2  ;;  %v130_v13 = vmax.f32 %v98_v63, %v114_v7  ;;  %v131_v24 = vmax.f32 %v99_v0, %v115_v8  ;;  %v101_v25 = vadd.f32 %v278_v23, %v63_v9 }
  0x15   :  { %v102_v26 = vadd.f32 %v259_v15, %v64_v10  ;;  %189 = vst [vmem:[%s363_s3 + $0x18] sm:$0xff] %v209_v12  ;;  %v116_v27 = vmul.f32 0.2, %v100_v17  ;;  %v103_v28 = vadd.f32 %v261_v16, %v65_v18  ;;  %v67_v29 = vmul.f32 %v274_v21, %v29_v11 }
  0x16   :  { %v104_v30 = vadd.f32 %v276_v22, %v66_v19  ;;  %v210_v14 = vpack.c.bf16 %v131_v24, %v130_v13  ;;  %v117_v31 = vmul.f32 0.2, %v101_v25 }
  0x17   :  { %v118_v20 = vmul.f32 0.2, %v102_v26  ;;  %v132_v32 = vmax.f32 %v100_v17, %v116_v27  ;;  %v119_v33 = vmul.f32 0.2, %v103_v28  ;;  %v105_v34 = vadd.f32 %v278_v23, %v67_v29 }
  0x18   :  { %v120_v35 = vmul.f32 0.2, %v104_v30  ;;  %190 = vst [vmem:[%s363_s3 + $0x20] sm:$0xff] %v210_v14  ;;  %v133_v15 = vmax.f32 %v101_v25, %v117_v31 }
  0x19   :  { %v134_v36 = vmax.f32 %v102_v26, %v118_v20  ;;  %v135_v37 = vmax.f32 %v103_v28, %v119_v33  ;;  %v121_v16 = vmul.f32 0.2, %v105_v34 }
  0x1a   :  { %v136_v38 = vmax.f32 %v104_v30, %v120_v35  ;;  %v211_v21 = vpack.c.bf16 %v133_v15, %v132_v32 }
  0x1b   :  { %v212_v39 = vpack.c.bf16 %v135_v37, %v134_v36  ;;  %v137_v22 = vmax.f32 %v105_v34, %v121_v16 }
  0x1c   :  { %191 = vst [vmem:[%s363_s3 + $0x28] sm:$0xff] %v211_v21 }
  0x1d   :  { %192 = vst [vmem:[%s363_s3 + $0x30] sm:$0xff] %v212_v39  ;;  %v213_v23 = vpack.c.bf16 %v137_v22, %v136_v38 }
  0x1f   :  { %193 = vst [vmem:[%s363_s3 + $0x38] sm:$0xff] %v213_v23 }

// kernel: discriminator_forward.15
= control target key start
LH: loop header
LB: loop body
LE: loop exit
PB: predicated region body
PF: predicated region fallthrough
CT: control target
= control target key end

     0   :  { %v147_v0 = vlaneseq  ;;  %vm858_vm0 = vcmask 7168   ;;  %s1563_s1 = inlined_call_operand.vmem [shape: bf16[1,8192], index: 1, kind: input, shape index: {}]   ;;  %s1564_s0 = inlined_call_operand.vmem [shape: bf16[8,8192], index: 0, kind: input, shape index: {}]   ;;  %s1565_s2 = inlined_call_operand.vmem [shape: f32[8,1], index: 2, kind: output, shape index: {}]  }
   0x1   :  { %v112_v1 = vld [vmem:[%s1563_s1 + $0x28] sm:$0xff]  ;;  %v113_v2 = vld [vmem:[%s1563_s1 + $0x30] sm:$0xff]  ;;  %v114_v4 = vld [vmem:[%s1563_s1 + $0x38] sm:$0xff] }
   0x2   :  { %v148_v3 = vshrl.u32 %v147_v0, 7  ;;  %v893_v5 = vunpack.c.l.bf16 %v112_v1  ;;  %v895_v6 = vunpack.c.h.bf16 %v112_v1  ;;  %v897_v7 = vunpack.c.l.bf16 %v113_v2  ;;  %v948_v31 = vld [vmem:[%s1564_s0] sm:$0xff]  ;;  %v953_v32 = vld [vmem:[%s1564_s0 + $0x8] sm:$0xff]  ;;  %v966_v37 = vld [vmem:[%s1564_s0 + $0x10] sm:$0xff] }
   0x3   :  { %v907_v12 = vunpack.c.h.bf16 %v113_v2  ;;  %v909_v13 = vunpack.c.l.bf16 %v114_v4  ;;  %v911_v14 = vunpack.c.h.bf16 %v114_v4  ;;  %1583 = vst [vmem:[#allocation6_spill] sm:$0xff] %v966_v37  ;;  %v971_v38 = vld [vmem:[%s1564_s0 + $0x88] sm:$0xff]  ;;  %v111_v39 = vld [vmem:[%s1563_s1 + $0x20] sm:$0xff]  ;;  %v987_v44 = vld [vmem:[%s1564_s0 + $0x90] sm:$0xff] }
   0x4   :  { %v899_v8 = vsub.s32 0, %v148_v3  ;;  %v901_v9 = vsub.s32 2, %v148_v3  ;;  %v903_v10 = vsub.s32 4, %v148_v3  ;;  %v905_v11 = vsub.s32 6, %v148_v3  ;;  %v992_v45 = vld [vmem:[%s1564_s0 + $0x98] sm:$0xff]  ;;  %v107_v53 = vld [vmem:[%s1563_s1] sm:$0xff] }
   0x5   :  { %v1004_v54 = vunpack.c.l.bf16 %v111_v39  ;;  %v1009_v55 = vld [vmem:[%s1564_s0 + $0xa0] sm:$0xff]  ;;  %v1014_v56 = vld [vmem:[%s1564_s0 + $0xa8] sm:$0xff]  ;;  %v1019_v60 = vunpack.c.h.bf16 %v111_v39  ;;  %v1024_v61 = vld [vmem:[%s1564_s0 + $0xb0] sm:$0xff]  ;;  %v1038_v3 = vunpack.c.l.bf16 %v107_v53  ;;  %v1054_v47 = vunpack.c.h.bf16 %v107_v53 }
   0x6   :  { %1579 = vst [vmem:[#allocation2_spill] sm:$0xff] %v899_v8  ;;  %1580 = vst [vmem:[#allocation3_spill] sm:$0xff] %v901_v9  ;;  %v310_v15 = vrot.slane %v893_v5, %v899_v8  ;;  %v314_v16 = vrot.slane %v893_v5, %v901_v9  ;;  %v318_v17 = vrot.slane %v893_v5, %v903_v10  ;;  %v1029_v62 = vld [vmem:[%s1564_s0 + $0xb8] sm:$0xff]  ;;  %v41_v49 = vld [vmem:[%s1564_s0 + $0xf0] sm:$0xff] }
   0x7   :  { %1581 = vst [vmem:[#allocation4_spill] sm:$0xff] %v903_v10  ;;  %1582 = vst [vmem:[#allocation5_spill] sm:$0xff] %v905_v11  ;;  %v322_v18 = vrot.slane %v893_v5, %v905_v11  ;;  %v326_v19 = vrot.slane %v895_v6, %v899_v8  ;;  %v330_v20 = vrot.slane %v895_v6, %v901_v9 }
   0x8   :  { %v334_v21 = vrot.slane %v895_v6, %v903_v10  ;;  %v338_v22 = vrot.slane %v895_v6, %v905_v11  ;;  %v342_v23 = vrot.slane %v897_v7, %v899_v8  ;;  %v346_v24 = vrot.slane %v897_v7, %v901_v9  ;;  %1584 = vst [vmem:[#allocation7_spill] sm:$0xff] %v1004_v54 }
   0x9   :  { %v350_v25 = vrot.slane %v897_v7, %v903_v10  ;;  %v354_v26 = vrot.slane %v897_v7, %v905_v11  ;;  %v358_v27 = vrot.slane %v907_v12, %v899_v8  ;;  %v362_v28 = vrot.slane %v907_v12, %v901_v9 }
   0xa   :  { %v366_v29 = vrot.slane %v907_v12, %v903_v10  ;;  %v370_v30 = vrot.slane %v907_v12, %v905_v11  ;;  %v374_v33 = vrot.slane %v909_v13, %v899_v8  ;;  %v378_v34 = vrot.slane %v909_v13, %v901_v9 }
   0xb   :  { %v382_v35 = vrot.slane %v909_v13, %v903_v10  ;;  %v386_v36 = vrot.slane %v909_v13, %v905_v11  ;;  %v390_v40 = vrot.slane %v911_v14, %v899_v8  ;;  %v394_v41 = vrot.slane %v911_v14, %v901_v9 }
   0xc   :  { %v398_v42 = vrot.slane %v911_v14, %v903_v10  ;;  %v402_v43 = vrot.slane %v911_v14, %v905_v11  ;;  %v282_v0 = vrot.slane %v1004_v54, %v901_v9  ;;  %v286_v1 = vrot.slane %v1004_v54, %v903_v10  ;;  %v40_v14 = vld [vmem:[%s1564_s0 + $0xe8] sm:$0xff] }
   0xd   :  { %v290_v2 = vrot.slane %v1004_v54, %v905_v11  ;;  %v298_v4 = vrot.slane %v1019_v60, %v901_v9  ;;  %v302_v39 = vrot.slane %v1019_v60, %v903_v10  ;;  %v306_v51 = vrot.slane %v1019_v60, %v905_v11 }
   0xe   :  { %v1057_v46 = vrot.slane %v282_v0, %v899_v8  ;;  %v1060_v50 = vrot.slane %v286_v1, %v899_v8  ;;  %v150_v58 = vrot.slane %v1038_v3, %v899_v8  ;;  %v1080_v0 = vrot.slane %v310_v15, %v899_v8 }
   0xf   :  { %v1063_v63 = vrot.slane %v290_v2, %v899_v8  ;;  %v1068_v57 = vrot.slane %v298_v4, %v899_v8  ;;  %v1071_v52 = vrot.slane %v302_v39, %v899_v8  ;;  %v1074_v53 = vrot.slane %v306_v51, %v899_v8 }
  0x10   :  { %1585 = vst [vmem:[#allocation8_spill] sm:$0xff] %v1057_v46  ;;  %v1086_v1 = vrot.slane %v314_v16, %v899_v8  ;;  %v1092_v2 = vrot.slane %v318_v17, %v899_v8  ;;  %v1098_v51 = vrot.slane %v322_v18, %v899_v8  ;;  %v1104_v15 = vrot.slane %v326_v19, %v899_v8 }
  0x11   :  { %v1110_v16 = vrot.slane %v330_v20, %v899_v8  ;;  %v1116_v17 = vrot.slane %v334_v21, %v899_v8  ;;  %v1122_v5 = vrot.slane %v338_v22, %v899_v8  ;;  %v1128_v18 = vrot.slane %v342_v23, %v899_v8  ;;  %v1151_v21 = vld [vmem:[%s1564_s0 + $0xc0] sm:$0xff] }
  0x12   :  { %v1134_v19 = vrot.slane %v346_v24, %v899_v8  ;;  %v1140_v20 = vrot.slane %v350_v25, %v899_v8  ;;  %v1146_v6 = vrot.slane %v354_v26, %v899_v8  ;;  %v1157_v22 = vrot.slane %v358_v27, %v899_v8  ;;  %v1180_v25 = vld [vmem:[%s1564_s0 + $0xc8] sm:$0xff] }
  0x13   :  { %v1163_v23 = vrot.slane %v362_v28, %v899_v8  ;;  %v1169_v7 = vrot.slane %v366_v29, %v899_v8  ;;  %v1175_v24 = vrot.slane %v370_v30, %v899_v8  ;;  %v1186_v26 = vrot.slane %v374_v33, %v899_v8  ;;  %v1209_v29 = vld [vmem:[%s1564_s0 + $0xd0] sm:$0xff]  ;;  %v1214_v30 = vld [vmem:[%s1564_s0 + $0xd8] sm:$0xff] }
  0x14   :  { %1586 = vst [vmem:[#allocation9_spill] sm:$0xff] %v1157_v22  ;;  %v1192_v27 = vrot.slane %v378_v34, %v899_v8  ;;  %v1198_v12 = vrot.slane %v382_v35, %v899_v8  ;;  %v1204_v28 = vrot.slane %v386_v36, %v899_v8  ;;  %v1220_v33 = vrot.slane %v390_v40, %v899_v8  ;;  %v1243_v36 = vld [vmem:[%s1564_s0 + $0xe0] sm:$0xff] }
  0x15   :  { %1587 = vst [vmem:[#allocation10_spill] sm:$0xff] %v1163_v23  ;;  %1588 = vst [vmem:[#allocation11_spill] sm:$0xff] %v1169_v7  ;;  %v1226_v13 = vrot.slane %v394_v41, %v899_v8  ;;  %v1232_v34 = vrot.slane %v398_v42, %v899_v8  ;;  %v1238_v35 = vrot.slane %v402_v43, %v899_v8  ;;  %v90_v40 = vunpack.c.h.bf16 %v1029_v62 }
  0x16   :  { %1589 = vst [vmem:[#allocation12_spill] sm:$0xff] %v1175_v24  ;;  %1590 = vst [vmem:[#allocation13_spill] sm:$0xff] %v1186_v26  ;;  %v91_v41 = vunpack.c.l.bf16 %v1151_v21  ;;  %v154_v4 = vrot.slane %v1038_v3, %v901_v9  ;;  %v158_v42 = vrot.slane %v1038_v3, %v903_v10  ;;  %v92_v43 = vunpack.c.h.bf16 %v1151_v21  ;;  %v42_v21 = vld [vmem:[%s1564_s0 + $0xf8] sm:$0xff] }
  0x17   :  { %1591 = vst [vmem:[#allocation14_spill] sm:$0xff] %v1192_v27  ;;  %1592 = vst [vmem:[#allocation15_spill] sm:$0xff] %v1198_v12  ;;  %v93_v39 = vunpack.c.l.bf16 %v1180_v25  ;;  %v94_v48 = vunpack.c.h.bf16 %v1180_v25  ;;  %v294_v59 = vrot.slane %v1019_v60, %v899_v8  ;;  %v95_v46 = vunpack.c.l.bf16 %v1209_v29  ;;  %v1273_v60 = vld [vmem:[%s1563_s1 + $0x8] sm:$0xff] }
  0x18   :  { %1593 = vst [vmem:[#allocation16_spill] sm:$0xff] %v1204_v28  ;;  %1594 = vst [vmem:[#allocation17_spill] sm:$0xff] %v1220_v33  ;;  %v96_v54 = vunpack.c.h.bf16 %v1209_v29  ;;  %v97_v37 = vunpack.c.l.bf16 %v1214_v30  ;;  %v99_v25 = vunpack.c.l.bf16 %v1243_v36  ;;  %v166_v29 = vrot.slane %v1054_v47, %v899_v8 }
  0x19   :  { %1595 = vst [vmem:[#allocation18_spill] sm:$0xff] %v1226_v13  ;;  %1596 = vst [vmem:[#allocation19_spill] sm:$0xff] %v1232_v34  ;;  %v162_v34 = vrot.slane %v1038_v3, %v905_v11  ;;  %v470_v13 = vrot.slane %v150_v58, %v899_v8  ;;  %v101_v33 = vunpack.c.l.bf16 %v40_v14  ;;  %v474_v28 = vrot.slane %v154_v4, %v899_v8 }
  0x1a   :  { %1597 = vst [vmem:[#allocation20_spill] sm:$0xff] %v1238_v35  ;;  %v98_v35 = vunpack.c.h.bf16 %v1214_v30  ;;  %1598 = vst [vmem:[#allocation21_spill] sm:$0xff] %v1273_v60  ;;  %v100_v30 = vunpack.c.h.bf16 %v1243_v36  ;;  %v478_v12 = vrot.slane %v158_v42, %v899_v8  ;;  %v102_v27 = vunpack.c.h.bf16 %v40_v14 }
  0x1b   :  { %v103_v26 = vunpack.c.l.bf16 %v41_v49  ;;  %v104_v24 = vunpack.c.h.bf16 %v41_v49  ;;  %v614_v7 = vrot.slane %v294_v59, %v899_v8  ;;  %v105_v23 = vunpack.c.l.bf16 %v42_v21 }
  0x1c   :  { %v106_v22 = vunpack.c.h.bf16 %v42_v21  ;;  %v1285_v3 = vunpack.c.l.bf16 %v1273_v60  ;;  %v170_v58 = vrot.slane %v1054_v47, %v901_v9  ;;  %v174_v36 = vrot.slane %v1054_v47, %v903_v10 }
  0x1d   :  { %v482_v4 = vrot.slane %v162_v34, %v899_v8  ;;  %v486_v42 = vrot.slane %v166_v29, %v899_v8  ;;  %v1600_v14 = vunpack.c.l.bf16 %v948_v31  ;;  %v1601_v59 = vunpack.c.h.bf16 %v948_v31 }
  0x1e   :  { %1599 = vst [vmem:[#allocation22_spill] sm:$0xff] %v1285_v3  ;;  %v1602_v21 = vunpack.c.l.bf16 %v953_v32  ;;  %v1603_v3 = vunpack.c.l.bf16 %v971_v38  ;;  %v1604_v10 = vunpack.c.h.bf16 %v971_v38  ;;  %v1605_v29 = vunpack.c.l.bf16 %v987_v44 }
  0x1f   :  { %v723_v49 = vmul.f32 %v470_v13, %v1600_v14  ;;  %v724_v11 = vmul.f32 %v474_v28, %v1601_v59  ;;  %v1606_v31 = vunpack.c.h.bf16 %v987_v44  ;;  %v1610_v44 = vunpack.c.h.bf16 %v1009_v55 }
  0x20   :  { %v725_v60 = vmul.f32 %v478_v12, %v1602_v21  ;;  %v1302_v9 = vmul.f32 %v1060_v50, %v1603_v3  ;;  %v1307_v34 = vmul.f32 %v1063_v63, %v1604_v10  ;;  %v1311_v8 = vmul.f32 %v614_v7, %v1605_v29 }
  0x21   :  { %v1316_v28 = vmul.f32 %v1068_v57, %v1606_v31  ;;  %v1607_v12 = vunpack.c.l.bf16 %v992_v45  ;;  %v1608_v50 = vunpack.c.h.bf16 %v992_v45  ;;  %v1609_v10 = vunpack.c.l.bf16 %v1009_v55 }
  0x22   :  { %v1336_v57 = vmul.f32 %v1086_v1, %v1610_v44  ;;  %v1611_v7 = vunpack.c.l.bf16 %v1014_v56  ;;  %v1612_v45 = vunpack.c.h.bf16 %v1014_v56  ;;  %v1613_v3 = vunpack.c.l.bf16 %v1024_v61 }
  0x23   :  { %v1321_v13 = vmul.f32 %v1071_v52, %v1607_v12  ;;  %v1326_v38 = vmul.f32 %v1074_v53, %v1608_v50  ;;  %v1331_v63 = vmul.f32 %v1080_v0, %v1609_v10  ;;  %v1614_v55 = vunpack.c.h.bf16 %v1024_v61  ;;  %v1626_v50 = vld [vmem:[#allocation19_spill] sm:$0xff] }
  0x24   :  { %v1341_v52 = vmul.f32 %v1092_v2, %v1611_v7  ;;  %v1346_v53 = vmul.f32 %v1098_v51, %v1612_v45  ;;  %v1351_v0 = vmul.f32 %v1104_v15, %v1613_v3  ;;  %v1615_v14 = vunpack.c.l.bf16 %v1029_v62 }
  0x25   :  { %v1356_v1 = vmul.f32 %v1110_v16, %v1614_v55  ;;  %v1364_v56 = vmul.f32 %v1122_v5, %v90_v40  ;;  %v1367_v51 = vmul.f32 %v1128_v18, %v91_v41  ;;  %v1370_v59 = vmul.f32 %v1134_v19, %v92_v43  ;;  %v1616_v16 = vld [vmem:[#allocation9_spill] sm:$0xff]  ;;  %v1618_v5 = vld [vmem:[#allocation11_spill] sm:$0xff]  ;;  %v1619_v18 = vld [vmem:[#allocation12_spill] sm:$0xff] }
  0x26   :  { %v1361_v2 = vmul.f32 %v1116_v17, %v1615_v14  ;;  %v1373_v15 = vmul.f32 %v1140_v20, %v93_v39  ;;  %v1376_v61 = vmul.f32 %v1146_v6, %v94_v48  ;;  %v1379_v62 = vmul.f32 %v1616_v16, %v95_v46  ;;  %v1617_v17 = vld [vmem:[#allocation10_spill] sm:$0xff]  ;;  %v14_v19 = vld [vmem:[%s1564_s0 + $0x18] sm:$0xff]  ;;  %v1622_v46 = vld [vmem:[#allocation15_spill] sm:$0xff] }
  0x27   :  { %v1382_v21 = vmul.f32 %v1617_v17, %v96_v54  ;;  %v1385_v40 = vmul.f32 %v1618_v5, %v97_v37  ;;  %v1388_v41 = vmul.f32 %v1619_v18, %v98_v35  ;;  %v1620_v20 = vld [vmem:[#allocation13_spill] sm:$0xff]  ;;  %v1621_v48 = vld [vmem:[#allocation14_spill] sm:$0xff]  ;;  %v1400_v39 = vmul.f32 %v1622_v46, %v101_v33  ;;  %v1623_v54 = vld [vmem:[#allocation16_spill] sm:$0xff] }
  0x28   :  { %v1394_v43 = vmul.f32 %v1620_v20, %v99_v25  ;;  %v1397_v6 = vmul.f32 %v1621_v48, %v100_v30  ;;  %v1403_v29 = vmul.f32 %v1623_v54, %v102_v27  ;;  %v1624_v37 = vld [vmem:[#allocation17_spill] sm:$0xff]  ;;  %v1625_v35 = vld [vmem:[#allocation18_spill] sm:$0xff]  ;;  %v1412_v10 = vmul.f32 %v1626_v50, %v105_v23  ;;  %v1627_v25 = vld [vmem:[#allocation20_spill] sm:$0xff] }
  0x29   :  { %v1406_v31 = vmul.f32 %v1624_v37, %v103_v26  ;;  %v1409_v12 = vmul.f32 %v1625_v35, %v104_v24  ;;  %v1415_v44 = vmul.f32 %v1627_v25, %v106_v22  ;;  %v1628_v30 = vld [vmem:[#allocation5_spill] sm:$0xff]  ;;  %v1629_v33 = vld [vmem:[#allocation2_spill] sm:$0xff]  ;;  %v1630_v27 = vunpack.c.h.bf16 %v953_v32  ;;  %v1637_v37 = vld [vmem:[#allocation4_spill] sm:$0xff] }
  0x2a   :  { %v178_v7 = vrot.slane %v1054_v47, %v1628_v30  ;;  %v490_v45 = vrot.slane %v170_v58, %v1629_v33  ;;  %v787_v55 = vadd.f32 %v724_v11, %v723_v49  ;;  %v49_v26 = vunpack.c.l.bf16 %v14_v19  ;;  %v15_v24 = vld [vmem:[%s1564_s0 + $0x20] sm:$0xff]  ;;  %v1634_v58 = vld [vmem:[#allocation3_spill] sm:$0xff]  ;;  %v1636_v46 = vld [vmem:[#allocation21_spill] sm:$0xff] }
  0x2b   :  { %v726_v3 = vmul.f32 %v482_v4, %v1630_v27  ;;  %v1631_v23 = vld [vmem:[#allocation22_spill] sm:$0xff]  ;;  %v494_v22 = vrot.slane %v174_v36, %v1629_v33  ;;  %v50_v18 = vunpack.c.h.bf16 %v14_v19  ;;  %v51_v48 = vunpack.c.l.bf16 %v15_v24  ;;  %v16_v36 = vld [vmem:[%s1564_s0 + $0x28] sm:$0xff] }
  0x2c   :  { %v182_v14 = vrot.slane %v1631_v23, %v1629_v33  ;;  %v1632_v16 = vld [vmem:[#allocation6_spill] sm:$0xff]  ;;  %v788_v47 = vadd.f32 %v787_v55, %v725_v60  ;;  %v186_v32 = vrot.slane %v1631_v23, %v1634_v58  ;;  %v498_v11 = vrot.slane %v178_v7, %v1629_v33  ;;  %v17_v55 = vld [vmem:[%s1564_s0 + $0x30] sm:$0xff] }
  0x2d   :  { %v1633_v17 = vunpack.c.l.bf16 %v1632_v16  ;;  %v1635_v4 = vunpack.c.h.bf16 %v1632_v16  ;;  %v118_v54 = vunpack.c.h.bf16 %v1636_v46  ;;  %v190_v60 = vrot.slane %v1631_v23, %v1637_v37  ;;  %v109_v16 = vld [vmem:[%s1563_s1 + $0x10] sm:$0xff] }
  0x2e   :  { %v789_v20 = vadd.f32 %v788_v47, %v726_v3  ;;  %v729_v19 = vmul.f32 %v494_v22, %v49_v26  ;;  %v52_v50 = vunpack.c.h.bf16 %v15_v24  ;;  %v194_v25 = vrot.slane %v1631_v23, %v1628_v30 }
  0x2f   :  { %v727_v5 = vmul.f32 %v486_v42, %v1633_v17  ;;  %v728_v49 = vmul.f32 %v490_v45, %v1635_v4  ;;  %v502_v42 = vrot.slane %v182_v14, %v1629_v33  ;;  %v506_v7 = vrot.slane %v186_v32, %v1629_v33  ;;  %v18_v4 = vld [vmem:[%s1564_s0 + $0x38] sm:$0xff] }
  0x30   :  { %v730_v45 = vmul.f32 %v498_v11, %v50_v18  ;;  %v53_v3 = vunpack.c.l.bf16 %v16_v36  ;;  %v198_v26 = vrot.slane %v118_v54, %v1629_v33  ;;  %v510_v24 = vrot.slane %v190_v60, %v1629_v33 }
  0x31   :  { %v790_v35 = vadd.f32 %v789_v20, %v727_v5  ;;  %v731_v14 = vmul.f32 %v502_v42, %v51_v48  ;;  %v54_v23 = vunpack.c.h.bf16 %v16_v36  ;;  %v202_v17 = vrot.slane %v118_v54, %v1634_v58 }
  0x32   :  { %v514_v5 = vrot.slane %v194_v25, %v1629_v33  ;;  %v732_v47 = vmul.f32 %v506_v7, %v52_v50  ;;  %v55_v32 = vunpack.c.l.bf16 %v17_v55  ;;  %v119_v11 = vunpack.c.l.bf16 %v109_v16  ;;  %v19_v25 = vld [vmem:[%s1564_s0 + $0x40] sm:$0xff] }
  0x33   :  { %v791_v27 = vadd.f32 %v790_v35, %v728_v49  ;;  %v206_v49 = vrot.slane %v118_v54, %v1637_v37  ;;  %v518_v20 = vrot.slane %v198_v26, %v1629_v33  ;;  %v733_v46 = vmul.f32 %v510_v24, %v53_v3 }
  0x34   :  { %v56_v60 = vunpack.c.h.bf16 %v17_v55  ;;  %v210_v36 = vrot.slane %v118_v54, %v1628_v30  ;;  %v522_v42 = vrot.slane %v202_v17, %v1629_v33  ;;  %v57_v50 = vunpack.c.l.bf16 %v18_v4  ;;  %v20_v17 = vld [vmem:[%s1564_s0 + $0x48] sm:$0xff] }
  0x35   :  { %v792_v22 = vadd.f32 %v791_v27, %v729_v19  ;;  %v734_v19 = vmul.f32 %v514_v5, %v54_v23  ;;  %v214_v7 = vrot.slane %v119_v11, %v1629_v33  ;;  %v735_v27 = vmul.f32 %v518_v20, %v55_v32 }
  0x36   :  { %v58_v3 = vunpack.c.h.bf16 %v18_v4  ;;  %v218_v55 = vrot.slane %v119_v11, %v1634_v58  ;;  %v530_v54 = vrot.slane %v210_v36, %v1629_v33  ;;  %v736_v24 = vmul.f32 %v522_v42, %v56_v60  ;;  %v110_v36 = vld [vmem:[%s1563_s1 + $0x18] sm:$0xff] }
  0x37   :  { %v793_v18 = vadd.f32 %v792_v22, %v730_v45  ;;  %v526_v45 = vrot.slane %v206_v49, %v1629_v33  ;;  %v59_v22 = vunpack.c.l.bf16 %v19_v25  ;;  %v120_v23 = vunpack.c.h.bf16 %v109_v16  ;;  %v21_v16 = vld [vmem:[%s1564_s0 + $0x50] sm:$0xff] }
  0x38   :  { %v222_v5 = vrot.slane %v119_v11, %v1637_v37  ;;  %v60_v49 = vunpack.c.h.bf16 %v19_v25  ;;  %v226_v4 = vrot.slane %v119_v11, %v1628_v30  ;;  %v538_v20 = vrot.slane %v218_v55, %v1629_v33  ;;  %v22_v55 = vld [vmem:[%s1564_s0 + $0x58] sm:$0xff] }
  0x39   :  { %v794_v48 = vadd.f32 %v793_v18, %v731_v14  ;;  %v737_v18 = vmul.f32 %v526_v45, %v57_v50  ;;  %v61_v60 = vunpack.c.l.bf16 %v20_v17  ;;  %v230_v42 = vrot.slane %v120_v23, %v1629_v33 }
  0x3a   :  { %v62_v11 = vunpack.c.h.bf16 %v20_v17  ;;  %v234_v25 = vrot.slane %v120_v23, %v1634_v58  ;;  %v740_v45 = vmul.f32 %v538_v20, %v60_v49  ;;  %v242_v17 = vrot.slane %v120_v23, %v1628_v30 }
  0x3b   :  { %v795_v35 = vadd.f32 %v794_v48, %v732_v47  ;;  %v534_v47 = vrot.slane %v214_v7, %v1629_v33  ;;  %v546_v7 = vrot.slane %v226_v4, %v1629_v33  ;;  %v65_v49 = vunpack.c.l.bf16 %v22_v55  ;;  %v23_v4 = vld [vmem:[%s1564_s0 + $0x60] sm:$0xff] }
  0x3d   :  { %v796_v26 = vadd.f32 %v795_v35, %v733_v46  ;;  %v738_v46 = vmul.f32 %v530_v54, %v58_v3  ;;  %v739_v35 = vmul.f32 %v534_v47, %v59_v22  ;;  %v121_v3 = vunpack.c.l.bf16 %v110_v36 }
  0x3e   :  { %v238_v54 = vrot.slane %v120_v23, %v1637_v37  ;;  %v554_v47 = vrot.slane %v234_v25, %v1629_v33  ;;  %v562_v23 = vrot.slane %v242_v17, %v1629_v33  ;;  %v24_v25 = vld [vmem:[%s1564_s0 + $0x68] sm:$0xff] }
  0x3f   :  { %v797_v14 = vadd.f32 %v796_v26, %v734_v19  ;;  %v542_v19 = vrot.slane %v222_v5, %v1629_v33  ;;  %v63_v26 = vunpack.c.l.bf16 %v21_v16  ;;  %v64_v5 = vunpack.c.h.bf16 %v21_v16 }
  0x40   :  { %v246_v20 = vrot.slane %v121_v3, %v1629_v33  ;;  %v250_v16 = vrot.slane %v121_v3, %v1634_v58 }
  0x41   :  { %v798_v32 = vadd.f32 %v797_v14, %v735_v27  ;;  %v741_v14 = vmul.f32 %v542_v19, %v61_v60  ;;  %v66_v60 = vunpack.c.h.bf16 %v22_v55  ;;  %v744_v19 = vmul.f32 %v554_v47, %v64_v5 }
  0x42   :  { %v258_v55 = vrot.slane %v121_v3, %v1628_v30  ;;  %v69_v5 = vunpack.c.l.bf16 %v24_v25 }
  0x43   :  { %v799_v48 = vadd.f32 %v798_v32, %v736_v24  ;;  %v550_v24 = vrot.slane %v230_v42, %v1629_v33 }
  0x45   :  { %v800_v50 = vadd.f32 %v799_v48, %v737_v18  ;;  %v742_v18 = vmul.f32 %v546_v7, %v62_v11  ;;  %v743_v48 = vmul.f32 %v550_v24, %v63_v26  ;;  %v122_v11 = vunpack.c.h.bf16 %v110_v36  ;;  %v25_v36 = vld [vmem:[%s1564_s0 + $0x70] sm:$0xff] }
  0x46   :  { %v254_v7 = vrot.slane %v121_v3, %v1637_v37  ;;  %v570_v24 = vrot.slane %v250_v16, %v1629_v33  ;;  %v578_v3 = vrot.slane %v258_v55, %v1629_v33 }
  0x47   :  { %v801_v27 = vadd.f32 %v800_v50, %v738_v46  ;;  %v558_v46 = vrot.slane %v238_v54, %v1629_v33  ;;  %v67_v50 = vunpack.c.l.bf16 %v23_v4  ;;  %v68_v54 = vunpack.c.h.bf16 %v23_v4 }
  0x48   :  { %v262_v17 = vrot.slane %v122_v11, %v1629_v33  ;;  %v574_v47 = vrot.slane %v254_v7, %v1629_v33  ;;  %v266_v4 = vrot.slane %v122_v11, %v1634_v58 }
  0x49   :  { %v802_v22 = vadd.f32 %v801_v27, %v739_v35  ;;  %v745_v27 = vmul.f32 %v558_v46, %v65_v49  ;;  %v70_v49 = vunpack.c.h.bf16 %v24_v25 }
  0x4a   :  { %v582_v16 = vrot.slane %v262_v17, %v1629_v33  ;;  %v586_v58 = vrot.slane %v266_v4, %v1629_v33 }
  0x4b   :  { %v803_v32 = vadd.f32 %v802_v22, %v740_v45  ;;  %v566_v45 = vrot.slane %v246_v20, %v1629_v33  ;;  %v748_v20 = vmul.f32 %v570_v24, %v68_v54  ;;  %v750_v25 = vmul.f32 %v578_v3, %v70_v49 }
  0x4d   :  { %v804_v42 = vadd.f32 %v803_v32, %v741_v14  ;;  %v746_v14 = vmul.f32 %v562_v23, %v66_v60  ;;  %v270_v60 = vrot.slane %v122_v11, %v1637_v37  ;;  %v749_v23 = vmul.f32 %v574_v47, %v69_v5  ;;  %v27_v37 = vld [vmem:[%s1564_s0 + $0x80] sm:$0xff] }
  0x4e   :  { %v75_v5 = vunpack.c.l.bf16 %v27_v37 }
  0x4f   :  { %v805_v35 = vadd.f32 %v804_v42, %v742_v18  ;;  %v747_v18 = vmul.f32 %v566_v45, %v67_v50  ;;  %v26_v42 = vld [vmem:[%s1564_s0 + $0x78] sm:$0xff]  ;;  %v274_v50 = vrot.slane %v122_v11, %v1628_v30  ;;  %v590_v54 = vrot.slane %v270_v60, %v1629_v33 }
  0x50   :  { %v73_v45 = vunpack.c.l.bf16 %v26_v42 }
  0x51   :  { %v806_v26 = vadd.f32 %v805_v35, %v743_v48  ;;  %v71_v48 = vunpack.c.l.bf16 %v25_v36  ;;  %v72_v35 = vunpack.c.h.bf16 %v25_v36 }
  0x52   :  { %v753_v17 = vmul.f32 %v590_v54, %v73_v45 }
  0x53   :  { %v807_v22 = vadd.f32 %v806_v26, %v744_v19  ;;  %v751_v55 = vmul.f32 %v582_v16, %v71_v48  ;;  %v752_v30 = vmul.f32 %v586_v58, %v72_v35 }
  0x55   :  { %v808_v32 = vadd.f32 %v807_v22, %v745_v27  ;;  %v1638_v27 = vld [vmem:[#allocation7_spill] sm:$0xff]  ;;  %v594_v22 = vrot.slane %v274_v50, %v1629_v33 }
  0x56   :  { %v278_v26 = vrot.slane %v1638_v27, %v1629_v33 }
  0x57   :  { %v809_v46 = vadd.f32 %v808_v32, %v746_v14  ;;  %v74_v14 = vunpack.c.h.bf16 %v26_v42 }
  0x58   :  { %v598_v36 = vrot.slane %v278_v26, %v1629_v33 }
  0x59   :  { %v810_v19 = vadd.f32 %v809_v46, %v747_v18  ;;  %v76_v18 = vunpack.c.h.bf16 %v27_v37  ;;  %v754_v32 = vmul.f32 %v594_v22, %v74_v14 }
  0x5a   :  { %v755_v4 = vmul.f32 %v598_v36, %v75_v5 }
  0x5b   :  { %v811_v7 = vadd.f32 %v810_v19, %v748_v20  ;;  %v1639_v20 = vld [vmem:[#allocation8_spill] sm:$0xff] }
  0x5c   :  { %v756_v46 = vmul.f32 %v1639_v20, %v76_v18 }
  0x5d   :  { %v812_v24 = vadd.f32 %v811_v7, %v749_v23 }
  0x5f   :  { %v813_v11 = vadd.f32 %v812_v24, %v750_v25 }
  0x61   :  { %v814_v47 = vadd.f32 %v813_v11, %v751_v55 }
  0x63   :  { %v815_v49 = vadd.f32 %v814_v47, %v752_v30 }
  0x65   :  { %v816_v3 = vadd.f32 %v815_v49, %v753_v17 }
  0x67   :  { %v817_v48 = vadd.f32 %v816_v3, %v754_v32 }
  0x69   :  { %v818_v60 = vadd.f32 %v817_v48, %v755_v4 }
  0x6b   :  { %v819_v16 = vadd.f32 %v818_v60, %v756_v46 }
  0x6d   :  { %v820_v42 = vadd.f32 %v819_v16, %v1302_v9 }
  0x6f   :  { %v821_v23 = vadd.f32 %v820_v42, %v1307_v34 }
  0x71   :  { %v822_v19 = vadd.f32 %v821_v23, %v1311_v8 }
  0x73   :  { %v823_v33 = vadd.f32 %v822_v19, %v1316_v28 }
  0x75   :  { %v824_v35 = vadd.f32 %v823_v33, %v1321_v13 }
  0x77   :  { %v825_v50 = vadd.f32 %v824_v35, %v1326_v38 }
  0x79   :  { %v826_v58 = vadd.f32 %v825_v50, %v1331_v63 }
  0x7b   :  { %v827_v25 = vadd.f32 %v826_v58, %v1336_v57 }
  0x7d   :  { %v828_v7 = vadd.f32 %v827_v25, %v1341_v52 }
  0x7f   :  { %v829_v45 = vadd.f32 %v828_v7, %v1346_v53 }
  0x81   :  { %v830_v9 = vadd.f32 %v829_v45, %v1351_v0 }
  0x83   :  { %v831_v34 = vadd.f32 %v830_v9, %v1356_v1 }
  0x85   :  { %v832_v8 = vadd.f32 %v831_v34, %v1361_v2 }
  0x87   :  { %v833_v28 = vadd.f32 %v832_v8, %v1364_v56 }
  0x89   :  { %v834_v13 = vadd.f32 %v833_v28, %v1367_v51 }
  0x8b   :  { %v835_v38 = vadd.f32 %v834_v13, %v1370_v59 }
  0x8d   :  { %v836_v63 = vadd.f32 %v835_v38, %v1373_v15 }
  0x8f   :  { %v837_v57 = vadd.f32 %v836_v63, %v1376_v61 }
  0x91   :  { %v838_v52 = vadd.f32 %v837_v57, %v1379_v62 }
  0x93   :  { %v839_v53 = vadd.f32 %v838_v52, %v1382_v21 }
  0x95   :  { %v840_v0 = vadd.f32 %v839_v53, %v1385_v40 }
  0x97   :  { %v841_v1 = vadd.f32 %v840_v0, %v1388_v41 }
  0x99   :  { %v842_v2 = vadd.f32 %v841_v1, %v1394_v43 }
  0x9b   :  { %v843_v56 = vadd.f32 %v842_v2, %v1397_v6 }
  0x9d   :  { %v844_v51 = vadd.f32 %v843_v56, %v1400_v39 }
  0x9f   :  { %v845_v59 = vadd.f32 %v844_v51, %v1403_v29 }
  0xa1   :  { %v846_v15 = vadd.f32 %v845_v59, %v1406_v31 }
  0xa3   :  { %v847_v61 = vadd.f32 %v846_v15, %v1409_v12 }
  0xa5   :  { %v848_v62 = vadd.f32 %v847_v61, %v1412_v10 }
  0xa7   :  { %v849_v21 = vadd.f32 %v848_v62, %v1415_v44 }
  0xa9   :  { %850 = vadd.xlane.f32.xlu0 %v849_v21 }
 0x136   :  { %v851_v40 = vpop.xlane.xlu0 %850 }
 0x137   :  { %v864_v27 = vmul.f32 -1.442695, %v851_v40 }
 0x139   :  { %865 = vpow2.f32 %v864_v27 }
 0x143   :  { %v866_v41 = vpop.eup %865 }
 0x144   :  { %v855_v43 = vadd.f32 1.0, %v866_v41 }
 0x146   :  { %867 = vrcp.f32 %v855_v43 }
 0x150   :  { %v868_v6 = vpop.eup %867 }
 0x151   :  { %859 = vst.msk [vmem:[%s1565_s2] sm:$0xff] %vm858_vm0, %v868_v6 }

// kernel: discriminator_forward.13
= control target key start
LH: loop header
LB: loop body
LE: loop exit
PB: predicated region body
PF: predicated region fallthrough
CT: control target
= control target key end

     0   :  { %s6308_s12 = smov 0   ;;  %s6310_s13 = smov 0   ;;  %s7106_s0 = inlined_call_operand.vmem [shape: bf16[32,4096], index: 0, kind: input, shape index: {}]   ;;  %s7107_s1 = inlined_call_operand.vmem [shape: bf16[4096,512], index: 1, kind: input, shape index: {}]   ;;  %s7108_s2 = inlined_call_operand.vmem [shape: f32[32,512], index: 2, kind: output, shape index: {0}]   ;;  %s7109_s3 = inlined_call_operand.vmem [shape: f32[1,2,512], index: 3, kind: output, shape index: {1}]  }
   0x1   :  { %s6312_s14 = smov 0   ;;  %s6314_s15 = smov 0  }
   0x2   :  { %s6316_s16 = smov 0  }
   0x3 LB: > { %s23_s17 = sadd.s32 1, %s6280_s15  ;;  %p42_p1 = scmp.ne.s32.totalorder %s6272_s13, %s6268_s12  ;;  %s6284_s16 = sphi %s6316_s16, %s14_s16   ;;  %s6280_s15 = sphi %s6314_s15, %s7113_s15   ;;  %s6276_s14 = sphi %s6312_s14, %s7112_s14   ;;  %s6272_s13 = sphi %s6310_s13, %s7111_s13   ;;  %s6268_s12 = sphi %s6308_s12, %s7110_s12  }
   0x4   : > { %p24_p0 = scmp.ge.s32.totalorder %s23_s17, 2  ;;  %p43_p2 = scmp.eq.s32.totalorder %s6284_s16, 0 }
   0x5   : > { %s35_s19 = sadd.s32 1, %s6272_s13  ;;  %p4762_p5 = scmp.ge.s32.totalorder %s6284_s16, 2 }
   0x6   : > { %s7115_s17 = smov (%p24_p0, %s23_s17), 0  ;;  %p44_p3 = por %p43_p2, %p42_p1 }
   0x7   : > { %s31_s18 = ssub.s32 %s6280_s15, %s7115_s17  ;;  %146 = sbr.rel (%p4762_p5) target bundleno = 34 (0x22), region = 16 }
   0x8   : > { %p33_p4 = scmp.eq.s32.totalorder %s31_s18, 0 }
   0xa   : > { %s6343_s20 = scalar_select %p33_p4, %s6272_s13, %s35_s19  }
   0xe   : > { %149 = sbr.rel (!%p44_p3) target bundleno = 34 (0x22), region = 20  ;;  %s151_s21 = sand.u32 (%p44_p3), 1, %s6272_s13  }
   0xf   : > { %s5322_s22 = sshll.u32 (%p44_p3), %s6280_s15, 6  ;;  %s4763_s23 = sshll.u32 (%p44_p3), %s151_s21, 8 }
  0x10   : > { %s6351_s26 = scalar_lea.vmem (%p44_p3), %s7106_s0, %s5322_s22  ;;  %s6356_s27 = scalar_lea.vmem (%p44_p3), [#allocation3], %s4763_s23 }
  0x11   : > { %v172_v0 = vld [vmem:[%s6351_s26] sm:$0xff] (%p44_p3)  ;;  %v174_v1 = vld [vmem:[%s6351_s26 + $0x8] sm:$0xff] (%p44_p3)  ;;  %v176_v2 = vld [vmem:[%s6351_s26 + $0x10] sm:$0xff] (%p44_p3) }
  0x12   : > { %173 = vst [vmem:[%s6356_s27] sm:$0xff] (%p44_p3), %v172_v0  ;;  %175 = vst [vmem:[%s6356_s27 + $0x8] sm:$0xff] (%p44_p3), %v174_v1  ;;  %v178_v3 = vld [vmem:[%s6351_s26 + $0x18] sm:$0xff] (%p44_p3)  ;;  %v180_v4 = vld [vmem:[%s6351_s26 + $0x20] sm:$0xff] (%p44_p3) }
  0x13   : > { %177 = vst [vmem:[%s6356_s27 + $0x10] sm:$0xff] (%p44_p3), %v176_v2  ;;  %v182_v5 = vld [vmem:[%s6351_s26 + $0x28] sm:$0xff] (%p44_p3)  ;;  %179 = vst [vmem:[%s6356_s27 + $0x18] sm:$0xff] (%p44_p3), %v178_v3  ;;  %v184_v6 = vld [vmem:[%s6351_s26 + $0x30] sm:$0xff] (%p44_p3) }
  0x14   : > { %181 = vst [vmem:[%s6356_s27 + $0x20] sm:$0xff] (%p44_p3), %v180_v4  ;;  %183 = vst [vmem:[%s6356_s27 + $0x28] sm:$0xff] (%p44_p3), %v182_v5  ;;  %v186_v7 = vld [vmem:[%s6351_s26 + $0x38] sm:$0xff] (%p44_p3)  ;;  %v188_v8 = vld [vmem:[%s6351_s26 + $0x80] sm:$0xff] (%p44_p3) }
  0x15   : > { %185 = vst [vmem:[%s6356_s27 + $0x30] sm:$0xff] %v184_v6  ;;  %187 = vst [vmem:[%s6356_s27 + $0x38] sm:$0xff] %v186_v7  ;;  %v190_v9 = vld [vmem:[%s6351_s26 + $0x88] sm:$0xff]  ;;  %v192_v10 = vld [vmem:[%s6351_s26 + $0x90] sm:$0xff] }
  0x16   : > { %189 = vst [vmem:[%s6356_s27 + $0x40] sm:$0xff] %v188_v8  ;;  %v194_v11 = vld [vmem:[%s6351_s26 + $0x98] sm:$0xff]  ;;  %191 = vst [vmem:[%s6356_s27 + $0x48] sm:$0xff] %v190_v9  ;;  %v196_v12 = vld [vmem:[%s6351_s26 + $0xa0] sm:$0xff] }
  0x17   : > { %193 = vst [vmem:[%s6356_s27 + $0x50] sm:$0xff] %v192_v10  ;;  %195 = vst [vmem:[%s6356_s27 + $0x58] sm:$0xff] %v194_v11  ;;  %v198_v13 = vld [vmem:[%s6351_s26 + $0xa8] sm:$0xff]  ;;  %v200_v14 = vld [vmem:[%s6351_s26 + $0xb0] sm:$0xff] }
  0x18   : > { %197 = vst [vmem:[%s6356_s27 + $0x60] sm:$0xff] %v196_v12  ;;  %199 = vst [vmem:[%s6356_s27 + $0x68] sm:$0xff] %v198_v13  ;;  %v202_v15 = vld [vmem:[%s6351_s26 + $0xb8] sm:$0xff]  ;;  %v204_v16 = vld [vmem:[%s6351_s26 + $0x100] sm:$0xff] }
  0x19   : > { %201 = vst [vmem:[%s6356_s27 + $0x70] sm:$0xff] %v200_v14  ;;  %v206_v17 = vld [vmem:[%s6351_s26 + $0x108] sm:$0xff]  ;;  %203 = vst [vmem:[%s6356_s27 + $0x78] sm:$0xff] %v202_v15  ;;  %v208_v18 = vld [vmem:[%s6351_s26 + $0x110] sm:$0xff] }
  0x1a   : > { %205 = vst [vmem:[%s6356_s27 + $0x80] sm:$0xff] %v204_v16  ;;  %207 = vst [vmem:[%s6356_s27 + $0x88] sm:$0xff] %v206_v17  ;;  %v210_v19 = vld [vmem:[%s6351_s26 + $0x118] sm:$0xff]  ;;  %v212_v20 = vld [vmem:[%s6351_s26 + $0x120] sm:$0xff] }
  0x1b   : > { %209 = vst [vmem:[%s6356_s27 + $0x90] sm:$0xff] %v208_v18  ;;  %211 = vst [vmem:[%s6356_s27 + $0x98] sm:$0xff] %v210_v19  ;;  %v214_v21 = vld [vmem:[%s6351_s26 + $0x128] sm:$0xff]  ;;  %v216_v22 = vld [vmem:[%s6351_s26 + $0x130] sm:$0xff] }
  0x1c   : > { %213 = vst [vmem:[%s6356_s27 + $0xa0] sm:$0xff] %v212_v20  ;;  %v218_v23 = vld [vmem:[%s6351_s26 + $0x138] sm:$0xff]  ;;  %215 = vst [vmem:[%s6356_s27 + $0xa8] sm:$0xff] %v214_v21  ;;  %v220_v24 = vld [vmem:[%s6351_s26 + $0x180] sm:$0xff] }
  0x1d   : > { %217 = vst [vmem:[%s6356_s27 + $0xb0] sm:$0xff] %v216_v22  ;;  %219 = vst [vmem:[%s6356_s27 + $0xb8] sm:$0xff] %v218_v23  ;;  %v222_v25 = vld [vmem:[%s6351_s26 + $0x188] sm:$0xff]  ;;  %v224_v26 = vld [vmem:[%s6351_s26 + $0x190] sm:$0xff] }
  0x1e   : > { %221 = vst [vmem:[%s6356_s27 + $0xc0] sm:$0xff] %v220_v24  ;;  %223 = vst [vmem:[%s6356_s27 + $0xc8] sm:$0xff] %v222_v25  ;;  %v226_v27 = vld [vmem:[%s6351_s26 + $0x198] sm:$0xff]  ;;  %v228_v28 = vld [vmem:[%s6351_s26 + $0x1a0] sm:$0xff] }
  0x1f   : > { %225 = vst [vmem:[%s6356_s27 + $0xd0] sm:$0xff] %v224_v26  ;;  %v230_v29 = vld [vmem:[%s6351_s26 + $0x1a8] sm:$0xff]  ;;  %227 = vst [vmem:[%s6356_s27 + $0xd8] sm:$0xff] %v226_v27  ;;  %v232_v30 = vld [vmem:[%s6351_s26 + $0x1b0] sm:$0xff] }
  0x20   : > { %229 = vst [vmem:[%s6356_s27 + $0xe0] sm:$0xff] %v228_v28  ;;  %231 = vst [vmem:[%s6356_s27 + $0xe8] sm:$0xff] %v230_v29  ;;  %v234_v31 = vld [vmem:[%s6351_s26 + $0x1b8] sm:$0xff] }
  0x21   : > { %233 = vst [vmem:[%s6356_s27 + $0xf0] sm:$0xff] %v232_v30  ;;  %235 = vst [vmem:[%s6356_s27 + $0xf8] sm:$0xff] %v234_v31 }
  0x22 PF: > { %p4766_p6 = scmp.ge.s32.totalorder %s6284_s16, 1  ;;  %p250_p7 = scmp.lt.s32.totalorder %s6284_s16, 3 }
  0x24   : > { %p251_p8 = pnand %p4766_p6, %p250_p7 }
  0x25   : > { %s257_s28 = sand.u32 (!%p251_p8), 1, %s6268_s12   ;;  %s4768_s29 = sshll.u32 (!%p251_p8), %s6276_s14, 8 }
  0x26   : > { %254 = sbr.rel (%p251_p8) target bundleno = 828 (0x33c), region = 47  ;;  %s4767_s30 = sshll.u32 (!%p251_p8), %s257_s28, 8 }
  0x27   : > { %p295_p9 = scmp.lt.s32.totalorder (!%p251_p8), %s4768_s29, 511  ;;  %s6428_s8 = scalar_lea.vmem (!%p251_p8), [#allocation3], %s4767_s30 }
  0x28   : > { %p4771_p10 = scmp.ne.s32.totalorder (!%p251_p8), %s6276_s14, 0 }
  0x2d   : > { %s7117_s29 = smov (!%p295_p9, %s4768_s29), 511  ;;  %316 = sbr.rel (%p4771_p10) target bundleno = 55 (0x37), region = 55 }
  0x2e   : > { %s5323_s4 = sshll.u32 %s7117_s29, 4  ;;  %v6286_v32 = vmov (!%p4771_p10), 0.0  }
  0x2f   : > { %s6426_s7 = scalar_lea.vmem %s7107_s1, %s5323_s4  ;;  %317 = vst [vmem:[#allocation2] sm:$0xff] (!%p4771_p10), %v6286_v32  ;;  %318 = vst [vmem:[#allocation2 + $0x8] sm:$0xff] (!%p4771_p10), %v6286_v32 }
  0x30   : > { %319 = vst [vmem:[#allocation2 + $0x10] sm:$0xff] (!%p4771_p10), %v6286_v32  ;;  %320 = vst [vmem:[#allocation2 + $0x18] sm:$0xff] (!%p4771_p10), %v6286_v32 }
  0x31   : > { %321 = vst [vmem:[#allocation2 + $0x20] sm:$0xff] (!%p4771_p10), %v6286_v32  ;;  %322 = vst [vmem:[#allocation2 + $0x28] sm:$0xff] (!%p4771_p10), %v6286_v32 }
  0x32   : > { %323 = vst [vmem:[#allocation2 + $0x30] sm:$0xff] (!%p4771_p10), %v6286_v32  ;;  %324 = vst [vmem:[#allocation2 + $0x38] sm:$0xff] (!%p4771_p10), %v6286_v32 }
  0x33   : > { %325 = vst [vmem:[#allocation2 + $0x40] sm:$0xff] (!%p4771_p10), %v6286_v32  ;;  %326 = vst [vmem:[#allocation2 + $0x48] sm:$0xff] (!%p4771_p10), %v6286_v32 }
  0x34   : > { %327 = vst [vmem:[#allocation2 + $0x50] sm:$0xff] %v6286_v32  ;;  %328 = vst [vmem:[#allocation2 + $0x58] sm:$0xff] %v6286_v32 }
  0x35   : > { %329 = vst [vmem:[#allocation2 + $0x60] sm:$0xff] %v6286_v32  ;;  %330 = vst [vmem:[#allocation2 + $0x68] sm:$0xff] %v6286_v32 }
  0x36   : > { %331 = vst [vmem:[#allocation2 + $0x70] sm:$0xff] %v6286_v32  ;;  %332 = vst [vmem:[#allocation2 + $0x78] sm:$0xff] %v6286_v32 }
  0x37 PF: > { %v5478_v33 = vld [vmem:[%s6426_s7 + $0x4] ss:$16 sps:$4 sm:$0xff]   ;;  %v5480_v34 = vld [vmem:[%s6426_s7 + $0xc] ss:$16 sps:$4 sm:$0xff]   ;;  %v5482_v35 = vld [vmem:[%s6426_s7] ss:$16 sps:$4 sm:$0xff]  }
  0x38   : > { %3613 = vmatprep.subr.bf16.mxu0 %v5478_v33  ;;  %v5483_v36 = vld [vmem:[%s6426_s7 + $0x8] ss:$16 sps:$4 sm:$0xff]   ;;  %4037 = vmatprep.subr.bf16.mxu1 %v5480_v34  ;;  %v5484_v37 = vld [vmem:[%s6426_s7 + $0x24] ss:$16 sps:$4 sm:$0xff]   ;;  %v5486_v38 = vld [vmem:[%s6426_s7 + $0x2c] ss:$16 sps:$4 sm:$0xff]  }
  0x39   : > { %3614 = vmatpush1.bf16.msra.mxu0 %v5482_v35  ;;  %4038 = vmatpush1.bf16.msra.mxu1 %v5483_v36  ;;  %v5488_v39 = vld [vmem:[%s6426_s7 + $0x20] ss:$16 sps:$4 sm:$0xff]   ;;  %v5489_v40 = vld [vmem:[%s6426_s7 + $0x28] ss:$16 sps:$4 sm:$0xff]   ;;  %v5490_v41 = vld [vmem:[%s6426_s7 + $0x44] ss:$16 sps:$4 sm:$0xff]  }
  0x3a   : > { %3615 = vmatprep.subr.bf16.mxu0 %v5484_v37  ;;  %4039 = vmatprep.subr.bf16.mxu1 %v5486_v38  ;;  %v5492_v42 = vld [vmem:[%s6426_s7 + $0x4c] ss:$16 sps:$4 sm:$0xff]   ;;  %v5494_v43 = vld [vmem:[%s6426_s7 + $0x40] ss:$16 sps:$4 sm:$0xff]   ;;  %v5495_v44 = vld [vmem:[%s6426_s7 + $0x48] ss:$16 sps:$4 sm:$0xff]  }
  0x3b   : > { %v5496_v45 = vld [vmem:[%s6426_s7 + $0x64] ss:$16 sps:$4 sm:$0xff]   ;;  %v5498_v46 = vld [vmem:[%s6426_s7 + $0x6c] ss:$16 sps:$4 sm:$0xff]   ;;  %v5500_v47 = vld [vmem:[%s6426_s7 + $0x60] ss:$16 sps:$4 sm:$0xff]  }
  0x3c   : > { %v5501_v48 = vld [vmem:[%s6426_s7 + $0x68] ss:$16 sps:$4 sm:$0xff]   ;;  %v5502_v49 = vld [vmem:[%s6426_s7 + $0x84] ss:$16 sps:$4 sm:$0xff]   ;;  %v5504_v50 = vld [vmem:[%s6426_s7 + $0x8c] ss:$16 sps:$4 sm:$0xff]  }
  0x3d   : > { %3616 = vmatpush1.bf16.msra.mxu0 %v5488_v39  ;;  %4040 = vmatpush1.bf16.msra.mxu1 %v5489_v40  ;;  %v5506_v51 = vld [vmem:[%s6426_s7 + $0x80] ss:$16 sps:$4 sm:$0xff]   ;;  %v5507_v52 = vld [vmem:[%s6426_s7 + $0x88] ss:$16 sps:$4 sm:$0xff]   ;;  %v5508_v53 = vld [vmem:[%s6426_s7 + $0xa4] ss:$16 sps:$4 sm:$0xff]  }
  0x3e   : > { %3617 = vmatprep.subr.bf16.mxu0 %v5490_v41  ;;  %4041 = vmatprep.subr.bf16.mxu1 %v5492_v42  ;;  %v5510_v54 = vld [vmem:[%s6426_s7 + $0xac] ss:$16 sps:$4 sm:$0xff]   ;;  %v5512_v55 = vld [vmem:[%s6426_s7 + $0xa0] ss:$16 sps:$4 sm:$0xff]   ;;  %v5513_v56 = vld [vmem:[%s6426_s7 + $0xa8] ss:$16 sps:$4 sm:$0xff]  }
  0x3f   : > { %v5514_v57 = vld [vmem:[%s6426_s7 + $0xc4] ss:$16 sps:$4 sm:$0xff]   ;;  %v5516_v58 = vld [vmem:[%s6426_s7 + $0xcc] ss:$16 sps:$4 sm:$0xff]   ;;  %v5518_v59 = vld [vmem:[%s6426_s7 + $0xc0] ss:$16 sps:$4 sm:$0xff]  }
  0x40   : > { %v5519_v60 = vld [vmem:[%s6426_s7 + $0xc8] ss:$16 sps:$4 sm:$0xff]   ;;  %v5520_v61 = vld [vmem:[%s6426_s7 + $0xe4] ss:$16 sps:$4 sm:$0xff]   ;;  %v5522_v62 = vld [vmem:[%s6426_s7 + $0xec] ss:$16 sps:$4 sm:$0xff]  }
  0x41   : > { %3618 = vmatpush1.bf16.msra.mxu0 %v5494_v43  ;;  %4042 = vmatpush1.bf16.msra.mxu1 %v5495_v44  ;;  %v5524_v63 = vld [vmem:[%s6426_s7 + $0xe0] ss:$16 sps:$4 sm:$0xff]   ;;  %v5525_v0 = vld [vmem:[%s6426_s7 + $0xe8] ss:$16 sps:$4 sm:$0xff]   ;;  %v5526_v1 = vld [vmem:[%s6426_s7 + $0x104] ss:$16 sps:$4 sm:$0xff]  }
  0x42   : > { %3619 = vmatprep.subr.bf16.mxu0 %v5496_v45  ;;  %4043 = vmatprep.subr.bf16.mxu1 %v5498_v46  ;;  %v5528_v2 = vld [vmem:[%s6426_s7 + $0x10c] ss:$16 sps:$4 sm:$0xff]   ;;  %v5530_v3 = vld [vmem:[%s6426_s7 + $0x100] ss:$16 sps:$4 sm:$0xff]   ;;  %v5531_v4 = vld [vmem:[%s6426_s7 + $0x108] ss:$16 sps:$4 sm:$0xff]  }
  0x43   : > { %v5532_v5 = vld [vmem:[%s6426_s7 + $0x124] ss:$16 sps:$4 sm:$0xff]   ;;  %v5534_v6 = vld [vmem:[%s6426_s7 + $0x12c] ss:$16 sps:$4 sm:$0xff]   ;;  %v5536_v7 = vld [vmem:[%s6426_s7 + $0x120] ss:$16 sps:$4 sm:$0xff]  }
  0x44   : > { %v5537_v8 = vld [vmem:[%s6426_s7 + $0x128] ss:$16 sps:$4 sm:$0xff]   ;;  %v5538_v9 = vld [vmem:[%s6426_s7 + $0x144] ss:$16 sps:$4 sm:$0xff]   ;;  %v5540_v10 = vld [vmem:[%s6426_s7 + $0x14c] ss:$16 sps:$4 sm:$0xff]  }
  0x45   : > { %3620 = vmatpush1.bf16.msra.mxu0 %v5500_v47  ;;  %4044 = vmatpush1.bf16.msra.mxu1 %v5501_v48  ;;  %v5542_v11 = vld [vmem:[%s6426_s7 + $0x140] ss:$16 sps:$4 sm:$0xff]   ;;  %v5543_v12 = vld [vmem:[%s6426_s7 + $0x148] ss:$16 sps:$4 sm:$0xff]   ;;  %v5544_v13 = vld [vmem:[%s6426_s7 + $0x164] ss:$16 sps:$4 sm:$0xff]  }
  0x46   : > { %3621 = vmatprep.subr.bf16.mxu0 %v5502_v49  ;;  %4045 = vmatprep.subr.bf16.mxu1 %v5504_v50  ;;  %v5546_v14 = vld [vmem:[%s6426_s7 + $0x16c] ss:$16 sps:$4 sm:$0xff]   ;;  %v349_v15 = vld [vmem:[%s6428_s8] sm:$0xff]  ;;  %v5549_v18 = vld [vmem:[%s6426_s7 + $0x168] ss:$16 sps:$4 sm:$0xff]   ;;  %p5316_p11 = scmp.ne.s32.totalorder %s6276_s14, 1 }
  0x47   : > { %v357_v16 = vld [vmem:[%s6428_s8 + $0x40] sm:$0xff]  ;;  %v5552_v21 = vld [vmem:[%s6426_s7 + $0x18c] ss:$16 sps:$4 sm:$0xff]   ;;  %v5555_v23 = vld [vmem:[%s6426_s7 + $0x188] ss:$16 sps:$4 sm:$0xff]   ;;  %vm4617_vm0 = vcmask (!%p5316_p11), 1040384  }
  0x48   : > { %v5548_v17 = vld [vmem:[%s6426_s7 + $0x160] ss:$16 sps:$4 sm:$0xff]   ;;  %v4773_v19 = vcombine.high %v349_v15, %v357_v16  ;;  %v5550_v20 = vld [vmem:[%s6426_s7 + $0x184] ss:$16 sps:$4 sm:$0xff]   ;;  %v5558_v25 = vld [vmem:[%s6426_s7 + $0x1ac] ss:$16 sps:$4 sm:$0xff]   ;;  %v4772_v38 = vcombine.low %v349_v15, %v357_v16 }
  0x49   : > { %3622 = vmatpush1.bf16.msra.mxu0 %v5506_v51  ;;  %4046 = vmatpush1.bf16.msra.mxu1 %v5507_v52  ;;  %v5554_v22 = vld [vmem:[%s6426_s7 + $0x180] ss:$16 sps:$4 sm:$0xff]   ;;  %v5556_v24 = vld [vmem:[%s6426_s7 + $0x1a4] ss:$16 sps:$4 sm:$0xff]   ;;  %v5561_v27 = vld [vmem:[%s6426_s7 + $0x1a8] ss:$16 sps:$4 sm:$0xff]  }
  0x4a   : > { %3623 = vmatprep.subr.bf16.mxu0 %v5508_v53  ;;  %4047 = vmatprep.subr.bf16.mxu1 %v5510_v54  ;;  %v5560_v26 = vld [vmem:[%s6426_s7 + $0x1a0] ss:$16 sps:$4 sm:$0xff]   ;;  %v5562_v28 = vld [vmem:[%s6426_s7 + $0x1c4] ss:$16 sps:$4 sm:$0xff]   ;;  %v5564_v29 = vld [vmem:[%s6426_s7 + $0x1cc] ss:$16 sps:$4 sm:$0xff]  }
  0x4b   : > { %3645 = vmatprep.mubr.bf16.mxu0 %v4773_v19  ;;  %4069 = vmatprep.mubr.bf16.mxu1 %v4773_v19  ;;  %v5566_v30 = vld [vmem:[%s6426_s7 + $0x1c0] ss:$16 sps:$4 sm:$0xff]   ;;  %v5567_v31 = vld [vmem:[%s6426_s7 + $0x1c8] ss:$16 sps:$4 sm:$0xff]   ;;  %v5568_v32 = vld [vmem:[%s6426_s7 + $0x1e4] ss:$16 sps:$4 sm:$0xff]  }
  0x4c   : > { %v5570_v33 = vld [vmem:[%s6426_s7 + $0x1ec] ss:$16 sps:$4 sm:$0xff]   ;;  %v5572_v34 = vld [vmem:[%s6426_s7 + $0x1e0] ss:$16 sps:$4 sm:$0xff]   ;;  %v5573_v35 = vld [vmem:[%s6426_s7 + $0x1e8] ss:$16 sps:$4 sm:$0xff]  }
  0x4d   : > { %3624 = vmatpush1.bf16.msra.mxu0 %v5512_v55  ;;  %4048 = vmatpush1.bf16.msra.mxu1 %v5513_v56  ;;  %v5576_v36 = vld [vmem:[%s6426_s7 + $0x204] ss:$16 sps:$4 sm:$0xff]   ;;  %v5579_v37 = vld [vmem:[%s6426_s7 + $0x20c] ss:$16 sps:$4 sm:$0xff]   ;;  %v5574_v39 = vld [vmem:[%s6426_s7 + $0x200] ss:$16 sps:$4 sm:$0xff]  }
  0x4e   : > { %3625 = vmatprep.subr.bf16.mxu0 %v5514_v57  ;;  %4049 = vmatprep.subr.bf16.mxu1 %v5516_v58  ;;  %v5577_v40 = vld [vmem:[%s6426_s7 + $0x208] ss:$16 sps:$4 sm:$0xff]   ;;  %v5582_v41 = vld [vmem:[%s6426_s7 + $0x224] ss:$16 sps:$4 sm:$0xff]   ;;  %v5585_v42 = vld [vmem:[%s6426_s7 + $0x22c] ss:$16 sps:$4 sm:$0xff]  }
  0x4f   : > { %v5580_v43 = vld [vmem:[%s6426_s7 + $0x220] ss:$16 sps:$4 sm:$0xff]   ;;  %v5583_v44 = vld [vmem:[%s6426_s7 + $0x228] ss:$16 sps:$4 sm:$0xff]   ;;  %v5588_v45 = vld [vmem:[%s6426_s7 + $0x244] ss:$16 sps:$4 sm:$0xff]  }
  0x50   : > { %v5591_v46 = vld [vmem:[%s6426_s7 + $0x24c] ss:$16 sps:$4 sm:$0xff]   ;;  %v5586_v47 = vld [vmem:[%s6426_s7 + $0x240] ss:$16 sps:$4 sm:$0xff]   ;;  %v5589_v48 = vld [vmem:[%s6426_s7 + $0x248] ss:$16 sps:$4 sm:$0xff]  }
  0x51   : > { %3626 = vmatpush1.bf16.msra.mxu0 %v5518_v59  ;;  %4050 = vmatpush1.bf16.msra.mxu1 %v5519_v60  ;;  %v5594_v49 = vld [vmem:[%s6426_s7 + $0x264] ss:$16 sps:$4 sm:$0xff]   ;;  %v5597_v50 = vld [vmem:[%s6426_s7 + $0x26c] ss:$16 sps:$4 sm:$0xff]   ;;  %v5592_v51 = vld [vmem:[%s6426_s7 + $0x260] ss:$16 sps:$4 sm:$0xff]  }
  0x52   : > { %3627 = vmatprep.subr.bf16.mxu0 %v5520_v61  ;;  %4051 = vmatprep.subr.bf16.mxu1 %v5522_v62  ;;  %v5595_v52 = vld [vmem:[%s6426_s7 + $0x268] ss:$16 sps:$4 sm:$0xff]   ;;  %v5600_v53 = vld [vmem:[%s6426_s7 + $0x284] ss:$16 sps:$4 sm:$0xff]   ;;  %v5603_v54 = vld [vmem:[%s6426_s7 + $0x28c] ss:$16 sps:$4 sm:$0xff]  }
  0x53   : > { %v5598_v55 = vld [vmem:[%s6426_s7 + $0x280] ss:$16 sps:$4 sm:$0xff]   ;;  %v5601_v56 = vld [vmem:[%s6426_s7 + $0x288] ss:$16 sps:$4 sm:$0xff]   ;;  %v5606_v57 = vld [vmem:[%s6426_s7 + $0x2a4] ss:$16 sps:$4 sm:$0xff]  }
  0x54   : > { %v5609_v58 = vld [vmem:[%s6426_s7 + $0x2ac] ss:$16 sps:$4 sm:$0xff]   ;;  %v365_v59 = vld [vmem:[%s6428_s8 + $0x80] sm:$0xff]  ;;  %v5625_v15 = vld [vmem:[%s6426_s7 + $0x308] ss:$16 sps:$4 sm:$0xff]  }
  0x55   : > { %3628 = vmatpush1.bf16.msra.mxu0 %v5524_v63  ;;  %4052 = vmatpush1.bf16.msra.mxu1 %v5525_v0  ;;  %v373_v60 = vld [vmem:[%s6428_s8 + $0xc0] sm:$0xff]  ;;  %v5607_v63 = vld [vmem:[%s6426_s7 + $0x2a8] ss:$16 sps:$4 sm:$0xff]  }
  0x56   : > { %3629 = vmatprep.subr.bf16.mxu0 %v5526_v1  ;;  %4053 = vmatprep.subr.bf16.mxu1 %v5528_v2  ;;  %v4789_v61 = vcombine.high %v365_v59, %v373_v60  ;;  %v5604_v62 = vld [vmem:[%s6426_s7 + $0x2a0] ss:$16 sps:$4 sm:$0xff]   ;;  %v4788_v0 = vcombine.low %v365_v59, %v373_v60  ;;  %v5612_v1 = vld [vmem:[%s6426_s7 + $0x2c4] ss:$16 sps:$4 sm:$0xff]   ;;  %v5615_v2 = vld [vmem:[%s6426_s7 + $0x2cc] ss:$16 sps:$4 sm:$0xff]  }
  0x57   : > { %v5630_v16 = vld [vmem:[%s6426_s7 + $0x324] ss:$16 sps:$4 sm:$0xff]   ;;  %v5631_v19 = vld [vmem:[%s6426_s7 + $0x328] ss:$16 sps:$4 sm:$0xff]  }
  0x58   : > { %v6589_v60 = vld [vmem:[%s6428_s8 + $0x50] sm:$0xff] }
  0x59   : > { %3630 = vmatpush1.bf16.msra.mxu0 %v5530_v3  ;;  %4054 = vmatpush1.bf16.msra.mxu1 %v5531_v4  ;;  %v6526_v3 = vld [vmem:[%s6428_s8 + $0x8] sm:$0xff] }
  0x5a   : > { %3631 = vmatprep.subr.bf16.mxu0 %v5532_v5  ;;  %4055 = vmatprep.subr.bf16.mxu1 %v5534_v6  ;;  %v6529_v4 = vld [vmem:[%s6428_s8 + $0x48] sm:$0xff]  ;;  %v5610_v5 = vld [vmem:[%s6426_s7 + $0x2c0] ss:$16 sps:$4 sm:$0xff]  }
  0x5b   : > { %v5613_v6 = vld [vmem:[%s6426_s7 + $0x2c8] ss:$16 sps:$4 sm:$0xff]  }
  0x5d   : > { %3632 = vmatpush1.bf16.msra.mxu0 %v5536_v7  ;;  %4056 = vmatpush1.bf16.msra.mxu1 %v5537_v8  ;;  %v4775_v7 = vcombine.high %v6526_v3, %v6529_v4  ;;  %v5618_v8 = vld [vmem:[%s6426_s7 + $0x2e4] ss:$16 sps:$4 sm:$0xff]  }
  0x5e   : > { %3633 = vmatprep.subr.bf16.mxu0 %v5538_v9  ;;  %4057 = vmatprep.subr.bf16.mxu1 %v5540_v10  ;;  %v5621_v9 = vld [vmem:[%s6426_s7 + $0x2ec] ss:$16 sps:$4 sm:$0xff]   ;;  %v5616_v10 = vld [vmem:[%s6426_s7 + $0x2e0] ss:$16 sps:$4 sm:$0xff]  }
  0x61   : > { %3634 = vmatpush1.bf16.msra.mxu0 %v5542_v11  ;;  %4058 = vmatpush1.bf16.msra.mxu1 %v5543_v12  ;;  %v5619_v11 = vld [vmem:[%s6426_s7 + $0x2e8] ss:$16 sps:$4 sm:$0xff]   ;;  %v5624_v12 = vld [vmem:[%s6426_s7 + $0x304] ss:$16 sps:$4 sm:$0xff]  }
  0x62   : > { %3635 = vmatprep.subr.bf16.mxu0 %v5544_v13  ;;  %4059 = vmatprep.subr.bf16.mxu1 %v5546_v14  ;;  %v5627_v13 = vld [vmem:[%s6426_s7 + $0x30c] ss:$16 sps:$4 sm:$0xff]   ;;  %v5622_v14 = vld [vmem:[%s6426_s7 + $0x300] ss:$16 sps:$4 sm:$0xff]  }
  0x65   : > { %3636 = vmatpush1.bf16.msra.mxu0 %v5548_v17  ;;  %4060 = vmatpush1.bf16.msra.mxu1 %v5549_v18  ;;  %v5633_v17 = vld [vmem:[%s6426_s7 + $0x32c] ss:$16 sps:$4 sm:$0xff]   ;;  %v5628_v18 = vld [vmem:[%s6426_s7 + $0x320] ss:$16 sps:$4 sm:$0xff]  }
  0x66   : > { %3637 = vmatprep.subr.bf16.mxu0 %v5550_v20  ;;  %4061 = vmatprep.subr.bf16.mxu1 %v5552_v21  ;;  %v5636_v20 = vld [vmem:[%s6426_s7 + $0x344] ss:$16 sps:$4 sm:$0xff]   ;;  %v5639_v21 = vld [vmem:[%s6426_s7 + $0x34c] ss:$16 sps:$4 sm:$0xff]  }
  0x69   : > { %3638 = vmatpush1.bf16.msra.mxu0 %v5554_v22  ;;  %4062 = vmatpush1.bf16.msra.mxu1 %v5555_v23  ;;  %v5634_v22 = vld [vmem:[%s6426_s7 + $0x340] ss:$16 sps:$4 sm:$0xff]   ;;  %v5637_v23 = vld [vmem:[%s6426_s7 + $0x348] ss:$16 sps:$4 sm:$0xff]  }
  0x6a   : > { %3639 = vmatprep.subr.bf16.mxu0 %v5556_v24  ;;  %4063 = vmatprep.subr.bf16.mxu1 %v5558_v25  ;;  %v5642_v24 = vld [vmem:[%s6426_s7 + $0x364] ss:$16 sps:$4 sm:$0xff]   ;;  %v5645_v25 = vld [vmem:[%s6426_s7 + $0x36c] ss:$16 sps:$4 sm:$0xff]  }
  0x6d   : > { %3640 = vmatpush1.bf16.msra.mxu0 %v5560_v26  ;;  %4064 = vmatpush1.bf16.msra.mxu1 %v5561_v27  ;;  %v5640_v26 = vld [vmem:[%s6426_s7 + $0x360] ss:$16 sps:$4 sm:$0xff]   ;;  %v5643_v27 = vld [vmem:[%s6426_s7 + $0x368] ss:$16 sps:$4 sm:$0xff]  }
  0x6e   : > { %3641 = vmatprep.subr.bf16.mxu0 %v5562_v28  ;;  %4065 = vmatprep.subr.bf16.mxu1 %v5564_v29  ;;  %v5648_v28 = vld [vmem:[%s6426_s7 + $0x384] ss:$16 sps:$4 sm:$0xff]   ;;  %v5651_v29 = vld [vmem:[%s6426_s7 + $0x38c] ss:$16 sps:$4 sm:$0xff]  }
  0x71   : > { %3642 = vmatpush1.bf16.msra.mxu0 %v5566_v30  ;;  %4066 = vmatpush1.bf16.msra.mxu1 %v5567_v31  ;;  %v5646_v30 = vld [vmem:[%s6426_s7 + $0x380] ss:$16 sps:$4 sm:$0xff]   ;;  %v5649_v31 = vld [vmem:[%s6426_s7 + $0x388] ss:$16 sps:$4 sm:$0xff]  }
  0x72   : > { %3643 = vmatprep.subr.bf16.mxu0 %v5568_v32  ;;  %4067 = vmatprep.subr.bf16.mxu1 %v5570_v33  ;;  %v5654_v32 = vld [vmem:[%s6426_s7 + $0x3a4] ss:$16 sps:$4 sm:$0xff]   ;;  %v5657_v33 = vld [vmem:[%s6426_s7 + $0x3ac] ss:$16 sps:$4 sm:$0xff]  }
  0x75   : > { %3644 = vmatpush1.bf16.msra.mxu0 %v5572_v34  ;;  %4068 = vmatpush1.bf16.msra.mxu1 %v5573_v35  ;;  %v5652_v34 = vld [vmem:[%s6426_s7 + $0x3a0] ss:$16 sps:$4 sm:$0xff]   ;;  %v5655_v35 = vld [vmem:[%s6426_s7 + $0x3a8] ss:$16 sps:$4 sm:$0xff]  }
  0x76   : > { %3666 = vmatprep.subr.bf16.mxu0 %v5576_v36  ;;  %4090 = vmatprep.subr.bf16.mxu1 %v5579_v37  ;;  %v5660_v36 = vld [vmem:[%s6426_s7 + $0x3c4] ss:$16 sps:$4 sm:$0xff]   ;;  %v5663_v37 = vld [vmem:[%s6426_s7 + $0x3cc] ss:$16 sps:$4 sm:$0xff]  }
  0x78   : > { %3646 = vmatmul.mubr.bf16.vlgmr.msra.gmra.mrb[0].mxu0 %v4772_v38  ;;  %4070 = vmatmul.mubr.bf16.vlgmr.msra.gmra.mrb[0].mxu1 %v4772_v38  ;;  %v5658_v38 = vld [vmem:[%s6426_s7 + $0x3c0] ss:$16 sps:$4 sm:$0xff]  }
  0x79   : > { %3667 = vmatpush1.bf16.msra.mxu0 %v5574_v39  ;;  %4091 = vmatpush1.bf16.msra.mxu1 %v5577_v40  ;;  %v5661_v39 = vld [vmem:[%s6426_s7 + $0x3c8] ss:$16 sps:$4 sm:$0xff]   ;;  %v5666_v40 = vld [vmem:[%s6426_s7 + $0x3e4] ss:$16 sps:$4 sm:$0xff]  }
  0x7a   : > { %3668 = vmatprep.subr.bf16.mxu0 %v5582_v41  ;;  %4092 = vmatprep.subr.bf16.mxu1 %v5585_v42  ;;  %v5669_v41 = vld [vmem:[%s6426_s7 + $0x3ec] ss:$16 sps:$4 sm:$0xff]   ;;  %v5664_v42 = vld [vmem:[%s6426_s7 + $0x3e0] ss:$16 sps:$4 sm:$0xff]  }
  0x7b   : > { %3655 = vmatprep.mubr.bf16.mxu0 %v4789_v61  ;;  %4079 = vmatprep.mubr.bf16.mxu1 %v4789_v61  ;;  %v5682_v61 = vld [vmem:[%s6426_s7 + $0x440] ss:$16 sps:$4 sm:$0xff]  }
  0x7d   : > { %3669 = vmatpush1.bf16.msra.mxu0 %v5580_v43  ;;  %4093 = vmatpush1.bf16.msra.mxu1 %v5583_v44  ;;  %v5667_v43 = vld [vmem:[%s6426_s7 + $0x3e8] ss:$16 sps:$4 sm:$0xff]   ;;  %v5672_v44 = vld [vmem:[%s6426_s7 + $0x404] ss:$16 sps:$4 sm:$0xff]  }
  0x7e   : > { %3670 = vmatprep.subr.bf16.mxu0 %v5588_v45  ;;  %4094 = vmatprep.subr.bf16.mxu1 %v5591_v46  ;;  %v5675_v45 = vld [vmem:[%s6426_s7 + $0x40c] ss:$16 sps:$4 sm:$0xff]   ;;  %v5670_v46 = vld [vmem:[%s6426_s7 + $0x400] ss:$16 sps:$4 sm:$0xff]  }
  0x80   : > { %3656 = vmatmul.mubr.bf16.gmra.mrb[4].mxu0 %v4788_v0  ;;  %4080 = vmatmul.mubr.bf16.gmra.mrb[4].mxu1 %v4788_v0  ;;  %v5693_v0 = vld [vmem:[%s6426_s7 + $0x46c] ss:$16 sps:$4 sm:$0xff]  }
  0x81   : > { %3671 = vmatpush1.bf16.msra.mxu0 %v5586_v47  ;;  %4095 = vmatpush1.bf16.msra.mxu1 %v5589_v48  ;;  %v5673_v47 = vld [vmem:[%s6426_s7 + $0x408] ss:$16 sps:$4 sm:$0xff]   ;;  %v4774_v48 = vcombine.low %v6526_v3, %v6529_v4  ;;  %v5696_v4 = vld [vmem:[%s6426_s7 + $0x484] ss:$16 sps:$4 sm:$0xff]  }
  0x82   : > { %3672 = vmatprep.subr.bf16.mxu0 %v5594_v49  ;;  %4096 = vmatprep.subr.bf16.mxu1 %v5597_v50  ;;  %v366_v49 = vld [vmem:[%s6428_s8 + $0x88] sm:$0xff] }
  0x83   : > { %3698 = vmatprep.mubr.bf16.mxu0 %v4775_v7  ;;  %4122 = vmatprep.mubr.bf16.mxu1 %v4775_v7  ;;  %v374_v50 = vld [vmem:[%s6428_s8 + $0xc8] sm:$0xff] }
  0x84   : > { %v4790_v59 = vcombine.low %v366_v49, %v374_v50  ;;  %v5691_v3 = vld [vmem:[%s6426_s7 + $0x468] ss:$16 sps:$4 sm:$0xff]  }
  0x85   : > { %3673 = vmatpush1.bf16.msra.mxu0 %v5592_v51  ;;  %4097 = vmatpush1.bf16.msra.mxu1 %v5595_v52  ;;  %v5678_v51 = vld [vmem:[%s6426_s7 + $0x424] ss:$16 sps:$4 sm:$0xff]   ;;  %v5681_v52 = vld [vmem:[%s6426_s7 + $0x42c] ss:$16 sps:$4 sm:$0xff]   ;;  %v5697_v7 = vld [vmem:[%s6426_s7 + $0x488] ss:$16 sps:$4 sm:$0xff]  }
  0x86   : > { %3674 = vmatprep.subr.bf16.mxu0 %v5600_v53  ;;  %4098 = vmatprep.subr.bf16.mxu1 %v5603_v54  ;;  %v4791_v53 = vcombine.high %v366_v49, %v374_v50  ;;  %v5676_v54 = vld [vmem:[%s6426_s7 + $0x420] ss:$16 sps:$4 sm:$0xff]   ;;  %v5765_v49 = vld [vmem:[%s6426_s7 + $0x5ec] ss:$16 sps:$4 sm:$0xff]  }
  0x87   : > { %v5760_v50 = vld [vmem:[%s6426_s7 + $0x5e0] ss:$16 sps:$4 sm:$0xff]  }
  0x89   : > { %3675 = vmatpush1.bf16.msra.mxu0 %v5598_v55  ;;  %4099 = vmatpush1.bf16.msra.mxu1 %v5601_v56  ;;  %v5679_v55 = vld [vmem:[%s6426_s7 + $0x428] ss:$16 sps:$4 sm:$0xff]   ;;  %v5684_v56 = vld [vmem:[%s6426_s7 + $0x444] ss:$16 sps:$4 sm:$0xff]  }
  0x8a   : > { %3676 = vmatprep.subr.bf16.mxu0 %v5606_v57  ;;  %4100 = vmatprep.subr.bf16.mxu1 %v5609_v58  ;;  %v5687_v57 = vld [vmem:[%s6426_s7 + $0x44c] ss:$16 sps:$4 sm:$0xff]   ;;  %v6586_v58 = vld [vmem:[%s6428_s8 + $0x10] sm:$0xff] }
  0x8d   : > { %3677 = vmatpush1.bf16.msra.mxu0 %v5604_v62  ;;  %4101 = vmatpush1.bf16.msra.mxu1 %v5607_v63  ;;  %v5685_v62 = vld [vmem:[%s6426_s7 + $0x448] ss:$16 sps:$4 sm:$0xff]   ;;  %v5690_v63 = vld [vmem:[%s6426_s7 + $0x464] ss:$16 sps:$4 sm:$0xff]  }
  0x8e   : > { %3678 = vmatprep.subr.bf16.mxu0 %v5612_v1  ;;  %4102 = vmatprep.subr.bf16.mxu1 %v5615_v2  ;;  %v4777_v1 = vcombine.high %v6586_v58, %v6589_v60  ;;  %v5688_v2 = vld [vmem:[%s6426_s7 + $0x460] ss:$16 sps:$4 sm:$0xff]  }
  0x91   : > { %3679 = vmatpush1.bf16.msra.mxu0 %v5610_v5  ;;  %4103 = vmatpush1.bf16.msra.mxu1 %v5613_v6  ;;  %v5699_v5 = vld [vmem:[%s6426_s7 + $0x48c] ss:$16 sps:$4 sm:$0xff]   ;;  %v5694_v6 = vld [vmem:[%s6426_s7 + $0x480] ss:$16 sps:$4 sm:$0xff]  }
  0x92   : > { %3680 = vmatprep.subr.bf16.mxu0 %v5618_v8  ;;  %4104 = vmatprep.subr.bf16.mxu1 %v5621_v9  ;;  %v5702_v8 = vld [vmem:[%s6426_s7 + $0x4a4] ss:$16 sps:$4 sm:$0xff]   ;;  %v5705_v9 = vld [vmem:[%s6426_s7 + $0x4ac] ss:$16 sps:$4 sm:$0xff]  }
  0x95   : > { %3681 = vmatpush1.bf16.msra.mxu0 %v5616_v10  ;;  %4105 = vmatpush1.bf16.msra.mxu1 %v5619_v11  ;;  %v5700_v10 = vld [vmem:[%s6426_s7 + $0x4a0] ss:$16 sps:$4 sm:$0xff]   ;;  %v5703_v11 = vld [vmem:[%s6426_s7 + $0x4a8] ss:$16 sps:$4 sm:$0xff]  }
  0x96   : > { %3682 = vmatprep.subr.bf16.mxu0 %v5624_v12  ;;  %4106 = vmatprep.subr.bf16.mxu1 %v5627_v13  ;;  %v5708_v12 = vld [vmem:[%s6426_s7 + $0x4c4] ss:$16 sps:$4 sm:$0xff]   ;;  %v5711_v13 = vld [vmem:[%s6426_s7 + $0x4cc] ss:$16 sps:$4 sm:$0xff]  }
  0x99   : > { %3683 = vmatpush1.bf16.msra.mxu0 %v5622_v14  ;;  %4107 = vmatpush1.bf16.msra.mxu1 %v5625_v15  ;;  %v5706_v14 = vld [vmem:[%s6426_s7 + $0x4c0] ss:$16 sps:$4 sm:$0xff]   ;;  %v5709_v15 = vld [vmem:[%s6426_s7 + $0x4c8] ss:$16 sps:$4 sm:$0xff]  }
  0x9a   : > { %3684 = vmatprep.subr.bf16.mxu0 %v5630_v16  ;;  %4108 = vmatprep.subr.bf16.mxu1 %v5633_v17  ;;  %v5714_v16 = vld [vmem:[%s6426_s7 + $0x4e4] ss:$16 sps:$4 sm:$0xff]   ;;  %v5717_v17 = vld [vmem:[%s6426_s7 + $0x4ec] ss:$16 sps:$4 sm:$0xff]  }
  0x9d   : > { %3685 = vmatpush1.bf16.msra.mxu0 %v5628_v18  ;;  %4109 = vmatpush1.bf16.msra.mxu1 %v5631_v19  ;;  %v5712_v18 = vld [vmem:[%s6426_s7 + $0x4e0] ss:$16 sps:$4 sm:$0xff]   ;;  %v5715_v19 = vld [vmem:[%s6426_s7 + $0x4e8] ss:$16 sps:$4 sm:$0xff]  }
  0x9e   : > { %3686 = vmatprep.subr.bf16.mxu0 %v5636_v20  ;;  %4110 = vmatprep.subr.bf16.mxu1 %v5639_v21  ;;  %v5720_v20 = vld [vmem:[%s6426_s7 + $0x504] ss:$16 sps:$4 sm:$0xff]   ;;  %v5723_v21 = vld [vmem:[%s6426_s7 + $0x50c] ss:$16 sps:$4 sm:$0xff]  }
  0xa1   : > { %3687 = vmatpush1.bf16.msra.mxu0 %v5634_v22  ;;  %4111 = vmatpush1.bf16.msra.mxu1 %v5637_v23  ;;  %v5718_v22 = vld [vmem:[%s6426_s7 + $0x500] ss:$16 sps:$4 sm:$0xff]   ;;  %v5721_v23 = vld [vmem:[%s6426_s7 + $0x508] ss:$16 sps:$4 sm:$0xff]  }
  0xa2   : > { %3688 = vmatprep.subr.bf16.mxu0 %v5642_v24  ;;  %4112 = vmatprep.subr.bf16.mxu1 %v5645_v25  ;;  %v5726_v24 = vld [vmem:[%s6426_s7 + $0x524] ss:$16 sps:$4 sm:$0xff]   ;;  %v5729_v25 = vld [vmem:[%s6426_s7 + $0x52c] ss:$16 sps:$4 sm:$0xff]  }
  0xa5   : > { %3689 = vmatpush1.bf16.msra.mxu0 %v5640_v26  ;;  %4113 = vmatpush1.bf16.msra.mxu1 %v5643_v27  ;;  %v5724_v26 = vld [vmem:[%s6426_s7 + $0x520] ss:$16 sps:$4 sm:$0xff]   ;;  %v5727_v27 = vld [vmem:[%s6426_s7 + $0x528] ss:$16 sps:$4 sm:$0xff]  }
  0xa6   : > { %3690 = vmatprep.subr.bf16.mxu0 %v5648_v28  ;;  %4114 = vmatprep.subr.bf16.mxu1 %v5651_v29  ;;  %v5732_v28 = vld [vmem:[%s6426_s7 + $0x544] ss:$16 sps:$4 sm:$0xff]   ;;  %v5735_v29 = vld [vmem:[%s6426_s7 + $0x54c] ss:$16 sps:$4 sm:$0xff]  }
  0xa9   : > { %3691 = vmatpush1.bf16.msra.mxu0 %v5646_v30  ;;  %4115 = vmatpush1.bf16.msra.mxu1 %v5649_v31  ;;  %v5730_v30 = vld [vmem:[%s6426_s7 + $0x540] ss:$16 sps:$4 sm:$0xff]   ;;  %v5733_v31 = vld [vmem:[%s6426_s7 + $0x548] ss:$16 sps:$4 sm:$0xff]  }
  0xaa   : > { %3692 = vmatprep.subr.bf16.mxu0 %v5654_v32  ;;  %4116 = vmatprep.subr.bf16.mxu1 %v5657_v33  ;;  %v5738_v32 = vld [vmem:[%s6426_s7 + $0x564] ss:$16 sps:$4 sm:$0xff]   ;;  %v5741_v33 = vld [vmem:[%s6426_s7 + $0x56c] ss:$16 sps:$4 sm:$0xff]  }
  0xad   : > { %3693 = vmatpush1.bf16.msra.mxu0 %v5652_v34  ;;  %4117 = vmatpush1.bf16.msra.mxu1 %v5655_v35  ;;  %v5736_v34 = vld [vmem:[%s6426_s7 + $0x560] ss:$16 sps:$4 sm:$0xff]   ;;  %v5739_v35 = vld [vmem:[%s6426_s7 + $0x568] ss:$16 sps:$4 sm:$0xff]  }
  0xae   : > { %3694 = vmatprep.subr.bf16.mxu0 %v5660_v36  ;;  %4118 = vmatprep.subr.bf16.mxu1 %v5663_v37  ;;  %v5744_v36 = vld [vmem:[%s6426_s7 + $0x584] ss:$16 sps:$4 sm:$0xff]   ;;  %v5747_v37 = vld [vmem:[%s6426_s7 + $0x58c] ss:$16 sps:$4 sm:$0xff]  }
  0xb1   : > { %3695 = vmatpush1.bf16.msra.mxu0 %v5658_v38  ;;  %4119 = vmatpush1.bf16.msra.mxu1 %v5661_v39  ;;  %v5742_v38 = vld [vmem:[%s6426_s7 + $0x580] ss:$16 sps:$4 sm:$0xff]   ;;  %v5745_v39 = vld [vmem:[%s6426_s7 + $0x588] ss:$16 sps:$4 sm:$0xff]  }
  0xb2   : > { %3696 = vmatprep.subr.bf16.mxu0 %v5666_v40  ;;  %4120 = vmatprep.subr.bf16.mxu1 %v5669_v41  ;;  %v5750_v40 = vld [vmem:[%s6426_s7 + $0x5a4] ss:$16 sps:$4 sm:$0xff]   ;;  %v5753_v41 = vld [vmem:[%s6426_s7 + $0x5ac] ss:$16 sps:$4 sm:$0xff]  }
  0xb5   : > { %3697 = vmatpush1.bf16.msra.mxu0 %v5664_v42  ;;  %4121 = vmatpush1.bf16.msra.mxu1 %v5667_v43  ;;  %v5748_v42 = vld [vmem:[%s6426_s7 + $0x5a0] ss:$16 sps:$4 sm:$0xff]   ;;  %v5751_v43 = vld [vmem:[%s6426_s7 + $0x5a8] ss:$16 sps:$4 sm:$0xff]  }
  0xb6   : > { %3719 = vmatprep.subr.bf16.mxu0 %v5672_v44  ;;  %4143 = vmatprep.subr.bf16.mxu1 %v5675_v45  ;;  %v5756_v44 = vld [vmem:[%s6426_s7 + $0x5c4] ss:$16 sps:$4 sm:$0xff]   ;;  %v5759_v45 = vld [vmem:[%s6426_s7 + $0x5cc] ss:$16 sps:$4 sm:$0xff]  }
  0xb8   : > { %3699 = vmatmul.mubr.bf16.vlgmr.msra.gmra.mrb[0].mxu0 %v4774_v48  ;;  %4123 = vmatmul.mubr.bf16.vlgmr.msra.gmra.mrb[0].mxu1 %v4774_v48  ;;  %v5762_v48 = vld [vmem:[%s6426_s7 + $0x5e4] ss:$16 sps:$4 sm:$0xff]  }
  0xb9   : > { %3720 = vmatpush1.bf16.msra.mxu0 %v5670_v46  ;;  %4144 = vmatpush1.bf16.msra.mxu1 %v5673_v47  ;;  %v5754_v46 = vld [vmem:[%s6426_s7 + $0x5c0] ss:$16 sps:$4 sm:$0xff]   ;;  %v5757_v47 = vld [vmem:[%s6426_s7 + $0x5c8] ss:$16 sps:$4 sm:$0xff]  }
  0xba   : > { %3721 = vmatprep.subr.bf16.mxu0 %v5678_v51  ;;  %4145 = vmatprep.subr.bf16.mxu1 %v5681_v52  ;;  %v5763_v51 = vld [vmem:[%s6426_s7 + $0x5e8] ss:$16 sps:$4 sm:$0xff]   ;;  %v5768_v52 = vld [vmem:[%s6426_s7 + $0x604] ss:$16 sps:$4 sm:$0xff]  }
  0xbb   : > { %3708 = vmatprep.mubr.bf16.mxu0 %v4791_v53  ;;  %4132 = vmatprep.mubr.bf16.mxu1 %v4791_v53  ;;  %v5771_v53 = vld [vmem:[%s6426_s7 + $0x60c] ss:$16 sps:$4 sm:$0xff]  }
  0xbd   : > { %3722 = vmatpush1.bf16.msra.mxu0 %v5676_v54  ;;  %4146 = vmatpush1.bf16.msra.mxu1 %v5679_v55  ;;  %v367_v54 = vld [vmem:[%s6428_s8 + $0x90] sm:$0xff]  ;;  %v4776_v55 = vcombine.low %v6586_v58, %v6589_v60  ;;  %v5775_v60 = vld [vmem:[%s6426_s7 + $0x628] ss:$16 sps:$4 sm:$0xff]  }
  0xbe   : > { %3723 = vmatprep.subr.bf16.mxu0 %v5684_v56  ;;  %4147 = vmatprep.subr.bf16.mxu1 %v5687_v57  ;;  %v375_v56 = vld [vmem:[%s6428_s8 + $0xd0] sm:$0xff] }
  0xbf   : > { %v5766_v57 = vld [vmem:[%s6426_s7 + $0x600] ss:$16 sps:$4 sm:$0xff]  }
  0xc0   : > { %3709 = vmatmul.mubr.bf16.gmra.mrb[4].mxu0 %v4790_v59  ;;  %4133 = vmatmul.mubr.bf16.gmra.mrb[4].mxu1 %v4790_v59  ;;  %v5769_v59 = vld [vmem:[%s6426_s7 + $0x608] ss:$16 sps:$4 sm:$0xff]   ;;  %v5772_v58 = vld [vmem:[%s6426_s7 + $0x620] ss:$16 sps:$4 sm:$0xff]  }
  0xc1   : > { %3724 = vmatpush1.bf16.msra.mxu0 %v5682_v61  ;;  %4148 = vmatpush1.bf16.msra.mxu1 %v5685_v62  ;;  %v5774_v61 = vld [vmem:[%s6426_s7 + $0x624] ss:$16 sps:$4 sm:$0xff]   ;;  %v5777_v62 = vld [vmem:[%s6426_s7 + $0x62c] ss:$16 sps:$4 sm:$0xff]  }
  0xc2   : > { %3725 = vmatprep.subr.bf16.mxu0 %v5690_v63  ;;  %4149 = vmatprep.subr.bf16.mxu1 %v5693_v0  ;;  %v4793_v63 = vcombine.high %v367_v54, %v375_v56  ;;  %v5780_v0 = vld [vmem:[%s6426_s7 + $0x644] ss:$16 sps:$4 sm:$0xff]  }
  0xc3   : > { %3751 = vmatprep.mubr.bf16.mxu0 %v4777_v1  ;;  %4175 = vmatprep.mubr.bf16.mxu1 %v4777_v1  ;;  %v5783_v1 = vld [vmem:[%s6426_s7 + $0x64c] ss:$16 sps:$4 sm:$0xff]  }
  0xc5   : > { %3726 = vmatpush1.bf16.msra.mxu0 %v5688_v2  ;;  %4150 = vmatpush1.bf16.msra.mxu1 %v5691_v3  ;;  %v6662_v2 = vld [vmem:[%s6428_s8 + $0x18] sm:$0xff]  ;;  %v4792_v3 = vcombine.low %v367_v54, %v375_v56  ;;  %v5850_v54 = vld [vmem:[%s6426_s7 + $0x7c0] ss:$16 sps:$4 sm:$0xff]   ;;  %v5858_v56 = vld [vmem:[%s6426_s7 + $0x7e4] ss:$16 sps:$4 sm:$0xff]  }
  0xc6   : > { %3727 = vmatprep.subr.bf16.mxu0 %v5696_v4  ;;  %4151 = vmatprep.subr.bf16.mxu1 %v5699_v5  ;;  %v6665_v4 = vld [vmem:[%s6428_s8 + $0x58] sm:$0xff]  ;;  %v5778_v5 = vld [vmem:[%s6426_s7 + $0x640] ss:$16 sps:$4 sm:$0xff]  }
  0xc9   : > { %3728 = vmatpush1.bf16.msra.mxu0 %v5694_v6  ;;  %4152 = vmatpush1.bf16.msra.mxu1 %v5697_v7  ;;  %v5781_v6 = vld [vmem:[%s6426_s7 + $0x648] ss:$16 sps:$4 sm:$0xff]   ;;  %v5786_v7 = vld [vmem:[%s6426_s7 + $0x664] ss:$16 sps:$4 sm:$0xff]  }
  0xca   : > { %3729 = vmatprep.subr.bf16.mxu0 %v5702_v8  ;;  %4153 = vmatprep.subr.bf16.mxu1 %v5705_v9  ;;  %v5789_v8 = vld [vmem:[%s6426_s7 + $0x66c] ss:$16 sps:$4 sm:$0xff]   ;;  %v4779_v9 = vcombine.high %v6662_v2, %v6665_v4 }
  0xcd   : > { %3730 = vmatpush1.bf16.msra.mxu0 %v5700_v10  ;;  %4154 = vmatpush1.bf16.msra.mxu1 %v5703_v11  ;;  %v5784_v10 = vld [vmem:[%s6426_s7 + $0x660] ss:$16 sps:$4 sm:$0xff]   ;;  %v5787_v11 = vld [vmem:[%s6426_s7 + $0x668] ss:$16 sps:$4 sm:$0xff]  }
  0xce   : > { %3731 = vmatprep.subr.bf16.mxu0 %v5708_v12  ;;  %4155 = vmatprep.subr.bf16.mxu1 %v5711_v13  ;;  %v5792_v12 = vld [vmem:[%s6426_s7 + $0x684] ss:$16 sps:$4 sm:$0xff]   ;;  %v5795_v13 = vld [vmem:[%s6426_s7 + $0x68c] ss:$16 sps:$4 sm:$0xff]  }
  0xd1   : > { %3732 = vmatpush1.bf16.msra.mxu0 %v5706_v14  ;;  %4156 = vmatpush1.bf16.msra.mxu1 %v5709_v15  ;;  %v5790_v14 = vld [vmem:[%s6426_s7 + $0x680] ss:$16 sps:$4 sm:$0xff]   ;;  %v5793_v15 = vld [vmem:[%s6426_s7 + $0x688] ss:$16 sps:$4 sm:$0xff]  }
  0xd2   : > { %3733 = vmatprep.subr.bf16.mxu0 %v5714_v16  ;;  %4157 = vmatprep.subr.bf16.mxu1 %v5717_v17  ;;  %v5798_v16 = vld [vmem:[%s6426_s7 + $0x6a4] ss:$16 sps:$4 sm:$0xff]   ;;  %v5801_v17 = vld [vmem:[%s6426_s7 + $0x6ac] ss:$16 sps:$4 sm:$0xff]  }
  0xd5   : > { %3734 = vmatpush1.bf16.msra.mxu0 %v5712_v18  ;;  %4158 = vmatpush1.bf16.msra.mxu1 %v5715_v19  ;;  %v5796_v18 = vld [vmem:[%s6426_s7 + $0x6a0] ss:$16 sps:$4 sm:$0xff]   ;;  %v5799_v19 = vld [vmem:[%s6426_s7 + $0x6a8] ss:$16 sps:$4 sm:$0xff]  }
  0xd6   : > { %3735 = vmatprep.subr.bf16.mxu0 %v5720_v20  ;;  %4159 = vmatprep.subr.bf16.mxu1 %v5723_v21  ;;  %v5804_v20 = vld [vmem:[%s6426_s7 + $0x6c4] ss:$16 sps:$4 sm:$0xff]   ;;  %v5807_v21 = vld [vmem:[%s6426_s7 + $0x6cc] ss:$16 sps:$4 sm:$0xff]  }
  0xd9   : > { %3736 = vmatpush1.bf16.msra.mxu0 %v5718_v22  ;;  %4160 = vmatpush1.bf16.msra.mxu1 %v5721_v23  ;;  %v5802_v22 = vld [vmem:[%s6426_s7 + $0x6c0] ss:$16 sps:$4 sm:$0xff]   ;;  %v5805_v23 = vld [vmem:[%s6426_s7 + $0x6c8] ss:$16 sps:$4 sm:$0xff]  }
  0xda   : > { %3737 = vmatprep.subr.bf16.mxu0 %v5726_v24  ;;  %4161 = vmatprep.subr.bf16.mxu1 %v5729_v25  ;;  %v5810_v24 = vld [vmem:[%s6426_s7 + $0x6e4] ss:$16 sps:$4 sm:$0xff]   ;;  %v5813_v25 = vld [vmem:[%s6426_s7 + $0x6ec] ss:$16 sps:$4 sm:$0xff]  }
  0xdd   : > { %3738 = vmatpush1.bf16.msra.mxu0 %v5724_v26  ;;  %4162 = vmatpush1.bf16.msra.mxu1 %v5727_v27  ;;  %v5808_v26 = vld [vmem:[%s6426_s7 + $0x6e0] ss:$16 sps:$4 sm:$0xff]   ;;  %v5811_v27 = vld [vmem:[%s6426_s7 + $0x6e8] ss:$16 sps:$4 sm:$0xff]  }
  0xde   : > { %3739 = vmatprep.subr.bf16.mxu0 %v5732_v28  ;;  %4163 = vmatprep.subr.bf16.mxu1 %v5735_v29  ;;  %v5816_v28 = vld [vmem:[%s6426_s7 + $0x704] ss:$16 sps:$4 sm:$0xff]   ;;  %v5819_v29 = vld [vmem:[%s6426_s7 + $0x70c] ss:$16 sps:$4 sm:$0xff]  }
  0xe1   : > { %3740 = vmatpush1.bf16.msra.mxu0 %v5730_v30  ;;  %4164 = vmatpush1.bf16.msra.mxu1 %v5733_v31  ;;  %v5814_v30 = vld [vmem:[%s6426_s7 + $0x700] ss:$16 sps:$4 sm:$0xff]   ;;  %v5817_v31 = vld [vmem:[%s6426_s7 + $0x708] ss:$16 sps:$4 sm:$0xff]  }
  0xe2   : > { %3741 = vmatprep.subr.bf16.mxu0 %v5738_v32  ;;  %4165 = vmatprep.subr.bf16.mxu1 %v5741_v33  ;;  %v5822_v32 = vld [vmem:[%s6426_s7 + $0x724] ss:$16 sps:$4 sm:$0xff]   ;;  %v5825_v33 = vld [vmem:[%s6426_s7 + $0x72c] ss:$16 sps:$4 sm:$0xff]  }
  0xe5   : > { %3742 = vmatpush1.bf16.msra.mxu0 %v5736_v34  ;;  %4166 = vmatpush1.bf16.msra.mxu1 %v5739_v35  ;;  %v5820_v34 = vld [vmem:[%s6426_s7 + $0x720] ss:$16 sps:$4 sm:$0xff]   ;;  %v5823_v35 = vld [vmem:[%s6426_s7 + $0x728] ss:$16 sps:$4 sm:$0xff]  }
  0xe6   : > { %3743 = vmatprep.subr.bf16.mxu0 %v5744_v36  ;;  %4167 = vmatprep.subr.bf16.mxu1 %v5747_v37  ;;  %v5828_v36 = vld [vmem:[%s6426_s7 + $0x744] ss:$16 sps:$4 sm:$0xff]   ;;  %v5831_v37 = vld [vmem:[%s6426_s7 + $0x74c] ss:$16 sps:$4 sm:$0xff]  }
  0xe9   : > { %3744 = vmatpush1.bf16.msra.mxu0 %v5742_v38  ;;  %4168 = vmatpush1.bf16.msra.mxu1 %v5745_v39  ;;  %v5826_v38 = vld [vmem:[%s6426_s7 + $0x740] ss:$16 sps:$4 sm:$0xff]   ;;  %v5829_v39 = vld [vmem:[%s6426_s7 + $0x748] ss:$16 sps:$4 sm:$0xff]  }
  0xea   : > { %3745 = vmatprep.subr.bf16.mxu0 %v5750_v40  ;;  %4169 = vmatprep.subr.bf16.mxu1 %v5753_v41  ;;  %v5834_v40 = vld [vmem:[%s6426_s7 + $0x764] ss:$16 sps:$4 sm:$0xff]   ;;  %v5837_v41 = vld [vmem:[%s6426_s7 + $0x76c] ss:$16 sps:$4 sm:$0xff]  }
  0xed   : > { %3746 = vmatpush1.bf16.msra.mxu0 %v5748_v42  ;;  %4170 = vmatpush1.bf16.msra.mxu1 %v5751_v43  ;;  %v5832_v42 = vld [vmem:[%s6426_s7 + $0x760] ss:$16 sps:$4 sm:$0xff]   ;;  %v5835_v43 = vld [vmem:[%s6426_s7 + $0x768] ss:$16 sps:$4 sm:$0xff]  }
  0xee   : > { %3747 = vmatprep.subr.bf16.mxu0 %v5756_v44  ;;  %4171 = vmatprep.subr.bf16.mxu1 %v5759_v45  ;;  %v5840_v44 = vld [vmem:[%s6426_s7 + $0x784] ss:$16 sps:$4 sm:$0xff]   ;;  %v5843_v45 = vld [vmem:[%s6426_s7 + $0x78c] ss:$16 sps:$4 sm:$0xff]  }
  0xf1   : > { %3748 = vmatpush1.bf16.msra.mxu0 %v5754_v46  ;;  %4172 = vmatpush1.bf16.msra.mxu1 %v5757_v47  ;;  %v5838_v46 = vld [vmem:[%s6426_s7 + $0x780] ss:$16 sps:$4 sm:$0xff]   ;;  %v5841_v47 = vld [vmem:[%s6426_s7 + $0x788] ss:$16 sps:$4 sm:$0xff]  }
  0xf2   : > { %3749 = vmatprep.subr.bf16.mxu0 %v5762_v48  ;;  %4173 = vmatprep.subr.bf16.mxu1 %v5765_v49  ;;  %v5846_v48 = vld [vmem:[%s6426_s7 + $0x7a4] ss:$16 sps:$4 sm:$0xff]   ;;  %v5849_v49 = vld [vmem:[%s6426_s7 + $0x7ac] ss:$16 sps:$4 sm:$0xff]  }
  0xf5   : > { %3750 = vmatpush1.bf16.msra.mxu0 %v5760_v50  ;;  %4174 = vmatpush1.bf16.msra.mxu1 %v5763_v51  ;;  %v5844_v50 = vld [vmem:[%s6426_s7 + $0x7a0] ss:$16 sps:$4 sm:$0xff]   ;;  %v5847_v51 = vld [vmem:[%s6426_s7 + $0x7a8] ss:$16 sps:$4 sm:$0xff]  }
  0xf6   : > { %3772 = vmatprep.subr.bf16.mxu0 %v5768_v52  ;;  %4196 = vmatprep.subr.bf16.mxu1 %v5771_v53  ;;  %v5852_v52 = vld [vmem:[%s6426_s7 + $0x7c4] ss:$16 sps:$4 sm:$0xff]   ;;  %v5855_v53 = vld [vmem:[%s6426_s7 + $0x7cc] ss:$16 sps:$4 sm:$0xff]  }
  0xf8   : > { %3752 = vmatmul.mubr.bf16.vlgmr.msra.gmra.mrb[0].mxu0 %v4776_v55  ;;  %4176 = vmatmul.mubr.bf16.vlgmr.msra.gmra.mrb[0].mxu1 %v4776_v55  ;;  %v5853_v55 = vld [vmem:[%s6426_s7 + $0x7c8] ss:$16 sps:$4 sm:$0xff]  }
  0xf9   : > { %3773 = vmatpush1.bf16.msra.mxu0 %v5766_v57  ;;  %4197 = vmatpush1.bf16.msra.mxu1 %v5769_v59  ;;  %v5861_v57 = vld [vmem:[%s6426_s7 + $0x7ec] ss:$16 sps:$4 sm:$0xff]   ;;  %v5856_v59 = vld [vmem:[%s6426_s7 + $0x7e0] ss:$16 sps:$4 sm:$0xff]  }
  0xfa   : > { %3774 = vmatprep.subr.bf16.mxu0 %v5774_v61  ;;  %4198 = vmatprep.subr.bf16.mxu1 %v5777_v62  ;;  %v5859_v61 = vld [vmem:[%s6426_s7 + $0x7e8] ss:$16 sps:$4 sm:$0xff]   ;;  %v5864_v62 = vld [vmem:[%s6426_s7 + $0x804] ss:$16 sps:$4 sm:$0xff]  }
  0xfb   : > { %3761 = vmatprep.mubr.bf16.mxu0 %v4793_v63  ;;  %4185 = vmatprep.mubr.bf16.mxu1 %v4793_v63  ;;  %v5867_v63 = vld [vmem:[%s6426_s7 + $0x80c] ss:$16 sps:$4 sm:$0xff]  }
  0xfd   : > { %3775 = vmatpush1.bf16.msra.mxu0 %v5772_v58  ;;  %4199 = vmatpush1.bf16.msra.mxu1 %v5775_v60  ;;  %v368_v58 = vld [vmem:[%s6428_s8 + $0x98] sm:$0xff]  ;;  %v4778_v60 = vcombine.low %v6662_v2, %v6665_v4  ;;  %v5876_v4 = vld [vmem:[%s6426_s7 + $0x844] ss:$16 sps:$4 sm:$0xff]  }
  0xfe   : > { %3776 = vmatprep.subr.bf16.mxu0 %v5780_v0  ;;  %4200 = vmatprep.subr.bf16.mxu1 %v5783_v1  ;;  %v376_v0 = vld [vmem:[%s6428_s8 + $0xd8] sm:$0xff]  ;;  %v5862_v1 = vld [vmem:[%s6426_s7 + $0x800] ss:$16 sps:$4 sm:$0xff]  }
  0xff   : > { %v5871_v2 = vld [vmem:[%s6426_s7 + $0x828] ss:$16 sps:$4 sm:$0xff]  }
 0x100   : > { %3762 = vmatmul.mubr.bf16.gmra.mrb[4].mxu0 %v4792_v3  ;;  %4186 = vmatmul.mubr.bf16.gmra.mrb[4].mxu1 %v4792_v3  ;;  %v5865_v3 = vld [vmem:[%s6426_s7 + $0x808] ss:$16 sps:$4 sm:$0xff]  }
 0x101   : > { %3777 = vmatpush1.bf16.msra.mxu0 %v5778_v5  ;;  %4201 = vmatpush1.bf16.msra.mxu1 %v5781_v6  ;;  %v5870_v5 = vld [vmem:[%s6426_s7 + $0x824] ss:$16 sps:$4 sm:$0xff]   ;;  %v5873_v6 = vld [vmem:[%s6426_s7 + $0x82c] ss:$16 sps:$4 sm:$0xff]  }
 0x102   : > { %3778 = vmatprep.subr.bf16.mxu0 %v5786_v7  ;;  %4202 = vmatprep.subr.bf16.mxu1 %v5789_v8  ;;  %v4795_v7 = vcombine.high %v368_v58, %v376_v0  ;;  %v5868_v8 = vld [vmem:[%s6426_s7 + $0x820] ss:$16 sps:$4 sm:$0xff]  }
 0x103   : > { %3804 = vmatprep.mubr.bf16.mxu0 %v4779_v9  ;;  %4228 = vmatprep.mubr.bf16.mxu1 %v4779_v9  ;;  %v5879_v9 = vld [vmem:[%s6426_s7 + $0x84c] ss:$16 sps:$4 sm:$0xff]  }
 0x105   : > { %3779 = vmatpush1.bf16.msra.mxu0 %v5784_v10  ;;  %4203 = vmatpush1.bf16.msra.mxu1 %v5787_v11  ;;  %v6738_v10 = vld [vmem:[%s6428_s8 + $0x20] sm:$0xff]  ;;  %v4794_v11 = vcombine.low %v368_v58, %v376_v0 }
 0x106   : > { %3780 = vmatprep.subr.bf16.mxu0 %v5792_v12  ;;  %4204 = vmatprep.subr.bf16.mxu1 %v5795_v13  ;;  %v6741_v12 = vld [vmem:[%s6428_s8 + $0x60] sm:$0xff] }
 0x107   : > { %v5874_v13 = vld [vmem:[%s6426_s7 + $0x840] ss:$16 sps:$4 sm:$0xff]   ;;  %v5954_v0 = vld [vmem:[%s6426_s7 + $0x9e4] ss:$16 sps:$4 sm:$0xff]  }
 0x108   : > { %v5946_v58 = vld [vmem:[%s6426_s7 + $0x9c0] ss:$16 sps:$4 sm:$0xff]  }
 0x109   : > { %3781 = vmatpush1.bf16.msra.mxu0 %v5790_v14  ;;  %4205 = vmatpush1.bf16.msra.mxu1 %v5793_v15  ;;  %v5877_v14 = vld [vmem:[%s6426_s7 + $0x848] ss:$16 sps:$4 sm:$0xff]   ;;  %v5882_v15 = vld [vmem:[%s6426_s7 + $0x864] ss:$16 sps:$4 sm:$0xff]  }
 0x10a   : > { %3782 = vmatprep.subr.bf16.mxu0 %v5798_v16  ;;  %4206 = vmatprep.subr.bf16.mxu1 %v5801_v17  ;;  %v5885_v16 = vld [vmem:[%s6426_s7 + $0x86c] ss:$16 sps:$4 sm:$0xff]   ;;  %v4781_v17 = vcombine.high %v6738_v10, %v6741_v12 }
 0x10d   : > { %3783 = vmatpush1.bf16.msra.mxu0 %v5796_v18  ;;  %4207 = vmatpush1.bf16.msra.mxu1 %v5799_v19  ;;  %v5880_v18 = vld [vmem:[%s6426_s7 + $0x860] ss:$16 sps:$4 sm:$0xff]   ;;  %v5883_v19 = vld [vmem:[%s6426_s7 + $0x868] ss:$16 sps:$4 sm:$0xff]  }
 0x10e   : > { %3784 = vmatprep.subr.bf16.mxu0 %v5804_v20  ;;  %4208 = vmatprep.subr.bf16.mxu1 %v5807_v21  ;;  %v5888_v20 = vld [vmem:[%s6426_s7 + $0x884] ss:$16 sps:$4 sm:$0xff]   ;;  %v5891_v21 = vld [vmem:[%s6426_s7 + $0x88c] ss:$16 sps:$4 sm:$0xff]  }
 0x111   : > { %3785 = vmatpush1.bf16.msra.mxu0 %v5802_v22  ;;  %4209 = vmatpush1.bf16.msra.mxu1 %v5805_v23  ;;  %v5886_v22 = vld [vmem:[%s6426_s7 + $0x880] ss:$16 sps:$4 sm:$0xff]   ;;  %v5889_v23 = vld [vmem:[%s6426_s7 + $0x888] ss:$16 sps:$4 sm:$0xff]  }
 0x112   : > { %3786 = vmatprep.subr.bf16.mxu0 %v5810_v24  ;;  %4210 = vmatprep.subr.bf16.mxu1 %v5813_v25  ;;  %v5894_v24 = vld [vmem:[%s6426_s7 + $0x8a4] ss:$16 sps:$4 sm:$0xff]   ;;  %v5897_v25 = vld [vmem:[%s6426_s7 + $0x8ac] ss:$16 sps:$4 sm:$0xff]  }
 0x115   : > { %3787 = vmatpush1.bf16.msra.mxu0 %v5808_v26  ;;  %4211 = vmatpush1.bf16.msra.mxu1 %v5811_v27  ;;  %v5892_v26 = vld [vmem:[%s6426_s7 + $0x8a0] ss:$16 sps:$4 sm:$0xff]   ;;  %v5895_v27 = vld [vmem:[%s6426_s7 + $0x8a8] ss:$16 sps:$4 sm:$0xff]  }
 0x116   : > { %3788 = vmatprep.subr.bf16.mxu0 %v5816_v28  ;;  %4212 = vmatprep.subr.bf16.mxu1 %v5819_v29  ;;  %v5900_v28 = vld [vmem:[%s6426_s7 + $0x8c4] ss:$16 sps:$4 sm:$0xff]   ;;  %v5903_v29 = vld [vmem:[%s6426_s7 + $0x8cc] ss:$16 sps:$4 sm:$0xff]  }
 0x119   : > { %3789 = vmatpush1.bf16.msra.mxu0 %v5814_v30  ;;  %4213 = vmatpush1.bf16.msra.mxu1 %v5817_v31  ;;  %v5898_v30 = vld [vmem:[%s6426_s7 + $0x8c0] ss:$16 sps:$4 sm:$0xff]   ;;  %v5901_v31 = vld [vmem:[%s6426_s7 + $0x8c8] ss:$16 sps:$4 sm:$0xff]  }
 0x11a   : > { %3790 = vmatprep.subr.bf16.mxu0 %v5822_v32  ;;  %4214 = vmatprep.subr.bf16.mxu1 %v5825_v33  ;;  %v5906_v32 = vld [vmem:[%s6426_s7 + $0x8e4] ss:$16 sps:$4 sm:$0xff]   ;;  %v5909_v33 = vld [vmem:[%s6426_s7 + $0x8ec] ss:$16 sps:$4 sm:$0xff]  }
 0x11d   : > { %3791 = vmatpush1.bf16.msra.mxu0 %v5820_v34  ;;  %4215 = vmatpush1.bf16.msra.mxu1 %v5823_v35  ;;  %v5904_v34 = vld [vmem:[%s6426_s7 + $0x8e0] ss:$16 sps:$4 sm:$0xff]   ;;  %v5907_v35 = vld [vmem:[%s6426_s7 + $0x8e8] ss:$16 sps:$4 sm:$0xff]  }
 0x11e   : > { %3792 = vmatprep.subr.bf16.mxu0 %v5828_v36  ;;  %4216 = vmatprep.subr.bf16.mxu1 %v5831_v37  ;;  %v5912_v36 = vld [vmem:[%s6426_s7 + $0x904] ss:$16 sps:$4 sm:$0xff]   ;;  %v5915_v37 = vld [vmem:[%s6426_s7 + $0x90c] ss:$16 sps:$4 sm:$0xff]  }
 0x121   : > { %3793 = vmatpush1.bf16.msra.mxu0 %v5826_v38  ;;  %4217 = vmatpush1.bf16.msra.mxu1 %v5829_v39  ;;  %v5910_v38 = vld [vmem:[%s6426_s7 + $0x900] ss:$16 sps:$4 sm:$0xff]   ;;  %v5913_v39 = vld [vmem:[%s6426_s7 + $0x908] ss:$16 sps:$4 sm:$0xff]  }
 0x122   : > { %3794 = vmatprep.subr.bf16.mxu0 %v5834_v40  ;;  %4218 = vmatprep.subr.bf16.mxu1 %v5837_v41  ;;  %v5918_v40 = vld [vmem:[%s6426_s7 + $0x924] ss:$16 sps:$4 sm:$0xff]   ;;  %v5921_v41 = vld [vmem:[%s6426_s7 + $0x92c] ss:$16 sps:$4 sm:$0xff]  }
 0x125   : > { %3795 = vmatpush1.bf16.msra.mxu0 %v5832_v42  ;;  %4219 = vmatpush1.bf16.msra.mxu1 %v5835_v43  ;;  %v5916_v42 = vld [vmem:[%s6426_s7 + $0x920] ss:$16 sps:$4 sm:$0xff]   ;;  %v5919_v43 = vld [vmem:[%s6426_s7 + $0x928] ss:$16 sps:$4 sm:$0xff]  }
 0x126   : > { %3796 = vmatprep.subr.bf16.mxu0 %v5840_v44  ;;  %4220 = vmatprep.subr.bf16.mxu1 %v5843_v45  ;;  %v5924_v44 = vld [vmem:[%s6426_s7 + $0x944] ss:$16 sps:$4 sm:$0xff]   ;;  %v5927_v45 = vld [vmem:[%s6426_s7 + $0x94c] ss:$16 sps:$4 sm:$0xff]  }
 0x129   : > { %3797 = vmatpush1.bf16.msra.mxu0 %v5838_v46  ;;  %4221 = vmatpush1.bf16.msra.mxu1 %v5841_v47  ;;  %v5922_v46 = vld [vmem:[%s6426_s7 + $0x940] ss:$16 sps:$4 sm:$0xff]   ;;  %v5925_v47 = vld [vmem:[%s6426_s7 + $0x948] ss:$16 sps:$4 sm:$0xff]  }
 0x12a   : > { %3798 = vmatprep.subr.bf16.mxu0 %v5846_v48  ;;  %4222 = vmatprep.subr.bf16.mxu1 %v5849_v49  ;;  %v5930_v48 = vld [vmem:[%s6426_s7 + $0x964] ss:$16 sps:$4 sm:$0xff]   ;;  %v5933_v49 = vld [vmem:[%s6426_s7 + $0x96c] ss:$16 sps:$4 sm:$0xff]  }
 0x12d   : > { %3799 = vmatpush1.bf16.msra.mxu0 %v5844_v50  ;;  %4223 = vmatpush1.bf16.msra.mxu1 %v5847_v51  ;;  %v5928_v50 = vld [vmem:[%s6426_s7 + $0x960] ss:$16 sps:$4 sm:$0xff]   ;;  %v5931_v51 = vld [vmem:[%s6426_s7 + $0x968] ss:$16 sps:$4 sm:$0xff]  }
 0x12e   : > { %3800 = vmatprep.subr.bf16.mxu0 %v5852_v52  ;;  %4224 = vmatprep.subr.bf16.mxu1 %v5855_v53  ;;  %v5936_v52 = vld [vmem:[%s6426_s7 + $0x984] ss:$16 sps:$4 sm:$0xff]   ;;  %v5939_v53 = vld [vmem:[%s6426_s7 + $0x98c] ss:$16 sps:$4 sm:$0xff]  }
 0x131   : > { %3801 = vmatpush1.bf16.msra.mxu0 %v5850_v54  ;;  %4225 = vmatpush1.bf16.msra.mxu1 %v5853_v55  ;;  %v5934_v54 = vld [vmem:[%s6426_s7 + $0x980] ss:$16 sps:$4 sm:$0xff]   ;;  %v5937_v55 = vld [vmem:[%s6426_s7 + $0x988] ss:$16 sps:$4 sm:$0xff]  }
 0x132   : > { %3802 = vmatprep.subr.bf16.mxu0 %v5858_v56  ;;  %4226 = vmatprep.subr.bf16.mxu1 %v5861_v57  ;;  %v5942_v56 = vld [vmem:[%s6426_s7 + $0x9a4] ss:$16 sps:$4 sm:$0xff]   ;;  %v5945_v57 = vld [vmem:[%s6426_s7 + $0x9ac] ss:$16 sps:$4 sm:$0xff]  }
 0x135   : > { %3803 = vmatpush1.bf16.msra.mxu0 %v5856_v59  ;;  %4227 = vmatpush1.bf16.msra.mxu1 %v5859_v61  ;;  %v5940_v59 = vld [vmem:[%s6426_s7 + $0x9a0] ss:$16 sps:$4 sm:$0xff]   ;;  %v5943_v61 = vld [vmem:[%s6426_s7 + $0x9a8] ss:$16 sps:$4 sm:$0xff]  }
 0x136   : > { %3825 = vmatprep.subr.bf16.mxu0 %v5864_v62  ;;  %4249 = vmatprep.subr.bf16.mxu1 %v5867_v63  ;;  %v5948_v62 = vld [vmem:[%s6426_s7 + $0x9c4] ss:$16 sps:$4 sm:$0xff]   ;;  %v5951_v63 = vld [vmem:[%s6426_s7 + $0x9cc] ss:$16 sps:$4 sm:$0xff]  }
 0x138   : > { %3805 = vmatmul.mubr.bf16.vlgmr.msra.gmra.mrb[0].mxu0 %v4778_v60  ;;  %4229 = vmatmul.mubr.bf16.vlgmr.msra.gmra.mrb[0].mxu1 %v4778_v60  ;;  %v5949_v60 = vld [vmem:[%s6426_s7 + $0x9c8] ss:$16 sps:$4 sm:$0xff]  }
 0x139   : > { %3826 = vmatpush1.bf16.msra.mxu0 %v5862_v1  ;;  %4250 = vmatpush1.bf16.msra.mxu1 %v5865_v3  ;;  %v5957_v1 = vld [vmem:[%s6426_s7 + $0x9ec] ss:$16 sps:$4 sm:$0xff]   ;;  %v5952_v3 = vld [vmem:[%s6426_s7 + $0x9e0] ss:$16 sps:$4 sm:$0xff]  }
 0x13a   : > { %3827 = vmatprep.subr.bf16.mxu0 %v5870_v5  ;;  %4251 = vmatprep.subr.bf16.mxu1 %v5873_v6  ;;  %v5955_v5 = vld [vmem:[%s6426_s7 + $0x9e8] ss:$16 sps:$4 sm:$0xff]   ;;  %v5960_v6 = vld [vmem:[%s6426_s7 + $0xa04] ss:$16 sps:$4 sm:$0xff]  }
 0x13b   : > { %3814 = vmatprep.mubr.bf16.mxu0 %v4795_v7  ;;  %4238 = vmatprep.mubr.bf16.mxu1 %v4795_v7  ;;  %v5963_v7 = vld [vmem:[%s6426_s7 + $0xa0c] ss:$16 sps:$4 sm:$0xff]  }
 0x13d   : > { %3828 = vmatpush1.bf16.msra.mxu0 %v5868_v8  ;;  %4252 = vmatpush1.bf16.msra.mxu1 %v5871_v2  ;;  %v369_v8 = vld [vmem:[%s6428_s8 + $0xa0] sm:$0xff] }
 0x13e   : > { %3829 = vmatprep.subr.bf16.mxu0 %v5876_v4  ;;  %4253 = vmatprep.subr.bf16.mxu1 %v5879_v9  ;;  %v377_v2 = vld [vmem:[%s6428_s8 + $0xe0] sm:$0xff]  ;;  %v4780_v4 = vcombine.low %v6738_v10, %v6741_v12  ;;  %v5975_v12 = vld [vmem:[%s6426_s7 + $0xa4c] ss:$16 sps:$4 sm:$0xff]  }
 0x13f   : > { %v5958_v9 = vld [vmem:[%s6426_s7 + $0xa00] ss:$16 sps:$4 sm:$0xff]   ;;  %v5972_v10 = vld [vmem:[%s6426_s7 + $0xa44] ss:$16 sps:$4 sm:$0xff]  }
 0x140   : > { %3815 = vmatmul.mubr.bf16.gmra.mrb[4].mxu0 %v4794_v11  ;;  %4239 = vmatmul.mubr.bf16.gmra.mrb[4].mxu1 %v4794_v11  ;;  %v5961_v11 = vld [vmem:[%s6426_s7 + $0xa08] ss:$16 sps:$4 sm:$0xff]  }
 0x141   : > { %3830 = vmatpush1.bf16.msra.mxu0 %v5874_v13  ;;  %4254 = vmatpush1.bf16.msra.mxu1 %v5877_v14  ;;  %v5966_v13 = vld [vmem:[%s6426_s7 + $0xa24] ss:$16 sps:$4 sm:$0xff]   ;;  %v5969_v14 = vld [vmem:[%s6426_s7 + $0xa2c] ss:$16 sps:$4 sm:$0xff]  }
 0x142   : > { %3831 = vmatprep.subr.bf16.mxu0 %v5882_v15  ;;  %4255 = vmatprep.subr.bf16.mxu1 %v5885_v16  ;;  %v5964_v15 = vld [vmem:[%s6426_s7 + $0xa20] ss:$16 sps:$4 sm:$0xff]   ;;  %v5967_v16 = vld [vmem:[%s6426_s7 + $0xa28] ss:$16 sps:$4 sm:$0xff]  }
 0x143   : > { %3857 = vmatprep.mubr.bf16.mxu0 %v4781_v17  ;;  %4281 = vmatprep.mubr.bf16.mxu1 %v4781_v17  ;;  %v4797_v17 = vcombine.high %v369_v8, %v377_v2 }
 0x145   : > { %3832 = vmatpush1.bf16.msra.mxu0 %v5880_v18  ;;  %4256 = vmatpush1.bf16.msra.mxu1 %v5883_v19  ;;  %v6814_v18 = vld [vmem:[%s6428_s8 + $0x28] sm:$0xff] }
 0x146   : > { %3833 = vmatprep.subr.bf16.mxu0 %v5888_v20  ;;  %4257 = vmatprep.subr.bf16.mxu1 %v5891_v21  ;;  %v6817_v19 = vld [vmem:[%s6428_s8 + $0x68] sm:$0xff]  ;;  %v4796_v20 = vcombine.low %v369_v8, %v377_v2  ;;  %v5970_v21 = vld [vmem:[%s6426_s7 + $0xa40] ss:$16 sps:$4 sm:$0xff]  }
 0x147   : > { %v6042_v8 = vld [vmem:[%s6426_s7 + $0xbc0] ss:$16 sps:$4 sm:$0xff]   ;;  %v6045_v2 = vld [vmem:[%s6426_s7 + $0xbc8] ss:$16 sps:$4 sm:$0xff]  }
 0x149   : > { %3834 = vmatpush1.bf16.msra.mxu0 %v5886_v22  ;;  %4258 = vmatpush1.bf16.msra.mxu1 %v5889_v23  ;;  %v5973_v22 = vld [vmem:[%s6426_s7 + $0xa48] ss:$16 sps:$4 sm:$0xff]   ;;  %v5978_v23 = vld [vmem:[%s6426_s7 + $0xa64] ss:$16 sps:$4 sm:$0xff]  }
 0x14a   : > { %3835 = vmatprep.subr.bf16.mxu0 %v5894_v24  ;;  %4259 = vmatprep.subr.bf16.mxu1 %v5897_v25  ;;  %v5981_v24 = vld [vmem:[%s6426_s7 + $0xa6c] ss:$16 sps:$4 sm:$0xff]   ;;  %v4783_v25 = vcombine.high %v6814_v18, %v6817_v19 }
 0x14d   : > { %3836 = vmatpush1.bf16.msra.mxu0 %v5892_v26  ;;  %4260 = vmatpush1.bf16.msra.mxu1 %v5895_v27  ;;  %v5976_v26 = vld [vmem:[%s6426_s7 + $0xa60] ss:$16 sps:$4 sm:$0xff]   ;;  %v5979_v27 = vld [vmem:[%s6426_s7 + $0xa68] ss:$16 sps:$4 sm:$0xff]  }
 0x14e   : > { %3837 = vmatprep.subr.bf16.mxu0 %v5900_v28  ;;  %4261 = vmatprep.subr.bf16.mxu1 %v5903_v29  ;;  %v5984_v28 = vld [vmem:[%s6426_s7 + $0xa84] ss:$16 sps:$4 sm:$0xff]   ;;  %v5987_v29 = vld [vmem:[%s6426_s7 + $0xa8c] ss:$16 sps:$4 sm:$0xff]  }
 0x151   : > { %3838 = vmatpush1.bf16.msra.mxu0 %v5898_v30  ;;  %4262 = vmatpush1.bf16.msra.mxu1 %v5901_v31  ;;  %v5982_v30 = vld [vmem:[%s6426_s7 + $0xa80] ss:$16 sps:$4 sm:$0xff]   ;;  %v5985_v31 = vld [vmem:[%s6426_s7 + $0xa88] ss:$16 sps:$4 sm:$0xff]  }
 0x152   : > { %3839 = vmatprep.subr.bf16.mxu0 %v5906_v32  ;;  %4263 = vmatprep.subr.bf16.mxu1 %v5909_v33  ;;  %v5990_v32 = vld [vmem:[%s6426_s7 + $0xaa4] ss:$16 sps:$4 sm:$0xff]   ;;  %v5993_v33 = vld [vmem:[%s6426_s7 + $0xaac] ss:$16 sps:$4 sm:$0xff]  }
 0x155   : > { %3840 = vmatpush1.bf16.msra.mxu0 %v5904_v34  ;;  %4264 = vmatpush1.bf16.msra.mxu1 %v5907_v35  ;;  %v5988_v34 = vld [vmem:[%s6426_s7 + $0xaa0] ss:$16 sps:$4 sm:$0xff]   ;;  %v5991_v35 = vld [vmem:[%s6426_s7 + $0xaa8] ss:$16 sps:$4 sm:$0xff]  }
 0x156   : > { %3841 = vmatprep.subr.bf16.mxu0 %v5912_v36  ;;  %4265 = vmatprep.subr.bf16.mxu1 %v5915_v37  ;;  %v5996_v36 = vld [vmem:[%s6426_s7 + $0xac4] ss:$16 sps:$4 sm:$0xff]   ;;  %v5999_v37 = vld [vmem:[%s6426_s7 + $0xacc] ss:$16 sps:$4 sm:$0xff]  }
 0x159   : > { %3842 = vmatpush1.bf16.msra.mxu0 %v5910_v38  ;;  %4266 = vmatpush1.bf16.msra.mxu1 %v5913_v39  ;;  %v5994_v38 = vld [vmem:[%s6426_s7 + $0xac0] ss:$16 sps:$4 sm:$0xff]   ;;  %v5997_v39 = vld [vmem:[%s6426_s7 + $0xac8] ss:$16 sps:$4 sm:$0xff]  }
 0x15a   : > { %3843 = vmatprep.subr.bf16.mxu0 %v5918_v40  ;;  %4267 = vmatprep.subr.bf16.mxu1 %v5921_v41  ;;  %v6002_v40 = vld [vmem:[%s6426_s7 + $0xae4] ss:$16 sps:$4 sm:$0xff]   ;;  %v6005_v41 = vld [vmem:[%s6426_s7 + $0xaec] ss:$16 sps:$4 sm:$0xff]  }
 0x15d   : > { %3844 = vmatpush1.bf16.msra.mxu0 %v5916_v42  ;;  %4268 = vmatpush1.bf16.msra.mxu1 %v5919_v43  ;;  %v6000_v42 = vld [vmem:[%s6426_s7 + $0xae0] ss:$16 sps:$4 sm:$0xff]   ;;  %v6003_v43 = vld [vmem:[%s6426_s7 + $0xae8] ss:$16 sps:$4 sm:$0xff]  }
 0x15e   : > { %3845 = vmatprep.subr.bf16.mxu0 %v5924_v44  ;;  %4269 = vmatprep.subr.bf16.mxu1 %v5927_v45  ;;  %v6008_v44 = vld [vmem:[%s6426_s7 + $0xb04] ss:$16 sps:$4 sm:$0xff]   ;;  %v6011_v45 = vld [vmem:[%s6426_s7 + $0xb0c] ss:$16 sps:$4 sm:$0xff]  }
 0x161   : > { %3846 = vmatpush1.bf16.msra.mxu0 %v5922_v46  ;;  %4270 = vmatpush1.bf16.msra.mxu1 %v5925_v47  ;;  %v6006_v46 = vld [vmem:[%s6426_s7 + $0xb00] ss:$16 sps:$4 sm:$0xff]   ;;  %v6009_v47 = vld [vmem:[%s6426_s7 + $0xb08] ss:$16 sps:$4 sm:$0xff]  }
 0x162   : > { %3847 = vmatprep.subr.bf16.mxu0 %v5930_v48  ;;  %4271 = vmatprep.subr.bf16.mxu1 %v5933_v49  ;;  %v6014_v48 = vld [vmem:[%s6426_s7 + $0xb24] ss:$16 sps:$4 sm:$0xff]   ;;  %v6017_v49 = vld [vmem:[%s6426_s7 + $0xb2c] ss:$16 sps:$4 sm:$0xff]  }
 0x165   : > { %3848 = vmatpush1.bf16.msra.mxu0 %v5928_v50  ;;  %4272 = vmatpush1.bf16.msra.mxu1 %v5931_v51  ;;  %v6012_v50 = vld [vmem:[%s6426_s7 + $0xb20] ss:$16 sps:$4 sm:$0xff]   ;;  %v6015_v51 = vld [vmem:[%s6426_s7 + $0xb28] ss:$16 sps:$4 sm:$0xff]  }
 0x166   : > { %3849 = vmatprep.subr.bf16.mxu0 %v5936_v52  ;;  %4273 = vmatprep.subr.bf16.mxu1 %v5939_v53  ;;  %v6020_v52 = vld [vmem:[%s6426_s7 + $0xb44] ss:$16 sps:$4 sm:$0xff]   ;;  %v6023_v53 = vld [vmem:[%s6426_s7 + $0xb4c] ss:$16 sps:$4 sm:$0xff]  }
 0x169   : > { %3850 = vmatpush1.bf16.msra.mxu0 %v5934_v54  ;;  %4274 = vmatpush1.bf16.msra.mxu1 %v5937_v55  ;;  %v6018_v54 = vld [vmem:[%s6426_s7 + $0xb40] ss:$16 sps:$4 sm:$0xff]   ;;  %v6021_v55 = vld [vmem:[%s6426_s7 + $0xb48] ss:$16 sps:$4 sm:$0xff]  }
 0x16a   : > { %3851 = vmatprep.subr.bf16.mxu0 %v5942_v56  ;;  %4275 = vmatprep.subr.bf16.mxu1 %v5945_v57  ;;  %v6026_v56 = vld [vmem:[%s6426_s7 + $0xb64] ss:$16 sps:$4 sm:$0xff]   ;;  %v6029_v57 = vld [vmem:[%s6426_s7 + $0xb6c] ss:$16 sps:$4 sm:$0xff]  }
 0x16d   : > { %3852 = vmatpush1.bf16.msra.mxu0 %v5940_v59  ;;  %4276 = vmatpush1.bf16.msra.mxu1 %v5943_v61  ;;  %v6024_v59 = vld [vmem:[%s6426_s7 + $0xb60] ss:$16 sps:$4 sm:$0xff]   ;;  %v6027_v61 = vld [vmem:[%s6426_s7 + $0xb68] ss:$16 sps:$4 sm:$0xff]  }
 0x16e   : > { %3853 = vmatprep.subr.bf16.mxu0 %v5948_v62  ;;  %4277 = vmatprep.subr.bf16.mxu1 %v5951_v63  ;;  %v6032_v62 = vld [vmem:[%s6426_s7 + $0xb84] ss:$16 sps:$4 sm:$0xff]   ;;  %v6035_v63 = vld [vmem:[%s6426_s7 + $0xb8c] ss:$16 sps:$4 sm:$0xff]  }
 0x171   : > { %3854 = vmatpush1.bf16.msra.mxu0 %v5946_v58  ;;  %4278 = vmatpush1.bf16.msra.mxu1 %v5949_v60  ;;  %v6030_v58 = vld [vmem:[%s6426_s7 + $0xb80] ss:$16 sps:$4 sm:$0xff]   ;;  %v6033_v60 = vld [vmem:[%s6426_s7 + $0xb88] ss:$16 sps:$4 sm:$0xff]  }
 0x172   : > { %3855 = vmatprep.subr.bf16.mxu0 %v5954_v0  ;;  %4279 = vmatprep.subr.bf16.mxu1 %v5957_v1  ;;  %v6038_v0 = vld [vmem:[%s6426_s7 + $0xba4] ss:$16 sps:$4 sm:$0xff]   ;;  %v6041_v1 = vld [vmem:[%s6426_s7 + $0xbac] ss:$16 sps:$4 sm:$0xff]  }
 0x175   : > { %3856 = vmatpush1.bf16.msra.mxu0 %v5952_v3  ;;  %4280 = vmatpush1.bf16.msra.mxu1 %v5955_v5  ;;  %v6036_v3 = vld [vmem:[%s6426_s7 + $0xba0] ss:$16 sps:$4 sm:$0xff]   ;;  %v6039_v5 = vld [vmem:[%s6426_s7 + $0xba8] ss:$16 sps:$4 sm:$0xff]  }
 0x176   : > { %3878 = vmatprep.subr.bf16.mxu0 %v5960_v6  ;;  %4302 = vmatprep.subr.bf16.mxu1 %v5963_v7  ;;  %v6044_v6 = vld [vmem:[%s6426_s7 + $0xbc4] ss:$16 sps:$4 sm:$0xff]   ;;  %v6047_v7 = vld [vmem:[%s6426_s7 + $0xbcc] ss:$16 sps:$4 sm:$0xff]  }
 0x178   : > { %3858 = vmatmul.mubr.bf16.vlgmr.msra.gmra.mrb[0].mxu0 %v4780_v4  ;;  %4282 = vmatmul.mubr.bf16.vlgmr.msra.gmra.mrb[0].mxu1 %v4780_v4  ;;  %v6050_v4 = vld [vmem:[%s6426_s7 + $0xbe4] ss:$16 sps:$4 sm:$0xff]  }
 0x179   : > { %3879 = vmatpush1.bf16.msra.mxu0 %v5958_v9  ;;  %4303 = vmatpush1.bf16.msra.mxu1 %v5961_v11  ;;  %v6053_v9 = vld [vmem:[%s6426_s7 + $0xbec] ss:$16 sps:$4 sm:$0xff]   ;;  %v6048_v11 = vld [vmem:[%s6426_s7 + $0xbe0] ss:$16 sps:$4 sm:$0xff]  }
 0x17a   : > { %3880 = vmatprep.subr.bf16.mxu0 %v5966_v13  ;;  %4304 = vmatprep.subr.bf16.mxu1 %v5969_v14  ;;  %v6051_v13 = vld [vmem:[%s6426_s7 + $0xbe8] ss:$16 sps:$4 sm:$0xff]   ;;  %v6056_v14 = vld [vmem:[%s6426_s7 + $0xc04] ss:$16 sps:$4 sm:$0xff]  }
 0x17b   : > { %3867 = vmatprep.mubr.bf16.mxu0 %v4797_v17  ;;  %4291 = vmatprep.mubr.bf16.mxu1 %v4797_v17  ;;  %v370_v17 = vld [vmem:[%s6428_s8 + $0xa8] sm:$0xff] }
 0x17d   : > { %3881 = vmatpush1.bf16.msra.mxu0 %v5964_v15  ;;  %4305 = vmatpush1.bf16.msra.mxu1 %v5967_v16  ;;  %v6059_v15 = vld [vmem:[%s6426_s7 + $0xc0c] ss:$16 sps:$4 sm:$0xff]   ;;  %v4782_v16 = vcombine.low %v6814_v18, %v6817_v19  ;;  %v6060_v18 = vld [vmem:[%s6426_s7 + $0xc20] ss:$16 sps:$4 sm:$0xff]   ;;  %v6063_v19 = vld [vmem:[%s6426_s7 + $0xc28] ss:$16 sps:$4 sm:$0xff]  }
 0x17e   : > { %3882 = vmatprep.subr.bf16.mxu0 %v5972_v10  ;;  %4306 = vmatprep.subr.bf16.mxu1 %v5975_v12  ;;  %v378_v10 = vld [vmem:[%s6428_s8 + $0xe8] sm:$0xff]  ;;  %v6054_v12 = vld [vmem:[%s6426_s7 + $0xc00] ss:$16 sps:$4 sm:$0xff]  }
 0x180   : > { %3868 = vmatmul.mubr.bf16.gmra.mrb[4].mxu0 %v4796_v20  ;;  %4292 = vmatmul.mubr.bf16.gmra.mrb[4].mxu1 %v4796_v20  ;;  %v6057_v20 = vld [vmem:[%s6426_s7 + $0xc08] ss:$16 sps:$4 sm:$0xff]  }
 0x181   : > { %3883 = vmatpush1.bf16.msra.mxu0 %v5970_v21  ;;  %4307 = vmatpush1.bf16.msra.mxu1 %v5973_v22  ;;  %v6062_v21 = vld [vmem:[%s6426_s7 + $0xc24] ss:$16 sps:$4 sm:$0xff]   ;;  %v6065_v22 = vld [vmem:[%s6426_s7 + $0xc2c] ss:$16 sps:$4 sm:$0xff]  }
 0x182   : > { %3884 = vmatprep.subr.bf16.mxu0 %v5978_v23  ;;  %4308 = vmatprep.subr.bf16.mxu1 %v5981_v24  ;;  %v4799_v23 = vcombine.high %v370_v17, %v378_v10  ;;  %v6068_v24 = vld [vmem:[%s6426_s7 + $0xc44] ss:$16 sps:$4 sm:$0xff]  }
 0x183   : > { %3910 = vmatprep.mubr.bf16.mxu0 %v4783_v25  ;;  %4334 = vmatprep.mubr.bf16.mxu1 %v4783_v25  ;;  %v6071_v25 = vld [vmem:[%s6426_s7 + $0xc4c] ss:$16 sps:$4 sm:$0xff]  }
 0x185   : > { %3885 = vmatpush1.bf16.msra.mxu0 %v5976_v26  ;;  %4309 = vmatpush1.bf16.msra.mxu1 %v5979_v27  ;;  %v4798_v26 = vcombine.low %v370_v17, %v378_v10  ;;  %v6890_v27 = vld [vmem:[%s6428_s8 + $0x30] sm:$0xff]  ;;  %v6141_v17 = vld [vmem:[%s6426_s7 + $0xdc8] ss:$16 sps:$4 sm:$0xff]  }
 0x186   : > { %3886 = vmatprep.subr.bf16.mxu0 %v5984_v28  ;;  %4310 = vmatprep.subr.bf16.mxu1 %v5987_v29  ;;  %v6893_v28 = vld [vmem:[%s6428_s8 + $0x70] sm:$0xff] }
 0x187   : > { %v6066_v29 = vld [vmem:[%s6426_s7 + $0xc40] ss:$16 sps:$4 sm:$0xff]   ;;  %v6146_v10 = vld [vmem:[%s6426_s7 + $0xde4] ss:$16 sps:$4 sm:$0xff]  }
 0x189   : > { %3887 = vmatpush1.bf16.msra.mxu0 %v5982_v30  ;;  %4311 = vmatpush1.bf16.msra.mxu1 %v5985_v31  ;;  %v6069_v30 = vld [vmem:[%s6426_s7 + $0xc48] ss:$16 sps:$4 sm:$0xff]   ;;  %v6074_v31 = vld [vmem:[%s6426_s7 + $0xc64] ss:$16 sps:$4 sm:$0xff]  }
 0x18a   : > { %3888 = vmatprep.subr.bf16.mxu0 %v5990_v32  ;;  %4312 = vmatprep.subr.bf16.mxu1 %v5993_v33  ;;  %v6077_v32 = vld [vmem:[%s6426_s7 + $0xc6c] ss:$16 sps:$4 sm:$0xff]   ;;  %v4785_v33 = vcombine.high %v6890_v27, %v6893_v28 }
 0x18d   : > { %3889 = vmatpush1.bf16.msra.mxu0 %v5988_v34  ;;  %4313 = vmatpush1.bf16.msra.mxu1 %v5991_v35  ;;  %v6072_v34 = vld [vmem:[%s6426_s7 + $0xc60] ss:$16 sps:$4 sm:$0xff]   ;;  %v6075_v35 = vld [vmem:[%s6426_s7 + $0xc68] ss:$16 sps:$4 sm:$0xff]  }
 0x18e   : > { %3890 = vmatprep.subr.bf16.mxu0 %v5996_v36  ;;  %4314 = vmatprep.subr.bf16.mxu1 %v5999_v37  ;;  %v6080_v36 = vld [vmem:[%s6426_s7 + $0xc84] ss:$16 sps:$4 sm:$0xff]   ;;  %v6083_v37 = vld [vmem:[%s6426_s7 + $0xc8c] ss:$16 sps:$4 sm:$0xff]  }
 0x191   : > { %3891 = vmatpush1.bf16.msra.mxu0 %v5994_v38  ;;  %4315 = vmatpush1.bf16.msra.mxu1 %v5997_v39  ;;  %v6078_v38 = vld [vmem:[%s6426_s7 + $0xc80] ss:$16 sps:$4 sm:$0xff]   ;;  %v6081_v39 = vld [vmem:[%s6426_s7 + $0xc88] ss:$16 sps:$4 sm:$0xff]  }
 0x192   : > { %3892 = vmatprep.subr.bf16.mxu0 %v6002_v40  ;;  %4316 = vmatprep.subr.bf16.mxu1 %v6005_v41  ;;  %v6086_v40 = vld [vmem:[%s6426_s7 + $0xca4] ss:$16 sps:$4 sm:$0xff]   ;;  %v6089_v41 = vld [vmem:[%s6426_s7 + $0xcac] ss:$16 sps:$4 sm:$0xff]  }
 0x195   : > { %3893 = vmatpush1.bf16.msra.mxu0 %v6000_v42  ;;  %4317 = vmatpush1.bf16.msra.mxu1 %v6003_v43  ;;  %v6084_v42 = vld [vmem:[%s6426_s7 + $0xca0] ss:$16 sps:$4 sm:$0xff]   ;;  %v6087_v43 = vld [vmem:[%s6426_s7 + $0xca8] ss:$16 sps:$4 sm:$0xff]  }
 0x196   : > { %3894 = vmatprep.subr.bf16.mxu0 %v6008_v44  ;;  %4318 = vmatprep.subr.bf16.mxu1 %v6011_v45  ;;  %v6092_v44 = vld [vmem:[%s6426_s7 + $0xcc4] ss:$16 sps:$4 sm:$0xff]   ;;  %v6095_v45 = vld [vmem:[%s6426_s7 + $0xccc] ss:$16 sps:$4 sm:$0xff]  }
 0x199   : > { %3895 = vmatpush1.bf16.msra.mxu0 %v6006_v46  ;;  %4319 = vmatpush1.bf16.msra.mxu1 %v6009_v47  ;;  %v6090_v46 = vld [vmem:[%s6426_s7 + $0xcc0] ss:$16 sps:$4 sm:$0xff]   ;;  %v6093_v47 = vld [vmem:[%s6426_s7 + $0xcc8] ss:$16 sps:$4 sm:$0xff]  }
 0x19a   : > { %3896 = vmatprep.subr.bf16.mxu0 %v6014_v48  ;;  %4320 = vmatprep.subr.bf16.mxu1 %v6017_v49  ;;  %v6098_v48 = vld [vmem:[%s6426_s7 + $0xce4] ss:$16 sps:$4 sm:$0xff]   ;;  %v6101_v49 = vld [vmem:[%s6426_s7 + $0xcec] ss:$16 sps:$4 sm:$0xff]  }
 0x19d   : > { %3897 = vmatpush1.bf16.msra.mxu0 %v6012_v50  ;;  %4321 = vmatpush1.bf16.msra.mxu1 %v6015_v51  ;;  %v6096_v50 = vld [vmem:[%s6426_s7 + $0xce0] ss:$16 sps:$4 sm:$0xff]   ;;  %v6099_v51 = vld [vmem:[%s6426_s7 + $0xce8] ss:$16 sps:$4 sm:$0xff]  }
 0x19e   : > { %3898 = vmatprep.subr.bf16.mxu0 %v6020_v52  ;;  %4322 = vmatprep.subr.bf16.mxu1 %v6023_v53  ;;  %v6104_v52 = vld [vmem:[%s6426_s7 + $0xd04] ss:$16 sps:$4 sm:$0xff]   ;;  %v6107_v53 = vld [vmem:[%s6426_s7 + $0xd0c] ss:$16 sps:$4 sm:$0xff]  }
 0x1a1   : > { %3899 = vmatpush1.bf16.msra.mxu0 %v6018_v54  ;;  %4323 = vmatpush1.bf16.msra.mxu1 %v6021_v55  ;;  %v6102_v54 = vld [vmem:[%s6426_s7 + $0xd00] ss:$16 sps:$4 sm:$0xff]   ;;  %v6105_v55 = vld [vmem:[%s6426_s7 + $0xd08] ss:$16 sps:$4 sm:$0xff]  }
 0x1a2   : > { %3900 = vmatprep.subr.bf16.mxu0 %v6026_v56  ;;  %4324 = vmatprep.subr.bf16.mxu1 %v6029_v57  ;;  %v6110_v56 = vld [vmem:[%s6426_s7 + $0xd24] ss:$16 sps:$4 sm:$0xff]   ;;  %v6113_v57 = vld [vmem:[%s6426_s7 + $0xd2c] ss:$16 sps:$4 sm:$0xff]  }
 0x1a5   : > { %3901 = vmatpush1.bf16.msra.mxu0 %v6024_v59  ;;  %4325 = vmatpush1.bf16.msra.mxu1 %v6027_v61  ;;  %v6108_v59 = vld [vmem:[%s6426_s7 + $0xd20] ss:$16 sps:$4 sm:$0xff]   ;;  %v6111_v61 = vld [vmem:[%s6426_s7 + $0xd28] ss:$16 sps:$4 sm:$0xff]  }
 0x1a6   : > { %3902 = vmatprep.subr.bf16.mxu0 %v6032_v62  ;;  %4326 = vmatprep.subr.bf16.mxu1 %v6035_v63  ;;  %v6116_v62 = vld [vmem:[%s6426_s7 + $0xd44] ss:$16 sps:$4 sm:$0xff]   ;;  %v6119_v63 = vld [vmem:[%s6426_s7 + $0xd4c] ss:$16 sps:$4 sm:$0xff]  }
 0x1a9   : > { %3903 = vmatpush1.bf16.msra.mxu0 %v6030_v58  ;;  %4327 = vmatpush1.bf16.msra.mxu1 %v6033_v60  ;;  %v6114_v58 = vld [vmem:[%s6426_s7 + $0xd40] ss:$16 sps:$4 sm:$0xff]   ;;  %v6117_v60 = vld [vmem:[%s6426_s7 + $0xd48] ss:$16 sps:$4 sm:$0xff]  }
 0x1aa   : > { %3904 = vmatprep.subr.bf16.mxu0 %v6038_v0  ;;  %4328 = vmatprep.subr.bf16.mxu1 %v6041_v1  ;;  %v6122_v0 = vld [vmem:[%s6426_s7 + $0xd64] ss:$16 sps:$4 sm:$0xff]   ;;  %v6125_v1 = vld [vmem:[%s6426_s7 + $0xd6c] ss:$16 sps:$4 sm:$0xff]  }
 0x1ad   : > { %3905 = vmatpush1.bf16.msra.mxu0 %v6036_v3  ;;  %4329 = vmatpush1.bf16.msra.mxu1 %v6039_v5  ;;  %v6120_v3 = vld [vmem:[%s6426_s7 + $0xd60] ss:$16 sps:$4 sm:$0xff]   ;;  %v6123_v5 = vld [vmem:[%s6426_s7 + $0xd68] ss:$16 sps:$4 sm:$0xff]  }
 0x1ae   : > { %3906 = vmatprep.subr.bf16.mxu0 %v6044_v6  ;;  %4330 = vmatprep.subr.bf16.mxu1 %v6047_v7  ;;  %v6128_v6 = vld [vmem:[%s6426_s7 + $0xd84] ss:$16 sps:$4 sm:$0xff]   ;;  %v6131_v7 = vld [vmem:[%s6426_s7 + $0xd8c] ss:$16 sps:$4 sm:$0xff]  }
 0x1b1   : > { %3907 = vmatpush1.bf16.msra.mxu0 %v6042_v8  ;;  %4331 = vmatpush1.bf16.msra.mxu1 %v6045_v2  ;;  %v6126_v8 = vld [vmem:[%s6426_s7 + $0xd80] ss:$16 sps:$4 sm:$0xff]   ;;  %v6129_v2 = vld [vmem:[%s6426_s7 + $0xd88] ss:$16 sps:$4 sm:$0xff]  }
 0x1b2   : > { %3908 = vmatprep.subr.bf16.mxu0 %v6050_v4  ;;  %4332 = vmatprep.subr.bf16.mxu1 %v6053_v9  ;;  %v6134_v4 = vld [vmem:[%s6426_s7 + $0xda4] ss:$16 sps:$4 sm:$0xff]   ;;  %v6137_v9 = vld [vmem:[%s6426_s7 + $0xdac] ss:$16 sps:$4 sm:$0xff]  }
 0x1b5   : > { %3909 = vmatpush1.bf16.msra.mxu0 %v6048_v11  ;;  %4333 = vmatpush1.bf16.msra.mxu1 %v6051_v13  ;;  %v6132_v11 = vld [vmem:[%s6426_s7 + $0xda0] ss:$16 sps:$4 sm:$0xff]   ;;  %v6135_v13 = vld [vmem:[%s6426_s7 + $0xda8] ss:$16 sps:$4 sm:$0xff]  }
 0x1b6   : > { %3931 = vmatprep.subr.bf16.mxu0 %v6056_v14  ;;  %4355 = vmatprep.subr.bf16.mxu1 %v6059_v15  ;;  %v6140_v14 = vld [vmem:[%s6426_s7 + $0xdc4] ss:$16 sps:$4 sm:$0xff]   ;;  %v6143_v15 = vld [vmem:[%s6426_s7 + $0xdcc] ss:$16 sps:$4 sm:$0xff]  }
 0x1b8   : > { %3911 = vmatmul.mubr.bf16.vlgmr.msra.gmra.mrb[0].mxu0 %v4782_v16  ;;  %4335 = vmatmul.mubr.bf16.vlgmr.msra.gmra.mrb[0].mxu1 %v4782_v16  ;;  %v6138_v16 = vld [vmem:[%s6426_s7 + $0xdc0] ss:$16 sps:$4 sm:$0xff]  }
 0x1b9   : > { %3932 = vmatpush1.bf16.msra.mxu0 %v6054_v12  ;;  %4356 = vmatpush1.bf16.msra.mxu1 %v6057_v20  ;;  %v6149_v12 = vld [vmem:[%s6426_s7 + $0xdec] ss:$16 sps:$4 sm:$0xff]   ;;  %v6144_v20 = vld [vmem:[%s6426_s7 + $0xde0] ss:$16 sps:$4 sm:$0xff]  }
 0x1ba   : > { %3933 = vmatprep.subr.bf16.mxu0 %v6062_v21  ;;  %4357 = vmatprep.subr.bf16.mxu1 %v6065_v22  ;;  %v6147_v21 = vld [vmem:[%s6426_s7 + $0xde8] ss:$16 sps:$4 sm:$0xff]   ;;  %v6152_v22 = vld [vmem:[%s6426_s7 + $0xe04] ss:$16 sps:$4 sm:$0xff]  }
 0x1bb   : > { %3920 = vmatprep.mubr.bf16.mxu0 %v4799_v23  ;;  %4344 = vmatprep.mubr.bf16.mxu1 %v4799_v23  ;;  %v6155_v23 = vld [vmem:[%s6426_s7 + $0xe0c] ss:$16 sps:$4 sm:$0xff]  }
 0x1bd   : > { %3934 = vmatpush1.bf16.msra.mxu0 %v6060_v18  ;;  %4358 = vmatpush1.bf16.msra.mxu1 %v6063_v19  ;;  %v4784_v18 = vcombine.low %v6890_v27, %v6893_v28  ;;  %v371_v19 = vld [vmem:[%s6428_s8 + $0xb0] sm:$0xff]  ;;  %v6159_v28 = vld [vmem:[%s6426_s7 + $0xe28] ss:$16 sps:$4 sm:$0xff]  }
 0x1be   : > { %3935 = vmatprep.subr.bf16.mxu0 %v6068_v24  ;;  %4359 = vmatprep.subr.bf16.mxu1 %v6071_v25  ;;  %v379_v24 = vld [vmem:[%s6428_s8 + $0xf0] sm:$0xff] }
 0x1bf   : > { %v6150_v25 = vld [vmem:[%s6426_s7 + $0xe00] ss:$16 sps:$4 sm:$0xff]  }
 0x1c0   : > { %3921 = vmatmul.mubr.bf16.gmra.mrb[4].mxu0 %v4798_v26  ;;  %4345 = vmatmul.mubr.bf16.gmra.mrb[4].mxu1 %v4798_v26  ;;  %v6153_v26 = vld [vmem:[%s6426_s7 + $0xe08] ss:$16 sps:$4 sm:$0xff]   ;;  %v6156_v27 = vld [vmem:[%s6426_s7 + $0xe20] ss:$16 sps:$4 sm:$0xff]  }
 0x1c1   : > { %3936 = vmatpush1.bf16.msra.mxu0 %v6066_v29  ;;  %4360 = vmatpush1.bf16.msra.mxu1 %v6069_v30  ;;  %v6158_v29 = vld [vmem:[%s6426_s7 + $0xe24] ss:$16 sps:$4 sm:$0xff]   ;;  %v6161_v30 = vld [vmem:[%s6426_s7 + $0xe2c] ss:$16 sps:$4 sm:$0xff]  }
 0x1c2   : > { %3937 = vmatprep.subr.bf16.mxu0 %v6074_v31  ;;  %4361 = vmatprep.subr.bf16.mxu1 %v6077_v32  ;;  %v4801_v31 = vcombine.high %v371_v19, %v379_v24  ;;  %v6164_v32 = vld [vmem:[%s6426_s7 + $0xe44] ss:$16 sps:$4 sm:$0xff]  }
 0x1c3   : > { %3963 = vmatprep.mubr.bf16.mxu0 %v4785_v33  ;;  %4387 = vmatprep.mubr.bf16.mxu1 %v4785_v33  ;;  %v6167_v33 = vld [vmem:[%s6426_s7 + $0xe4c] ss:$16 sps:$4 sm:$0xff]  }
 0x1c5   : > { %3938 = vmatpush1.bf16.msra.mxu0 %v6072_v34  ;;  %4362 = vmatpush1.bf16.msra.mxu1 %v6075_v35  ;;  %v4800_v34 = vcombine.low %v371_v19, %v379_v24  ;;  %v6966_v35 = vld [vmem:[%s6428_s8 + $0x38] sm:$0xff]  ;;  %v6242_v24 = vld [vmem:[%s6426_s7 + $0xfe4] ss:$16 sps:$4 sm:$0xff]  }
 0x1c6   : > { %3939 = vmatprep.subr.bf16.mxu0 %v6080_v36  ;;  %4363 = vmatprep.subr.bf16.mxu1 %v6083_v37  ;;  %v6969_v36 = vld [vmem:[%s6428_s8 + $0x78] sm:$0xff]  ;;  %v6162_v37 = vld [vmem:[%s6426_s7 + $0xe40] ss:$16 sps:$4 sm:$0xff]  }
 0x1c7   : > { %v6237_v19 = vld [vmem:[%s6426_s7 + $0xfc8] ss:$16 sps:$4 sm:$0xff]  }
 0x1c9   : > { %3940 = vmatpush1.bf16.msra.mxu0 %v6078_v38  ;;  %4364 = vmatpush1.bf16.msra.mxu1 %v6081_v39  ;;  %v6165_v38 = vld [vmem:[%s6426_s7 + $0xe48] ss:$16 sps:$4 sm:$0xff]   ;;  %v6170_v39 = vld [vmem:[%s6426_s7 + $0xe64] ss:$16 sps:$4 sm:$0xff]  }
 0x1ca   : > { %3941 = vmatprep.subr.bf16.mxu0 %v6086_v40  ;;  %4365 = vmatprep.subr.bf16.mxu1 %v6089_v41  ;;  %v6173_v40 = vld [vmem:[%s6426_s7 + $0xe6c] ss:$16 sps:$4 sm:$0xff]   ;;  %v4787_v41 = vcombine.high %v6966_v35, %v6969_v36 }
 0x1cd   : > { %3942 = vmatpush1.bf16.msra.mxu0 %v6084_v42  ;;  %4366 = vmatpush1.bf16.msra.mxu1 %v6087_v43  ;;  %v6168_v42 = vld [vmem:[%s6426_s7 + $0xe60] ss:$16 sps:$4 sm:$0xff]   ;;  %v6171_v43 = vld [vmem:[%s6426_s7 + $0xe68] ss:$16 sps:$4 sm:$0xff]  }
 0x1ce   : > { %3943 = vmatprep.subr.bf16.mxu0 %v6092_v44  ;;  %4367 = vmatprep.subr.bf16.mxu1 %v6095_v45  ;;  %v6176_v44 = vld [vmem:[%s6426_s7 + $0xe84] ss:$16 sps:$4 sm:$0xff]   ;;  %v6179_v45 = vld [vmem:[%s6426_s7 + $0xe8c] ss:$16 sps:$4 sm:$0xff]  }
 0x1d1   : > { %3944 = vmatpush1.bf16.msra.mxu0 %v6090_v46  ;;  %4368 = vmatpush1.bf16.msra.mxu1 %v6093_v47  ;;  %v6174_v46 = vld [vmem:[%s6426_s7 + $0xe80] ss:$16 sps:$4 sm:$0xff]   ;;  %v6177_v47 = vld [vmem:[%s6426_s7 + $0xe88] ss:$16 sps:$4 sm:$0xff]  }
 0x1d2   : > { %3945 = vmatprep.subr.bf16.mxu0 %v6098_v48  ;;  %4369 = vmatprep.subr.bf16.mxu1 %v6101_v49  ;;  %v6182_v48 = vld [vmem:[%s6426_s7 + $0xea4] ss:$16 sps:$4 sm:$0xff]   ;;  %v6185_v49 = vld [vmem:[%s6426_s7 + $0xeac] ss:$16 sps:$4 sm:$0xff]  }
 0x1d5   : > { %3946 = vmatpush1.bf16.msra.mxu0 %v6096_v50  ;;  %4370 = vmatpush1.bf16.msra.mxu1 %v6099_v51  ;;  %v6180_v50 = vld [vmem:[%s6426_s7 + $0xea0] ss:$16 sps:$4 sm:$0xff]   ;;  %v6183_v51 = vld [vmem:[%s6426_s7 + $0xea8] ss:$16 sps:$4 sm:$0xff]  }
 0x1d6   : > { %3947 = vmatprep.subr.bf16.mxu0 %v6104_v52  ;;  %4371 = vmatprep.subr.bf16.mxu1 %v6107_v53  ;;  %v6188_v52 = vld [vmem:[%s6426_s7 + $0xec4] ss:$16 sps:$4 sm:$0xff]   ;;  %v6191_v53 = vld [vmem:[%s6426_s7 + $0xecc] ss:$16 sps:$4 sm:$0xff]  }
 0x1d9   : > { %3948 = vmatpush1.bf16.msra.mxu0 %v6102_v54  ;;  %4372 = vmatpush1.bf16.msra.mxu1 %v6105_v55  ;;  %v6186_v54 = vld [vmem:[%s6426_s7 + $0xec0] ss:$16 sps:$4 sm:$0xff]   ;;  %v6189_v55 = vld [vmem:[%s6426_s7 + $0xec8] ss:$16 sps:$4 sm:$0xff]  }
 0x1da   : > { %3949 = vmatprep.subr.bf16.mxu0 %v6110_v56  ;;  %4373 = vmatprep.subr.bf16.mxu1 %v6113_v57  ;;  %v6194_v56 = vld [vmem:[%s6426_s7 + $0xee4] ss:$16 sps:$4 sm:$0xff]   ;;  %v6197_v57 = vld [vmem:[%s6426_s7 + $0xeec] ss:$16 sps:$4 sm:$0xff]  }
 0x1dd   : > { %3950 = vmatpush1.bf16.msra.mxu0 %v6108_v59  ;;  %4374 = vmatpush1.bf16.msra.mxu1 %v6111_v61  ;;  %v6192_v59 = vld [vmem:[%s6426_s7 + $0xee0] ss:$16 sps:$4 sm:$0xff]   ;;  %v6195_v61 = vld [vmem:[%s6426_s7 + $0xee8] ss:$16 sps:$4 sm:$0xff]  }
 0x1de   : > { %3951 = vmatprep.subr.bf16.mxu0 %v6116_v62  ;;  %4375 = vmatprep.subr.bf16.mxu1 %v6119_v63  ;;  %v6200_v62 = vld [vmem:[%s6426_s7 + $0xf04] ss:$16 sps:$4 sm:$0xff]   ;;  %v6203_v63 = vld [vmem:[%s6426_s7 + $0xf0c] ss:$16 sps:$4 sm:$0xff]  }
 0x1e1   : > { %3952 = vmatpush1.bf16.msra.mxu0 %v6114_v58  ;;  %4376 = vmatpush1.bf16.msra.mxu1 %v6117_v60  ;;  %v6198_v58 = vld [vmem:[%s6426_s7 + $0xf00] ss:$16 sps:$4 sm:$0xff]   ;;  %v6201_v60 = vld [vmem:[%s6426_s7 + $0xf08] ss:$16 sps:$4 sm:$0xff]  }
 0x1e2   : > { %3953 = vmatprep.subr.bf16.mxu0 %v6122_v0  ;;  %4377 = vmatprep.subr.bf16.mxu1 %v6125_v1  ;;  %v6206_v0 = vld [vmem:[%s6426_s7 + $0xf24] ss:$16 sps:$4 sm:$0xff]   ;;  %v6209_v1 = vld [vmem:[%s6426_s7 + $0xf2c] ss:$16 sps:$4 sm:$0xff]  }
 0x1e5   : > { %3954 = vmatpush1.bf16.msra.mxu0 %v6120_v3  ;;  %4378 = vmatpush1.bf16.msra.mxu1 %v6123_v5  ;;  %v6204_v3 = vld [vmem:[%s6426_s7 + $0xf20] ss:$16 sps:$4 sm:$0xff]   ;;  %v6207_v5 = vld [vmem:[%s6426_s7 + $0xf28] ss:$16 sps:$4 sm:$0xff]  }
 0x1e6   : > { %3955 = vmatprep.subr.bf16.mxu0 %v6128_v6  ;;  %4379 = vmatprep.subr.bf16.mxu1 %v6131_v7  ;;  %v6212_v6 = vld [vmem:[%s6426_s7 + $0xf44] ss:$16 sps:$4 sm:$0xff]   ;;  %v6215_v7 = vld [vmem:[%s6426_s7 + $0xf4c] ss:$16 sps:$4 sm:$0xff]  }
 0x1e9   : > { %3956 = vmatpush1.bf16.msra.mxu0 %v6126_v8  ;;  %4380 = vmatpush1.bf16.msra.mxu1 %v6129_v2  ;;  %v6210_v8 = vld [vmem:[%s6426_s7 + $0xf40] ss:$16 sps:$4 sm:$0xff]   ;;  %v6213_v2 = vld [vmem:[%s6426_s7 + $0xf48] ss:$16 sps:$4 sm:$0xff]  }
 0x1ea   : > { %3957 = vmatprep.subr.bf16.mxu0 %v6134_v4  ;;  %4381 = vmatprep.subr.bf16.mxu1 %v6137_v9  ;;  %v6218_v4 = vld [vmem:[%s6426_s7 + $0xf64] ss:$16 sps:$4 sm:$0xff]   ;;  %v6221_v9 = vld [vmem:[%s6426_s7 + $0xf6c] ss:$16 sps:$4 sm:$0xff]  }
 0x1ed   : > { %3958 = vmatpush1.bf16.msra.mxu0 %v6132_v11  ;;  %4382 = vmatpush1.bf16.msra.mxu1 %v6135_v13  ;;  %v6216_v11 = vld [vmem:[%s6426_s7 + $0xf60] ss:$16 sps:$4 sm:$0xff]   ;;  %v6219_v13 = vld [vmem:[%s6426_s7 + $0xf68] ss:$16 sps:$4 sm:$0xff]  }
 0x1ee   : > { %3959 = vmatprep.subr.bf16.mxu0 %v6140_v14  ;;  %4383 = vmatprep.subr.bf16.mxu1 %v6143_v15  ;;  %v6224_v14 = vld [vmem:[%s6426_s7 + $0xf84] ss:$16 sps:$4 sm:$0xff]   ;;  %v6227_v15 = vld [vmem:[%s6426_s7 + $0xf8c] ss:$16 sps:$4 sm:$0xff]  }
 0x1f1   : > { %3960 = vmatpush1.bf16.msra.mxu0 %v6138_v16  ;;  %4384 = vmatpush1.bf16.msra.mxu1 %v6141_v17  ;;  %v6222_v16 = vld [vmem:[%s6426_s7 + $0xf80] ss:$16 sps:$4 sm:$0xff]   ;;  %v6225_v17 = vld [vmem:[%s6426_s7 + $0xf88] ss:$16 sps:$4 sm:$0xff]  }
 0x1f2   : > { %3961 = vmatprep.subr.bf16.mxu0 %v6146_v10  ;;  %4385 = vmatprep.subr.bf16.mxu1 %v6149_v12  ;;  %v6230_v10 = vld [vmem:[%s6426_s7 + $0xfa4] ss:$16 sps:$4 sm:$0xff]   ;;  %v6233_v12 = vld [vmem:[%s6426_s7 + $0xfac] ss:$16 sps:$4 sm:$0xff]  }
 0x1f5   : > { %3962 = vmatpush1.bf16.msra.mxu0 %v6144_v20  ;;  %4386 = vmatpush1.bf16.msra.mxu1 %v6147_v21  ;;  %v6228_v20 = vld [vmem:[%s6426_s7 + $0xfa0] ss:$16 sps:$4 sm:$0xff]   ;;  %v6231_v21 = vld [vmem:[%s6426_s7 + $0xfa8] ss:$16 sps:$4 sm:$0xff]  }
 0x1f6   : > { %3984 = vmatprep.subr.bf16.mxu0 %v6152_v22  ;;  %4408 = vmatprep.subr.bf16.mxu1 %v6155_v23  ;;  %v6236_v22 = vld [vmem:[%s6426_s7 + $0xfc4] ss:$16 sps:$4 sm:$0xff]   ;;  %v6239_v23 = vld [vmem:[%s6426_s7 + $0xfcc] ss:$16 sps:$4 sm:$0xff]  }
 0x1f8   : > { %3964 = vmatmul.mubr.bf16.vlgmr.msra.gmra.mrb[0].mxu0 %v4784_v18  ;;  %4388 = vmatmul.mubr.bf16.vlgmr.msra.gmra.mrb[0].mxu1 %v4784_v18  ;;  %v6234_v18 = vld [vmem:[%s6426_s7 + $0xfc0] ss:$16 sps:$4 sm:$0xff]  }
 0x1f9   : > { %3985 = vmatpush1.bf16.msra.mxu0 %v6150_v25  ;;  %4409 = vmatpush1.bf16.msra.mxu1 %v6153_v26  ;;  %v6245_v25 = vld [vmem:[%s6426_s7 + $0xfec] ss:$16 sps:$4 sm:$0xff]   ;;  %v6240_v26 = vld [vmem:[%s6426_s7 + $0xfe0] ss:$16 sps:$4 sm:$0xff]  }
 0x1fa   : > { %3986 = vmatprep.subr.bf16.mxu0 %v6158_v29  ;;  %4410 = vmatprep.subr.bf16.mxu1 %v6161_v30  ;;  %v6243_v29 = vld [vmem:[%s6426_s7 + $0xfe8] ss:$16 sps:$4 sm:$0xff]  }
 0x1fb   : > { %3973 = vmatprep.mubr.bf16.mxu0 %v4801_v31  ;;  %4397 = vmatprep.mubr.bf16.mxu1 %v4801_v31  ;;  %v372_v30 = vld [vmem:[%s6428_s8 + $0xb8] sm:$0xff] }
 0x1fc   : > { %v380_v31 = vld [vmem:[%s6428_s8 + $0xf8] sm:$0xff] }
 0x1fd   : > { %3987 = vmatpush1.bf16.msra.mxu0 %v6156_v27  ;;  %4411 = vmatpush1.bf16.msra.mxu1 %v6159_v28  ;;  %v4786_v27 = vcombine.low %v6966_v35, %v6969_v36  ;;  %v4803_v28 = vcombine.high %v372_v30, %v380_v31 }
 0x1fe   : > { %3988 = vmatprep.subr.bf16.mxu0 %v6164_v32  ;;  %4412 = vmatprep.subr.bf16.mxu1 %v6167_v33  ;;  %v4802_v32 = vcombine.low %v372_v30, %v380_v31  ;;  %v333_v33 = vld [vmem:[#allocation2] sm:$0xff] }
 0x200   : > { %3974 = vmatmul.mubr.bf16.gmra.mrb[4].mxu0 %v4800_v34  ;;  %4398 = vmatmul.mubr.bf16.gmra.mrb[4].mxu1 %v4800_v34  ;;  %v335_v34 = vld [vmem:[#allocation2 + $0x10] sm:$0xff] }
 0x201   : > { %3989 = vmatpush1.bf16.msra.mxu0 %v6162_v37  ;;  %4413 = vmatpush1.bf16.msra.mxu1 %v6165_v38  ;;  %v334_v37 = vld [vmem:[#allocation2 + $0x8] sm:$0xff]  ;;  %v336_v38 = vld [vmem:[#allocation2 + $0x18] sm:$0xff] }
 0x202   : > { %3990 = vmatprep.subr.bf16.mxu0 %v6170_v39  ;;  %4414 = vmatprep.subr.bf16.mxu1 %v6173_v40 }
 0x203   : > { %4016 = vmatprep.mubr.bf16.mxu0 %v4787_v41  ;;  %4440 = vmatprep.mubr.bf16.mxu1 %v4787_v41  ;;  %v337_v41 = vld [vmem:[#allocation2 + $0x20] sm:$0xff] }
 0x205   : > { %3991 = vmatpush1.bf16.msra.mxu0 %v6168_v42  ;;  %4415 = vmatpush1.bf16.msra.mxu1 %v6171_v43  ;;  %v339_v42 = vld [vmem:[#allocation2 + $0x30] sm:$0xff] }
 0x206   : > { %3992 = vmatprep.subr.bf16.mxu0 %v6176_v44  ;;  %4416 = vmatprep.subr.bf16.mxu1 %v6179_v45  ;;  %v338_v45 = vld [vmem:[#allocation2 + $0x28] sm:$0xff] }
 0x209   : > { %3993 = vmatpush1.bf16.msra.mxu0 %v6174_v46  ;;  %4417 = vmatpush1.bf16.msra.mxu1 %v6177_v47  ;;  %v340_v46 = vld [vmem:[#allocation2 + $0x38] sm:$0xff] }
 0x20a   : > { %3994 = vmatprep.subr.bf16.mxu0 %v6182_v48  ;;  %4418 = vmatprep.subr.bf16.mxu1 %v6185_v49 }
 0x20d   : > { %3995 = vmatpush1.bf16.msra.mxu0 %v6180_v50  ;;  %4419 = vmatpush1.bf16.msra.mxu1 %v6183_v51 }
 0x20e   : > { %3996 = vmatprep.subr.bf16.mxu0 %v6188_v52  ;;  %4420 = vmatprep.subr.bf16.mxu1 %v6191_v53 }
 0x211   : > { %3997 = vmatpush1.bf16.msra.mxu0 %v6186_v54  ;;  %4421 = vmatpush1.bf16.msra.mxu1 %v6189_v55 }
 0x212   : > { %3998 = vmatprep.subr.bf16.mxu0 %v6194_v56  ;;  %4422 = vmatprep.subr.bf16.mxu1 %v6197_v57  ;;  %v341_v57 = vld [vmem:[#allocation2 + $0x40] sm:$0xff] }
 0x215   : > { %3999 = vmatpush1.bf16.msra.mxu0 %v6192_v59  ;;  %4423 = vmatpush1.bf16.msra.mxu1 %v6195_v61  ;;  %v343_v59 = vld [vmem:[#allocation2 + $0x50] sm:$0xff]  ;;  %v342_v61 = vld [vmem:[#allocation2 + $0x48] sm:$0xff] }
 0x216   : > { %4000 = vmatprep.subr.bf16.mxu0 %v6200_v62  ;;  %4424 = vmatprep.subr.bf16.mxu1 %v6203_v63  ;;  %v344_v62 = vld [vmem:[#allocation2 + $0x58] sm:$0xff] }
 0x219   : > { %4001 = vmatpush1.bf16.msra.mxu0 %v6198_v58  ;;  %4425 = vmatpush1.bf16.msra.mxu1 %v6201_v60  ;;  %v345_v60 = vld [vmem:[#allocation2 + $0x60] sm:$0xff] }
 0x21a   : > { %4002 = vmatprep.subr.bf16.mxu0 %v6206_v0  ;;  %4426 = vmatprep.subr.bf16.mxu1 %v6209_v1  ;;  %v347_v0 = vld [vmem:[#allocation2 + $0x70] sm:$0xff] }
 0x21d   : > { %4003 = vmatpush1.bf16.msra.mxu0 %v6204_v3  ;;  %4427 = vmatpush1.bf16.msra.mxu1 %v6207_v5 }
 0x21e   : > { %4004 = vmatprep.subr.bf16.mxu0 %v6212_v6  ;;  %4428 = vmatprep.subr.bf16.mxu1 %v6215_v7  ;;  %v346_v7 = vld [vmem:[#allocation2 + $0x68] sm:$0xff] }
 0x221   : > { %4005 = vmatpush1.bf16.msra.mxu0 %v6210_v8  ;;  %4429 = vmatpush1.bf16.msra.mxu1 %v6213_v2  ;;  %v348_v8 = vld [vmem:[#allocation2 + $0x78] sm:$0xff] }
 0x222   : > { %4006 = vmatprep.subr.bf16.mxu0 %v6218_v4  ;;  %4430 = vmatprep.subr.bf16.mxu1 %v6221_v9 }
 0x225   : > { %4007 = vmatpush1.bf16.msra.mxu0 %v6216_v11  ;;  %4431 = vmatpush1.bf16.msra.mxu1 %v6219_v13 }
 0x226   : > { %4008 = vmatprep.subr.bf16.mxu0 %v6224_v14  ;;  %4432 = vmatprep.subr.bf16.mxu1 %v6227_v15 }
 0x229   : > { %4009 = vmatpush1.bf16.msra.mxu0 %v6222_v16  ;;  %4433 = vmatpush1.bf16.msra.mxu1 %v6225_v17 }
 0x22a   : > { %4010 = vmatprep.subr.bf16.mxu0 %v6230_v10  ;;  %4434 = vmatprep.subr.bf16.mxu1 %v6233_v12 }
 0x22d   : > { %4011 = vmatpush1.bf16.msra.mxu0 %v6228_v20  ;;  %4435 = vmatpush1.bf16.msra.mxu1 %v6231_v21 }
 0x22e   : > { %4012 = vmatprep.subr.bf16.mxu0 %v6236_v22  ;;  %4436 = vmatprep.subr.bf16.mxu1 %v6239_v23  ;;  %v4631_v22 = vlaneseq (!%p5316_p11) }
 0x231   : > { %4013 = vmatpush1.bf16.msra.mxu0 %v6234_v18  ;;  %4437 = vmatpush1.bf16.msra.mxu1 %v6237_v19 }
 0x232   : > { %4014 = vmatprep.subr.bf16.mxu0 %v6242_v24  ;;  %4438 = vmatprep.subr.bf16.mxu1 %v6245_v25 }
 0x235   : > { %4015 = vmatpush1.bf16.msra.mxu0 %v6240_v26  ;;  %4439 = vmatpush1.bf16.msra.mxu1 %v6243_v29  ;;  %v6287_v29 = vmov (!%p5316_p11), 1983009808  }
 0x236   : > { %v7041_v30 = vunpack.c.l.s4 (!%p5316_p11), %v6287_v29 }
 0x238   : > { %4017 = vmatmul.mubr.bf16.vlgmr.msra.gmra.mrb[0].mxu0 %v4786_v27  ;;  %4441 = vmatmul.mubr.bf16.vlgmr.msra.gmra.mrb[0].mxu1 %v4786_v27 }
 0x239   : > { %4026 = vmatprep.mubr.bf16.mxu0 %v4803_v28  ;;  %4450 = vmatprep.mubr.bf16.mxu1 %v4803_v28 }
 0x240   : > { %4027 = vmatmul.mubr.bf16.gmra.mrb[4].mxu0 %v4802_v32  ;;  %4451 = vmatmul.mubr.bf16.gmra.mrb[4].mxu1 %v4802_v32 }
 0x30b   : > { %v4018_v39 = vpop.f32.mrb[0].mxu0  ;;  %v4442_v40 = vpop.f32.mrb[0].mxu1 }
 0x30c   : > { %v4461_v43 = vadd.f32 %v4018_v39, %v333_v33  ;;  %v4463_v35 = vadd.f32 %v4442_v40, %v335_v34  ;;  %v4020_v36 = vpop.f32.mrb[1].mxu0  ;;  %v4444_v44 = vpop.f32.mrb[1].mxu1 }
 0x30d   : > { %v4462_v47 = vadd.f32 %v4020_v36, %v334_v37  ;;  %v4464_v48 = vadd.f32 %v4444_v44, %v336_v38  ;;  %v4022_v49 = vpop.f32.mrb[2].mxu0  ;;  %v4446_v50 = vpop.f32.mrb[2].mxu1 }
 0x30e   : > { %4477 = vst [vmem:[#allocation2] sm:$0xff] %v4461_v43  ;;  %4479 = vst [vmem:[#allocation2 + $0x10] sm:$0xff] %v4463_v35  ;;  %v4465_v51 = vadd.f32 %v4022_v49, %v337_v41  ;;  %v4467_v52 = vadd.f32 %v4446_v50, %v339_v42  ;;  %v4024_v53 = vpop.f32.mrb[3].mxu0  ;;  %v4448_v54 = vpop.f32.mrb[3].mxu1 }
 0x30f   : > { %4478 = vst [vmem:[#allocation2 + $0x8] sm:$0xff] %v4462_v47  ;;  %4480 = vst [vmem:[#allocation2 + $0x18] sm:$0xff] %v4464_v48  ;;  %v4466_v55 = vadd.f32 %v4024_v53, %v338_v45  ;;  %v4468_v56 = vadd.f32 %v4448_v54, %v340_v46 }
 0x310   : > { %4481 = vst [vmem:[#allocation2 + $0x20] sm:$0xff] %v4465_v51  ;;  %4483 = vst [vmem:[#allocation2 + $0x30] sm:$0xff] %v4467_v52 }
 0x311   : > { %4482 = vst [vmem:[#allocation2 + $0x28] sm:$0xff] %v4466_v55  ;;  %4484 = vst [vmem:[#allocation2 + $0x38] sm:$0xff] %v4468_v56 }
 0x313   : > { %v4028_v63 = vpop.f32.mrb[4].mxu0  ;;  %v4452_v58 = vpop.f32.mrb[4].mxu1  ;;  %4496 = sbr.rel (%p5316_p11) target bundleno = 828 (0x33c), region = 59 }
 0x314   : > { %v4469_v1 = vadd.f32 %v4028_v63, %v341_v57  ;;  %v4471_v3 = vadd.f32 %v4452_v58, %v343_v59  ;;  %v4030_v5 = vpop.f32.mrb[5].mxu0  ;;  %v4454_v6 = vpop.f32.mrb[5].mxu1 }
 0x315   : > { %v4470_v2 = vadd.f32 %v4030_v5, %v342_v61  ;;  %v4472_v4 = vadd.f32 %v4454_v6, %v344_v62  ;;  %v4032_v9 = vpop.f32.mrb[6].mxu0  ;;  %v4456_v11 = vpop.f32.mrb[6].mxu1  ;;  %v4497_v12 = vld [vmem:[#allocation2] sm:$0xff] (!%p5316_p11)  ;;  %v4499_v21 = vld [vmem:[#allocation2 + $0x10] sm:$0xff] (!%p5316_p11) }
 0x316   : > { %4485 = vst [vmem:[#allocation2 + $0x40] sm:$0xff] %v4469_v1  ;;  %4487 = vst [vmem:[#allocation2 + $0x50] sm:$0xff] %v4471_v3  ;;  %v4473_v13 = vadd.f32 %v4032_v9, %v345_v60  ;;  %v4475_v14 = vadd.f32 %v4456_v11, %v347_v0  ;;  %v4034_v15 = vpop.f32.mrb[7].mxu0  ;;  %v4458_v16 = vpop.f32.mrb[7].mxu1  ;;  %v4498_v20 = vld [vmem:[#allocation2 + $0x8] sm:$0xff] (!%p5316_p11)  ;;  %v4565_v23 = vmul.f32 (!%p5316_p11), %v4497_v12, %v4497_v12  ;;  %v4500_v24 = vld [vmem:[#allocation2 + $0x18] sm:$0xff] (!%p5316_p11) }
 0x317   : > { %4486 = vst [vmem:[#allocation2 + $0x48] sm:$0xff] %v4470_v2  ;;  %4488 = vst [vmem:[#allocation2 + $0x58] sm:$0xff] %v4472_v4  ;;  %v4474_v17 = vadd.f32 %v4034_v15, %v346_v7  ;;  %v4476_v10 = vadd.f32 %v4458_v16, %v348_v8  ;;  %v4566_v18 = vmul.f32 (!%p5316_p11), %v4498_v20, %v4498_v20  ;;  %v4501_v25 = vld [vmem:[#allocation2 + $0x20] sm:$0xff] (!%p5316_p11)  ;;  %v4503_v33 = vld [vmem:[#allocation2 + $0x30] sm:$0xff] (!%p5316_p11) }
 0x318   : > { %4489 = vst [vmem:[#allocation2 + $0x60] sm:$0xff] %v4473_v13  ;;  %4491 = vst [vmem:[#allocation2 + $0x70] sm:$0xff] %v4475_v14  ;;  %v4567_v19 = vmul.f32 (!%p5316_p11), %v4499_v21, %v4499_v21  ;;  %v4502_v26 = vld [vmem:[#allocation2 + $0x28] sm:$0xff] (!%p5316_p11)  ;;  %v4568_v31 = vmul.f32 (!%p5316_p11), %v4500_v24, %v4500_v24  ;;  %v4529_v27 = vadd.f32 (!%p5316_p11), %v4501_v25, %v4497_v12  ;;  %v4504_v34 = vld [vmem:[#allocation2 + $0x38] sm:$0xff] (!%p5316_p11) }
 0x319   : > { %4490 = vst [vmem:[#allocation2 + $0x68] sm:$0xff] %v4474_v17  ;;  %4492 = vst [vmem:[#allocation2 + $0x78] sm:$0xff] %v4476_v10  ;;  %v4569_v28 = vmul.f32 (!%p5316_p11), %v4501_v25, %v4501_v25  ;;  %v4538_v32 = vadd.f32 (!%p5316_p11), %v4502_v26, %v4498_v20  ;;  %v4570_v38 = vmul.f32 (!%p5316_p11), %v4502_v26, %v4502_v26 }
 0x31a   : > { %4513 = vst [vmem:[%s7108_s2] sm:$0xff] %v4497_v12  ;;  %4514 = vst [vmem:[%s7108_s2 + $0x8] sm:$0xff] %v4498_v20  ;;  %v4547_v39 = vadd.f32 %v4503_v33, %v4499_v21  ;;  %v4571_v40 = vmul.f32 %v4503_v33, %v4503_v33  ;;  %v4556_v41 = vadd.f32 %v4504_v34, %v4500_v24 }
 0x31b   : > { %4515 = vst [vmem:[%s7108_s2 + $0x10] sm:$0xff] %v4499_v21  ;;  %4516 = vst [vmem:[%s7108_s2 + $0x18] sm:$0xff] %v4500_v24  ;;  %v4581_v36 = vadd.f32 %v4569_v28, %v4565_v23  ;;  %v4572_v44 = vmul.f32 %v4504_v34, %v4504_v34  ;;  %v4590_v50 = vadd.f32 %v4570_v38, %v4566_v18 }
 0x31c   : > { %4517 = vst [vmem:[%s7108_s2 + $0x20] sm:$0xff] %v4501_v25  ;;  %4518 = vst [vmem:[%s7108_s2 + $0x28] sm:$0xff] %v4502_v26  ;;  %v4599_v51 = vadd.f32 %v4571_v40, %v4567_v19 }
 0x31d   : > { %v4505_v37 = vld [vmem:[#allocation2 + $0x40] sm:$0xff]  ;;  %4519 = vst [vmem:[%s7108_s2 + $0x30] sm:$0xff] %v4503_v33  ;;  %4520 = vst [vmem:[%s7108_s2 + $0x38] sm:$0xff] %v4504_v34  ;;  %v4507_v43 = vld [vmem:[#allocation2 + $0x50] sm:$0xff]  ;;  %v4608_v55 = vadd.f32 %v4572_v44, %v4568_v31 }
 0x31e   : > { %4521 = vst [vmem:[%s7108_s2 + $0x40] sm:$0xff] %v4505_v37  ;;  %v4506_v42 = vld [vmem:[#allocation2 + $0x48] sm:$0xff]  ;;  %v4508_v35 = vld [vmem:[#allocation2 + $0x58] sm:$0xff]  ;;  %v4530_v45 = vadd.f32 %v4529_v27, %v4505_v37  ;;  %v4573_v46 = vmul.f32 %v4505_v37, %v4505_v37  ;;  %4523 = vst [vmem:[%s7108_s2 + $0x50] sm:$0xff] %v4507_v43  ;;  %v4548_v57 = vadd.f32 %v4547_v39, %v4507_v43 }
 0x31f   : > { %4522 = vst [vmem:[%s7108_s2 + $0x48] sm:$0xff] %v4506_v42  ;;  %4524 = vst [vmem:[%s7108_s2 + $0x58] sm:$0xff] %v4508_v35  ;;  %v4509_v47 = vld [vmem:[#allocation2 + $0x60] sm:$0xff]  ;;  %v4511_v49 = vld [vmem:[#allocation2 + $0x70] sm:$0xff]  ;;  %v4539_v52 = vadd.f32 %v4538_v32, %v4506_v42  ;;  %v4574_v53 = vmul.f32 %v4506_v42, %v4506_v42  ;;  %v4575_v59 = vmul.f32 %v4507_v43, %v4507_v43 }
 0x320   : > { %v4510_v48 = vld [vmem:[#allocation2 + $0x68] sm:$0xff]  ;;  %4525 = vst [vmem:[%s7108_s2 + $0x60] sm:$0xff] %v4509_v47  ;;  %4527 = vst [vmem:[%s7108_s2 + $0x70] sm:$0xff] %v4511_v49  ;;  %v4512_v54 = vld [vmem:[#allocation2 + $0x78] sm:$0xff]  ;;  %v4582_v56 = vadd.f32 %v4581_v36, %v4573_v46  ;;  %v4557_v62 = vadd.f32 %v4556_v41, %v4508_v35  ;;  %v4576_v63 = vmul.f32 %v4508_v35, %v4508_v35 }
 0x321   : > { %4526 = vst [vmem:[%s7108_s2 + $0x68] sm:$0xff] %v4510_v48  ;;  %4528 = vst [vmem:[%s7108_s2 + $0x78] sm:$0xff] %v4512_v54  ;;  %v4591_v61 = vadd.f32 %v4590_v50, %v4574_v53  ;;  %v4531_v58 = vadd.f32 %v4530_v45, %v4509_v47  ;;  %v4600_v60 = vadd.f32 %v4599_v51, %v4575_v59 }
 0x322   : > { %v4577_v0 = vmul.f32 %v4509_v47, %v4509_v47  ;;  %v4540_v1 = vadd.f32 %v4539_v52, %v4510_v48  ;;  %v4578_v3 = vmul.f32 %v4510_v48, %v4510_v48  ;;  %v4609_v5 = vadd.f32 %v4608_v55, %v4576_v63 }
 0x323   : > { %v4532_v6 = vrot.slane %v4531_v58, 4  ;;  %v4549_v7 = vadd.f32 %v4548_v57, %v4511_v49  ;;  %v4579_v8 = vmul.f32 %v4511_v49, %v4511_v49  ;;  %v4558_v11 = vadd.f32 %v4557_v62, %v4512_v54 }
 0x324   : > { %v4583_v2 = vadd.f32 %v4582_v56, %v4577_v0  ;;  %v4541_v4 = vrot.slane %v4540_v1, 4  ;;  %v4592_v9 = vadd.f32 %v4591_v61, %v4578_v3  ;;  %v4580_v16 = vmul.f32 %v4512_v54, %v4512_v54 }
 0x325   : > { %v4533_v13 = vadd.f32 %v4532_v6, %v4531_v58  ;;  %v4550_v14 = vrot.slane %v4549_v7, 4  ;;  %v4601_v15 = vadd.f32 %v4600_v60, %v4579_v8  ;;  %v4559_v20 = vrot.slane %v4558_v11, 4 }
 0x326   : > { %v4584_v17 = vrot.slane %v4583_v2, 4  ;;  %v4542_v10 = vadd.f32 %v4541_v4, %v4540_v1  ;;  %v4593_v12 = vrot.slane %v4592_v9, 4  ;;  %v4610_v19 = vadd.f32 %v4609_v5, %v4580_v16 }
 0x327   : > { %v4534_v21 = vrot.slane %v4533_v13, 2  ;;  %v4551_v23 = vadd.f32 %v4550_v14, %v4549_v7  ;;  %v4602_v18 = vrot.slane %v4601_v15, 4  ;;  %v4560_v29 = vadd.f32 %v4559_v20, %v4558_v11 }
 0x328   : > { %v4585_v24 = vadd.f32 %v4584_v17, %v4583_v2  ;;  %v4543_v25 = vrot.slane %v4542_v10, 2  ;;  %v4594_v26 = vadd.f32 %v4593_v12, %v4592_v9  ;;  %v4611_v32 = vrot.slane %v4610_v19, 4 }
 0x329   : > { %v4535_v31 = vadd.f32 %v4534_v21, %v4533_v13  ;;  %v4552_v27 = vrot.slane %v4551_v23, 2  ;;  %v4603_v28 = vadd.f32 %v4602_v18, %v4601_v15  ;;  %v4561_v38 = vrot.slane %v4560_v29, 2 }
 0x32a   : > { %v4586_v33 = vrot.slane %v4585_v24, 2  ;;  %v4544_v34 = vadd.f32 %v4543_v25, %v4542_v10  ;;  %v4595_v37 = vrot.slane %v4594_v26, 2  ;;  %v4612_v42 = vadd.f32 %v4611_v32, %v4610_v19 }
 0x32b   : > { %v4536_v39 = vrot.slane %v4535_v31, 1  ;;  %v4553_v40 = vadd.f32 %v4552_v27, %v4551_v23  ;;  %v4604_v41 = vrot.slane %v4603_v28, 2  ;;  %v4562_v44 = vadd.f32 %v4561_v38, %v4560_v29 }
 0x32c   : > { %v4587_v43 = vadd.f32 %v4586_v33, %v4585_v24  ;;  %v4545_v35 = vrot.slane %v4544_v34, 1  ;;  %v4596_v36 = vadd.f32 %v4595_v37, %v4594_v26  ;;  %v4613_v47 = vrot.slane %v4612_v42, 2 }
 0x32d   : > { %v4554_v45 = vrot.slane %v4553_v40, 1  ;;  %v4605_v46 = vadd.f32 %v4604_v41, %v4603_v28  ;;  %v4537_v48 = vadd.f32 %v4536_v39, %v4535_v31  ;;  %v4563_v49 = vrot.slane %v4562_v44, 1 }
 0x32e   : > { %v4546_v50 = vadd.f32 %v4545_v35, %v4544_v34  ;;  %v4588_v51 = vrot.slane %v4587_v43, 1  ;;  %v4597_v52 = vrot.slane %v4596_v36, 1  ;;  %v4614_v53 = vadd.f32 %v4613_v47, %v4612_v42 }
 0x32f   : > { %v4555_v54 = vadd.f32 %v4554_v45, %v4553_v40  ;;  %v4606_v55 = vrot.slane %v4605_v46, 1  ;;  %v4630_v56 = vunpack.c.0.s8 %v7041_v30  ;;  %v4632_v61 = vshrl.u32 %v4631_v22, 7 }
 0x330   : > { %v4589_v57 = vadd.f32 %v4588_v51, %v4587_v43  ;;  %v4598_v59 = vadd.f32 %v4597_v52, %v4596_v36  ;;  %v4564_v62 = vadd.f32 %v4563_v49, %v4562_v44  ;;  %v4615_v58 = vrot.slane %v4614_v53, 1 }
 0x331   : > { %v4607_v63 = vadd.f32 %v4606_v55, %v4605_v46  ;;  %v4633_v1 = vsub.s32 %v4630_v56, %v4632_v61 }
 0x332   : > { %v4618_v60 = vsel %vm4617_vm0, %v4537_v48, %v4589_v57  ;;  %v4619_v0 = vsel %vm4617_vm0, %v4546_v50, %v4598_v59  ;;  %v4616_v3 = vadd.f32 %v4615_v58, %v4614_v53 }
 0x333   : > { %v4620_v5 = vsel %vm4617_vm0, %v4555_v54, %v4607_v63  ;;  %v4626_v6 = vcombine.low %v4618_v60, %v4619_v0 }
 0x334   : > { %v4621_v7 = vsel %vm4617_vm0, %v4564_v62, %v4616_v3 }
 0x335   : > { %v4627_v8 = vcombine.low %v4620_v5, %v4621_v7  ;;  %v4634_v30 = vrot.slane %v4626_v6, %v4633_v1 }
 0x337   : > { %v4641_v2 = vrot.slane %v4627_v8, %v4633_v1 }
 0x339   : > { %v4642_v4 = vcombine.low %v4634_v30, %v4641_v2 }
 0x33b   : > { %4644 = vst [vmem:[%s7109_s3] sm:$0xff] %v4642_v4 }
 0x33c PF: > { %s14_s16 = sadd.s32 1, %s6284_s16   ;;  %s7110_s12 = smov %s6272_s13 }
 0x33d   : > { %p11_p12 = scmp.ge.s32.totalorder %s14_s16, 4   ;;  %s7111_s13 = smov %s6343_s20 }
 0x33e   : > { %s7112_s14 = smov %s6280_s15  ;;  %s7113_s15 = smov %s7115_s17 }
 0x33f   :  { %13 = sbr.rel (!%p11_p12) target bundleno = 3 (0x3), region = 109 }

</bundles_post_ra>
